<compile_context>
chip_gen: v7x
topology: tpu7x:2x2x1
jax: 0.10.0
libtpu: 0.0.40
codegen_flags: <defaults>
</compile_context>

<pallas_src>
import math
from functools import partial

import jax
import jax.numpy as jnp
from jax.experimental import pallas as pl
from jax.experimental.pallas import tpu as pltpu

LN_EPS = 1e-5
_NEG = -1e9
_GELU_C = 0.7978845608028654  # sqrt(2/pi)


# --------------------------- Pallas kernel ---------------------------

def _decoder_kernel(nhead,
                    x_ref, c_ref, m_ref, bias_ref,
                    ln0_ref, wdd_ref, wkv_ref, l1w_ref, l2w_ref,
                    bD_ref, bKV_ref, l1b_ref,
                    o_ref):
    Bb, Lx, D = x_ref.shape
    S = c_ref.shape[1]
    M = m_ref.shape[1]
    H = nhead
    hd = D // H
    scale = 1.0 / math.sqrt(hd)

    x3 = x_ref[...]            # (Bb, Lx, D) f32  merged [query ; content] slab
    c3 = c_ref[...]            # (Bb, S,  D) f32  content (self-attn K/V source)
    bias = bias_ref[...]       # (Bb, Lx, S) f32  additive self-attn bias
    ln0 = ln0_ref[...]         # (2,  Lx, D) f32  per-row gamma/beta (norm_q | norm_c)
    bD = bD_ref[...]           # (11, D)  f32 rows: [saq_b, sao_b, caq_b, cao_b, l2_b,
                               #                     normc_g, normc_b, n1_g, n1_b, n2_g, n2_b]
    bKV = bKV_ref[...]         # (2, 2D)  f32 rows: [sa_kv_b, ca_kv_b]
    l1_b = l1b_ref[...]        # (1, DFF) f32

    def standardize(v):                          # LN statistics over last dim, f32
        mu = jnp.mean(v, axis=-1, keepdims=True)
        vc = v - mu
        var = jnp.mean(vc * vc, axis=-1, keepdims=True)
        return vc * jax.lax.rsqrt(var + LN_EPS)

    def layernorm(v2, g_row):                    # affine rows g_row/g_row+1 of bD
        return standardize(v2) * bD[g_row:g_row + 1, :] + bD[g_row + 1:g_row + 2, :]

    def gelu(v):                                 # tanh approximation (EUP)
        return 0.5 * v * (1.0 + jnp.tanh(_GELU_C * (v + 0.044715 * (v * v * v))))

    def matmul(v2, w):                           # bf16 operands, f32 accumulation
        return jnp.dot(v2.astype(jnp.bfloat16), w, preferred_element_type=jnp.float32)

    def mha(q2, k3, v3, b3, wo, bo):
        # q2: (Bb*Lx, D) projected queries; k3/v3: (Bb, Lk, D) bf16; b3: (Bb, Lx, Lk)|None
        q3 = q2.reshape(Bb, Lx, D).astype(jnp.bfloat16)
        ctx = []
        for h in range(H):                       # static, small head count
            sl = slice(h * hd, (h + 1) * hd)
            s = jnp.einsum('bqd,bkd->bqk', q3[:, :, sl], k3[:, :, sl],
                           preferred_element_type=jnp.float32) * scale
            if b3 is not None:
                s = s + b3
            s = s - jnp.max(s, axis=-1, keepdims=True)
            e = jnp.exp(s)
            p = e * pl.reciprocal(jnp.sum(e, axis=-1, keepdims=True), approx=True)
            ctx.append(jnp.einsum('bqk,bkd->bqd', p.astype(jnp.bfloat16), v3[:, :, sl],
                                  preferred_element_type=jnp.float32))
        ctx2 = jnp.concatenate(ctx, axis=-1).reshape(Bb * Lx, D)
        return matmul(ctx2, wo) + bo

    x2 = x3.reshape(Bb * Lx, D)

    # LN0 of the slab with row-dependent affine (= norm_q on query rows, norm_c on content rows)
    xn2 = (standardize(x3) * ln0[0][None] + ln0[1][None]).reshape(Bb * Lx, D)

    # ----- self-attention: K/V from norm_c(content), shared by both streams -----
    c_norm = layernorm(c3.reshape(Bb * S, D), 5)
    kv = matmul(c_norm, wkv_ref[0]) + bKV[0:1, :]            # (Bb*S, 2D)
    k_sa = kv[:, :D].reshape(Bb, S, D).astype(jnp.bfloat16)
    v_sa = kv[:, D:].reshape(Bb, S, D).astype(jnp.bfloat16)
    q_sa = matmul(xn2, wdd_ref[0]) + bD[0:1, :]              # (Bb*Lx, D)
    x2 = x2 + mha(q_sa, k_sa, v_sa, bias, wdd_ref[1], bD[1:2, :])

    # ----- cross-attention over memory (no mask) -----
    x1 = layernorm(x2, 7)                                    # norm1
    m2 = m_ref[...].reshape(Bb * M, D)                       # bf16 already
    kvm = matmul(m2, wkv_ref[1]) + bKV[1:2, :]               # (Bb*M, 2D)
    k_ca = kvm[:, :D].reshape(Bb, M, D).astype(jnp.bfloat16)
    v_ca = kvm[:, D:].reshape(Bb, M, D).astype(jnp.bfloat16)
    q_ca = matmul(x1, wdd_ref[2]) + bD[2:3, :]
    x2 = x2 + mha(q_ca, k_ca, v_ca, None, wdd_ref[3], bD[3:4, :])

    # ----- feed-forward -----
    xf = layernorm(x2, 9)                                    # norm2
    h1 = gelu(matmul(xf, l1w_ref[...]) + l1_b)
    x2 = x2 + matmul(h1, l2w_ref[...]) + bD[4:5, :]

    o_ref[...] = x2.reshape(Bb, Lx, D)


# --------------------------- wrapper helpers ---------------------------

def _prepare_params(params):
    """Split/transpose to (in, out), cast matmul weights to bf16, pack small vectors."""
    bf = lambda a: jnp.asarray(a, jnp.bfloat16)
    f32 = lambda a: jnp.asarray(a, jnp.float32)
    D = params["sa_out_w"].shape[0]
    sa_in_w, ca_in_w = params["sa_in_w"], params["ca_in_w"]
    wdd = jnp.stack([bf(sa_in_w[:D].T), bf(params["sa_out_w"].T),
                     bf(ca_in_w[:D].T), bf(params["ca_out_w"].T)])          # (4, D, D)
    wkv = jnp.stack([bf(sa_in_w[D:].T), bf(ca_in_w[D:].T)])                 # (2, D, 2D)
    l1_w = bf(params["l1_w"].T)                                             # (D, DFF)
    l2_w = bf(params["l2_w"].T)                                             # (DFF, D)
    bD = jnp.stack([f32(params["sa_in_b"][:D]), f32(params["sa_out_b"]),
                    f32(params["ca_in_b"][:D]), f32(params["ca_out_b"]),
                    f32(params["l2_b"]),
                    f32(params["normc_g"]), f32(params["normc_b"]),
                    f32(params["norm1_g"]), f32(params["norm1_b"]),
                    f32(params["norm2_g"]), f32(params["norm2_b"])])        # (11, D)
    bKV = jnp.stack([f32(params["sa_in_b"][D:]), f32(params["ca_in_b"][D:])])  # (2, 2D)
    l1_b = f32(params["l1_b"]).reshape(1, -1)                               # (1, DFF)
    return wdd, wkv, l1_w, l2_w, bD, bKV, l1_b


def _chip_config():
    """Generation-aware VMEM / grid heuristics (safe defaults if detection fails)."""
    kind = ""
    try:
        kind = jax.devices()[0].device_kind.lower()
    except Exception:
        pass
    if "v7" in kind or "7x" in kind:
        # 64 MiB physical VMEM, 2 TensorCores -> keep >=2 grid steps, modest budget.
        return {"act_budget": 24 << 20, "vmem_limit": 48 << 20, "two_steps": True}
    if "v5" in kind or "v6" in kind:
        # 128 MiB physical VMEM, single TensorCore -> fewer, fatter grid steps.
        return {"act_budget": 64 << 20, "vmem_limit": 100 << 20, "two_steps": False}
    return {"act_budget": 24 << 20, "vmem_limit": None, "two_steps": False}


def _pick_block_batch(B, per_b_bytes, act_budget_bytes, two_steps):
    cap = max(1, int(act_budget_bytes // max(per_b_bytes, 1)))
    if two_steps and B >= 2:
        cap = min(cap, max(1, B // 2))     # >=2 grid steps so both TCs get work
    cap = min(cap, B, 64)
    bb = 1
    for d in range(1, cap + 1):
        if B % d == 0:
            bb = d
    return bb


def _mask_bias(mask, shape):
    if mask is None:
        return jnp.zeros(shape, jnp.float32)
    mask = jnp.asarray(mask)
    if mask.dtype == jnp.bool_:
        return jnp.where(mask, _NEG, 0.0).astype(jnp.float32)
    return mask.astype(jnp.float32)


# --------------------------- public entry point ---------------------------

def decoder_layer_soft(params, query, content, memory,
                       query_mask=None, content_mask=None,
                       content_key_padding_mask=None, *, nhead,
                       update_content=True):
    B, T, D = query.shape
    S = content.shape[1]
    M = memory.shape[1]
    assert D % nhead == 0

    if content_key_padding_mask is None:
        kpm_bias = jnp.zeros((B, 1, S), jnp.float32)
    else:
        kpm_bias = jnp.where(jnp.asarray(content_key_padding_mask), _NEG, 0.0)
        kpm_bias = kpm_bias.astype(jnp.float32).reshape(B, 1, S)
    q_bias = _mask_bias(query_mask, (T, S))[None, :, :] + kpm_bias          # (B, T, S)

    normq_g = params["normq_g"].astype(jnp.float32)
    normq_b = params["normq_b"].astype(jnp.float32)
    normc_g = params["normc_g"].astype(jnp.float32)
    normc_b = params["normc_b"].astype(jnp.float32)

    if update_content:
        # Merge the two streams into one slab: rows [0:T] = query, rows [T:T+S] = content.
        c_bias = _mask_bias(content_mask, (S, S))[None, :, :] + kpm_bias    # (B, S, S)
        x_in = jnp.concatenate([query, content], axis=1).astype(jnp.float32)
        bias = jnp.concatenate([q_bias, c_bias], axis=1)                    # (B, T+S, S)
        g_rows = jnp.concatenate([jnp.tile(normq_g[None], (T, 1)),
                                  jnp.tile(normc_g[None], (S, 1))], axis=0)
        b_rows = jnp.concatenate([jnp.tile(normq_b[None], (T, 1)),
                                  jnp.tile(normc_b[None], (S, 1))], axis=0)
    else:
        # Last decoder layer: skip the content stream entirely (query rows only).
        x_in = query.astype(jnp.float32)
        bias = q_bias
        g_rows = jnp.tile(normq_g[None], (T, 1))
        b_rows = jnp.tile(normq_b[None], (T, 1))
    Lx = x_in.shape[1]
    ln0 = jnp.stack([g_rows, b_rows])                                       # (2, Lx, D)

    wdd, wkv, l1_w, l2_w, bD, bKV, l1_b = _prepare_params(params)
    DFF = l1_w.shape[1]

    content_f = content.astype(jnp.float32)
    memory_bf = memory.astype(jnp.bfloat16)   # only feeds matmuls -> lossless vs. in-kernel cast

    cfg = _chip_config()
    weight_bytes = sum(int(w.size) * w.dtype.itemsize for w in (wdd, wkv, l1_w, l2_w))
    # Largest live f32 temporaries per batch element (slab, projections, FFN hidden,
    # K/V, one head's score block) plus pipeline input buffers; 1.5x safety.
    per_b = 4 * (Lx * (6 * D + 2 * DFF) + (S + M) * 4 * D + Lx * (S + M) * 2)
    per_b = int(per_b * 1.5)
    act_budget = max(cfg["act_budget"] - 2 * weight_bytes, 1 << 20)
    Bb = _pick_block_batch(B, per_b, act_budget, cfg["two_steps"])
    grid = (B // Bb,)

    blocked_args = [x_in, content_f, memory_bf, bias]
    const_args = [ln0, wdd, wkv, l1_w, l2_w, bD, bKV, l1_b]

    def bspec(a):
        nz = a.ndim - 1
        return pl.BlockSpec((Bb,) + tuple(a.shape[1:]),
                            lambda g, _n=nz: (g,) + (0,) * _n)

    def make_fn(single_buffer_weights):
        kw = dict(pipeline_mode=pl.Buffered(1)) if single_buffer_weights else {}

        def cspec(a):
            nd = a.ndim
            return pl.BlockSpec(tuple(a.shape), lambda g, _n=nd: (0,) * _n, **kw)

        return pl.pallas_call(
            partial(_decoder_kernel, nhead),
            grid=grid,
            in_specs=[bspec(a) for a in blocked_args] + [cspec(a) for a in const_args],
            out_specs=pl.BlockSpec((Bb, Lx, D), lambda g: (g, 0, 0)),
            out_shape=jax.ShapeDtypeStruct((B, Lx, D), jnp.float32),
            compiler_params=pltpu.CompilerParams(
                dimension_semantics=("parallel",),
                vmem_limit_bytes=cfg["vmem_limit"]),
        )

    args = blocked_args + const_args
    try:
        out = make_fn(True)(*args)      # single-buffered constant weights
    except Exception:
        out = make_fn(False)(*args)     # fallback: default double-buffering

    if update_content:
        return out[:, :T], out[:, T:]
    return out, content


# --------------------------- synthetic parameters (PyTorch layout) ---------------------------

def init_params(key, d_model, dff):
    ks = iter(jax.random.split(key, 16))

    def w(shape, scale=0.05):
        return (scale * jax.random.normal(next(ks), shape)).astype(jnp.float32)

    ones = lambda n: jnp.ones((n,), jnp.float32)
    zeros = lambda n: jnp.zeros((n,), jnp.float32)
    return {
        "sa_in_w": w((3 * d_model, d_model)), "sa_in_b": w((3 * d_model,)),
        "sa_out_w": w((d_model, d_model)), "sa_out_b": w((d_model,)),
        "ca_in_w": w((3 * d_model, d_model)), "ca_in_b": w((3 * d_model,)),
        "ca_out_w": w((d_model, d_model)), "ca_out_b": w((d_model,)),
        "l1_w": w((dff, d_model)), "l1_b": w((dff,)),
        "l2_w": w((d_model, dff)), "l2_b": w((d_model,)),
        "normq_g": ones(d_model), "normq_b": zeros(d_model),
        "normc_g": ones(d_model), "normc_b": zeros(d_model),
        "norm1_g": ones(d_model), "norm1_b": zeros(d_model),
        "norm2_g": ones(d_model), "norm2_b": zeros(d_model),
    }


# --------------------------- pure-JAX f32 reference (exact-erf GELU) ---------------------------

def _ln_ref(x, g, b, eps=LN_EPS):
    mu = jnp.mean(x, axis=-1, keepdims=True)
    xc = x - mu
    var = jnp.mean(xc * xc, axis=-1, keepdims=True)
    return xc * jax.lax.rsqrt(var + eps) * g + b


def _gelu_exact(x):
    return 0.5 * x * (1.0 + jax.scipy.special.erf(x * (1.0 / math.sqrt(2.0))))


def _mha_ref(q, kv, in_w, in_b, out_w, out_b, bias, nhead):
    B, Lq, D = q.shape
    Lk = kv.shape[1]
    hd = D // nhead
    qp = q @ in_w[:D].T + in_b[:D]
    kp = kv @ in_w[D:2 * D].T + in_b[D:2 * D]
    vp = kv @ in_w[2 * D:].T + in_b[2 * D:]
    qh = qp.reshape(B, Lq, nhead, hd).transpose(0, 2, 1, 3)
    kh = kp.reshape(B, Lk, nhead, hd).transpose(0, 2, 1, 3)
    vh = vp.reshape(B, Lk, nhead, hd).transpose(0, 2, 1, 3)
    s = jnp.einsum('bhqd,bhkd->bhqk', qh, kh) / math.sqrt(hd)
    if bias is not None:
        s = s + bias[:, None]
    p = jax.nn.softmax(s, axis=-1)
    ctx = jnp.einsum('bhqk,bhkd->bhqd', p, vh).transpose(0, 2, 1, 3).reshape(B, Lq, D)
    return ctx @ out_w.T + out_b


def reference(params, query, content, memory, query_mask, content_mask, kpm, nhead):
    kpm_bias = jnp.where(kpm, _NEG, 0.0)[:, None, :]
    q_bias = jnp.where(query_mask, _NEG, 0.0)[None] + kpm_bias
    c_bias = jnp.where(content_mask, _NEG, 0.0)[None] + kpm_bias
    q_norm = _ln_ref(query, params["normq_g"], params["normq_b"])
    c_norm = _ln_ref(content, params["normc_g"], params["normc_b"])

    def stream(tgt, tgt_norm, tgt_kv, bias):
        sa = _mha_ref(tgt_norm, tgt_kv, params["sa_in_w"], params["sa_in_b"],
                      params["sa_out_w"], params["sa_out_b"], bias, nhead)
        t = tgt + sa
        ca = _mha_ref(_ln_ref(t, params["norm1_g"], params["norm1_b"]), memory,
                      params["ca_in_w"], params["ca_in_b"],
                      params["ca_out_w"], params["ca_out_b"], None, nhead)
        t = t + ca
        x = _ln_ref(t, params["norm2_g"], params["norm2_b"])
        ff = _gelu_exact(x @ params["l1_w"].T + params["l1_b"]) @ params["l2_w"].T + params["l2_b"]
        return t + ff

    q_out = stream(query, q_norm, c_norm, q_bias)
    c_out = stream(content, c_norm, c_norm, c_bias)
    return q_out, c_out


if __name__ == "__main__":
    B, T, S, M, D, NHEAD, DFF = 2, 8, 8, 16, 32, 4, 64

    key = jax.random.PRNGKey(0)
    k1, k2, k3, kp = jax.random.split(key, 4)
    query = jax.random.normal(k1, (B, T, D), jnp.float32)
    content = jax.random.normal(k2, (B, S, D), jnp.float32)
    memory = jax.random.normal(k3, (B, M, D), jnp.float32)
    content_kpm = jnp.zeros((B, S), jnp.bool_).at[:, -1].set(True)
    query_mask = jnp.triu(jnp.ones((T, S), jnp.bool_), k=1)
    content_mask = jnp.triu(jnp.ones((S, S), jnp.bool_), k=1)

    params = init_params(kp, D, DFF)

    q_out, c_out = decoder_layer_soft(params, query, content, memory,
                                      query_mask, content_mask, content_kpm,
                                      nhead=NHEAD, update_content=True)
    q_out, c_out = jax.block_until_ready((q_out, c_out))

    ref_q, ref_c = reference(params, query, content, memory,
                             query_mask, content_mask, content_kpm, NHEAD)

    assert q_out.shape == (B, T, D) and c_out.shape == (B, S, D)
    # bf16 MXU operands + tanh-GELU + approx reciprocal vs. f32/exact-erf reference.
    assert bool(jnp.allclose(q_out, ref_q, atol=2e-2, rtol=2e-2))
    assert bool(jnp.allclose(c_out, ref_c, atol=2e-2, rtol=2e-2))

    # update_content=False path (last decoder layer): content stream is skipped entirely.
    q_only, c_same = decoder_layer_soft(params, query, content, memory,
                                        query_mask, content_mask, content_kpm,
                                        nhead=NHEAD, update_content=False)
    q_only = jax.block_until_ready(q_only)
    assert bool(jnp.allclose(q_only, ref_q, atol=2e-2, rtol=2e-2))
    assert bool(jnp.array_equal(c_same, content))

    print("KERNEL_OK")
</pallas_src>

<mosaic_0001>
module attributes {stable_mosaic.version = 11 : i64} {
  func.func @_decoder_kernel(%arg0: i32, %arg1: memref<2x16x32xf32, #tpu.memory_space<vmem>>, %arg2: memref<2x8x32xf32, #tpu.memory_space<vmem>>, %arg3: memref<2x16x32xbf16, #tpu.memory_space<vmem>>, %arg4: memref<2x16x8xf32, #tpu.memory_space<vmem>>, %arg5: memref<2x16x32xf32, #tpu.memory_space<vmem>>, %arg6: memref<4x32x32xbf16, #tpu.memory_space<vmem>>, %arg7: memref<2x32x64xbf16, #tpu.memory_space<vmem>>, %arg8: memref<32x64xbf16, #tpu.memory_space<vmem>>, %arg9: memref<64x32xbf16, #tpu.memory_space<vmem>>, %arg10: memref<11x32xf32, #tpu.memory_space<vmem>>, %arg11: memref<2x64xf32, #tpu.memory_space<vmem>>, %arg12: memref<1x64xf32, #tpu.memory_space<vmem>>, %arg13: memref<2x16x32xf32, #tpu.memory_space<vmem>>) attributes {dimension_semantics = [#tpu.dimension_semantics<parallel>], iteration_bounds = array<i64: 1>, scalar_prefetch = 0 : i64, scratch_operands = 0 : i64, tpu.core_type = #tpu.core_type<tc>, window_params = [{transform_indices = @transform_0, window_bounds = array<i64: 2, 16, 32>}, {transform_indices = @transform_1, window_bounds = array<i64: 2, 8, 32>}, {transform_indices = @transform_2, window_bounds = array<i64: 2, 16, 32>}, {transform_indices = @transform_3, window_bounds = array<i64: 2, 16, 8>}, {pipeline_mode = #tpu.pipeline_mode<synchronous>, transform_indices = @transform_4, window_bounds = array<i64: 2, 16, 32>}, {pipeline_mode = #tpu.pipeline_mode<synchronous>, transform_indices = @transform_5, window_bounds = array<i64: 4, 32, 32>}, {pipeline_mode = #tpu.pipeline_mode<synchronous>, transform_indices = @transform_6, window_bounds = array<i64: 2, 32, 64>}, {pipeline_mode = #tpu.pipeline_mode<synchronous>, transform_indices = @transform_7, window_bounds = array<i64: 32, 64>}, {pipeline_mode = #tpu.pipeline_mode<synchronous>, transform_indices = @transform_8, window_bounds = array<i64: 64, 32>}, {pipeline_mode = #tpu.pipeline_mode<synchronous>, transform_indices = @transform_9, window_bounds = array<i64: 11, 32>}, {pipeline_mode = #tpu.pipeline_mode<synchronous>, transform_indices = @transform_10, window_bounds = array<i64: 2, 64>}, {pipeline_mode = #tpu.pipeline_mode<synchronous>, transform_indices = @transform_11, window_bounds = array<i64: 1, 64>}, {transform_indices = @transform_12, window_bounds = array<i64: 2, 16, 32>}]} {
    %c0 = arith.constant 0 : index
    %c0_0 = arith.constant 0 : index
    %c0_1 = arith.constant 0 : index
    %0 = vector.load %arg1[%c0, %c0_0, %c0_1] : memref<2x16x32xf32, #tpu.memory_space<vmem>>, vector<2x16x32xf32>
    %c0_2 = arith.constant 0 : index
    %c0_3 = arith.constant 0 : index
    %c0_4 = arith.constant 0 : index
    %1 = vector.load %arg2[%c0_2, %c0_3, %c0_4] : memref<2x8x32xf32, #tpu.memory_space<vmem>>, vector<2x8x32xf32>
    %c0_5 = arith.constant 0 : index
    %c0_6 = arith.constant 0 : index
    %c0_7 = arith.constant 0 : index
    %2 = vector.load %arg4[%c0_5, %c0_6, %c0_7] : memref<2x16x8xf32, #tpu.memory_space<vmem>>, vector<2x16x8xf32>
    %c0_8 = arith.constant 0 : index
    %c0_9 = arith.constant 0 : index
    %c0_10 = arith.constant 0 : index
    %3 = vector.load %arg5[%c0_8, %c0_9, %c0_10] : memref<2x16x32xf32, #tpu.memory_space<vmem>>, vector<2x16x32xf32>
    %c0_11 = arith.constant 0 : index
    %c0_12 = arith.constant 0 : index
    %4 = vector.load %arg10[%c0_11, %c0_12] : memref<11x32xf32, #tpu.memory_space<vmem>>, vector<11x32xf32>
    %c0_13 = arith.constant 0 : index
    %c0_14 = arith.constant 0 : index
    %5 = vector.load %arg11[%c0_13, %c0_14] : memref<2x64xf32, #tpu.memory_space<vmem>>, vector<2x64xf32>
    %c0_15 = arith.constant 0 : index
    %c0_16 = arith.constant 0 : index
    %6 = vector.load %arg12[%c0_15, %c0_16] : memref<1x64xf32, #tpu.memory_space<vmem>>, vector<1x64xf32>
    %7 = vector.shape_cast %0 : vector<2x16x32xf32> to vector<32x32xf32>
    %cst = arith.constant dense<0.000000e+00> : vector<2x16xf32>
    %8 = vector.multi_reduction <add>, %0, %cst [2] : vector<2x16x32xf32> to vector<2x16xf32>
    %9 = vector.shape_cast %8 : vector<2x16xf32> to vector<2x16x1xf32>
    %cst_17 = arith.constant 3.200000e+01 : f32
    %10 = vector.broadcast %cst_17 : f32 to vector<2x16x1xf32>
    %11 = arith.divf %9, %10 : vector<2x16x1xf32>
    %12 = vector.broadcast %11 : vector<2x16x1xf32> to vector<2x16x32xf32>
    %13 = arith.subf %0, %12 : vector<2x16x32xf32>
    %14 = arith.mulf %13, %13 : vector<2x16x32xf32>
    %cst_18 = arith.constant dense<0.000000e+00> : vector<2x16xf32>
    %15 = vector.multi_reduction <add>, %14, %cst_18 [2] : vector<2x16x32xf32> to vector<2x16xf32>
    %16 = vector.shape_cast %15 : vector<2x16xf32> to vector<2x16x1xf32>
    %cst_19 = arith.constant 3.200000e+01 : f32
    %17 = vector.broadcast %cst_19 : f32 to vector<2x16x1xf32>
    %18 = arith.divf %16, %17 : vector<2x16x1xf32>
    %cst_20 = arith.constant 9.99999974E-6 : f32
    %19 = vector.broadcast %cst_20 : f32 to vector<2x16x1xf32>
    %20 = arith.addf %18, %19 : vector<2x16x1xf32>
    %21 = math.rsqrt %20 : vector<2x16x1xf32>
    %22 = vector.broadcast %21 : vector<2x16x1xf32> to vector<2x16x32xf32>
    %23 = arith.mulf %13, %22 : vector<2x16x32xf32>
    %24 = vector.extract_strided_slice %3 {offsets = [0, 0, 0], sizes = [1, 16, 32], strides = [1, 1, 1]} : vector<2x16x32xf32> to vector<1x16x32xf32>
    %25 = vector.shape_cast %24 : vector<1x16x32xf32> to vector<16x32xf32>
    %26 = vector.shape_cast %25 : vector<16x32xf32> to vector<1x16x32xf32>
    %27 = vector.broadcast %26 : vector<1x16x32xf32> to vector<2x16x32xf32>
    %28 = arith.mulf %23, %27 : vector<2x16x32xf32>
    %29 = vector.extract_strided_slice %3 {offsets = [1, 0, 0], sizes = [1, 16, 32], strides = [1, 1, 1]} : vector<2x16x32xf32> to vector<1x16x32xf32>
    %30 = vector.shape_cast %29 : vector<1x16x32xf32> to vector<16x32xf32>
    %31 = vector.shape_cast %30 : vector<16x32xf32> to vector<1x16x32xf32>
    %32 = vector.broadcast %31 : vector<1x16x32xf32> to vector<2x16x32xf32>
    %33 = arith.addf %28, %32 : vector<2x16x32xf32>
    %34 = vector.shape_cast %33 : vector<2x16x32xf32> to vector<32x32xf32>
    %35 = vector.shape_cast %1 : vector<2x8x32xf32> to vector<16x32xf32>
    %cst_21 = arith.constant dense<0.000000e+00> : vector<16xf32>
    %36 = vector.multi_reduction <add>, %35, %cst_21 [1] : vector<16x32xf32> to vector<16xf32>
    %37 = vector.shape_cast %36 : vector<16xf32> to vector<16x1xf32>
    %cst_22 = arith.constant 3.200000e+01 : f32
    %38 = vector.broadcast %cst_22 : f32 to vector<16x1xf32>
    %39 = arith.divf %37, %38 : vector<16x1xf32>
    %40 = vector.broadcast %39 : vector<16x1xf32> to vector<16x32xf32>
    %41 = arith.subf %35, %40 : vector<16x32xf32>
    %42 = arith.mulf %41, %41 : vector<16x32xf32>
    %cst_23 = arith.constant dense<0.000000e+00> : vector<16xf32>
    %43 = vector.multi_reduction <add>, %42, %cst_23 [1] : vector<16x32xf32> to vector<16xf32>
    %44 = vector.shape_cast %43 : vector<16xf32> to vector<16x1xf32>
    %cst_24 = arith.constant 3.200000e+01 : f32
    %45 = vector.broadcast %cst_24 : f32 to vector<16x1xf32>
    %46 = arith.divf %44, %45 : vector<16x1xf32>
    %cst_25 = arith.constant 9.99999974E-6 : f32
    %47 = vector.broadcast %cst_25 : f32 to vector<16x1xf32>
    %48 = arith.addf %46, %47 : vector<16x1xf32>
    %49 = math.rsqrt %48 : vector<16x1xf32>
    %50 = vector.broadcast %49 : vector<16x1xf32> to vector<16x32xf32>
    %51 = arith.mulf %41, %50 : vector<16x32xf32>
    %52 = vector.extract_strided_slice %4 {offsets = [5, 0], sizes = [1, 32], strides = [1, 1]} : vector<11x32xf32> to vector<1x32xf32>
    %53 = vector.broadcast %52 : vector<1x32xf32> to vector<16x32xf32>
    %54 = arith.mulf %51, %53 : vector<16x32xf32>
    %55 = vector.extract_strided_slice %4 {offsets = [6, 0], sizes = [1, 32], strides = [1, 1]} : vector<11x32xf32> to vector<1x32xf32>
    %56 = vector.broadcast %55 : vector<1x32xf32> to vector<16x32xf32>
    %57 = arith.addf %54, %56 : vector<16x32xf32>
    %c0_26 = arith.constant 0 : index
    %c0_27 = arith.constant 0 : index
    %c0_28 = arith.constant 0 : index
    %58 = vector.load %arg7[%c0_26, %c0_27, %c0_28] : memref<2x32x64xbf16, #tpu.memory_space<vmem>>, vector<1x32x64xbf16>
    %59 = vector.shape_cast %58 : vector<1x32x64xbf16> to vector<32x64xbf16>
    %60 = arith.truncf %57 : vector<16x32xf32> to vector<16x32xbf16>
    %cst_29 = arith.constant dense<0.000000e+00> : vector<16x64xf32>
    %61 = tpu.matmul %60, %59, %cst_29 {dimension_numbers = #tpu.dot_dimension_numbers<[1], [0], [0], [1], [0, 0, 1, 1], [], []>} : vector<16x32xbf16>, vector<32x64xbf16>, vector<16x64xf32> -> vector<16x64xf32>
    %62 = vector.extract_strided_slice %5 {offsets = [0, 0], sizes = [1, 64], strides = [1, 1]} : vector<2x64xf32> to vector<1x64xf32>
    %63 = vector.broadcast %62 : vector<1x64xf32> to vector<16x64xf32>
    %64 = arith.addf %61, %63 : vector<16x64xf32>
    %65 = vector.extract_strided_slice %64 {offsets = [0, 0], sizes = [16, 32], strides = [1, 1]} : vector<16x64xf32> to vector<16x32xf32>
    %66 = vector.shape_cast %65 : vector<16x32xf32> to vector<2x8x32xf32>
    %67 = arith.truncf %66 : vector<2x8x32xf32> to vector<2x8x32xbf16>
    %68 = vector.extract_strided_slice %64 {offsets = [0, 32], sizes = [16, 32], strides = [1, 1]} : vector<16x64xf32> to vector<16x32xf32>
    %69 = vector.shape_cast %68 : vector<16x32xf32> to vector<2x8x32xf32>
    %70 = arith.truncf %69 : vector<2x8x32xf32> to vector<2x8x32xbf16>
    %c0_30 = arith.constant 0 : index
    %c0_31 = arith.constant 0 : index
    %c0_32 = arith.constant 0 : index
    %71 = vector.load %arg6[%c0_30, %c0_31, %c0_32] : memref<4x32x32xbf16, #tpu.memory_space<vmem>>, vector<1x32x32xbf16>
    %72 = vector.shape_cast %71 : vector<1x32x32xbf16> to vector<32x32xbf16>
    %73 = arith.truncf %34 : vector<32x32xf32> to vector<32x32xbf16>
    %cst_33 = arith.constant dense<0.000000e+00> : vector<32x32xf32>
    %74 = tpu.matmul %73, %72, %cst_33 {dimension_numbers = #tpu.dot_dimension_numbers<[1], [0], [0], [1], [0, 0, 1, 1], [], []>} : vector<32x32xbf16>, vector<32x32xbf16>, vector<32x32xf32> -> vector<32x32xf32>
    %75 = vector.extract_strided_slice %4 {offsets = [0, 0], sizes = [1, 32], strides = [1, 1]} : vector<11x32xf32> to vector<1x32xf32>
    %76 = vector.broadcast %75 : vector<1x32xf32> to vector<32x32xf32>
    %77 = arith.addf %74, %76 : vector<32x32xf32>
    %c1 = arith.constant 1 : index
    %c0_34 = arith.constant 0 : index
    %c0_35 = arith.constant 0 : index
    %78 = vector.load %arg6[%c1, %c0_34, %c0_35] : memref<4x32x32xbf16, #tpu.memory_space<vmem>>, vector<1x32x32xbf16>
    %79 = vector.shape_cast %78 : vector<1x32x32xbf16> to vector<32x32xbf16>
    %80 = vector.extract_strided_slice %4 {offsets = [1, 0], sizes = [1, 32], strides = [1, 1]} : vector<11x32xf32> to vector<1x32xf32>
    %81 = vector.shape_cast %77 : vector<32x32xf32> to vector<2x16x32xf32>
    %82 = arith.truncf %81 : vector<2x16x32xf32> to vector<2x16x32xbf16>
    %83 = vector.extract_strided_slice %82 {offsets = [0, 0, 0], sizes = [2, 16, 8], strides = [1, 1, 1]} : vector<2x16x32xbf16> to vector<2x16x8xbf16>
    %84 = vector.extract_strided_slice %67 {offsets = [0, 0, 0], sizes = [2, 8, 8], strides = [1, 1, 1]} : vector<2x8x32xbf16> to vector<2x8x8xbf16>
    "tpu.trace_start"() <{level = 10 : i32, message = "bqd,bkd->bqk"}> : () -> ()
    %cst_36 = arith.constant dense<0.000000e+00> : vector<2x16x8xf32>
    %85 = tpu.matmul %83, %84, %cst_36 {dimension_numbers = #tpu.dot_dimension_numbers<[2], [2], [1], [1], [0, 0, 0, 1, 1, 1], [0], [0]>} : vector<2x16x8xbf16>, vector<2x8x8xbf16>, vector<2x16x8xf32> -> vector<2x16x8xf32>
    "tpu.trace_stop"() : () -> ()
    %cst_37 = arith.constant 0.353553385 : f32
    %86 = vector.broadcast %cst_37 : f32 to vector<2x16x8xf32>
    %87 = arith.mulf %85, %86 : vector<2x16x8xf32>
    %88 = arith.addf %87, %2 : vector<2x16x8xf32>
    %cst_38 = arith.constant dense<0xFF800000> : vector<2x16xf32>
    %89 = vector.multi_reduction <maximumf>, %88, %cst_38 [2] : vector<2x16x8xf32> to vector<2x16xf32>
    %90 = vector.shape_cast %89 : vector<2x16xf32> to vector<2x16x1xf32>
    %91 = vector.broadcast %90 : vector<2x16x1xf32> to vector<2x16x8xf32>
    %92 = arith.subf %88, %91 : vector<2x16x8xf32>
    %93 = math.exp %92 : vector<2x16x8xf32>
    %cst_39 = arith.constant dense<0.000000e+00> : vector<2x16xf32>
    %94 = vector.multi_reduction <add>, %93, %cst_39 [2] : vector<2x16x8xf32> to vector<2x16xf32>
    %95 = vector.shape_cast %94 : vector<2x16xf32> to vector<2x16x1xf32>
    %96 = tpu.reciprocal %95 {approx = true} : vector<2x16x1xf32> -> vector<2x16x1xf32>
    %97 = vector.broadcast %96 : vector<2x16x1xf32> to vector<2x16x8xf32>
    %98 = arith.mulf %93, %97 : vector<2x16x8xf32>
    %99 = arith.truncf %98 : vector<2x16x8xf32> to vector<2x16x8xbf16>
    %100 = vector.extract_strided_slice %70 {offsets = [0, 0, 0], sizes = [2, 8, 8], strides = [1, 1, 1]} : vector<2x8x32xbf16> to vector<2x8x8xbf16>
    "tpu.trace_start"() <{level = 10 : i32, message = "bqk,bkd->bqd"}> : () -> ()
    %cst_40 = arith.constant dense<0.000000e+00> : vector<2x16x8xf32>
    %101 = tpu.matmul %99, %100, %cst_40 {dimension_numbers = #tpu.dot_dimension_numbers<[2], [1], [1], [2], [0, 0, 0, 1, 1, 2], [0], [0]>} : vector<2x16x8xbf16>, vector<2x8x8xbf16>, vector<2x16x8xf32> -> vector<2x16x8xf32>
    "tpu.trace_stop"() : () -> ()
    %102 = vector.extract_strided_slice %82 {offsets = [0, 0, 8], sizes = [2, 16, 8], strides = [1, 1, 1]} : vector<2x16x32xbf16> to vector<2x16x8xbf16>
    %103 = vector.extract_strided_slice %67 {offsets = [0, 0, 8], sizes = [2, 8, 8], strides = [1, 1, 1]} : vector<2x8x32xbf16> to vector<2x8x8xbf16>
    "tpu.trace_start"() <{level = 10 : i32, message = "bqd,bkd->bqk"}> : () -> ()
    %cst_41 = arith.constant dense<0.000000e+00> : vector<2x16x8xf32>
    %104 = tpu.matmul %102, %103, %cst_41 {dimension_numbers = #tpu.dot_dimension_numbers<[2], [2], [1], [1], [0, 0, 0, 1, 1, 1], [0], [0]>} : vector<2x16x8xbf16>, vector<2x8x8xbf16>, vector<2x16x8xf32> -> vector<2x16x8xf32>
    "tpu.trace_stop"() : () -> ()
    %cst_42 = arith.constant 0.353553385 : f32
    %105 = vector.broadcast %cst_42 : f32 to vector<2x16x8xf32>
    %106 = arith.mulf %104, %105 : vector<2x16x8xf32>
    %107 = arith.addf %106, %2 : vector<2x16x8xf32>
    %cst_43 = arith.constant dense<0xFF800000> : vector<2x16xf32>
    %108 = vector.multi_reduction <maximumf>, %107, %cst_43 [2] : vector<2x16x8xf32> to vector<2x16xf32>
    %109 = vector.shape_cast %108 : vector<2x16xf32> to vector<2x16x1xf32>
    %110 = vector.broadcast %109 : vector<2x16x1xf32> to vector<2x16x8xf32>
    %111 = arith.subf %107, %110 : vector<2x16x8xf32>
    %112 = math.exp %111 : vector<2x16x8xf32>
    %cst_44 = arith.constant dense<0.000000e+00> : vector<2x16xf32>
    %113 = vector.multi_reduction <add>, %112, %cst_44 [2] : vector<2x16x8xf32> to vector<2x16xf32>
    %114 = vector.shape_cast %113 : vector<2x16xf32> to vector<2x16x1xf32>
    %115 = tpu.reciprocal %114 {approx = true} : vector<2x16x1xf32> -> vector<2x16x1xf32>
    %116 = vector.broadcast %115 : vector<2x16x1xf32> to vector<2x16x8xf32>
    %117 = arith.mulf %112, %116 : vector<2x16x8xf32>
    %118 = arith.truncf %117 : vector<2x16x8xf32> to vector<2x16x8xbf16>
    %119 = vector.extract_strided_slice %70 {offsets = [0, 0, 8], sizes = [2, 8, 8], strides = [1, 1, 1]} : vector<2x8x32xbf16> to vector<2x8x8xbf16>
    "tpu.trace_start"() <{level = 10 : i32, message = "bqk,bkd->bqd"}> : () -> ()
    %cst_45 = arith.constant dense<0.000000e+00> : vector<2x16x8xf32>
    %120 = tpu.matmul %118, %119, %cst_45 {dimension_numbers = #tpu.dot_dimension_numbers<[2], [1], [1], [2], [0, 0, 0, 1, 1, 2], [0], [0]>} : vector<2x16x8xbf16>, vector<2x8x8xbf16>, vector<2x16x8xf32> -> vector<2x16x8xf32>
    "tpu.trace_stop"() : () -> ()
    %121 = vector.extract_strided_slice %82 {offsets = [0, 0, 16], sizes = [2, 16, 8], strides = [1, 1, 1]} : vector<2x16x32xbf16> to vector<2x16x8xbf16>
    %122 = vector.extract_strided_slice %67 {offsets = [0, 0, 16], sizes = [2, 8, 8], strides = [1, 1, 1]} : vector<2x8x32xbf16> to vector<2x8x8xbf16>
    "tpu.trace_start"() <{level = 10 : i32, message = "bqd,bkd->bqk"}> : () -> ()
    %cst_46 = arith.constant dense<0.000000e+00> : vector<2x16x8xf32>
    %123 = tpu.matmul %121, %122, %cst_46 {dimension_numbers = #tpu.dot_dimension_numbers<[2], [2], [1], [1], [0, 0, 0, 1, 1, 1], [0], [0]>} : vector<2x16x8xbf16>, vector<2x8x8xbf16>, vector<2x16x8xf32> -> vector<2x16x8xf32>
    "tpu.trace_stop"() : () -> ()
    %cst_47 = arith.constant 0.353553385 : f32
    %124 = vector.broadcast %cst_47 : f32 to vector<2x16x8xf32>
    %125 = arith.mulf %123, %124 : vector<2x16x8xf32>
    %126 = arith.addf %125, %2 : vector<2x16x8xf32>
    %cst_48 = arith.constant dense<0xFF800000> : vector<2x16xf32>
    %127 = vector.multi_reduction <maximumf>, %126, %cst_48 [2] : vector<2x16x8xf32> to vector<2x16xf32>
    %128 = vector.shape_cast %127 : vector<2x16xf32> to vector<2x16x1xf32>
    %129 = vector.broadcast %128 : vector<2x16x1xf32> to vector<2x16x8xf32>
    %130 = arith.subf %126, %129 : vector<2x16x8xf32>
    %131 = math.exp %130 : vector<2x16x8xf32>
    %cst_49 = arith.constant dense<0.000000e+00> : vector<2x16xf32>
    %132 = vector.multi_reduction <add>, %131, %cst_49 [2] : vector<2x16x8xf32> to vector<2x16xf32>
    %133 = vector.shape_cast %132 : vector<2x16xf32> to vector<2x16x1xf32>
    %134 = tpu.reciprocal %133 {approx = true} : vector<2x16x1xf32> -> vector<2x16x1xf32>
    %135 = vector.broadcast %134 : vector<2x16x1xf32> to vector<2x16x8xf32>
    %136 = arith.mulf %131, %135 : vector<2x16x8xf32>
    %137 = arith.truncf %136 : vector<2x16x8xf32> to vector<2x16x8xbf16>
    %138 = vector.extract_strided_slice %70 {offsets = [0, 0, 16], sizes = [2, 8, 8], strides = [1, 1, 1]} : vector<2x8x32xbf16> to vector<2x8x8xbf16>
    "tpu.trace_start"() <{level = 10 : i32, message = "bqk,bkd->bqd"}> : () -> ()
    %cst_50 = arith.constant dense<0.000000e+00> : vector<2x16x8xf32>
    %139 = tpu.matmul %137, %138, %cst_50 {dimension_numbers = #tpu.dot_dimension_numbers<[2], [1], [1], [2], [0, 0, 0, 1, 1, 2], [0], [0]>} : vector<2x16x8xbf16>, vector<2x8x8xbf16>, vector<2x16x8xf32> -> vector<2x16x8xf32>
    "tpu.trace_stop"() : () -> ()
    %140 = vector.extract_strided_slice %82 {offsets = [0, 0, 24], sizes = [2, 16, 8], strides = [1, 1, 1]} : vector<2x16x32xbf16> to vector<2x16x8xbf16>
    %141 = vector.extract_strided_slice %67 {offsets = [0, 0, 24], sizes = [2, 8, 8], strides = [1, 1, 1]} : vector<2x8x32xbf16> to vector<2x8x8xbf16>
    "tpu.trace_start"() <{level = 10 : i32, message = "bqd,bkd->bqk"}> : () -> ()
    %cst_51 = arith.constant dense<0.000000e+00> : vector<2x16x8xf32>
    %142 = tpu.matmul %140, %141, %cst_51 {dimension_numbers = #tpu.dot_dimension_numbers<[2], [2], [1], [1], [0, 0, 0, 1, 1, 1], [0], [0]>} : vector<2x16x8xbf16>, vector<2x8x8xbf16>, vector<2x16x8xf32> -> vector<2x16x8xf32>
    "tpu.trace_stop"() : () -> ()
    %cst_52 = arith.constant 0.353553385 : f32
    %143 = vector.broadcast %cst_52 : f32 to vector<2x16x8xf32>
    %144 = arith.mulf %142, %143 : vector<2x16x8xf32>
    %145 = arith.addf %144, %2 : vector<2x16x8xf32>
    %cst_53 = arith.constant dense<0xFF800000> : vector<2x16xf32>
    %146 = vector.multi_reduction <maximumf>, %145, %cst_53 [2] : vector<2x16x8xf32> to vector<2x16xf32>
    %147 = vector.shape_cast %146 : vector<2x16xf32> to vector<2x16x1xf32>
    %148 = vector.broadcast %147 : vector<2x16x1xf32> to vector<2x16x8xf32>
    %149 = arith.subf %145, %148 : vector<2x16x8xf32>
    %150 = math.exp %149 : vector<2x16x8xf32>
    %cst_54 = arith.constant dense<0.000000e+00> : vector<2x16xf32>
    %151 = vector.multi_reduction <add>, %150, %cst_54 [2] : vector<2x16x8xf32> to vector<2x16xf32>
    %152 = vector.shape_cast %151 : vector<2x16xf32> to vector<2x16x1xf32>
    %153 = tpu.reciprocal %152 {approx = true} : vector<2x16x1xf32> -> vector<2x16x1xf32>
    %154 = vector.broadcast %153 : vector<2x16x1xf32> to vector<2x16x8xf32>
    %155 = arith.mulf %150, %154 : vector<2x16x8xf32>
    %156 = arith.truncf %155 : vector<2x16x8xf32> to vector<2x16x8xbf16>
    %157 = vector.extract_strided_slice %70 {offsets = [0, 0, 24], sizes = [2, 8, 8], strides = [1, 1, 1]} : vector<2x8x32xbf16> to vector<2x8x8xbf16>
    "tpu.trace_start"() <{level = 10 : i32, message = "bqk,bkd->bqd"}> : () -> ()
    %cst_55 = arith.constant dense<0.000000e+00> : vector<2x16x8xf32>
    %158 = tpu.matmul %156, %157, %cst_55 {dimension_numbers = #tpu.dot_dimension_numbers<[2], [1], [1], [2], [0, 0, 0, 1, 1, 2], [0], [0]>} : vector<2x16x8xbf16>, vector<2x8x8xbf16>, vector<2x16x8xf32> -> vector<2x16x8xf32>
    "tpu.trace_stop"() : () -> ()
    %159 = tpu.concatenate %101, %120, %139, %158 in 2 : vector<2x16x8xf32>, vector<2x16x8xf32>, vector<2x16x8xf32>, vector<2x16x8xf32> -> vector<2x16x32xf32>
    %160 = vector.shape_cast %159 : vector<2x16x32xf32> to vector<32x32xf32>
    %161 = arith.truncf %160 : vector<32x32xf32> to vector<32x32xbf16>
    %cst_56 = arith.constant dense<0.000000e+00> : vector<32x32xf32>
    %162 = tpu.matmul %161, %79, %cst_56 {dimension_numbers = #tpu.dot_dimension_numbers<[1], [0], [0], [1], [0, 0, 1, 1], [], []>} : vector<32x32xbf16>, vector<32x32xbf16>, vector<32x32xf32> -> vector<32x32xf32>
    %163 = vector.broadcast %80 : vector<1x32xf32> to vector<32x32xf32>
    %164 = arith.addf %162, %163 : vector<32x32xf32>
    %165 = arith.addf %7, %164 : vector<32x32xf32>
    %cst_57 = arith.constant dense<0.000000e+00> : vector<32xf32>
    %166 = vector.multi_reduction <add>, %165, %cst_57 [1] : vector<32x32xf32> to vector<32xf32>
    %167 = vector.shape_cast %166 : vector<32xf32> to vector<32x1xf32>
    %cst_58 = arith.constant 3.200000e+01 : f32
    %168 = vector.broadcast %cst_58 : f32 to vector<32x1xf32>
    %169 = arith.divf %167, %168 : vector<32x1xf32>
    %170 = vector.broadcast %169 : vector<32x1xf32> to vector<32x32xf32>
    %171 = arith.subf %165, %170 : vector<32x32xf32>
    %172 = arith.mulf %171, %171 : vector<32x32xf32>
    %cst_59 = arith.constant dense<0.000000e+00> : vector<32xf32>
    %173 = vector.multi_reduction <add>, %172, %cst_59 [1] : vector<32x32xf32> to vector<32xf32>
    %174 = vector.shape_cast %173 : vector<32xf32> to vector<32x1xf32>
    %cst_60 = arith.constant 3.200000e+01 : f32
    %175 = vector.broadcast %cst_60 : f32 to vector<32x1xf32>
    %176 = arith.divf %174, %175 : vector<32x1xf32>
    %cst_61 = arith.constant 9.99999974E-6 : f32
    %177 = vector.broadcast %cst_61 : f32 to vector<32x1xf32>
    %178 = arith.addf %176, %177 : vector<32x1xf32>
    %179 = math.rsqrt %178 : vector<32x1xf32>
    %180 = vector.broadcast %179 : vector<32x1xf32> to vector<32x32xf32>
    %181 = arith.mulf %171, %180 : vector<32x32xf32>
    %182 = vector.extract_strided_slice %4 {offsets = [7, 0], sizes = [1, 32], strides = [1, 1]} : vector<11x32xf32> to vector<1x32xf32>
    %183 = vector.broadcast %182 : vector<1x32xf32> to vector<32x32xf32>
    %184 = arith.mulf %181, %183 : vector<32x32xf32>
    %185 = vector.extract_strided_slice %4 {offsets = [8, 0], sizes = [1, 32], strides = [1, 1]} : vector<11x32xf32> to vector<1x32xf32>
    %186 = vector.broadcast %185 : vector<1x32xf32> to vector<32x32xf32>
    %187 = arith.addf %184, %186 : vector<32x32xf32>
    %c0_62 = arith.constant 0 : index
    %c0_63 = arith.constant 0 : index
    %c0_64 = arith.constant 0 : index
    %188 = vector.load %arg3[%c0_62, %c0_63, %c0_64] : memref<2x16x32xbf16, #tpu.memory_space<vmem>>, vector<2x16x32xbf16>
    %189 = vector.shape_cast %188 : vector<2x16x32xbf16> to vector<32x32xbf16>
    %c1_65 = arith.constant 1 : index
    %c0_66 = arith.constant 0 : index
    %c0_67 = arith.constant 0 : index
    %190 = vector.load %arg7[%c1_65, %c0_66, %c0_67] : memref<2x32x64xbf16, #tpu.memory_space<vmem>>, vector<1x32x64xbf16>
    %191 = vector.shape_cast %190 : vector<1x32x64xbf16> to vector<32x64xbf16>
    %cst_68 = arith.constant dense<0.000000e+00> : vector<32x64xf32>
    %192 = tpu.matmul %189, %191, %cst_68 {dimension_numbers = #tpu.dot_dimension_numbers<[1], [0], [0], [1], [0, 0, 1, 1], [], []>} : vector<32x32xbf16>, vector<32x64xbf16>, vector<32x64xf32> -> vector<32x64xf32>
    %193 = vector.extract_strided_slice %5 {offsets = [1, 0], sizes = [1, 64], strides = [1, 1]} : vector<2x64xf32> to vector<1x64xf32>
    %194 = vector.broadcast %193 : vector<1x64xf32> to vector<32x64xf32>
    %195 = arith.addf %192, %194 : vector<32x64xf32>
    %196 = vector.extract_strided_slice %195 {offsets = [0, 0], sizes = [32, 32], strides = [1, 1]} : vector<32x64xf32> to vector<32x32xf32>
    %197 = vector.shape_cast %196 : vector<32x32xf32> to vector<2x16x32xf32>
    %198 = arith.truncf %197 : vector<2x16x32xf32> to vector<2x16x32xbf16>
    %199 = vector.extract_strided_slice %195 {offsets = [0, 32], sizes = [32, 32], strides = [1, 1]} : vector<32x64xf32> to vector<32x32xf32>
    %200 = vector.shape_cast %199 : vector<32x32xf32> to vector<2x16x32xf32>
    %201 = arith.truncf %200 : vector<2x16x32xf32> to vector<2x16x32xbf16>
    %c2 = arith.constant 2 : index
    %c0_69 = arith.constant 0 : index
    %c0_70 = arith.constant 0 : index
    %202 = vector.load %arg6[%c2, %c0_69, %c0_70] : memref<4x32x32xbf16, #tpu.memory_space<vmem>>, vector<1x32x32xbf16>
    %203 = vector.shape_cast %202 : vector<1x32x32xbf16> to vector<32x32xbf16>
    %204 = arith.truncf %187 : vector<32x32xf32> to vector<32x32xbf16>
    %cst_71 = arith.constant dense<0.000000e+00> : vector<32x32xf32>
    %205 = tpu.matmul %204, %203, %cst_71 {dimension_numbers = #tpu.dot_dimension_numbers<[1], [0], [0], [1], [0, 0, 1, 1], [], []>} : vector<32x32xbf16>, vector<32x32xbf16>, vector<32x32xf32> -> vector<32x32xf32>
    %206 = vector.extract_strided_slice %4 {offsets = [2, 0], sizes = [1, 32], strides = [1, 1]} : vector<11x32xf32> to vector<1x32xf32>
    %207 = vector.broadcast %206 : vector<1x32xf32> to vector<32x32xf32>
    %208 = arith.addf %205, %207 : vector<32x32xf32>
    %c3 = arith.constant 3 : index
    %c0_72 = arith.constant 0 : index
    %c0_73 = arith.constant 0 : index
    %209 = vector.load %arg6[%c3, %c0_72, %c0_73] : memref<4x32x32xbf16, #tpu.memory_space<vmem>>, vector<1x32x32xbf16>
    %210 = vector.shape_cast %209 : vector<1x32x32xbf16> to vector<32x32xbf16>
    %211 = vector.extract_strided_slice %4 {offsets = [3, 0], sizes = [1, 32], strides = [1, 1]} : vector<11x32xf32> to vector<1x32xf32>
    %212 = vector.shape_cast %208 : vector<32x32xf32> to vector<2x16x32xf32>
    %213 = arith.truncf %212 : vector<2x16x32xf32> to vector<2x16x32xbf16>
    %214 = vector.extract_strided_slice %213 {offsets = [0, 0, 0], sizes = [2, 16, 8], strides = [1, 1, 1]} : vector<2x16x32xbf16> to vector<2x16x8xbf16>
    %215 = vector.extract_strided_slice %198 {offsets = [0, 0, 0], sizes = [2, 16, 8], strides = [1, 1, 1]} : vector<2x16x32xbf16> to vector<2x16x8xbf16>
    "tpu.trace_start"() <{level = 10 : i32, message = "bqd,bkd->bqk"}> : () -> ()
    %cst_74 = arith.constant dense<0.000000e+00> : vector<2x16x16xf32>
    %216 = tpu.matmul %214, %215, %cst_74 {dimension_numbers = #tpu.dot_dimension_numbers<[2], [2], [1], [1], [0, 0, 0, 1, 1, 1], [0], [0]>} : vector<2x16x8xbf16>, vector<2x16x8xbf16>, vector<2x16x16xf32> -> vector<2x16x16xf32>
    "tpu.trace_stop"() : () -> ()
    %cst_75 = arith.constant 0.353553385 : f32
    %217 = vector.broadcast %cst_75 : f32 to vector<2x16x16xf32>
    %218 = arith.mulf %216, %217 : vector<2x16x16xf32>
    %cst_76 = arith.constant dense<0xFF800000> : vector<2x16xf32>
    %219 = vector.multi_reduction <maximumf>, %218, %cst_76 [2] : vector<2x16x16xf32> to vector<2x16xf32>
    %220 = vector.shape_cast %219 : vector<2x16xf32> to vector<2x16x1xf32>
    %221 = vector.broadcast %220 : vector<2x16x1xf32> to vector<2x16x16xf32>
    %222 = arith.subf %218, %221 : vector<2x16x16xf32>
    %223 = math.exp %222 : vector<2x16x16xf32>
    %cst_77 = arith.constant dense<0.000000e+00> : vector<2x16xf32>
    %224 = vector.multi_reduction <add>, %223, %cst_77 [2] : vector<2x16x16xf32> to vector<2x16xf32>
    %225 = vector.shape_cast %224 : vector<2x16xf32> to vector<2x16x1xf32>
    %226 = tpu.reciprocal %225 {approx = true} : vector<2x16x1xf32> -> vector<2x16x1xf32>
    %227 = vector.broadcast %226 : vector<2x16x1xf32> to vector<2x16x16xf32>
    %228 = arith.mulf %223, %227 : vector<2x16x16xf32>
    %229 = arith.truncf %228 : vector<2x16x16xf32> to vector<2x16x16xbf16>
    %230 = vector.extract_strided_slice %201 {offsets = [0, 0, 0], sizes = [2, 16, 8], strides = [1, 1, 1]} : vector<2x16x32xbf16> to vector<2x16x8xbf16>
    "tpu.trace_start"() <{level = 10 : i32, message = "bqk,bkd->bqd"}> : () -> ()
    %cst_78 = arith.constant dense<0.000000e+00> : vector<2x16x8xf32>
    %231 = tpu.matmul %229, %230, %cst_78 {dimension_numbers = #tpu.dot_dimension_numbers<[2], [1], [1], [2], [0, 0, 0, 1, 1, 2], [0], [0]>} : vector<2x16x16xbf16>, vector<2x16x8xbf16>, vector<2x16x8xf32> -> vector<2x16x8xf32>
    "tpu.trace_stop"() : () -> ()
    %232 = vector.extract_strided_slice %213 {offsets = [0, 0, 8], sizes = [2, 16, 8], strides = [1, 1, 1]} : vector<2x16x32xbf16> to vector<2x16x8xbf16>
    %233 = vector.extract_strided_slice %198 {offsets = [0, 0, 8], sizes = [2, 16, 8], strides = [1, 1, 1]} : vector<2x16x32xbf16> to vector<2x16x8xbf16>
    "tpu.trace_start"() <{level = 10 : i32, message = "bqd,bkd->bqk"}> : () -> ()
    %cst_79 = arith.constant dense<0.000000e+00> : vector<2x16x16xf32>
    %234 = tpu.matmul %232, %233, %cst_79 {dimension_numbers = #tpu.dot_dimension_numbers<[2], [2], [1], [1], [0, 0, 0, 1, 1, 1], [0], [0]>} : vector<2x16x8xbf16>, vector<2x16x8xbf16>, vector<2x16x16xf32> -> vector<2x16x16xf32>
    "tpu.trace_stop"() : () -> ()
    %cst_80 = arith.constant 0.353553385 : f32
    %235 = vector.broadcast %cst_80 : f32 to vector<2x16x16xf32>
    %236 = arith.mulf %234, %235 : vector<2x16x16xf32>
    %cst_81 = arith.constant dense<0xFF800000> : vector<2x16xf32>
    %237 = vector.multi_reduction <maximumf>, %236, %cst_81 [2] : vector<2x16x16xf32> to vector<2x16xf32>
    %238 = vector.shape_cast %237 : vector<2x16xf32> to vector<2x16x1xf32>
    %239 = vector.broadcast %238 : vector<2x16x1xf32> to vector<2x16x16xf32>
    %240 = arith.subf %236, %239 : vector<2x16x16xf32>
    %241 = math.exp %240 : vector<2x16x16xf32>
    %cst_82 = arith.constant dense<0.000000e+00> : vector<2x16xf32>
    %242 = vector.multi_reduction <add>, %241, %cst_82 [2] : vector<2x16x16xf32> to vector<2x16xf32>
    %243 = vector.shape_cast %242 : vector<2x16xf32> to vector<2x16x1xf32>
    %244 = tpu.reciprocal %243 {approx = true} : vector<2x16x1xf32> -> vector<2x16x1xf32>
    %245 = vector.broadcast %244 : vector<2x16x1xf32> to vector<2x16x16xf32>
    %246 = arith.mulf %241, %245 : vector<2x16x16xf32>
    %247 = arith.truncf %246 : vector<2x16x16xf32> to vector<2x16x16xbf16>
    %248 = vector.extract_strided_slice %201 {offsets = [0, 0, 8], sizes = [2, 16, 8], strides = [1, 1, 1]} : vector<2x16x32xbf16> to vector<2x16x8xbf16>
    "tpu.trace_start"() <{level = 10 : i32, message = "bqk,bkd->bqd"}> : () -> ()
    %cst_83 = arith.constant dense<0.000000e+00> : vector<2x16x8xf32>
    %249 = tpu.matmul %247, %248, %cst_83 {dimension_numbers = #tpu.dot_dimension_numbers<[2], [1], [1], [2], [0, 0, 0, 1, 1, 2], [0], [0]>} : vector<2x16x16xbf16>, vector<2x16x8xbf16>, vector<2x16x8xf32> -> vector<2x16x8xf32>
    "tpu.trace_stop"() : () -> ()
    %250 = vector.extract_strided_slice %213 {offsets = [0, 0, 16], sizes = [2, 16, 8], strides = [1, 1, 1]} : vector<2x16x32xbf16> to vector<2x16x8xbf16>
    %251 = vector.extract_strided_slice %198 {offsets = [0, 0, 16], sizes = [2, 16, 8], strides = [1, 1, 1]} : vector<2x16x32xbf16> to vector<2x16x8xbf16>
    "tpu.trace_start"() <{level = 10 : i32, message = "bqd,bkd->bqk"}> : () -> ()
    %cst_84 = arith.constant dense<0.000000e+00> : vector<2x16x16xf32>
    %252 = tpu.matmul %250, %251, %cst_84 {dimension_numbers = #tpu.dot_dimension_numbers<[2], [2], [1], [1], [0, 0, 0, 1, 1, 1], [0], [0]>} : vector<2x16x8xbf16>, vector<2x16x8xbf16>, vector<2x16x16xf32> -> vector<2x16x16xf32>
    "tpu.trace_stop"() : () -> ()
    %cst_85 = arith.constant 0.353553385 : f32
    %253 = vector.broadcast %cst_85 : f32 to vector<2x16x16xf32>
    %254 = arith.mulf %252, %253 : vector<2x16x16xf32>
    %cst_86 = arith.constant dense<0xFF800000> : vector<2x16xf32>
    %255 = vector.multi_reduction <maximumf>, %254, %cst_86 [2] : vector<2x16x16xf32> to vector<2x16xf32>
    %256 = vector.shape_cast %255 : vector<2x16xf32> to vector<2x16x1xf32>
    %257 = vector.broadcast %256 : vector<2x16x1xf32> to vector<2x16x16xf32>
    %258 = arith.subf %254, %257 : vector<2x16x16xf32>
    %259 = math.exp %258 : vector<2x16x16xf32>
    %cst_87 = arith.constant dense<0.000000e+00> : vector<2x16xf32>
    %260 = vector.multi_reduction <add>, %259, %cst_87 [2] : vector<2x16x16xf32> to vector<2x16xf32>
    %261 = vector.shape_cast %260 : vector<2x16xf32> to vector<2x16x1xf32>
    %262 = tpu.reciprocal %261 {approx = true} : vector<2x16x1xf32> -> vector<2x16x1xf32>
    %263 = vector.broadcast %262 : vector<2x16x1xf32> to vector<2x16x16xf32>
    %264 = arith.mulf %259, %263 : vector<2x16x16xf32>
    %265 = arith.truncf %264 : vector<2x16x16xf32> to vector<2x16x16xbf16>
    %266 = vector.extract_strided_slice %201 {offsets = [0, 0, 16], sizes = [2, 16, 8], strides = [1, 1, 1]} : vector<2x16x32xbf16> to vector<2x16x8xbf16>
    "tpu.trace_start"() <{level = 10 : i32, message = "bqk,bkd->bqd"}> : () -> ()
    %cst_88 = arith.constant dense<0.000000e+00> : vector<2x16x8xf32>
    %267 = tpu.matmul %265, %266, %cst_88 {dimension_numbers = #tpu.dot_dimension_numbers<[2], [1], [1], [2], [0, 0, 0, 1, 1, 2], [0], [0]>} : vector<2x16x16xbf16>, vector<2x16x8xbf16>, vector<2x16x8xf32> -> vector<2x16x8xf32>
    "tpu.trace_stop"() : () -> ()
    %268 = vector.extract_strided_slice %213 {offsets = [0, 0, 24], sizes = [2, 16, 8], strides = [1, 1, 1]} : vector<2x16x32xbf16> to vector<2x16x8xbf16>
    %269 = vector.extract_strided_slice %198 {offsets = [0, 0, 24], sizes = [2, 16, 8], strides = [1, 1, 1]} : vector<2x16x32xbf16> to vector<2x16x8xbf16>
    "tpu.trace_start"() <{level = 10 : i32, message = "bqd,bkd->bqk"}> : () -> ()
    %cst_89 = arith.constant dense<0.000000e+00> : vector<2x16x16xf32>
    %270 = tpu.matmul %268, %269, %cst_89 {dimension_numbers = #tpu.dot_dimension_numbers<[2], [2], [1], [1], [0, 0, 0, 1, 1, 1], [0], [0]>} : vector<2x16x8xbf16>, vector<2x16x8xbf16>, vector<2x16x16xf32> -> vector<2x16x16xf32>
    "tpu.trace_stop"() : () -> ()
    %cst_90 = arith.constant 0.353553385 : f32
    %271 = vector.broadcast %cst_90 : f32 to vector<2x16x16xf32>
    %272 = arith.mulf %270, %271 : vector<2x16x16xf32>
    %cst_91 = arith.constant dense<0xFF800000> : vector<2x16xf32>
    %273 = vector.multi_reduction <maximumf>, %272, %cst_91 [2] : vector<2x16x16xf32> to vector<2x16xf32>
    %274 = vector.shape_cast %273 : vector<2x16xf32> to vector<2x16x1xf32>
    %275 = vector.broadcast %274 : vector<2x16x1xf32> to vector<2x16x16xf32>
    %276 = arith.subf %272, %275 : vector<2x16x16xf32>
    %277 = math.exp %276 : vector<2x16x16xf32>
    %cst_92 = arith.constant dense<0.000000e+00> : vector<2x16xf32>
    %278 = vector.multi_reduction <add>, %277, %cst_92 [2] : vector<2x16x16xf32> to vector<2x16xf32>
    %279 = vector.shape_cast %278 : vector<2x16xf32> to vector<2x16x1xf32>
    %280 = tpu.reciprocal %279 {approx = true} : vector<2x16x1xf32> -> vector<2x16x1xf32>
    %281 = vector.broadcast %280 : vector<2x16x1xf32> to vector<2x16x16xf32>
    %282 = arith.mulf %277, %281 : vector<2x16x16xf32>
    %283 = arith.truncf %282 : vector<2x16x16xf32> to vector<2x16x16xbf16>
    %284 = vector.extract_strided_slice %201 {offsets = [0, 0, 24], sizes = [2, 16, 8], strides = [1, 1, 1]} : vector<2x16x32xbf16> to vector<2x16x8xbf16>
    "tpu.trace_start"() <{level = 10 : i32, message = "bqk,bkd->bqd"}> : () -> ()
    %cst_93 = arith.constant dense<0.000000e+00> : vector<2x16x8xf32>
    %285 = tpu.matmul %283, %284, %cst_93 {dimension_numbers = #tpu.dot_dimension_numbers<[2], [1], [1], [2], [0, 0, 0, 1, 1, 2], [0], [0]>} : vector<2x16x16xbf16>, vector<2x16x8xbf16>, vector<2x16x8xf32> -> vector<2x16x8xf32>
    "tpu.trace_stop"() : () -> ()
    %286 = tpu.concatenate %231, %249, %267, %285 in 2 : vector<2x16x8xf32>, vector<2x16x8xf32>, vector<2x16x8xf32>, vector<2x16x8xf32> -> vector<2x16x32xf32>
    %287 = vector.shape_cast %286 : vector<2x16x32xf32> to vector<32x32xf32>
    %288 = arith.truncf %287 : vector<32x32xf32> to vector<32x32xbf16>
    %cst_94 = arith.constant dense<0.000000e+00> : vector<32x32xf32>
    %289 = tpu.matmul %288, %210, %cst_94 {dimension_numbers = #tpu.dot_dimension_numbers<[1], [0], [0], [1], [0, 0, 1, 1], [], []>} : vector<32x32xbf16>, vector<32x32xbf16>, vector<32x32xf32> -> vector<32x32xf32>
    %290 = vector.broadcast %211 : vector<1x32xf32> to vector<32x32xf32>
    %291 = arith.addf %289, %290 : vector<32x32xf32>
    %292 = arith.addf %165, %291 : vector<32x32xf32>
    %cst_95 = arith.constant dense<0.000000e+00> : vector<32xf32>
    %293 = vector.multi_reduction <add>, %292, %cst_95 [1] : vector<32x32xf32> to vector<32xf32>
    %294 = vector.shape_cast %293 : vector<32xf32> to vector<32x1xf32>
    %cst_96 = arith.constant 3.200000e+01 : f32
    %295 = vector.broadcast %cst_96 : f32 to vector<32x1xf32>
    %296 = arith.divf %294, %295 : vector<32x1xf32>
    %297 = vector.broadcast %296 : vector<32x1xf32> to vector<32x32xf32>
    %298 = arith.subf %292, %297 : vector<32x32xf32>
    %299 = arith.mulf %298, %298 : vector<32x32xf32>
    %cst_97 = arith.constant dense<0.000000e+00> : vector<32xf32>
    %300 = vector.multi_reduction <add>, %299, %cst_97 [1] : vector<32x32xf32> to vector<32xf32>
    %301 = vector.shape_cast %300 : vector<32xf32> to vector<32x1xf32>
    %cst_98 = arith.constant 3.200000e+01 : f32
    %302 = vector.broadcast %cst_98 : f32 to vector<32x1xf32>
    %303 = arith.divf %301, %302 : vector<32x1xf32>
    %cst_99 = arith.constant 9.99999974E-6 : f32
    %304 = vector.broadcast %cst_99 : f32 to vector<32x1xf32>
    %305 = arith.addf %303, %304 : vector<32x1xf32>
    %306 = math.rsqrt %305 : vector<32x1xf32>
    %307 = vector.broadcast %306 : vector<32x1xf32> to vector<32x32xf32>
    %308 = arith.mulf %298, %307 : vector<32x32xf32>
    %309 = vector.extract_strided_slice %4 {offsets = [9, 0], sizes = [1, 32], strides = [1, 1]} : vector<11x32xf32> to vector<1x32xf32>
    %310 = vector.broadcast %309 : vector<1x32xf32> to vector<32x32xf32>
    %311 = arith.mulf %308, %310 : vector<32x32xf32>
    %312 = vector.extract_strided_slice %4 {offsets = [10, 0], sizes = [1, 32], strides = [1, 1]} : vector<11x32xf32> to vector<1x32xf32>
    %313 = vector.broadcast %312 : vector<1x32xf32> to vector<32x32xf32>
    %314 = arith.addf %311, %313 : vector<32x32xf32>
    %c0_100 = arith.constant 0 : index
    %c0_101 = arith.constant 0 : index
    %315 = vector.load %arg8[%c0_100, %c0_101] : memref<32x64xbf16, #tpu.memory_space<vmem>>, vector<32x64xbf16>
    %316 = arith.truncf %314 : vector<32x32xf32> to vector<32x32xbf16>
    %cst_102 = arith.constant dense<0.000000e+00> : vector<32x64xf32>
    %317 = tpu.matmul %316, %315, %cst_102 {dimension_numbers = #tpu.dot_dimension_numbers<[1], [0], [0], [1], [0, 0, 1, 1], [], []>} : vector<32x32xbf16>, vector<32x64xbf16>, vector<32x64xf32> -> vector<32x64xf32>
    %318 = vector.broadcast %6 : vector<1x64xf32> to vector<32x64xf32>
    %319 = arith.addf %317, %318 : vector<32x64xf32>
    %cst_103 = arith.constant 5.000000e-01 : f32
    %320 = vector.broadcast %cst_103 : f32 to vector<32x64xf32>
    %321 = arith.mulf %320, %319 : vector<32x64xf32>
    %322 = arith.mulf %319, %319 : vector<32x64xf32>
    %323 = arith.mulf %322, %319 : vector<32x64xf32>
    %cst_104 = arith.constant 4.471500e-02 : f32
    %324 = vector.broadcast %cst_104 : f32 to vector<32x64xf32>
    %325 = arith.mulf %324, %323 : vector<32x64xf32>
    %326 = arith.addf %319, %325 : vector<32x64xf32>
    %cst_105 = arith.constant 0.797884583 : f32
    %327 = vector.broadcast %cst_105 : f32 to vector<32x64xf32>
    %328 = arith.mulf %327, %326 : vector<32x64xf32>
    %329 = math.tanh %328 : vector<32x64xf32>
    %cst_106 = arith.constant 1.000000e+00 : f32
    %330 = vector.broadcast %cst_106 : f32 to vector<32x64xf32>
    %331 = arith.addf %330, %329 : vector<32x64xf32>
    %332 = arith.mulf %321, %331 : vector<32x64xf32>
    %c0_107 = arith.constant 0 : index
    %c0_108 = arith.constant 0 : index
    %333 = vector.load %arg9[%c0_107, %c0_108] : memref<64x32xbf16, #tpu.memory_space<vmem>>, vector<64x32xbf16>
    %334 = arith.truncf %332 : vector<32x64xf32> to vector<32x64xbf16>
    %cst_109 = arith.constant dense<0.000000e+00> : vector<32x32xf32>
    %335 = tpu.matmul %334, %333, %cst_109 {dimension_numbers = #tpu.dot_dimension_numbers<[1], [0], [0], [1], [0, 0, 1, 1], [], []>} : vector<32x64xbf16>, vector<64x32xbf16>, vector<32x32xf32> -> vector<32x32xf32>
    %336 = arith.addf %292, %335 : vector<32x32xf32>
    %337 = vector.extract_strided_slice %4 {offsets = [4, 0], sizes = [1, 32], strides = [1, 1]} : vector<11x32xf32> to vector<1x32xf32>
    %338 = vector.broadcast %337 : vector<1x32xf32> to vector<32x32xf32>
    %339 = arith.addf %336, %338 : vector<32x32xf32>
    %340 = vector.shape_cast %339 : vector<32x32xf32> to vector<2x16x32xf32>
    %c0_110 = arith.constant 0 : index
    %c0_111 = arith.constant 0 : index
    %c0_112 = arith.constant 0 : index
    %341 = vector.load %arg13[%c0_110, %c0_111, %c0_112] : memref<2x16x32xf32, #tpu.memory_space<vmem>>, vector<2x16x32xf32>
    tpu.vector_store %arg13[%c0_110, %c0_111, %c0_112], %340 {strides = array<i32>} : memref<2x16x32xf32, #tpu.memory_space<vmem>>, vector<2x16x32xf32>,
    return
  }
  func.func @transform_0(%arg0: i32) -> (i32, i32, i32) {
    %c0_i32 = arith.constant 0 : i32
    %c0_i32_0 = arith.constant 0 : i32
    %c0_i32_1 = arith.constant 0 : i32
    return %arg0, %c0_i32, %c0_i32_0 : i32, i32, i32
  }
  func.func @transform_1(%arg0: i32) -> (i32, i32, i32) {
    %c0_i32 = arith.constant 0 : i32
    %c0_i32_0 = arith.constant 0 : i32
    %c0_i32_1 = arith.constant 0 : i32
    return %arg0, %c0_i32, %c0_i32_0 : i32, i32, i32
  }
  func.func @transform_2(%arg0: i32) -> (i32, i32, i32) {
    %c0_i32 = arith.constant 0 : i32
    %c0_i32_0 = arith.constant 0 : i32
    %c0_i32_1 = arith.constant 0 : i32
    return %arg0, %c0_i32, %c0_i32_0 : i32, i32, i32
  }
  func.func @transform_3(%arg0: i32) -> (i32, i32, i32) {
    %c0_i32 = arith.constant 0 : i32
    %c0_i32_0 = arith.constant 0 : i32
    %c0_i32_1 = arith.constant 0 : i32
    return %arg0, %c0_i32, %c0_i32_0 : i32, i32, i32
  }
  func.func @transform_4(%arg0: i32) -> (i32, i32, i32) {
    %c0_i32 = arith.constant 0 : i32
    %c0_i32_0 = arith.constant 0 : i32
    %c0_i32_1 = arith.constant 0 : i32
    %c0_i32_2 = arith.constant 0 : i32
    return %c0_i32, %c0_i32_0, %c0_i32_1 : i32, i32, i32
  }
  func.func @transform_5(%arg0: i32) -> (i32, i32, i32) {
    %c0_i32 = arith.constant 0 : i32
    %c0_i32_0 = arith.constant 0 : i32
    %c0_i32_1 = arith.constant 0 : i32
    %c0_i32_2 = arith.constant 0 : i32
    return %c0_i32, %c0_i32_0, %c0_i32_1 : i32, i32, i32
  }
  func.func @transform_6(%arg0: i32) -> (i32, i32, i32) {
    %c0_i32 = arith.constant 0 : i32
    %c0_i32_0 = arith.constant 0 : i32
    %c0_i32_1 = arith.constant 0 : i32
    %c0_i32_2 = arith.constant 0 : i32
    return %c0_i32, %c0_i32_0, %c0_i32_1 : i32, i32, i32
  }
  func.func @transform_7(%arg0: i32) -> (i32, i32) {
    %c0_i32 = arith.constant 0 : i32
    %c0_i32_0 = arith.constant 0 : i32
    %c0_i32_1 = arith.constant 0 : i32
    return %c0_i32, %c0_i32_0 : i32, i32
  }
  func.func @transform_8(%arg0: i32) -> (i32, i32) {
    %c0_i32 = arith.constant 0 : i32
    %c0_i32_0 = arith.constant 0 : i32
    %c0_i32_1 = arith.constant 0 : i32
    return %c0_i32, %c0_i32_0 : i32, i32
  }
  func.func @transform_9(%arg0: i32) -> (i32, i32) {
    %c0_i32 = arith.constant 0 : i32
    %c0_i32_0 = arith.constant 0 : i32
    %c0_i32_1 = arith.constant 0 : i32
    return %c0_i32, %c0_i32_0 : i32, i32
  }
  func.func @transform_10(%arg0: i32) -> (i32, i32) {
    %c0_i32 = arith.constant 0 : i32
    %c0_i32_0 = arith.constant 0 : i32
    %c0_i32_1 = arith.constant 0 : i32
    return %c0_i32, %c0_i32_0 : i32, i32
  }
  func.func @transform_11(%arg0: i32) -> (i32, i32) {
    %c0_i32 = arith.constant 0 : i32
    %c0_i32_0 = arith.constant 0 : i32
    %c0_i32_1 = arith.constant 0 : i32
    return %c0_i32, %c0_i32_0 : i32, i32
  }
  func.func @transform_12(%arg0: i32) -> (i32, i32, i32) {
    %c0_i32 = arith.constant 0 : i32
    %c0_i32_0 = arith.constant 0 : i32
    %c0_i32_1 = arith.constant 0 : i32
    return %arg0, %c0_i32, %c0_i32_0 : i32, i32, i32
  }
}

module attributes {stable_mosaic.version = 11 : i64} {
  func.func @_decoder_kernel(%arg0: i32, %arg1: memref<2x16x32xf32, #tpu.memory_space<vmem>>, %arg2: memref<2x8x32xf32, #tpu.memory_space<vmem>>, %arg3: memref<2x16x32xbf16, #tpu.memory_space<vmem>>, %arg4: memref<2x16x8xf32, #tpu.memory_space<vmem>>, %arg5: memref<2x16x32xf32, #tpu.memory_space<vmem>>, %arg6: memref<4x32x32xbf16, #tpu.memory_space<vmem>>, %arg7: memref<2x32x64xbf16, #tpu.memory_space<vmem>>, %arg8: memref<32x64xbf16, #tpu.memory_space<vmem>>, %arg9: memref<64x32xbf16, #tpu.memory_space<vmem>>, %arg10: memref<11x32xf32, #tpu.memory_space<vmem>>, %arg11: memref<2x64xf32, #tpu.memory_space<vmem>>, %arg12: memref<1x64xf32, #tpu.memory_space<vmem>>, %arg13: memref<2x16x32xf32, #tpu.memory_space<vmem>>) attributes {dimension_semantics = [#tpu.dimension_semantics<parallel>], iteration_bounds = array<i64: 1>, scalar_prefetch = 0 : i64, scratch_operands = 0 : i64, tpu.core_type = #tpu.core_type<tc>, window_params = [{transform_indices = @transform_0, window_bounds = array<i64: 2, 16, 32>}, {transform_indices = @transform_1, window_bounds = array<i64: 2, 8, 32>}, {transform_indices = @transform_2, window_bounds = array<i64: 2, 16, 32>}, {transform_indices = @transform_3, window_bounds = array<i64: 2, 16, 8>}, {pipeline_mode = #tpu.pipeline_mode<synchronous>, transform_indices = @transform_4, window_bounds = array<i64: 2, 16, 32>}, {pipeline_mode = #tpu.pipeline_mode<synchronous>, transform_indices = @transform_5, window_bounds = array<i64: 4, 32, 32>}, {pipeline_mode = #tpu.pipeline_mode<synchronous>, transform_indices = @transform_6, window_bounds = array<i64: 2, 32, 64>}, {pipeline_mode = #tpu.pipeline_mode<synchronous>, transform_indices = @transform_7, window_bounds = array<i64: 32, 64>}, {pipeline_mode = #tpu.pipeline_mode<synchronous>, transform_indices = @transform_8, window_bounds = array<i64: 64, 32>}, {pipeline_mode = #tpu.pipeline_mode<synchronous>, transform_indices = @transform_9, window_bounds = array<i64: 11, 32>}, {pipeline_mode = #tpu.pipeline_mode<synchronous>, transform_indices = @transform_10, window_bounds = array<i64: 2, 64>}, {pipeline_mode = #tpu.pipeline_mode<synchronous>, transform_indices = @transform_11, window_bounds = array<i64: 1, 64>}, {transform_indices = @transform_12, window_bounds = array<i64: 2, 16, 32>}]} {
    %c0 = arith.constant 0 : index
    %c0_0 = arith.constant 0 : index
    %c0_1 = arith.constant 0 : index
    %0 = vector.load %arg1[%c0, %c0_0, %c0_1] : memref<2x16x32xf32, #tpu.memory_space<vmem>>, vector<2x16x32xf32>
    %c0_2 = arith.constant 0 : index
    %c0_3 = arith.constant 0 : index
    %c0_4 = arith.constant 0 : index
    %1 = vector.load %arg2[%c0_2, %c0_3, %c0_4] : memref<2x8x32xf32, #tpu.memory_space<vmem>>, vector<2x8x32xf32>
    %c0_5 = arith.constant 0 : index
    %c0_6 = arith.constant 0 : index
    %c0_7 = arith.constant 0 : index
    %2 = vector.load %arg4[%c0_5, %c0_6, %c0_7] : memref<2x16x8xf32, #tpu.memory_space<vmem>>, vector<2x16x8xf32>
    %c0_8 = arith.constant 0 : index
    %c0_9 = arith.constant 0 : index
    %c0_10 = arith.constant 0 : index
    %3 = vector.load %arg5[%c0_8, %c0_9, %c0_10] : memref<2x16x32xf32, #tpu.memory_space<vmem>>, vector<2x16x32xf32>
    %c0_11 = arith.constant 0 : index
    %c0_12 = arith.constant 0 : index
    %4 = vector.load %arg10[%c0_11, %c0_12] : memref<11x32xf32, #tpu.memory_space<vmem>>, vector<11x32xf32>
    %c0_13 = arith.constant 0 : index
    %c0_14 = arith.constant 0 : index
    %5 = vector.load %arg11[%c0_13, %c0_14] : memref<2x64xf32, #tpu.memory_space<vmem>>, vector<2x64xf32>
    %c0_15 = arith.constant 0 : index
    %c0_16 = arith.constant 0 : index
    %6 = vector.load %arg12[%c0_15, %c0_16] : memref<1x64xf32, #tpu.memory_space<vmem>>, vector<1x64xf32>
    %7 = vector.shape_cast %0 : vector<2x16x32xf32> to vector<32x32xf32>
    %cst = arith.constant dense<0.000000e+00> : vector<2x16xf32>
    %8 = vector.multi_reduction <add>, %0, %cst [2] : vector<2x16x32xf32> to vector<2x16xf32>
    %9 = vector.shape_cast %8 : vector<2x16xf32> to vector<2x16x1xf32>
    %cst_17 = arith.constant 3.200000e+01 : f32
    %10 = vector.broadcast %cst_17 : f32 to vector<2x16x1xf32>
    %11 = arith.divf %9, %10 : vector<2x16x1xf32>
    %12 = vector.broadcast %11 : vector<2x16x1xf32> to vector<2x16x32xf32>
    %13 = arith.subf %0, %12 : vector<2x16x32xf32>
    %14 = arith.mulf %13, %13 : vector<2x16x32xf32>
    %cst_18 = arith.constant dense<0.000000e+00> : vector<2x16xf32>
    %15 = vector.multi_reduction <add>, %14, %cst_18 [2] : vector<2x16x32xf32> to vector<2x16xf32>
    %16 = vector.shape_cast %15 : vector<2x16xf32> to vector<2x16x1xf32>
    %cst_19 = arith.constant 3.200000e+01 : f32
    %17 = vector.broadcast %cst_19 : f32 to vector<2x16x1xf32>
    %18 = arith.divf %16, %17 : vector<2x16x1xf32>
    %cst_20 = arith.constant 9.99999974E-6 : f32
    %19 = vector.broadcast %cst_20 : f32 to vector<2x16x1xf32>
    %20 = arith.addf %18, %19 : vector<2x16x1xf32>
    %21 = math.rsqrt %20 : vector<2x16x1xf32>
    %22 = vector.broadcast %21 : vector<2x16x1xf32> to vector<2x16x32xf32>
    %23 = arith.mulf %13, %22 : vector<2x16x32xf32>
    %24 = vector.extract_strided_slice %3 {offsets = [0, 0, 0], sizes = [1, 16, 32], strides = [1, 1, 1]} : vector<2x16x32xf32> to vector<1x16x32xf32>
    %25 = vector.shape_cast %24 : vector<1x16x32xf32> to vector<16x32xf32>
    %26 = vector.shape_cast %25 : vector<16x32xf32> to vector<1x16x32xf32>
    %27 = vector.broadcast %26 : vector<1x16x32xf32> to vector<2x16x32xf32>
    %28 = arith.mulf %23, %27 : vector<2x16x32xf32>
    %29 = vector.extract_strided_slice %3 {offsets = [1, 0, 0], sizes = [1, 16, 32], strides = [1, 1, 1]} : vector<2x16x32xf32> to vector<1x16x32xf32>
    %30 = vector.shape_cast %29 : vector<1x16x32xf32> to vector<16x32xf32>
    %31 = vector.shape_cast %30 : vector<16x32xf32> to vector<1x16x32xf32>
    %32 = vector.broadcast %31 : vector<1x16x32xf32> to vector<2x16x32xf32>
    %33 = arith.addf %28, %32 : vector<2x16x32xf32>
    %34 = vector.shape_cast %33 : vector<2x16x32xf32> to vector<32x32xf32>
    %35 = vector.shape_cast %1 : vector<2x8x32xf32> to vector<16x32xf32>
    %cst_21 = arith.constant dense<0.000000e+00> : vector<16xf32>
    %36 = vector.multi_reduction <add>, %35, %cst_21 [1] : vector<16x32xf32> to vector<16xf32>
    %37 = vector.shape_cast %36 : vector<16xf32> to vector<16x1xf32>
    %cst_22 = arith.constant 3.200000e+01 : f32
    %38 = vector.broadcast %cst_22 : f32 to vector<16x1xf32>
    %39 = arith.divf %37, %38 : vector<16x1xf32>
    %40 = vector.broadcast %39 : vector<16x1xf32> to vector<16x32xf32>
    %41 = arith.subf %35, %40 : vector<16x32xf32>
    %42 = arith.mulf %41, %41 : vector<16x32xf32>
    %cst_23 = arith.constant dense<0.000000e+00> : vector<16xf32>
    %43 = vector.multi_reduction <add>, %42, %cst_23 [1] : vector<16x32xf32> to vector<16xf32>
    %44 = vector.shape_cast %43 : vector<16xf32> to vector<16x1xf32>
    %cst_24 = arith.constant 3.200000e+01 : f32
    %45 = vector.broadcast %cst_24 : f32 to vector<16x1xf32>
    %46 = arith.divf %44, %45 : vector<16x1xf32>
    %cst_25 = arith.constant 9.99999974E-6 : f32
    %47 = vector.broadcast %cst_25 : f32 to vector<16x1xf32>
    %48 = arith.addf %46, %47 : vector<16x1xf32>
    %49 = math.rsqrt %48 : vector<16x1xf32>
    %50 = vector.broadcast %49 : vector<16x1xf32> to vector<16x32xf32>
    %51 = arith.mulf %41, %50 : vector<16x32xf32>
    %52 = vector.extract_strided_slice %4 {offsets = [5, 0], sizes = [1, 32], strides = [1, 1]} : vector<11x32xf32> to vector<1x32xf32>
    %53 = vector.broadcast %52 : vector<1x32xf32> to vector<16x32xf32>
    %54 = arith.mulf %51, %53 : vector<16x32xf32>
    %55 = vector.extract_strided_slice %4 {offsets = [6, 0], sizes = [1, 32], strides = [1, 1]} : vector<11x32xf32> to vector<1x32xf32>
    %56 = vector.broadcast %55 : vector<1x32xf32> to vector<16x32xf32>
    %57 = arith.addf %54, %56 : vector<16x32xf32>
    %c0_26 = arith.constant 0 : index
    %c0_27 = arith.constant 0 : index
    %c0_28 = arith.constant 0 : index
    %58 = vector.load %arg7[%c0_26, %c0_27, %c0_28] : memref<2x32x64xbf16, #tpu.memory_space<vmem>>, vector<1x32x64xbf16>
    %59 = vector.shape_cast %58 : vector<1x32x64xbf16> to vector<32x64xbf16>
    %60 = arith.truncf %57 : vector<16x32xf32> to vector<16x32xbf16>
    %cst_29 = arith.constant dense<0.000000e+00> : vector<16x64xf32>
    %61 = tpu.matmul %60, %59, %cst_29 {dimension_numbers = #tpu.dot_dimension_numbers<[1], [0], [0], [1], [0, 0, 1, 1], [], []>} : vector<16x32xbf16>, vector<32x64xbf16>, vector<16x64xf32> -> vector<16x64xf32>
    %62 = vector.extract_strided_slice %5 {offsets = [0, 0], sizes = [1, 64], strides = [1, 1]} : vector<2x64xf32> to vector<1x64xf32>
    %63 = vector.broadcast %62 : vector<1x64xf32> to vector<16x64xf32>
    %64 = arith.addf %61, %63 : vector<16x64xf32>
    %65 = vector.extract_strided_slice %64 {offsets = [0, 0], sizes = [16, 32], strides = [1, 1]} : vector<16x64xf32> to vector<16x32xf32>
    %66 = vector.shape_cast %65 : vector<16x32xf32> to vector<2x8x32xf32>
    %67 = arith.truncf %66 : vector<2x8x32xf32> to vector<2x8x32xbf16>
    %68 = vector.extract_strided_slice %64 {offsets = [0, 32], sizes = [16, 32], strides = [1, 1]} : vector<16x64xf32> to vector<16x32xf32>
    %69 = vector.shape_cast %68 : vector<16x32xf32> to vector<2x8x32xf32>
    %70 = arith.truncf %69 : vector<2x8x32xf32> to vector<2x8x32xbf16>
    %c0_30 = arith.constant 0 : index
    %c0_31 = arith.constant 0 : index
    %c0_32 = arith.constant 0 : index
    %71 = vector.load %arg6[%c0_30, %c0_31, %c0_32] : memref<4x32x32xbf16, #tpu.memory_space<vmem>>, vector<1x32x32xbf16>
    %72 = vector.shape_cast %71 : vector<1x32x32xbf16> to vector<32x32xbf16>
    %73 = arith.truncf %34 : vector<32x32xf32> to vector<32x32xbf16>
    %cst_33 = arith.constant dense<0.000000e+00> : vector<32x32xf32>
    %74 = tpu.matmul %73, %72, %cst_33 {dimension_numbers = #tpu.dot_dimension_numbers<[1], [0], [0], [1], [0, 0, 1, 1], [], []>} : vector<32x32xbf16>, vector<32x32xbf16>, vector<32x32xf32> -> vector<32x32xf32>
    %75 = vector.extract_strided_slice %4 {offsets = [0, 0], sizes = [1, 32], strides = [1, 1]} : vector<11x32xf32> to vector<1x32xf32>
    %76 = vector.broadcast %75 : vector<1x32xf32> to vector<32x32xf32>
    %77 = arith.addf %74, %76 : vector<32x32xf32>
    %c1 = arith.constant 1 : index
    %c0_34 = arith.constant 0 : index
    %c0_35 = arith.constant 0 : index
    %78 = vector.load %arg6[%c1, %c0_34, %c0_35] : memref<4x32x32xbf16, #tpu.memory_space<vmem>>, vector<1x32x32xbf16>
    %79 = vector.shape_cast %78 : vector<1x32x32xbf16> to vector<32x32xbf16>
    %80 = vector.extract_strided_slice %4 {offsets = [1, 0], sizes = [1, 32], strides = [1, 1]} : vector<11x32xf32> to vector<1x32xf32>
    %81 = vector.shape_cast %77 : vector<32x32xf32> to vector<2x16x32xf32>
    %82 = arith.truncf %81 : vector<2x16x32xf32> to vector<2x16x32xbf16>
    %83 = vector.extract_strided_slice %82 {offsets = [0, 0, 0], sizes = [2, 16, 8], strides = [1, 1, 1]} : vector<2x16x32xbf16> to vector<2x16x8xbf16>
    %84 = vector.extract_strided_slice %67 {offsets = [0, 0, 0], sizes = [2, 8, 8], strides = [1, 1, 1]} : vector<2x8x32xbf16> to vector<2x8x8xbf16>
    "tpu.trace_start"() <{level = 10 : i32, message = "bqd,bkd->bqk"}> : () -> ()
    %cst_36 = arith.constant dense<0.000000e+00> : vector<2x16x8xf32>
    %85 = tpu.matmul %83, %84, %cst_36 {dimension_numbers = #tpu.dot_dimension_numbers<[2], [2], [1], [1], [0, 0, 0, 1, 1, 1], [0], [0]>} : vector<2x16x8xbf16>, vector<2x8x8xbf16>, vector<2x16x8xf32> -> vector<2x16x8xf32>
    "tpu.trace_stop"() : () -> ()
    %cst_37 = arith.constant 0.353553385 : f32
    %86 = vector.broadcast %cst_37 : f32 to vector<2x16x8xf32>
    %87 = arith.mulf %85, %86 : vector<2x16x8xf32>
    %88 = arith.addf %87, %2 : vector<2x16x8xf32>
    %cst_38 = arith.constant dense<0xFF800000> : vector<2x16xf32>
    %89 = vector.multi_reduction <maximumf>, %88, %cst_38 [2] : vector<2x16x8xf32> to vector<2x16xf32>
    %90 = vector.shape_cast %89 : vector<2x16xf32> to vector<2x16x1xf32>
    %91 = vector.broadcast %90 : vector<2x16x1xf32> to vector<2x16x8xf32>
    %92 = arith.subf %88, %91 : vector<2x16x8xf32>
    %93 = math.exp %92 : vector<2x16x8xf32>
    %cst_39 = arith.constant dense<0.000000e+00> : vector<2x16xf32>
    %94 = vector.multi_reduction <add>, %93, %cst_39 [2] : vector<2x16x8xf32> to vector<2x16xf32>
    %95 = vector.shape_cast %94 : vector<2x16xf32> to vector<2x16x1xf32>
    %96 = tpu.reciprocal %95 {approx = true} : vector<2x16x1xf32> -> vector<2x16x1xf32>
    %97 = vector.broadcast %96 : vector<2x16x1xf32> to vector<2x16x8xf32>
    %98 = arith.mulf %93, %97 : vector<2x16x8xf32>
    %99 = arith.truncf %98 : vector<2x16x8xf32> to vector<2x16x8xbf16>
    %100 = vector.extract_strided_slice %70 {offsets = [0, 0, 0], sizes = [2, 8, 8], strides = [1, 1, 1]} : vector<2x8x32xbf16> to vector<2x8x8xbf16>
    "tpu.trace_start"() <{level = 10 : i32, message = "bqk,bkd->bqd"}> : () -> ()
    %cst_40 = arith.constant dense<0.000000e+00> : vector<2x16x8xf32>
    %101 = tpu.matmul %99, %100, %cst_40 {dimension_numbers = #tpu.dot_dimension_numbers<[2], [1], [1], [2], [0, 0, 0, 1, 1, 2], [0], [0]>} : vector<2x16x8xbf16>, vector<2x8x8xbf16>, vector<2x16x8xf32> -> vector<2x16x8xf32>
    "tpu.trace_stop"() : () -> ()
    %102 = vector.extract_strided_slice %82 {offsets = [0, 0, 8], sizes = [2, 16, 8], strides = [1, 1, 1]} : vector<2x16x32xbf16> to vector<2x16x8xbf16>
    %103 = vector.extract_strided_slice %67 {offsets = [0, 0, 8], sizes = [2, 8, 8], strides = [1, 1, 1]} : vector<2x8x32xbf16> to vector<2x8x8xbf16>
    "tpu.trace_start"() <{level = 10 : i32, message = "bqd,bkd->bqk"}> : () -> ()
    %cst_41 = arith.constant dense<0.000000e+00> : vector<2x16x8xf32>
    %104 = tpu.matmul %102, %103, %cst_41 {dimension_numbers = #tpu.dot_dimension_numbers<[2], [2], [1], [1], [0, 0, 0, 1, 1, 1], [0], [0]>} : vector<2x16x8xbf16>, vector<2x8x8xbf16>, vector<2x16x8xf32> -> vector<2x16x8xf32>
    "tpu.trace_stop"() : () -> ()
    %cst_42 = arith.constant 0.353553385 : f32
    %105 = vector.broadcast %cst_42 : f32 to vector<2x16x8xf32>
    %106 = arith.mulf %104, %105 : vector<2x16x8xf32>
    %107 = arith.addf %106, %2 : vector<2x16x8xf32>
    %cst_43 = arith.constant dense<0xFF800000> : vector<2x16xf32>
    %108 = vector.multi_reduction <maximumf>, %107, %cst_43 [2] : vector<2x16x8xf32> to vector<2x16xf32>
    %109 = vector.shape_cast %108 : vector<2x16xf32> to vector<2x16x1xf32>
    %110 = vector.broadcast %109 : vector<2x16x1xf32> to vector<2x16x8xf32>
    %111 = arith.subf %107, %110 : vector<2x16x8xf32>
    %112 = math.exp %111 : vector<2x16x8xf32>
    %cst_44 = arith.constant dense<0.000000e+00> : vector<2x16xf32>
    %113 = vector.multi_reduction <add>, %112, %cst_44 [2] : vector<2x16x8xf32> to vector<2x16xf32>
    %114 = vector.shape_cast %113 : vector<2x16xf32> to vector<2x16x1xf32>
    %115 = tpu.reciprocal %114 {approx = true} : vector<2x16x1xf32> -> vector<2x16x1xf32>
    %116 = vector.broadcast %115 : vector<2x16x1xf32> to vector<2x16x8xf32>
    %117 = arith.mulf %112, %116 : vector<2x16x8xf32>
    %118 = arith.truncf %117 : vector<2x16x8xf32> to vector<2x16x8xbf16>
    %119 = vector.extract_strided_slice %70 {offsets = [0, 0, 8], sizes = [2, 8, 8], strides = [1, 1, 1]} : vector<2x8x32xbf16> to vector<2x8x8xbf16>
    "tpu.trace_start"() <{level = 10 : i32, message = "bqk,bkd->bqd"}> : () -> ()
    %cst_45 = arith.constant dense<0.000000e+00> : vector<2x16x8xf32>
    %120 = tpu.matmul %118, %119, %cst_45 {dimension_numbers = #tpu.dot_dimension_numbers<[2], [1], [1], [2], [0, 0, 0, 1, 1, 2], [0], [0]>} : vector<2x16x8xbf16>, vector<2x8x8xbf16>, vector<2x16x8xf32> -> vector<2x16x8xf32>
    "tpu.trace_stop"() : () -> ()
    %121 = vector.extract_strided_slice %82 {offsets = [0, 0, 16], sizes = [2, 16, 8], strides = [1, 1, 1]} : vector<2x16x32xbf16> to vector<2x16x8xbf16>
    %122 = vector.extract_strided_slice %67 {offsets = [0, 0, 16], sizes = [2, 8, 8], strides = [1, 1, 1]} : vector<2x8x32xbf16> to vector<2x8x8xbf16>
    "tpu.trace_start"() <{level = 10 : i32, message = "bqd,bkd->bqk"}> : () -> ()
    %cst_46 = arith.constant dense<0.000000e+00> : vector<2x16x8xf32>
    %123 = tpu.matmul %121, %122, %cst_46 {dimension_numbers = #tpu.dot_dimension_numbers<[2], [2], [1], [1], [0, 0, 0, 1, 1, 1], [0], [0]>} : vector<2x16x8xbf16>, vector<2x8x8xbf16>, vector<2x16x8xf32> -> vector<2x16x8xf32>
    "tpu.trace_stop"() : () -> ()
    %cst_47 = arith.constant 0.353553385 : f32
    %124 = vector.broadcast %cst_47 : f32 to vector<2x16x8xf32>
    %125 = arith.mulf %123, %124 : vector<2x16x8xf32>
    %126 = arith.addf %125, %2 : vector<2x16x8xf32>
    %cst_48 = arith.constant dense<0xFF800000> : vector<2x16xf32>
    %127 = vector.multi_reduction <maximumf>, %126, %cst_48 [2] : vector<2x16x8xf32> to vector<2x16xf32>
    %128 = vector.shape_cast %127 : vector<2x16xf32> to vector<2x16x1xf32>
    %129 = vector.broadcast %128 : vector<2x16x1xf32> to vector<2x16x8xf32>
    %130 = arith.subf %126, %129 : vector<2x16x8xf32>
    %131 = math.exp %130 : vector<2x16x8xf32>
    %cst_49 = arith.constant dense<0.000000e+00> : vector<2x16xf32>
    %132 = vector.multi_reduction <add>, %131, %cst_49 [2] : vector<2x16x8xf32> to vector<2x16xf32>
    %133 = vector.shape_cast %132 : vector<2x16xf32> to vector<2x16x1xf32>
    %134 = tpu.reciprocal %133 {approx = true} : vector<2x16x1xf32> -> vector<2x16x1xf32>
    %135 = vector.broadcast %134 : vector<2x16x1xf32> to vector<2x16x8xf32>
    %136 = arith.mulf %131, %135 : vector<2x16x8xf32>
    %137 = arith.truncf %136 : vector<2x16x8xf32> to vector<2x16x8xbf16>
    %138 = vector.extract_strided_slice %70 {offsets = [0, 0, 16], sizes = [2, 8, 8], strides = [1, 1, 1]} : vector<2x8x32xbf16> to vector<2x8x8xbf16>
    "tpu.trace_start"() <{level = 10 : i32, message = "bqk,bkd->bqd"}> : () -> ()
    %cst_50 = arith.constant dense<0.000000e+00> : vector<2x16x8xf32>
    %139 = tpu.matmul %137, %138, %cst_50 {dimension_numbers = #tpu.dot_dimension_numbers<[2], [1], [1], [2], [0, 0, 0, 1, 1, 2], [0], [0]>} : vector<2x16x8xbf16>, vector<2x8x8xbf16>, vector<2x16x8xf32> -> vector<2x16x8xf32>
    "tpu.trace_stop"() : () -> ()
    %140 = vector.extract_strided_slice %82 {offsets = [0, 0, 24], sizes = [2, 16, 8], strides = [1, 1, 1]} : vector<2x16x32xbf16> to vector<2x16x8xbf16>
    %141 = vector.extract_strided_slice %67 {offsets = [0, 0, 24], sizes = [2, 8, 8], strides = [1, 1, 1]} : vector<2x8x32xbf16> to vector<2x8x8xbf16>
    "tpu.trace_start"() <{level = 10 : i32, message = "bqd,bkd->bqk"}> : () -> ()
    %cst_51 = arith.constant dense<0.000000e+00> : vector<2x16x8xf32>
    %142 = tpu.matmul %140, %141, %cst_51 {dimension_numbers = #tpu.dot_dimension_numbers<[2], [2], [1], [1], [0, 0, 0, 1, 1, 1], [0], [0]>} : vector<2x16x8xbf16>, vector<2x8x8xbf16>, vector<2x16x8xf32> -> vector<2x16x8xf32>
    "tpu.trace_stop"() : () -> ()
    %cst_52 = arith.constant 0.353553385 : f32
    %143 = vector.broadcast %cst_52 : f32 to vector<2x16x8xf32>
    %144 = arith.mulf %142, %143 : vector<2x16x8xf32>
    %145 = arith.addf %144, %2 : vector<2x16x8xf32>
    %cst_53 = arith.constant dense<0xFF800000> : vector<2x16xf32>
    %146 = vector.multi_reduction <maximumf>, %145, %cst_53 [2] : vector<2x16x8xf32> to vector<2x16xf32>
    %147 = vector.shape_cast %146 : vector<2x16xf32> to vector<2x16x1xf32>
    %148 = vector.broadcast %147 : vector<2x16x1xf32> to vector<2x16x8xf32>
    %149 = arith.subf %145, %148 : vector<2x16x8xf32>
    %150 = math.exp %149 : vector<2x16x8xf32>
    %cst_54 = arith.constant dense<0.000000e+00> : vector<2x16xf32>
    %151 = vector.multi_reduction <add>, %150, %cst_54 [2] : vector<2x16x8xf32> to vector<2x16xf32>
    %152 = vector.shape_cast %151 : vector<2x16xf32> to vector<2x16x1xf32>
    %153 = tpu.reciprocal %152 {approx = true} : vector<2x16x1xf32> -> vector<2x16x1xf32>
    %154 = vector.broadcast %153 : vector<2x16x1xf32> to vector<2x16x8xf32>
    %155 = arith.mulf %150, %154 : vector<2x16x8xf32>
    %156 = arith.truncf %155 : vector<2x16x8xf32> to vector<2x16x8xbf16>
    %157 = vector.extract_strided_slice %70 {offsets = [0, 0, 24], sizes = [2, 8, 8], strides = [1, 1, 1]} : vector<2x8x32xbf16> to vector<2x8x8xbf16>
    "tpu.trace_start"() <{level = 10 : i32, message = "bqk,bkd->bqd"}> : () -> ()
    %cst_55 = arith.constant dense<0.000000e+00> : vector<2x16x8xf32>
    %158 = tpu.matmul %156, %157, %cst_55 {dimension_numbers = #tpu.dot_dimension_numbers<[2], [1], [1], [2], [0, 0, 0, 1, 1, 2], [0], [0]>} : vector<2x16x8xbf16>, vector<2x8x8xbf16>, vector<2x16x8xf32> -> vector<2x16x8xf32>
    "tpu.trace_stop"() : () -> ()
    %159 = tpu.concatenate %101, %120, %139, %158 in 2 : vector<2x16x8xf32>, vector<2x16x8xf32>, vector<2x16x8xf32>, vector<2x16x8xf32> -> vector<2x16x32xf32>
    %160 = vector.shape_cast %159 : vector<2x16x32xf32> to vector<32x32xf32>
    %161 = arith.truncf %160 : vector<32x32xf32> to vector<32x32xbf16>
    %cst_56 = arith.constant dense<0.000000e+00> : vector<32x32xf32>
    %162 = tpu.matmul %161, %79, %cst_56 {dimension_numbers = #tpu.dot_dimension_numbers<[1], [0], [0], [1], [0, 0, 1, 1], [], []>} : vector<32x32xbf16>, vector<32x32xbf16>, vector<32x32xf32> -> vector<32x32xf32>
    %163 = vector.broadcast %80 : vector<1x32xf32> to vector<32x32xf32>
    %164 = arith.addf %162, %163 : vector<32x32xf32>
    %165 = arith.addf %7, %164 : vector<32x32xf32>
    %cst_57 = arith.constant dense<0.000000e+00> : vector<32xf32>
    %166 = vector.multi_reduction <add>, %165, %cst_57 [1] : vector<32x32xf32> to vector<32xf32>
    %167 = vector.shape_cast %166 : vector<32xf32> to vector<32x1xf32>
    %cst_58 = arith.constant 3.200000e+01 : f32
    %168 = vector.broadcast %cst_58 : f32 to vector<32x1xf32>
    %169 = arith.divf %167, %168 : vector<32x1xf32>
    %170 = vector.broadcast %169 : vector<32x1xf32> to vector<32x32xf32>
    %171 = arith.subf %165, %170 : vector<32x32xf32>
    %172 = arith.mulf %171, %171 : vector<32x32xf32>
    %cst_59 = arith.constant dense<0.000000e+00> : vector<32xf32>
    %173 = vector.multi_reduction <add>, %172, %cst_59 [1] : vector<32x32xf32> to vector<32xf32>
    %174 = vector.shape_cast %173 : vector<32xf32> to vector<32x1xf32>
    %cst_60 = arith.constant 3.200000e+01 : f32
    %175 = vector.broadcast %cst_60 : f32 to vector<32x1xf32>
    %176 = arith.divf %174, %175 : vector<32x1xf32>
    %cst_61 = arith.constant 9.99999974E-6 : f32
    %177 = vector.broadcast %cst_61 : f32 to vector<32x1xf32>
    %178 = arith.addf %176, %177 : vector<32x1xf32>
    %179 = math.rsqrt %178 : vector<32x1xf32>
    %180 = vector.broadcast %179 : vector<32x1xf32> to vector<32x32xf32>
    %181 = arith.mulf %171, %180 : vector<32x32xf32>
    %182 = vector.extract_strided_slice %4 {offsets = [7, 0], sizes = [1, 32], strides = [1, 1]} : vector<11x32xf32> to vector<1x32xf32>
    %183 = vector.broadcast %182 : vector<1x32xf32> to vector<32x32xf32>
    %184 = arith.mulf %181, %183 : vector<32x32xf32>
    %185 = vector.extract_strided_slice %4 {offsets = [8, 0], sizes = [1, 32], strides = [1, 1]} : vector<11x32xf32> to vector<1x32xf32>
    %186 = vector.broadcast %185 : vector<1x32xf32> to vector<32x32xf32>
    %187 = arith.addf %184, %186 : vector<32x32xf32>
    %c0_62 = arith.constant 0 : index
    %c0_63 = arith.constant 0 : index
    %c0_64 = arith.constant 0 : index
    %188 = vector.load %arg3[%c0_62, %c0_63, %c0_64] : memref<2x16x32xbf16, #tpu.memory_space<vmem>>, vector<2x16x32xbf16>
    %189 = vector.shape_cast %188 : vector<2x16x32xbf16> to vector<32x32xbf16>
    %c1_65 = arith.constant 1 : index
    %c0_66 = arith.constant 0 : index
    %c0_67 = arith.constant 0 : index
    %190 = vector.load %arg7[%c1_65, %c0_66, %c0_67] : memref<2x32x64xbf16, #tpu.memory_space<vmem>>, vector<1x32x64xbf16>
    %191 = vector.shape_cast %190 : vector<1x32x64xbf16> to vector<32x64xbf16>
    %cst_68 = arith.constant dense<0.000000e+00> : vector<32x64xf32>
    %192 = tpu.matmul %189, %191, %cst_68 {dimension_numbers = #tpu.dot_dimension_numbers<[1], [0], [0], [1], [0, 0, 1, 1], [], []>} : vector<32x32xbf16>, vector<32x64xbf16>, vector<32x64xf32> -> vector<32x64xf32>
    %193 = vector.extract_strided_slice %5 {offsets = [1, 0], sizes = [1, 64], strides = [1, 1]} : vector<2x64xf32> to vector<1x64xf32>
    %194 = vector.broadcast %193 : vector<1x64xf32> to vector<32x64xf32>
    %195 = arith.addf %192, %194 : vector<32x64xf32>
    %196 = vector.extract_strided_slice %195 {offsets = [0, 0], sizes = [32, 32], strides = [1, 1]} : vector<32x64xf32> to vector<32x32xf32>
    %197 = vector.shape_cast %196 : vector<32x32xf32> to vector<2x16x32xf32>
    %198 = arith.truncf %197 : vector<2x16x32xf32> to vector<2x16x32xbf16>
    %199 = vector.extract_strided_slice %195 {offsets = [0, 32], sizes = [32, 32], strides = [1, 1]} : vector<32x64xf32> to vector<32x32xf32>
    %200 = vector.shape_cast %199 : vector<32x32xf32> to vector<2x16x32xf32>
    %201 = arith.truncf %200 : vector<2x16x32xf32> to vector<2x16x32xbf16>
    %c2 = arith.constant 2 : index
    %c0_69 = arith.constant 0 : index
    %c0_70 = arith.constant 0 : index
    %202 = vector.load %arg6[%c2, %c0_69, %c0_70] : memref<4x32x32xbf16, #tpu.memory_space<vmem>>, vector<1x32x32xbf16>
    %203 = vector.shape_cast %202 : vector<1x32x32xbf16> to vector<32x32xbf16>
    %204 = arith.truncf %187 : vector<32x32xf32> to vector<32x32xbf16>
    %cst_71 = arith.constant dense<0.000000e+00> : vector<32x32xf32>
    %205 = tpu.matmul %204, %203, %cst_71 {dimension_numbers = #tpu.dot_dimension_numbers<[1], [0], [0], [1], [0, 0, 1, 1], [], []>} : vector<32x32xbf16>, vector<32x32xbf16>, vector<32x32xf32> -> vector<32x32xf32>
    %206 = vector.extract_strided_slice %4 {offsets = [2, 0], sizes = [1, 32], strides = [1, 1]} : vector<11x32xf32> to vector<1x32xf32>
    %207 = vector.broadcast %206 : vector<1x32xf32> to vector<32x32xf32>
    %208 = arith.addf %205, %207 : vector<32x32xf32>
    %c3 = arith.constant 3 : index
    %c0_72 = arith.constant 0 : index
    %c0_73 = arith.constant 0 : index
    %209 = vector.load %arg6[%c3, %c0_72, %c0_73] : memref<4x32x32xbf16, #tpu.memory_space<vmem>>, vector<1x32x32xbf16>
    %210 = vector.shape_cast %209 : vector<1x32x32xbf16> to vector<32x32xbf16>
    %211 = vector.extract_strided_slice %4 {offsets = [3, 0], sizes = [1, 32], strides = [1, 1]} : vector<11x32xf32> to vector<1x32xf32>
    %212 = vector.shape_cast %208 : vector<32x32xf32> to vector<2x16x32xf32>
    %213 = arith.truncf %212 : vector<2x16x32xf32> to vector<2x16x32xbf16>
    %214 = vector.extract_strided_slice %213 {offsets = [0, 0, 0], sizes = [2, 16, 8], strides = [1, 1, 1]} : vector<2x16x32xbf16> to vector<2x16x8xbf16>
    %215 = vector.extract_strided_slice %198 {offsets = [0, 0, 0], sizes = [2, 16, 8], strides = [1, 1, 1]} : vector<2x16x32xbf16> to vector<2x16x8xbf16>
    "tpu.trace_start"() <{level = 10 : i32, message = "bqd,bkd->bqk"}> : () -> ()
    %cst_74 = arith.constant dense<0.000000e+00> : vector<2x16x16xf32>
    %216 = tpu.matmul %214, %215, %cst_74 {dimension_numbers = #tpu.dot_dimension_numbers<[2], [2], [1], [1], [0, 0, 0, 1, 1, 1], [0], [0]>} : vector<2x16x8xbf16>, vector<2x16x8xbf16>, vector<2x16x16xf32> -> vector<2x16x16xf32>
    "tpu.trace_stop"() : () -> ()
    %cst_75 = arith.constant 0.353553385 : f32
    %217 = vector.broadcast %cst_75 : f32 to vector<2x16x16xf32>
    %218 = arith.mulf %216, %217 : vector<2x16x16xf32>
    %cst_76 = arith.constant dense<0xFF800000> : vector<2x16xf32>
    %219 = vector.multi_reduction <maximumf>, %218, %cst_76 [2] : vector<2x16x16xf32> to vector<2x16xf32>
    %220 = vector.shape_cast %219 : vector<2x16xf32> to vector<2x16x1xf32>
    %221 = vector.broadcast %220 : vector<2x16x1xf32> to vector<2x16x16xf32>
    %222 = arith.subf %218, %221 : vector<2x16x16xf32>
    %223 = math.exp %222 : vector<2x16x16xf32>
    %cst_77 = arith.constant dense<0.000000e+00> : vector<2x16xf32>
    %224 = vector.multi_reduction <add>, %223, %cst_77 [2] : vector<2x16x16xf32> to vector<2x16xf32>
    %225 = vector.shape_cast %224 : vector<2x16xf32> to vector<2x16x1xf32>
    %226 = tpu.reciprocal %225 {approx = true} : vector<2x16x1xf32> -> vector<2x16x1xf32>
    %227 = vector.broadcast %226 : vector<2x16x1xf32> to vector<2x16x16xf32>
    %228 = arith.mulf %223, %227 : vector<2x16x16xf32>
    %229 = arith.truncf %228 : vector<2x16x16xf32> to vector<2x16x16xbf16>
    %230 = vector.extract_strided_slice %201 {offsets = [0, 0, 0], sizes = [2, 16, 8], strides = [1, 1, 1]} : vector<2x16x32xbf16> to vector<2x16x8xbf16>
    "tpu.trace_start"() <{level = 10 : i32, message = "bqk,bkd->bqd"}> : () -> ()
    %cst_78 = arith.constant dense<0.000000e+00> : vector<2x16x8xf32>
    %231 = tpu.matmul %229, %230, %cst_78 {dimension_numbers = #tpu.dot_dimension_numbers<[2], [1], [1], [2], [0, 0, 0, 1, 1, 2], [0], [0]>} : vector<2x16x16xbf16>, vector<2x16x8xbf16>, vector<2x16x8xf32> -> vector<2x16x8xf32>
    "tpu.trace_stop"() : () -> ()
    %232 = vector.extract_strided_slice %213 {offsets = [0, 0, 8], sizes = [2, 16, 8], strides = [1, 1, 1]} : vector<2x16x32xbf16> to vector<2x16x8xbf16>
    %233 = vector.extract_strided_slice %198 {offsets = [0, 0, 8], sizes = [2, 16, 8], strides = [1, 1, 1]} : vector<2x16x32xbf16> to vector<2x16x8xbf16>
    "tpu.trace_start"() <{level = 10 : i32, message = "bqd,bkd->bqk"}> : () -> ()
    %cst_79 = arith.constant dense<0.000000e+00> : vector<2x16x16xf32>
    %234 = tpu.matmul %232, %233, %cst_79 {dimension_numbers = #tpu.dot_dimension_numbers<[2], [2], [1], [1], [0, 0, 0, 1, 1, 1], [0], [0]>} : vector<2x16x8xbf16>, vector<2x16x8xbf16>, vector<2x16x16xf32> -> vector<2x16x16xf32>
    "tpu.trace_stop"() : () -> ()
    %cst_80 = arith.constant 0.353553385 : f32
    %235 = vector.broadcast %cst_80 : f32 to vector<2x16x16xf32>
    %236 = arith.mulf %234, %235 : vector<2x16x16xf32>
    %cst_81 = arith.constant dense<0xFF800000> : vector<2x16xf32>
    %237 = vector.multi_reduction <maximumf>, %236, %cst_81 [2] : vector<2x16x16xf32> to vector<2x16xf32>
    %238 = vector.shape_cast %237 : vector<2x16xf32> to vector<2x16x1xf32>
    %239 = vector.broadcast %238 : vector<2x16x1xf32> to vector<2x16x16xf32>
    %240 = arith.subf %236, %239 : vector<2x16x16xf32>
    %241 = math.exp %240 : vector<2x16x16xf32>
    %cst_82 = arith.constant dense<0.000000e+00> : vector<2x16xf32>
    %242 = vector.multi_reduction <add>, %241, %cst_82 [2] : vector<2x16x16xf32> to vector<2x16xf32>
    %243 = vector.shape_cast %242 : vector<2x16xf32> to vector<2x16x1xf32>
    %244 = tpu.reciprocal %243 {approx = true} : vector<2x16x1xf32> -> vector<2x16x1xf32>
    %245 = vector.broadcast %244 : vector<2x16x1xf32> to vector<2x16x16xf32>
    %246 = arith.mulf %241, %245 : vector<2x16x16xf32>
    %247 = arith.truncf %246 : vector<2x16x16xf32> to vector<2x16x16xbf16>
    %248 = vector.extract_strided_slice %201 {offsets = [0, 0, 8], sizes = [2, 16, 8], strides = [1, 1, 1]} : vector<2x16x32xbf16> to vector<2x16x8xbf16>
    "tpu.trace_start"() <{level = 10 : i32, message = "bqk,bkd->bqd"}> : () -> ()
    %cst_83 = arith.constant dense<0.000000e+00> : vector<2x16x8xf32>
    %249 = tpu.matmul %247, %248, %cst_83 {dimension_numbers = #tpu.dot_dimension_numbers<[2], [1], [1], [2], [0, 0, 0, 1, 1, 2], [0], [0]>} : vector<2x16x16xbf16>, vector<2x16x8xbf16>, vector<2x16x8xf32> -> vector<2x16x8xf32>
    "tpu.trace_stop"() : () -> ()
    %250 = vector.extract_strided_slice %213 {offsets = [0, 0, 16], sizes = [2, 16, 8], strides = [1, 1, 1]} : vector<2x16x32xbf16> to vector<2x16x8xbf16>
    %251 = vector.extract_strided_slice %198 {offsets = [0, 0, 16], sizes = [2, 16, 8], strides = [1, 1, 1]} : vector<2x16x32xbf16> to vector<2x16x8xbf16>
    "tpu.trace_start"() <{level = 10 : i32, message = "bqd,bkd->bqk"}> : () -> ()
    %cst_84 = arith.constant dense<0.000000e+00> : vector<2x16x16xf32>
    %252 = tpu.matmul %250, %251, %cst_84 {dimension_numbers = #tpu.dot_dimension_numbers<[2], [2], [1], [1], [0, 0, 0, 1, 1, 1], [0], [0]>} : vector<2x16x8xbf16>, vector<2x16x8xbf16>, vector<2x16x16xf32> -> vector<2x16x16xf32>
    "tpu.trace_stop"() : () -> ()
    %cst_85 = arith.constant 0.353553385 : f32
    %253 = vector.broadcast %cst_85 : f32 to vector<2x16x16xf32>
    %254 = arith.mulf %252, %253 : vector<2x16x16xf32>
    %cst_86 = arith.constant dense<0xFF800000> : vector<2x16xf32>
    %255 = vector.multi_reduction <maximumf>, %254, %cst_86 [2] : vector<2x16x16xf32> to vector<2x16xf32>
    %256 = vector.shape_cast %255 : vector<2x16xf32> to vector<2x16x1xf32>
    %257 = vector.broadcast %256 : vector<2x16x1xf32> to vector<2x16x16xf32>
    %258 = arith.subf %254, %257 : vector<2x16x16xf32>
    %259 = math.exp %258 : vector<2x16x16xf32>
    %cst_87 = arith.constant dense<0.000000e+00> : vector<2x16xf32>
    %260 = vector.multi_reduction <add>, %259, %cst_87 [2] : vector<2x16x16xf32> to vector<2x16xf32>
    %261 = vector.shape_cast %260 : vector<2x16xf32> to vector<2x16x1xf32>
    %262 = tpu.reciprocal %261 {approx = true} : vector<2x16x1xf32> -> vector<2x16x1xf32>
    %263 = vector.broadcast %262 : vector<2x16x1xf32> to vector<2x16x16xf32>
    %264 = arith.mulf %259, %263 : vector<2x16x16xf32>
    %265 = arith.truncf %264 : vector<2x16x16xf32> to vector<2x16x16xbf16>
    %266 = vector.extract_strided_slice %201 {offsets = [0, 0, 16], sizes = [2, 16, 8], strides = [1, 1, 1]} : vector<2x16x32xbf16> to vector<2x16x8xbf16>
    "tpu.trace_start"() <{level = 10 : i32, message = "bqk,bkd->bqd"}> : () -> ()
    %cst_88 = arith.constant dense<0.000000e+00> : vector<2x16x8xf32>
    %267 = tpu.matmul %265, %266, %cst_88 {dimension_numbers = #tpu.dot_dimension_numbers<[2], [1], [1], [2], [0, 0, 0, 1, 1, 2], [0], [0]>} : vector<2x16x16xbf16>, vector<2x16x8xbf16>, vector<2x16x8xf32> -> vector<2x16x8xf32>
    "tpu.trace_stop"() : () -> ()
    %268 = vector.extract_strided_slice %213 {offsets = [0, 0, 24], sizes = [2, 16, 8], strides = [1, 1, 1]} : vector<2x16x32xbf16> to vector<2x16x8xbf16>
    %269 = vector.extract_strided_slice %198 {offsets = [0, 0, 24], sizes = [2, 16, 8], strides = [1, 1, 1]} : vector<2x16x32xbf16> to vector<2x16x8xbf16>
    "tpu.trace_start"() <{level = 10 : i32, message = "bqd,bkd->bqk"}> : () -> ()
    %cst_89 = arith.constant dense<0.000000e+00> : vector<2x16x16xf32>
    %270 = tpu.matmul %268, %269, %cst_89 {dimension_numbers = #tpu.dot_dimension_numbers<[2], [2], [1], [1], [0, 0, 0, 1, 1, 1], [0], [0]>} : vector<2x16x8xbf16>, vector<2x16x8xbf16>, vector<2x16x16xf32> -> vector<2x16x16xf32>
    "tpu.trace_stop"() : () -> ()
    %cst_90 = arith.constant 0.353553385 : f32
    %271 = vector.broadcast %cst_90 : f32 to vector<2x16x16xf32>
    %272 = arith.mulf %270, %271 : vector<2x16x16xf32>
    %cst_91 = arith.constant dense<0xFF800000> : vector<2x16xf32>
    %273 = vector.multi_reduction <maximumf>, %272, %cst_91 [2] : vector<2x16x16xf32> to vector<2x16xf32>
    %274 = vector.shape_cast %273 : vector<2x16xf32> to vector<2x16x1xf32>
    %275 = vector.broadcast %274 : vector<2x16x1xf32> to vector<2x16x16xf32>
    %276 = arith.subf %272, %275 : vector<2x16x16xf32>
    %277 = math.exp %276 : vector<2x16x16xf32>
    %cst_92 = arith.constant dense<0.000000e+00> : vector<2x16xf32>
    %278 = vector.multi_reduction <add>, %277, %cst_92 [2] : vector<2x16x16xf32> to vector<2x16xf32>
    %279 = vector.shape_cast %278 : vector<2x16xf32> to vector<2x16x1xf32>
    %280 = tpu.reciprocal %279 {approx = true} : vector<2x16x1xf32> -> vector<2x16x1xf32>
    %281 = vector.broadcast %280 : vector<2x16x1xf32> to vector<2x16x16xf32>
    %282 = arith.mulf %277, %281 : vector<2x16x16xf32>
    %283 = arith.truncf %282 : vector<2x16x16xf32> to vector<2x16x16xbf16>
    %284 = vector.extract_strided_slice %201 {offsets = [0, 0, 24], sizes = [2, 16, 8], strides = [1, 1, 1]} : vector<2x16x32xbf16> to vector<2x16x8xbf16>
    "tpu.trace_start"() <{level = 10 : i32, message = "bqk,bkd->bqd"}> : () -> ()
    %cst_93 = arith.constant dense<0.000000e+00> : vector<2x16x8xf32>
    %285 = tpu.matmul %283, %284, %cst_93 {dimension_numbers = #tpu.dot_dimension_numbers<[2], [1], [1], [2], [0, 0, 0, 1, 1, 2], [0], [0]>} : vector<2x16x16xbf16>, vector<2x16x8xbf16>, vector<2x16x8xf32> -> vector<2x16x8xf32>
    "tpu.trace_stop"() : () -> ()
    %286 = tpu.concatenate %231, %249, %267, %285 in 2 : vector<2x16x8xf32>, vector<2x16x8xf32>, vector<2x16x8xf32>, vector<2x16x8xf32> -> vector<2x16x32xf32>
    %287 = vector.shape_cast %286 : vector<2x16x32xf32> to vector<32x32xf32>
    %288 = arith.truncf %287 : vector<32x32xf32> to vector<32x32xbf16>
    %cst_94 = arith.constant dense<0.000000e+00> : vector<32x32xf32>
    %289 = tpu.matmul %288, %210, %cst_94 {dimension_numbers = #tpu.dot_dimension_numbers<[1], [0], [0], [1], [0, 0, 1, 1], [], []>} : vector<32x32xbf16>, vector<32x32xbf16>, vector<32x32xf32> -> vector<32x32xf32>
    %290 = vector.broadcast %211 : vector<1x32xf32> to vector<32x32xf32>
    %291 = arith.addf %289, %290 : vector<32x32xf32>
    %292 = arith.addf %165, %291 : vector<32x32xf32>
    %cst_95 = arith.constant dense<0.000000e+00> : vector<32xf32>
    %293 = vector.multi_reduction <add>, %292, %cst_95 [1] : vector<32x32xf32> to vector<32xf32>
    %294 = vector.shape_cast %293 : vector<32xf32> to vector<32x1xf32>
    %cst_96 = arith.constant 3.200000e+01 : f32
    %295 = vector.broadcast %cst_96 : f32 to vector<32x1xf32>
    %296 = arith.divf %294, %295 : vector<32x1xf32>
    %297 = vector.broadcast %296 : vector<32x1xf32> to vector<32x32xf32>
    %298 = arith.subf %292, %297 : vector<32x32xf32>
    %299 = arith.mulf %298, %298 : vector<32x32xf32>
    %cst_97 = arith.constant dense<0.000000e+00> : vector<32xf32>
    %300 = vector.multi_reduction <add>, %299, %cst_97 [1] : vector<32x32xf32> to vector<32xf32>
    %301 = vector.shape_cast %300 : vector<32xf32> to vector<32x1xf32>
    %cst_98 = arith.constant 3.200000e+01 : f32
    %302 = vector.broadcast %cst_98 : f32 to vector<32x1xf32>
    %303 = arith.divf %301, %302 : vector<32x1xf32>
    %cst_99 = arith.constant 9.99999974E-6 : f32
    %304 = vector.broadcast %cst_99 : f32 to vector<32x1xf32>
    %305 = arith.addf %303, %304 : vector<32x1xf32>
    %306 = math.rsqrt %305 : vector<32x1xf32>
    %307 = vector.broadcast %306 : vector<32x1xf32> to vector<32x32xf32>
    %308 = arith.mulf %298, %307 : vector<32x32xf32>
    %309 = vector.extract_strided_slice %4 {offsets = [9, 0], sizes = [1, 32], strides = [1, 1]} : vector<11x32xf32> to vector<1x32xf32>
    %310 = vector.broadcast %309 : vector<1x32xf32> to vector<32x32xf32>
    %311 = arith.mulf %308, %310 : vector<32x32xf32>
    %312 = vector.extract_strided_slice %4 {offsets = [10, 0], sizes = [1, 32], strides = [1, 1]} : vector<11x32xf32> to vector<1x32xf32>
    %313 = vector.broadcast %312 : vector<1x32xf32> to vector<32x32xf32>
    %314 = arith.addf %311, %313 : vector<32x32xf32>
    %c0_100 = arith.constant 0 : index
    %c0_101 = arith.constant 0 : index
    %315 = vector.load %arg8[%c0_100, %c0_101] : memref<32x64xbf16, #tpu.memory_space<vmem>>, vector<32x64xbf16>
    %316 = arith.truncf %314 : vector<32x32xf32> to vector<32x32xbf16>
    %cst_102 = arith.constant dense<0.000000e+00> : vector<32x64xf32>
    %317 = tpu.matmul %316, %315, %cst_102 {dimension_numbers = #tpu.dot_dimension_numbers<[1], [0], [0], [1], [0, 0, 1, 1], [], []>} : vector<32x32xbf16>, vector<32x64xbf16>, vector<32x64xf32> -> vector<32x64xf32>
    %318 = vector.broadcast %6 : vector<1x64xf32> to vector<32x64xf32>
    %319 = arith.addf %317, %318 : vector<32x64xf32>
    %cst_103 = arith.constant 5.000000e-01 : f32
    %320 = vector.broadcast %cst_103 : f32 to vector<32x64xf32>
    %321 = arith.mulf %320, %319 : vector<32x64xf32>
    %322 = arith.mulf %319, %319 : vector<32x64xf32>
    %323 = arith.mulf %322, %319 : vector<32x64xf32>
    %cst_104 = arith.constant 4.471500e-02 : f32
    %324 = vector.broadcast %cst_104 : f32 to vector<32x64xf32>
    %325 = arith.mulf %324, %323 : vector<32x64xf32>
    %326 = arith.addf %319, %325 : vector<32x64xf32>
    %cst_105 = arith.constant 0.797884583 : f32
    %327 = vector.broadcast %cst_105 : f32 to vector<32x64xf32>
    %328 = arith.mulf %327, %326 : vector<32x64xf32>
    %329 = math.tanh %328 : vector<32x64xf32>
    %cst_106 = arith.constant 1.000000e+00 : f32
    %330 = vector.broadcast %cst_106 : f32 to vector<32x64xf32>
    %331 = arith.addf %330, %329 : vector<32x64xf32>
    %332 = arith.mulf %321, %331 : vector<32x64xf32>
    %c0_107 = arith.constant 0 : index
    %c0_108 = arith.constant 0 : index
    %333 = vector.load %arg9[%c0_107, %c0_108] : memref<64x32xbf16, #tpu.memory_space<vmem>>, vector<64x32xbf16>
    %334 = arith.truncf %332 : vector<32x64xf32> to vector<32x64xbf16>
    %cst_109 = arith.constant dense<0.000000e+00> : vector<32x32xf32>
    %335 = tpu.matmul %334, %333, %cst_109 {dimension_numbers = #tpu.dot_dimension_numbers<[1], [0], [0], [1], [0, 0, 1, 1], [], []>} : vector<32x64xbf16>, vector<64x32xbf16>, vector<32x32xf32> -> vector<32x32xf32>
    %336 = arith.addf %292, %335 : vector<32x32xf32>
    %337 = vector.extract_strided_slice %4 {offsets = [4, 0], sizes = [1, 32], strides = [1, 1]} : vector<11x32xf32> to vector<1x32xf32>
    %338 = vector.broadcast %337 : vector<1x32xf32> to vector<32x32xf32>
    %339 = arith.addf %336, %338 : vector<32x32xf32>
    %340 = vector.shape_cast %339 : vector<32x32xf32> to vector<2x16x32xf32>
    %c0_110 = arith.constant 0 : index
    %c0_111 = arith.constant 0 : index
    %c0_112 = arith.constant 0 : index
    %341 = vector.load %arg13[%c0_110, %c0_111, %c0_112] : memref<2x16x32xf32, #tpu.memory_space<vmem>>, vector<2x16x32xf32>
    tpu.vector_store %arg13[%c0_110, %c0_111, %c0_112], %340 {strides = array<i32>} : memref<2x16x32xf32, #tpu.memory_space<vmem>>, vector<2x16x32xf32>,
    return
  }
  func.func @transform_0(%arg0: i32) -> (i32, i32, i32) {
    %c0_i32 = arith.constant 0 : i32
    %c0_i32_0 = arith.constant 0 : i32
    %c0_i32_1 = arith.constant 0 : i32
    return %arg0, %c0_i32, %c0_i32_0 : i32, i32, i32
  }
  func.func @transform_1(%arg0: i32) -> (i32, i32, i32) {
    %c0_i32 = arith.constant 0 : i32
    %c0_i32_0 = arith.constant 0 : i32
    %c0_i32_1 = arith.constant 0 : i32
    return %arg0, %c0_i32, %c0_i32_0 : i32, i32, i32
  }
  func.func @transform_2(%arg0: i32) -> (i32, i32, i32) {
    %c0_i32 = arith.constant 0 : i32
    %c0_i32_0 = arith.constant 0 : i32
    %c0_i32_1 = arith.constant 0 : i32
    return %arg0, %c0_i32, %c0_i32_0 : i32, i32, i32
  }
  func.func @transform_3(%arg0: i32) -> (i32, i32, i32) {
    %c0_i32 = arith.constant 0 : i32
    %c0_i32_0 = arith.constant 0 : i32
    %c0_i32_1 = arith.constant 0 : i32
    return %arg0, %c0_i32, %c0_i32_0 : i32, i32, i32
  }
  func.func @transform_4(%arg0: i32) -> (i32, i32, i32) {
    %c0_i32 = arith.constant 0 : i32
    %c0_i32_0 = arith.constant 0 : i32
    %c0_i32_1 = arith.constant 0 : i32
    %c0_i32_2 = arith.constant 0 : i32
    return %c0_i32, %c0_i32_0, %c0_i32_1 : i32, i32, i32
  }
  func.func @transform_5(%arg0: i32) -> (i32, i32, i32) {
    %c0_i32 = arith.constant 0 : i32
    %c0_i32_0 = arith.constant 0 : i32
    %c0_i32_1 = arith.constant 0 : i32
    %c0_i32_2 = arith.constant 0 : i32
    return %c0_i32, %c0_i32_0, %c0_i32_1 : i32, i32, i32
  }
  func.func @transform_6(%arg0: i32) -> (i32, i32, i32) {
    %c0_i32 = arith.constant 0 : i32
    %c0_i32_0 = arith.constant 0 : i32
    %c0_i32_1 = arith.constant 0 : i32
    %c0_i32_2 = arith.constant 0 : i32
    return %c0_i32, %c0_i32_0, %c0_i32_1 : i32, i32, i32
  }
  func.func @transform_7(%arg0: i32) -> (i32, i32) {
    %c0_i32 = arith.constant 0 : i32
    %c0_i32_0 = arith.constant 0 : i32
    %c0_i32_1 = arith.constant 0 : i32
    return %c0_i32, %c0_i32_0 : i32, i32
  }
  func.func @transform_8(%arg0: i32) -> (i32, i32) {
    %c0_i32 = arith.constant 0 : i32
    %c0_i32_0 = arith.constant 0 : i32
    %c0_i32_1 = arith.constant 0 : i32
    return %c0_i32, %c0_i32_0 : i32, i32
  }
  func.func @transform_9(%arg0: i32) -> (i32, i32) {
    %c0_i32 = arith.constant 0 : i32
    %c0_i32_0 = arith.constant 0 : i32
    %c0_i32_1 = arith.constant 0 : i32
    return %c0_i32, %c0_i32_0 : i32, i32
  }
  func.func @transform_10(%arg0: i32) -> (i32, i32) {
    %c0_i32 = arith.constant 0 : i32
    %c0_i32_0 = arith.constant 0 : i32
    %c0_i32_1 = arith.constant 0 : i32
    return %c0_i32, %c0_i32_0 : i32, i32
  }
  func.func @transform_11(%arg0: i32) -> (i32, i32) {
    %c0_i32 = arith.constant 0 : i32
    %c0_i32_0 = arith.constant 0 : i32
    %c0_i32_1 = arith.constant 0 : i32
    return %c0_i32, %c0_i32_0 : i32, i32
  }
  func.func @transform_12(%arg0: i32) -> (i32, i32, i32) {
    %c0_i32 = arith.constant 0 : i32
    %c0_i32_0 = arith.constant 0 : i32
    %c0_i32_1 = arith.constant 0 : i32
    return %arg0, %c0_i32, %c0_i32_0 : i32, i32, i32
  }
}

</mosaic_0001>

<bundles_post_ra>
// kernel: tpu_custom_call.1
= control target key start
LH: loop header
LB: loop body
LE: loop exit
PB: predicated region body
PF: predicated region fallthrough
CT: control target
= control target key end

     0   :  { %17 = vsyncpa [#allocation3], 0  ;;  %s4929_s0 = inlined_call_operand.vmem [shape: f32[2,16,32], index: 0, kind: input, shape index: {}]   ;;  %s4930_s1 = inlined_call_operand.hbm [shape: f32[2,8,32], index: 1, kind: input, shape index: {}]   ;;  %s4931_s2 = inlined_call_operand.hbm [shape: bf16[2,16,32], index: 2, kind: input, shape index: {}]   ;;  %s4932_s3 = inlined_call_operand.vmem [shape: f32[2,16,8], index: 3, kind: input, shape index: {}]   ;;  %s4933_s4 = inlined_call_operand.hbm [shape: f32[2,16,32], index: 4, kind: input, shape index: {}]   ;;  %s4934_s5 = inlined_call_operand.vmem [shape: bf16[4,32,32], index: 5, kind: input, shape index: {}]   ;;  %s4935_s6 = inlined_call_operand.hbm [shape: bf16[2,32,64], index: 6, kind: input, shape index: {}]   ;;  %s4936_s7 = inlined_call_operand.hbm [shape: bf16[32,64], index: 7, kind: input, shape index: {}]   ;;  %s4937_s8 = inlined_call_operand.vmem [shape: bf16[64,32], index: 8, kind: input, shape index: {}]   ;;  %s4938_s9 = inlined_call_operand.vmem [shape: f32[11,32], index: 9, kind: input, shape index: {}]   ;;  %s4939_s10 = inlined_call_operand.vmem [shape: f32[2,64], index: 10, kind: input, shape index: {}]   ;;  %s4940_s11 = inlined_call_operand.vmem [shape: f32[1,64], index: 11, kind: input, shape index: {}]   ;;  %s4941_s12 = inlined_call_operand.hbm [shape: f32[2,16,32], index: 12, kind: output, shape index: {}]  }
   0x1   :  { %18 = vsyncpa [#allocation6], 0 }
   0x2   :  { %19 = vsyncpa [#allocation9], 0 }
   0x3   :  { %20 = vsyncpa [#allocation4], 0  ;;  %s4053_s21 = smov [#allocation5]   ;;  %s3913_s25 = scalar_lea.hbm %s4931_s2, 256 }
   0x4   :  { %s40_s22 = sshll.u32 %s4053_s21, 4  ;;  %p3914_p0 = scmp.ne.s32.totalorder %s4931_s2, %s3913_s25  ;;  %s41_s22 = int_to_ptr.vmem [resolvable:$true] %s40_s22 }
   0x5   :  { %p3917_p1 = scmp.lt.u32.totalorder %s3913_s25, %s4931_s2 }
   0x7   :  { %p3919_p2 = pnand %p3917_p1, %p3914_p0 }
   0x9   :  { %3922 = shalt.err (!%p3919_p2)
}
   0xa   :  { %s3923_s30 = scalar_lea.vmem %s41_s22, 256  ;;  %p3928_p4 = scmp.lt.s32.totalorder %s41_s22, %s41_s22 }
   0xb   :  { %p3924_p3 = scmp.ne.s32.totalorder %s41_s22, %s3923_s30  ;;  %p3929_p5 = scmp.lt.s32.totalorder %s3923_s30, %s3923_s30 }
   0xd   :  { %p3930_p6 = por %p3929_p5, %p3928_p4 }
   0xf   :  { %p3931_p7 = pnand %p3930_p6, %p3924_p3 }
  0x11   :  { %3934 = shalt.err (!%p3931_p7)
}
  0x12   :  { %s4054_s13 = smov 64   ;;  %s4055_s14 = smov 4  }
  0x13   :  { %46 = dma.hbm_to_vmem [thread:$0]  %s4931_s2, 256, %s41_s22, [#allocation6], %s4054_s13, %s4054_s13, %s4055_s14  }
  0x14   :  { %s4056_s17 = smov [#allocation8]   ;;  %s4057_s19 = smov [#allocation2]  }
  0x15   :  { %s68_s18 = sshll.u32 %s4056_s17, 4  ;;  %s28_s20 = sshll.u32 %s4057_s19, 4  ;;  %s69_s18 = int_to_ptr.vmem [resolvable:$true] %s68_s18  ;;  %s29_s20 = int_to_ptr.vmem [resolvable:$true] %s28_s20 }
  0x16   :  { %s3935_s24 = scalar_lea.hbm %s4935_s6, 512 }
  0x17   :  { %p3936_p8 = scmp.ne.s32.totalorder %s4935_s6, %s3935_s24  ;;  %p3939_p9 = scmp.lt.u32.totalorder %s3935_s24, %s4935_s6 }
  0x19   :  { %p3941_p10 = pnand %p3939_p9, %p3936_p8 }
  0x1b   :  { %3944 = shalt.err (!%p3941_p10)
}
  0x1c   :  { %s3945_s2 = scalar_lea.vmem %s69_s18, 512  ;;  %p3950_p12 = scmp.lt.s32.totalorder %s69_s18, %s69_s18 }
  0x1d   :  { %p3946_p11 = scmp.ne.s32.totalorder %s69_s18, %s3945_s2  ;;  %p3951_p13 = scmp.lt.s32.totalorder %s3945_s2, %s3945_s2 }
  0x1f   :  { %p3952_p0 = por %p3951_p13, %p3950_p12 }
  0x21   :  { %p3953_p1 = pnand %p3952_p0, %p3946_p11 }
  0x23   :  { %3956 = shalt.err (!%p3953_p1)
}
  0x24   :  { %74 = dma.hbm_to_vmem [thread:$0]  %s4935_s6, 512, %s69_s18, [#allocation9], %s4054_s13, %s4054_s13, %s4055_s14  }
  0x25   :  { %s3957_s16 = scalar_lea.hbm %s4930_s1, 256 }
  0x26   :  { %p3958_p2 = scmp.ne.s32.totalorder %s4930_s1, %s3957_s16  ;;  %p3961_p3 = scmp.lt.u32.totalorder %s3957_s16, %s4930_s1 }
  0x28   :  { %p3963_p4 = pnand %p3961_p3, %p3958_p2 }
  0x2a   :  { %3966 = shalt.err (!%p3963_p4)
}
  0x2b   :  { %s3967_s24 = scalar_lea.vmem %s29_s20, 256  ;;  %p3972_p6 = scmp.lt.s32.totalorder %s29_s20, %s29_s20 }
  0x2c   :  { %p3968_p5 = scmp.ne.s32.totalorder %s29_s20, %s3967_s24  ;;  %p3973_p7 = scmp.lt.s32.totalorder %s3967_s24, %s3967_s24 }
  0x2e   :  { %p3974_p8 = por %p3973_p7, %p3972_p6 }
  0x30   :  { %p3975_p9 = pnand %p3974_p8, %p3968_p5 }
  0x32   :  { %3978 = shalt.err (!%p3975_p9)
}
  0x33   :  { %s4058_s6 = smov 128   ;;  %s4059_s18 = smov 8  }
  0x34   :  { %34 = dma.hbm_to_vmem [thread:$0]  %s4930_s1, 256, %s29_s20, [#allocation3], %s4058_s6, %s4058_s6, %s4059_s18  }
  0x35   :  { %s4060_s27 = smov [#allocation7]   ;;  %s4061_s2 = smov [#allocation10]  }
  0x36   :  { %s54_s28 = sshll.u32 %s4060_s27, 4  ;;  %s80_s22 = sshll.u32 %s4061_s2, 4  ;;  %s55_s28 = int_to_ptr.vmem [resolvable:$true] %s54_s28  ;;  %s81_s22 = int_to_ptr.vmem [resolvable:$true] %s80_s22 }
  0x37   :  { %s3979_s15 = scalar_lea.hbm %s4933_s4, 512 }
  0x38   :  { %p3980_p10 = scmp.ne.s32.totalorder %s4933_s4, %s3979_s15  ;;  %p3983_p11 = scmp.lt.u32.totalorder %s3979_s15, %s4933_s4 }
  0x3a   :  { %p3985_p12 = pnand %p3983_p11, %p3980_p10 }
  0x3c   :  { %3988 = shalt.err (!%p3985_p12)
}
  0x3d   :  { %s3989_s1 = scalar_lea.vmem %s55_s28, 512  ;;  %p3994_p0 = scmp.lt.s32.totalorder %s55_s28, %s55_s28 }
  0x3e   :  { %p3990_p13 = scmp.ne.s32.totalorder %s55_s28, %s3989_s1  ;;  %p3995_p1 = scmp.lt.s32.totalorder %s3989_s1, %s3989_s1 }
  0x40   :  { %p3996_p2 = por %p3995_p1, %p3994_p0 }
  0x42   :  { %p3997_p3 = pnand %p3996_p2, %p3990_p13 }
  0x44   :  { %4000 = shalt.err (!%p3997_p3)
}
  0x45   :  { %60 = dma.hbm_to_vmem [thread:$0]  %s4933_s4, 512, %s55_s28, [#allocation6], %s4058_s6, %s4058_s6, %s4059_s18  }
  0x46   :  { %s4001_s26 = scalar_lea.hbm %s4936_s7, 256 }
  0x47   :  { %p4002_p4 = scmp.ne.s32.totalorder %s4936_s7, %s4001_s26  ;;  %p4005_p5 = scmp.lt.u32.totalorder %s4001_s26, %s4936_s7 }
  0x49   :  { %p4007_p6 = pnand %p4005_p5, %p4002_p4 }
  0x4b   :  { %4010 = shalt.err (!%p4007_p6)
}
  0x4c   :  { %s4011_s15 = scalar_lea.vmem %s81_s22, 256  ;;  %p4016_p8 = scmp.lt.s32.totalorder %s81_s22, %s81_s22 }
  0x4d   :  { %p4012_p7 = scmp.ne.s32.totalorder %s81_s22, %s4011_s15  ;;  %p4017_p9 = scmp.lt.s32.totalorder %s4011_s15, %s4011_s15 }
  0x4f   :  { %p4018_p10 = por %p4017_p9, %p4016_p8 }
  0x51   :  { %p4019_p11 = pnand %p4018_p10, %p4012_p7 }
  0x53   :  { %4022 = shalt.err (!%p4019_p11)
}
  0x54   :  { %86 = dma.hbm_to_vmem [thread:$0]  %s4936_s7, 256, %s81_s22, [#allocation9], %s4054_s13, %s4054_s13, %s4055_s14  }
  0x55   :  { %4045 = dma.done.wait [#allocation3], 256  }
  0x56   :  { %4046 = vsyncadd [#allocation3], 4294967040 }
  0x57   :  { %4047 = dma.done.wait [#allocation6], 768  }
  0x58   :  { %4048 = vsyncadd [#allocation6], 4294966528 }
  0x59   :  { %4049 = dma.done.wait [#allocation9], 768  }
  0x5a   :  { %4050 = vsyncadd [#allocation9], 4294966528  ;;  %vm129_vm0 = vcmask 261120   ;;  %v115_v0 = vld [vmem:[#allocation2] sm:$0xff]  ;;  %v116_v1 = vld [vmem:[#allocation2 + $0x8] sm:$0xff]  ;;  %v4062_v43 = vmov 0.0   ;;  %v217_v54 = vlaneseq }
  0x5b   :  { %v111_v2 = vld [vmem:[%s4929_s0] sm:$0xff]  ;;  %v191_v3 = vsel %vm129_vm0, %v115_v0, 0.0  ;;  %v113_v5 = vld [vmem:[%s4929_s0 + $0x10] sm:$0xff]  ;;  %v112_v6 = vld [vmem:[%s4929_s0 + $0x8] sm:$0xff]  ;;  %v194_v8 = vsel %vm129_vm0, %v116_v1, 0.0  ;;  %3380 = vmatprep.subr.bf16.mxu0 %v4062_v43  ;;  %vm4063_vm1 = vmmov 0  }
  0x5c   :  { %v130_v4 = vsel %vm129_vm0, %v111_v2, 0.0  ;;  %v114_v7 = vld [vmem:[%s4929_s0 + $0x18] sm:$0xff]  ;;  %192 = vadd.xlane.f32.xlu0 %v191_v3  ;;  %v136_v9 = vsel %vm129_vm0, %v113_v5, 0.0  ;;  %v133_v10 = vsel %vm129_vm0, %v112_v6, 0.0  ;;  %v3721_v42 = vld [vmem:[#allocation8] sm:$0xff]   ;;  %3384 = vmatprep.mubr.msk.bf16.mxu0 %vm4063_vm1, %v4062_v43  ;;  %v3722_v44 = vld [vmem:[#allocation8 + $0x8] sm:$0xff]  }
  0x5d   :  { %131 = vadd.xlane.f32.xlu1 %v130_v4  ;;  %v139_v11 = vsel %vm129_vm0, %v114_v7, 0.0  ;;  %3381 = vmatpush3.bf16.msra.mxu0 %v3721_v42  ;;  %v3723_v45 = vld [vmem:[%s4934_s5] sm:$0xff]   ;;  %v3724_v46 = vld [vmem:[%s4934_s5 + $0x8] sm:$0xff]   ;;  %v4274_v61 = vshrl.u32 %v217_v54, 7  ;;  %vm380_vm2 = vcmask 64512   ;;  %s4065_s21 = smov 120  }
  0x5e   :  { %3382 = vmatprep.subr.bf16.mxu0 %v4062_v43  ;;  %3388 = vmatprep.subr.bf16.mxu1 %v3723_v45  ;;  %v125_v3 = vld [vmem:[%s4938_s9] sm:$0xff]  ;;  %vm535_vm3 = vcmask 1043456   ;;  %s4066_s7 = smov 88   ;;  %s4067_s13 = smov 112   ;;  %vm1446_vm4 = vcmask 130048   ;;  %vm1451_vm5 = vcmask 195584  }
  0x5f   :  { %3389 = vmatpush3.bf16.msra.mxu1 %v3723_v45  ;;  %s4068_s14 = smov 80   ;;  %s4069_s22 = smov 104   ;;  %vm3112_vm6 = vcmask 523264  }
  0x60   :  { %195 = vadd.xlane.f32.xlu0 %v194_v8  ;;  %3390 = vmatprep.subr.bf16.mxu1 %v3724_v46  ;;  %v225_v8 = vsub.s32 6, %v4274_v61  ;;  %s4070_s1 = smov 72   ;;  %s4071_s20 = smov 16  }
  0x61   :  { %134 = vadd.xlane.f32.xlu1 %v133_v10  ;;  %3383 = vmatpush3.bf16.msra.mxu0 %v3722_v44  ;;  %s4072_s27 = smov 24  }
  0x62   :  { %3396 = vmatprep.subr.bf16.mxu0 %v4062_v43 }
  0x63   :  { %3391 = vmatpush3.bf16.msra.mxu1 %v3724_v46 }
  0x64   :  { %137 = vadd.xlane.f32.xlu0 %v136_v9  ;;  %3402 = vmatprep.subr.bf16.mxu1 %v4062_v43 }
  0x65   :  { %140 = vadd.xlane.f32.xlu1 %v139_v11 }
  0xe9   :  { %v193_v12 = vpop.xlane.xlu0 %192 }
  0xea   :  { %v132_v13 = vpop.xlane.xlu1 %131  ;;  %v197_v14 = vmul.f32 0.03125, %v193_v12 }
  0xeb   :  { %v143_v15 = vmul.f32 0.03125, %v132_v13  ;;  %v226_v13 = vrot.slane %v125_v3, %v225_v8 }
  0xec   :  { %v4232_v16 = vsub.f32 %v115_v0, %v197_v14 }
  0xed   :  { %v4234_v17 = vsub.f32 %v111_v2, %v143_v15  ;;  %v196_v18 = vpop.xlane.xlu0 %195  ;;  %v219_v2 = vsub.s32 5, %v4274_v61  ;;  %v121_v15 = vld [vmem:[#allocation7] sm:$0xff] }
  0xee   :  { %v135_v19 = vpop.xlane.xlu1 %134  ;;  %v198_v20 = vmul.f32 0.03125, %v196_v18  ;;  %v201_v21 = vmul.f32 %v4232_v16, %v4232_v16 }
  0xef   :  { %v144_v22 = vmul.f32 0.03125, %v135_v19  ;;  %v151_v23 = vmul.f32 %v4234_v17, %v4234_v17 }
  0xf0   :  { %v4240_v24 = vsub.f32 %v116_v1, %v198_v20  ;;  %v203_v25 = vsel %vm129_vm0, %v201_v21, 0.0  ;;  %v122_v21 = vld [vmem:[#allocation7 + $0x8] sm:$0xff] }
  0xf1   :  { %v4243_v26 = vsub.f32 %v112_v6, %v144_v22  ;;  %204 = vadd.xlane.f32.xlu0 %v203_v25  ;;  %v138_v27 = vpop.xlane.xlu0 %137  ;;  %v155_v28 = vsel %vm129_vm0, %v151_v23, 0.0 }
  0xf2   :  { %v141_v29 = vpop.xlane.xlu1 %140  ;;  %v145_v30 = vmul.f32 0.03125, %v138_v27  ;;  %v202_v31 = vmul.f32 %v4240_v24, %v4240_v24 }
  0xf3   :  { %v146_v32 = vmul.f32 0.03125, %v141_v29  ;;  %v152_v33 = vmul.f32 %v4243_v26, %v4243_v26  ;;  %v124_v29 = vld [vmem:[#allocation7 + $0x18] sm:$0xff] }
  0xf4   :  { %v4250_v34 = vsub.f32 %v113_v5, %v145_v30  ;;  %v206_v35 = vsel %vm129_vm0, %v202_v31, 0.0 }
  0xf5   :  { %v4253_v36 = vsub.f32 %v114_v7, %v146_v32  ;;  %207 = vadd.xlane.f32.xlu1 %v206_v35  ;;  %156 = vadd.xlane.f32.xlu0 %v155_v28  ;;  %v158_v38 = vsel %vm129_vm0, %v152_v33, 0.0  ;;  %v220_v7 = vrot.slane %v125_v3, %v219_v2  ;;  %v123_v28 = vld [vmem:[#allocation7 + $0x10] sm:$0xff] }
  0xf6   :  { %v153_v37 = vmul.f32 %v4250_v34, %v4250_v34 }
  0xf7   :  { %v154_v39 = vmul.f32 %v4253_v36, %v4253_v36 }
  0xf8   :  { %v161_v40 = vsel %vm129_vm0, %v153_v37, 0.0 }
  0xf9   :  { %162 = vadd.xlane.f32.xlu0 %v161_v40  ;;  %159 = vadd.xlane.f32.xlu1 %v158_v38  ;;  %v164_v41 = vsel %vm129_vm0, %v154_v39, 0.0  ;;  %v127_v40 = vld [vmem:[%s4939_s10] sm:$0x3] }
  0xfd   :  { %165 = vadd.xlane.f32.xlu1 %v164_v41 }
 0x17e   :  { %v205_v47 = vpop.xlane.xlu0 %204 }
 0x17f   :  { %v209_v48 = vmul.f32 0.03125, %v205_v47 }
 0x181   :  { %v211_v49 = vadd.f32 1e-05, %v209_v48 }
 0x182   :  { %v157_v50 = vpop.xlane.xlu0 %156  ;;  %v208_v51 = vpop.xlane.xlu1 %207 }
 0x183   :  { %3741 = vrsqrt.f32 %v211_v49  ;;  %v167_v52 = vmul.f32 0.03125, %v157_v50  ;;  %v210_v53 = vmul.f32 0.03125, %v208_v51 }
 0x185   :  { %v171_v55 = vadd.f32 1e-05, %v167_v52  ;;  %v212_v56 = vadd.f32 1e-05, %v210_v53 }
 0x186   :  { %v163_v57 = vpop.xlane.xlu0 %162  ;;  %v160_v58 = vpop.xlane.xlu1 %159 }
 0x187   :  { %3743 = vrsqrt.f32 %v171_v55  ;;  %v169_v59 = vmul.f32 0.03125, %v163_v57  ;;  %v168_v60 = vmul.f32 0.03125, %v160_v58 }
 0x188   :  { %3745 = vrsqrt.f32 %v212_v56 }
 0x189   :  { %v173_v62 = vadd.f32 1e-05, %v169_v59  ;;  %v172_v63 = vadd.f32 1e-05, %v168_v60 }
 0x18a   :  { %v166_v0 = vpop.xlane.xlu1 %165 }
 0x18b   :  { %3747 = vrsqrt.f32 %v173_v62  ;;  %v170_v1 = vmul.f32 0.03125, %v166_v0 }
 0x18c   :  { %3749 = vrsqrt.f32 %v172_v63 }
 0x18d   :  { %v3742_v4 = vpop.eup %3741  ;;  %v174_v5 = vadd.f32 1e-05, %v170_v1 }
 0x18e   :  { %v215_v6 = vmul.f32 %v3742_v4, %v4232_v16 }
 0x18f   :  { %3751 = vrsqrt.f32 %v174_v5 }
 0x190   :  { %v221_v12 = vmul.f32 %v220_v7, %v215_v6 }
 0x191   :  { %v3744_v9 = vpop.eup %3743 }
 0x192   :  { %v3746_v10 = vpop.eup %3745  ;;  %v179_v14 = vmul.f32 %v3744_v9, %v4234_v17  ;;  %v227_v23 = vadd.f32 %v226_v13, %v221_v12 }
 0x193   :  { %v216_v11 = vmul.f32 %v3746_v10, %v4240_v24  ;;  %v4332_v10 = vld [vmem:[%s4932_s3 + $0x8] sm:$0xff] }
 0x194   :  { %v183_v27 = vmul.f32 %v179_v14, %v121_v15 }
 0x195   :  { %v3748_v18 = vpop.eup %3747  ;;  %v222_v19 = vmul.f32 %v220_v7, %v216_v11  ;;  %v4337_v11 = vld [vmem:[%s4932_s3 + $0x10] sm:$0xff] }
 0x196   :  { %v3750_v20 = vpop.eup %3749  ;;  %v181_v22 = vmul.f32 %v3748_v18, %v4250_v34  ;;  %v187_v33 = vadd.f32 %v183_v27, %v123_v28 }
 0x197   :  { %v228_v16 = vadd.f32 %v226_v13, %v222_v19  ;;  %v180_v25 = vmul.f32 %v3750_v20, %v4243_v26  ;;  %v4343_v19 = vld [vmem:[%s4932_s3 + $0x18] sm:$0xff] }
 0x198   :  { %v185_v17 = vmul.f32 %v181_v22, %v121_v15 }
 0x199   :  { %v3752_v30 = vpop.eup %3751  ;;  %v233_v24 = vpack.c.bf16 %v228_v16, %v227_v23  ;;  %v184_v31 = vmul.f32 %v180_v25, %v122_v21 }
 0x19a   :  { %v182_v32 = vmul.f32 %v3752_v30, %v4253_v36  ;;  %v189_v38 = vadd.f32 %v185_v17, %v123_v28  ;;  %v4295_v36 = vsub.s32 0, %v4274_v61 }
 0x19b   :  { %3385 = vmatmul.mubr.msk.bf16.vlgmr.msra.gmra.mrb[0].mxu0 %vm129_vm0, %v233_v24  ;;  %v188_v35 = vadd.f32 %v184_v31, %v124_v29 }
 0x19c   :  { %v186_v37 = vmul.f32 %v182_v32, %v122_v21  ;;  %3398 = vmatprep.mubr.msk.bf16.mxu0 %vm4063_vm1, %v4062_v43  ;;  %v237_v41 = vrot.slane %v127_v40, %v4295_v36  ;;  %v305_v52 = vrot.slane %v125_v3, %v4295_v36  ;;  %v4327_v3 = vld [vmem:[%s4932_s3] sm:$0xff]  ;;  %s4064_s3 = smov 96  }
 0x19d   :  { %v300_v34 = vpack.c.bf16 %v188_v35, %v187_v33 }
 0x19e   :  { %v190_v26 = vadd.f32 %v186_v37, %v124_v29 }
 0x19f   :  { %3392 = vmatprep.mubr.msk.bf16.mxu1 %vm129_vm0, %v300_v34 }
 0x1a0   :  { %v301_v39 = vpack.c.bf16 %v190_v26, %v189_v38 }
 0x1a2   :  { %3393 = vmatmul.mubr.msk.bf16.vlgmr.msra.gmra.mrb[0].mxu1 %vm129_vm0, %v301_v39 }
 0x1a3   :  { %3404 = vmatprep.mubr.msk.bf16.mxu1 %vm4063_vm1, %v4062_v43 }
 0x26e   :  { %v287_v42 = vpop.f32.mrb[0].mxu0 }
 0x26f   :  { %v288_v44 = vadd.f32 %v287_v42, %v237_v41  ;;  %v3386_v45 = vpop.f32.mrb[1].mxu0 }
 0x270   :  { %v290_v46 = vpop.f32.mrb[2].mxu0 }
 0x271   :  { %v4301_v47 = vpack.c.bf16 %v288_v44, %v288_v44  ;;  %v291_v48 = vadd.f32 %v290_v46, %v237_v41  ;;  %v3387_v49 = vpop.f32.mrb[3].mxu0 }
 0x273   :  { %v4303_v50 = vpack.c.bf16 %v291_v48, %v291_v48  ;;  %v385_v51 = vsel %vm380_vm2, %v4301_v47, 0 }
 0x274   :  { %3397 = vmatpush3.bf16.xpose.msra.mxu0 %v385_v51 }
 0x275   :  { %v3394_v53 = vpop.f32.mrb[0].mxu1  ;;  %v432_v54 = vsel %vm380_vm2, %v4303_v50, 0  ;;  %3408 = vmatprep.subr.bf16.mxu0 %v4062_v43 }
 0x276   :  { %3403 = vmatpush3.bf16.xpose.msra.mxu1 %v432_v54  ;;  %v358_v55 = vpop.f32.mrb[1].mxu1  ;;  %v367_v57 = vadd.f32 %v3394_v53, %v305_v52 }
 0x277   :  { %v3395_v56 = vpop.f32.mrb[2].mxu1  ;;  %3414 = vmatprep.subr.bf16.mxu1 %v4062_v43  ;;  %v359_v60 = vadd.f32 %v358_v55, %v305_v52 }
 0x278   :  { %v370_v58 = vadd.f32 %v3395_v56, %v305_v52  ;;  %v361_v59 = vpop.f32.mrb[3].mxu1 }
 0x279   :  { %v362_v62 = vadd.f32 %v361_v59, %v305_v52 }
 0x27a   :  { %v4312_v63 = vpack.c.bf16 %v370_v58, %v367_v57 }
 0x27b   :  { %v4314_v0 = vpack.c.bf16 %v362_v62, %v359_v60 }
 0x27d   :  { %3405 = vmatmul.mubr.msk.bf16.vlgmr.msra.gmra.mrb[4].mxu1 %vm380_vm2, %v4312_v63  ;;  %3399 = vmatmul.mubr.msk.bf16.vlgmr.msra.gmra.mrb[4].mxu0 %vm380_vm2, %v4314_v0 }
 0x27e   :  { %3410 = vmatprep.mubr.msk.bf16.mxu0 %vm4063_vm1, %v4062_v43  ;;  %3416 = vmatprep.mubr.msk.bf16.mxu1 %vm4063_vm1, %v4062_v43 }
 0x350   :  { %v468_v1 = vpop.f32.mrb[4].mxu1  ;;  %v421_v2 = vpop.f32.mrb[4].mxu0 }
 0x351   :  { %v477_v4 = vmul.f32 0.35355338, %v468_v1  ;;  %v475_v5 = vmul.f32 0.35355338, %v421_v2  ;;  %v3406_v6 = vpop.f32.mrb[5].mxu1  ;;  %v3400_v7 = vpop.f32.mrb[5].mxu0 }
 0x352   :  { %v471_v8 = vpop.f32.mrb[6].mxu1  ;;  %v424_v9 = vpop.f32.mrb[6].mxu0 }
 0x353   :  { %v478_v12 = vmul.f32 0.35355338, %v471_v8  ;;  %v476_v13 = vmul.f32 0.35355338, %v424_v9  ;;  %v3407_v14 = vpop.f32.mrb[7].mxu1  ;;  %v3401_v15 = vpop.f32.mrb[7].mxu0  ;;  %v479_v18 = vadd.f32 %v475_v5, %v4327_v3  ;;  %v481_v22 = vadd.f32 %v477_v4, %v4337_v11 }
 0x355   :  { %v483_v20 = vsel %vm380_vm2, %v479_v18, -inf  ;;  %v480_v21 = vadd.f32 %v476_v13, %v4332_v10  ;;  %v482_v16 = vadd.f32 %v478_v12, %v4343_v19  ;;  %v489_v25 = vsel %vm380_vm2, %v481_v22, -inf }
 0x356   :  { %484 = vmax.xlane.f32.xlu0 %v483_v20 }
 0x357   :  { %v486_v23 = vsel %vm380_vm2, %v480_v21, -inf  ;;  %v492_v27 = vsel %vm380_vm2, %v482_v16, -inf }
 0x358   :  { %487 = vmax.xlane.f32.xlu1 %v486_v23 }
 0x35a   :  { %490 = vmax.xlane.f32.xlu0 %v489_v25 }
 0x35c   :  { %493 = vmax.xlane.f32.xlu1 %v492_v27 }
 0x3e3   :  { %v485_v28 = vpop.xlane.xlu0 %484 }
 0x3e4   :  { %v495_v29 = vsub.f32 %v479_v18, %v485_v28 }
 0x3e5   :  { %v488_v30 = vpop.xlane.xlu1 %487 }
 0x3e6   :  { %v499_v24 = vmul.f32 1.442695, %v495_v29  ;;  %v496_v31 = vsub.f32 %v480_v21, %v488_v30 }
 0x3e7   :  { %v491_v32 = vpop.xlane.xlu0 %490 }
 0x3e8   :  { %3753 = vpow2.f32 %v499_v24  ;;  %v501_v17 = vmul.f32 1.442695, %v496_v31  ;;  %v497_v33 = vsub.f32 %v481_v22, %v491_v32 }
 0x3e9   :  { %v494_v41 = vpop.xlane.xlu1 %493 }
 0x3ea   :  { %3755 = vpow2.f32 %v501_v17  ;;  %v503_v35 = vmul.f32 1.442695, %v497_v33  ;;  %v498_v42 = vsub.f32 %v482_v16, %v494_v41 }
 0x3ec   :  { %3757 = vpow2.f32 %v503_v35  ;;  %v505_v44 = vmul.f32 1.442695, %v498_v42 }
 0x3ee   :  { %3759 = vpow2.f32 %v505_v44 }
 0x3f2   :  { %v3754_v37 = vpop.eup %3753 }
 0x3f3   :  { %v507_v34 = vsel %vm380_vm2, %v3754_v37, 0.0 }
 0x3f4   :  { %v3756_v38 = vpop.eup %3755  ;;  %508 = vadd.xlane.f32.xlu0 %v507_v34 }
 0x3f5   :  { %v510_v26 = vsel %vm380_vm2, %v3756_v38, 0.0 }
 0x3f6   :  { %v3758_v39 = vpop.eup %3757  ;;  %511 = vadd.xlane.f32.xlu1 %v510_v26 }
 0x3f7   :  { %v513_v40 = vsel %vm380_vm2, %v3758_v39, 0.0 }
 0x3f8   :  { %514 = vadd.xlane.f32.xlu0 %v513_v40  ;;  %v3760_v45 = vpop.eup %3759 }
 0x3f9   :  { %v516_v46 = vsel %vm380_vm2, %v3760_v45, 0.0 }
 0x407   :  { %581 = vrot.lane.b32.xlu1 %v4303_v50, %s4064_s3 }
 0x40b   :  { %633 = vrot.lane.b32.xlu1 %v4301_v47, %s4065_s21 }
 0x40e   :  { %530 = vrot.lane.b32.xlu0 %v4301_v47, %s4064_s3 }
 0x412   :  { %631 = vrot.lane.b32.xlu0 %v4314_v0, %s4065_s21 }
 0x42f   :  { %517 = vadd.xlane.f32.xlu1 %v516_v46 }
 0x440   :  { %685 = vrot.lane.b32.xlu1 %v4303_v50, %s4065_s21 }
 0x444   :  { %683 = vrot.lane.b32.xlu1 %v4312_v63, %s4065_s21 }
 0x481   :  { %v509_v48 = vpop.xlane.xlu0 %508 }
 0x482   :  { %3761 = vrcp.f32 %v509_v48 }
 0x483   :  { %v512_v49 = vpop.xlane.xlu1 %511 }
 0x484   :  { %3763 = vrcp.f32 %v512_v49 }
 0x485   :  { %v515_v51 = vpop.xlane.xlu0 %514 }
 0x486   :  { %3765 = vrcp.f32 %v515_v51 }
 0x487   :  { %v582_v52 = vpop.permute.xlu1 %581 }
 0x488   :  { %v587_v53 = vsel %vm535_vm3, %v582_v52, 0 }
 0x489   :  { %v531_v54 = vpop.permute.xlu0 %530  ;;  %3415 = vmatpush3.bf16.msra.mxu1 %v587_v53 }
 0x48a   :  { %v537_v55 = vsel %vm535_vm3, %v531_v54, 0  ;;  %3426 = vmatprep.subr.bf16.mxu1 %v4062_v43 }
 0x48b   :  { %3409 = vmatpush3.bf16.msra.mxu0 %v537_v55  ;;  %v634_v60 = vpop.permute.xlu1 %633 }
 0x48c   :  { %v3762_v56 = vpop.eup %3761  ;;  %3420 = vmatprep.subr.bf16.mxu0 %v4062_v43  ;;  %v639_v1 = vsel %vm380_vm2, %v634_v60, 0 }
 0x48d   :  { %v523_v58 = vmul.f32 %v3762_v56, %v3754_v37  ;;  %v632_v2 = vpop.permute.xlu0 %631 }
 0x48e   :  { %v3764_v57 = vpop.eup %3763 }
 0x48f   :  { %v524_v59 = vmul.f32 %v3764_v57, %v3756_v38 }
 0x490   :  { %v3766_v5 = vpop.eup %3765 }
 0x491   :  { %v527_v62 = vpack.c.bf16 %v524_v59, %v523_v58  ;;  %v525_v7 = vmul.f32 %v3766_v5, %v3758_v39 }
 0x493   :  { %3411 = vmatmul.mubr.msk.bf16.vlgmr.msra.gmra.mrb[8].mxu0 %vm380_vm2, %v527_v62 }
 0x494   :  { %3421 = vmatpush3.bf16.xpose.msra.mxu0 %v639_v1  ;;  %3422 = vmatprep.mubr.msk.bf16.mxu0 %vm4063_vm1, %v4062_v43 }
 0x495   :  { %3432 = vmatprep.subr.bf16.mxu0 %v4062_v43 }
 0x49b   :  { %3423 = vmatmul.mubr.msk.bf16.vlgmr.msra.gmra.mrb[12].mxu0 %vm380_vm2, %v632_v2 }
 0x49c   :  { %3434 = vmatprep.mubr.msk.bf16.mxu0 %vm4063_vm1, %v4062_v43 }
 0x4bc   :  { %v518_v4 = vpop.xlane.xlu1 %517 }
 0x4bd   :  { %3767 = vrcp.f32 %v518_v4 }
 0x4c0   :  { %v686_v9 = vpop.permute.xlu1 %685 }
 0x4c1   :  { %v691_v13 = vsel %vm380_vm2, %v686_v9, 0 }
 0x4c4   :  { %v684_v14 = vpop.permute.xlu1 %683 }
 0x4c7   :  { %v3768_v6 = vpop.eup %3767 }
 0x4c8   :  { %v526_v8 = vmul.f32 %v3768_v6, %v3760_v45 }
 0x4ca   :  { %v528_v12 = vpack.c.bf16 %v526_v8, %v525_v7 }
 0x4cc   :  { %3417 = vmatmul.mubr.msk.bf16.vlgmr.msra.gmra.mrb[8].mxu1 %vm380_vm2, %v528_v12 }
 0x4cd   :  { %3427 = vmatpush3.bf16.xpose.msra.mxu1 %v691_v13  ;;  %3428 = vmatprep.mubr.msk.bf16.mxu1 %vm4063_vm1, %v4062_v43 }
 0x4ce   :  { %3438 = vmatprep.subr.bf16.mxu1 %v4062_v43 }
 0x4d4   :  { %3429 = vmatmul.mubr.msk.bf16.vlgmr.msra.gmra.mrb[12].mxu1 %vm380_vm2, %v684_v14 }
 0x4d5   :  { %3440 = vmatprep.mubr.msk.bf16.mxu1 %vm4063_vm1, %v4062_v43 }
 0x566   :  { %v4388_v15 = vpop.f32.mrb[8].mxu0 }
 0x567   :  { %v3412_v18 = vpop.f32.mrb[9].mxu0 }
 0x568   :  { %v4390_v20 = vpop.f32.mrb[10].mxu0 }
 0x569   :  { %v3413_v21 = vpop.f32.mrb[11].mxu0 }
 0x56e   :  { %v675_v22 = vpop.f32.mrb[12].mxu0 }
 0x56f   :  { %v734_v23 = vmul.f32 0.35355338, %v675_v22  ;;  %v3424_v16 = vpop.f32.mrb[13].mxu0 }
 0x570   :  { %v678_v25 = vpop.f32.mrb[14].mxu0 }
 0x571   :  { %v735_v27 = vmul.f32 0.35355338, %v678_v25  ;;  %v3425_v28 = vpop.f32.mrb[15].mxu0  ;;  %v738_v29 = vadd.f32 %v734_v23, %v4327_v3 }
 0x573   :  { %v742_v30 = vsel %vm380_vm2, %v738_v29, -inf  ;;  %v739_v24 = vadd.f32 %v735_v27, %v4332_v10 }
 0x574   :  { %743 = vmax.xlane.f32.xlu0 %v742_v30 }
 0x575   :  { %v745_v31 = vsel %vm380_vm2, %v739_v24, -inf }
 0x576   :  { %746 = vmax.xlane.f32.xlu1 %v745_v31 }
 0x59f   :  { %v4396_v32 = vpop.f32.mrb[8].mxu1 }
 0x5a0   :  { %v3418_v17 = vpop.f32.mrb[9].mxu1 }
 0x5a1   :  { %v4398_v33 = vpop.f32.mrb[10].mxu1 }
 0x5a2   :  { %v3419_v35 = vpop.f32.mrb[11].mxu1 }
 0x5a7   :  { %v727_v37 = vpop.f32.mrb[12].mxu1 }
 0x5a8   :  { %v736_v34 = vmul.f32 0.35355338, %v727_v37  ;;  %v3430_v38 = vpop.f32.mrb[13].mxu1 }
 0x5a9   :  { %v730_v26 = vpop.f32.mrb[14].mxu1 }
 0x5aa   :  { %v737_v39 = vmul.f32 0.35355338, %v730_v26  ;;  %v3431_v40 = vpop.f32.mrb[15].mxu1  ;;  %v740_v41 = vadd.f32 %v736_v34, %v4337_v11 }
 0x5ac   :  { %v748_v42 = vsel %vm380_vm2, %v740_v41, -inf  ;;  %v741_v44 = vadd.f32 %v737_v39, %v4343_v19 }
 0x5ad   :  { %749 = vmax.xlane.f32.xlu0 %v748_v42 }
 0x5ae   :  { %v751_v45 = vsel %vm380_vm2, %v741_v44, -inf }
 0x5b1   :  { %752 = vmax.xlane.f32.xlu0 %v751_v45 }
 0x601   :  { %v744_v46 = vpop.xlane.xlu0 %743 }
 0x602   :  { %v754_v48 = vsub.f32 %v738_v29, %v744_v46 }
 0x603   :  { %v747_v49 = vpop.xlane.xlu1 %746 }
 0x604   :  { %v758_v51 = vmul.f32 1.442695, %v754_v48  ;;  %v755_v52 = vsub.f32 %v739_v24, %v747_v49 }
 0x606   :  { %3769 = vpow2.f32 %v758_v51  ;;  %v760_v53 = vmul.f32 1.442695, %v755_v52 }
 0x608   :  { %3771 = vpow2.f32 %v760_v53 }
 0x610   :  { %v3770_v54 = vpop.eup %3769 }
 0x611   :  { %v766_v55 = vsel %vm380_vm2, %v3770_v54, 0.0 }
 0x612   :  { %v3772_v56 = vpop.eup %3771  ;;  %767 = vadd.xlane.f32.xlu0 %v766_v55 }
 0x613   :  { %v769_v57 = vsel %vm380_vm2, %v3772_v56, 0.0 }
 0x614   :  { %770 = vadd.xlane.f32.xlu1 %v769_v57 }
 0x625   :  { %837 = vrot.lane.b32.xlu1 %v4303_v50, %s4066_s7 }
 0x629   :  { %888 = vrot.lane.b32.xlu1 %v4301_v47, %s4067_s13 }
 0x63a   :  { %v750_v58 = vpop.xlane.xlu0 %749 }
 0x63b   :  { %v756_v59 = vsub.f32 %v740_v41, %v750_v58 }
 0x63d   :  { %v762_v60 = vmul.f32 1.442695, %v756_v59 }
 0x63e   :  { %v753_v62 = vpop.xlane.xlu0 %752 }
 0x63f   :  { %3773 = vpow2.f32 %v762_v60  ;;  %v757_v1 = vsub.f32 %v741_v44, %v753_v62 }
 0x641   :  { %v764_v2 = vmul.f32 1.442695, %v757_v1 }
 0x643   :  { %3775 = vpow2.f32 %v764_v2 }
 0x649   :  { %v3774_v4 = vpop.eup %3773 }
 0x64a   :  { %v772_v5 = vsel %vm380_vm2, %v3774_v4, 0.0 }
 0x64b   :  { %773 = vadd.xlane.f32.xlu0 %v772_v5 }
 0x64d   :  { %v3776_v6 = vpop.eup %3775 }
 0x64e   :  { %v775_v7 = vsel %vm380_vm2, %v3776_v6, 0.0 }
 0x64f   :  { %776 = vadd.xlane.f32.xlu1 %v775_v7 }
 0x660   :  { %939 = vrot.lane.b32.xlu1 %v4303_v50, %s4067_s13 }
 0x661   :  { %788 = vrot.lane.b32.xlu0 %v4301_v47, %s4066_s7 }
 0x664   :  { %937 = vrot.lane.b32.xlu1 %v4312_v63, %s4067_s13 }
 0x665   :  { %886 = vrot.lane.b32.xlu0 %v4314_v0, %s4067_s13 }
 0x69f   :  { %v768_v13 = vpop.xlane.xlu0 %767 }
 0x6a1   :  { %v771_v8 = vpop.xlane.xlu1 %770 }
 0x6a2   :  { %3777 = vrcp.f32 %v771_v8 }
 0x6a3   :  { %3779 = vrcp.f32 %v768_v13 }
 0x6a5   :  { %v838_v9 = vpop.permute.xlu1 %837 }
 0x6a6   :  { %v843_v12 = vsel %vm535_vm3, %v838_v9, 0 }
 0x6a7   :  { %3439 = vmatpush3.bf16.msra.mxu1 %v843_v12 }
 0x6a8   :  { %3450 = vmatprep.subr.bf16.mxu1 %v4062_v43 }
 0x6a9   :  { %v889_v18 = vpop.permute.xlu1 %888 }
 0x6aa   :  { %v894_v24 = vsel %vm380_vm2, %v889_v18, 0 }
 0x6ac   :  { %v3778_v14 = vpop.eup %3777 }
 0x6ad   :  { %v3780_v22 = vpop.eup %3779  ;;  %v783_v23 = vmul.f32 %v3778_v14, %v3772_v56 }
 0x6ae   :  { %v782_v27 = vmul.f32 %v3780_v22, %v3770_v54 }
 0x6b0   :  { %v786_v29 = vpack.c.bf16 %v783_v23, %v782_v27 }
 0x6d8   :  { %v774_v21 = vpop.xlane.xlu0 %773 }
 0x6d9   :  { %3781 = vrcp.f32 %v774_v21 }
 0x6dc   :  { %v789_v16 = vpop.permute.xlu0 %788  ;;  %v777_v25 = vpop.xlane.xlu1 %776 }
 0x6dd   :  { %v794_v28 = vsel %vm535_vm3, %v789_v16, 0  ;;  %3783 = vrcp.f32 %v777_v25 }
 0x6de   :  { %3433 = vmatpush3.bf16.msra.mxu0 %v794_v28 }
 0x6df   :  { %3444 = vmatprep.subr.bf16.mxu0 %v4062_v43 }
 0x6e0   :  { %v940_v37 = vpop.permute.xlu1 %939  ;;  %v887_v26 = vpop.permute.xlu0 %886 }
 0x6e1   :  { %3435 = vmatmul.mubr.msk.bf16.vlgmr.msra.gmra.mrb[16].mxu0 %vm380_vm2, %v786_v29  ;;  %v945_v38 = vsel %vm380_vm2, %v940_v37, 0 }
 0x6e2   :  { %3446 = vmatprep.mubr.msk.bf16.mxu0 %vm4063_vm1, %v4062_v43 }
 0x6e3   :  { %v3782_v30 = vpop.eup %3781 }
 0x6e4   :  { %v784_v17 = vmul.f32 %v3782_v30, %v3774_v4  ;;  %v938_v39 = vpop.permute.xlu1 %937 }
 0x6e7   :  { %v3784_v31 = vpop.eup %3783  ;;  %3445 = vmatpush3.bf16.xpose.msra.mxu0 %v894_v24 }
 0x6e8   :  { %v785_v35 = vmul.f32 %v3784_v31, %v3776_v6  ;;  %3456 = vmatprep.subr.bf16.mxu0 %v4062_v43 }
 0x6ea   :  { %v787_v34 = vpack.c.bf16 %v785_v35, %v784_v17 }
 0x6ec   :  { %3441 = vmatmul.mubr.msk.bf16.vlgmr.msra.gmra.mrb[16].mxu1 %vm380_vm2, %v787_v34 }
 0x6ed   :  { %3451 = vmatpush3.bf16.xpose.msra.mxu1 %v945_v38  ;;  %3452 = vmatprep.mubr.msk.bf16.mxu1 %vm4063_vm1, %v4062_v43 }
 0x6ee   :  { %3447 = vmatmul.mubr.msk.bf16.vlgmr.msra.gmra.mrb[20].mxu0 %vm380_vm2, %v887_v26  ;;  %3462 = vmatprep.subr.bf16.mxu1 %v4062_v43 }
 0x6ef   :  { %3458 = vmatprep.mubr.msk.bf16.mxu0 %vm4063_vm1, %v4062_v43 }
 0x6f4   :  { %3453 = vmatmul.mubr.msk.bf16.vlgmr.msra.gmra.mrb[20].mxu1 %vm380_vm2, %v938_v39 }
 0x6f5   :  { %3464 = vmatprep.mubr.msk.bf16.mxu1 %vm4063_vm1, %v4062_v43 }
 0x7b4   :  { %v4440_v40 = vpop.f32.mrb[16].mxu0 }
 0x7b5   :  { %v3436_v41 = vpop.f32.mrb[17].mxu0 }
 0x7b6   :  { %v4442_v42 = vpop.f32.mrb[18].mxu0 }
 0x7b7   :  { %v3661_v44 = vpack.i.bf16 %v4442_v42, %v4440_v40  ;;  %v3437_v45 = vpop.f32.mrb[19].mxu0 }
 0x7bf   :  { %v4446_v46 = vpop.f32.mrb[16].mxu1 }
 0x7c0   :  { %v3442_v48 = vpop.f32.mrb[17].mxu1 }
 0x7c1   :  { %v4448_v49 = vpop.f32.mrb[18].mxu1  ;;  %v930_v51 = vpop.f32.mrb[20].mxu0 }
 0x7c2   :  { %v3666_v52 = vpack.i.bf16 %v4448_v49, %v4446_v46  ;;  %v988_v53 = vmul.f32 0.35355338, %v930_v51  ;;  %v3443_v54 = vpop.f32.mrb[19].mxu1  ;;  %v3448_v55 = vpop.f32.mrb[21].mxu0 }
 0x7c3   :  { %v933_v56 = vpop.f32.mrb[22].mxu0 }
 0x7c4   :  { %v989_v57 = vmul.f32 0.35355338, %v933_v56  ;;  %v3449_v58 = vpop.f32.mrb[23].mxu0  ;;  %v992_v59 = vadd.f32 %v988_v53, %v4327_v3 }
 0x7c6   :  { %v996_v60 = vsel %vm380_vm2, %v992_v59, -inf  ;;  %v993_v62 = vadd.f32 %v989_v57, %v4332_v10 }
 0x7c7   :  { %v981_v1 = vpop.f32.mrb[20].mxu1  ;;  %997 = vmax.xlane.f32.xlu0 %v996_v60 }
 0x7c8   :  { %v990_v2 = vmul.f32 0.35355338, %v981_v1  ;;  %v3454_v4 = vpop.f32.mrb[21].mxu1  ;;  %v999_v5 = vsel %vm380_vm2, %v993_v62, -inf }
 0x7c9   :  { %v984_v6 = vpop.f32.mrb[22].mxu1  ;;  %1000 = vmax.xlane.f32.xlu1 %v999_v5 }
 0x7ca   :  { %v991_v7 = vmul.f32 0.35355338, %v984_v6  ;;  %v3455_v8 = vpop.f32.mrb[23].mxu1  ;;  %v994_v9 = vadd.f32 %v990_v2, %v4337_v11 }
 0x7cc   :  { %v1002_v12 = vsel %vm380_vm2, %v994_v9, -inf  ;;  %v995_v13 = vadd.f32 %v991_v7, %v4343_v19 }
 0x7cd   :  { %1003 = vmax.xlane.f32.xlu0 %v1002_v12 }
 0x7ce   :  { %v1005_v14 = vsel %vm380_vm2, %v995_v13, -inf }
 0x7d1   :  { %1006 = vmax.xlane.f32.xlu0 %v1005_v14 }
 0x854   :  { %v998_v18 = vpop.xlane.xlu0 %997 }
 0x855   :  { %v1008_v21 = vsub.f32 %v992_v59, %v998_v18 }
 0x856   :  { %v1001_v22 = vpop.xlane.xlu1 %1000 }
 0x857   :  { %v1012_v23 = vmul.f32 1.442695, %v1008_v21  ;;  %v1009_v16 = vsub.f32 %v993_v62, %v1001_v22 }
 0x859   :  { %3785 = vpow2.f32 %v1012_v23  ;;  %v1014_v25 = vmul.f32 1.442695, %v1009_v16 }
 0x85a   :  { %v1004_v27 = vpop.xlane.xlu0 %1003 }
 0x85b   :  { %3787 = vpow2.f32 %v1014_v25  ;;  %v1010_v28 = vsub.f32 %v994_v9, %v1004_v27 }
 0x85d   :  { %v1016_v29 = vmul.f32 1.442695, %v1010_v28 }
 0x85e   :  { %v1007_v34 = vpop.xlane.xlu0 %1006 }
 0x85f   :  { %3789 = vpow2.f32 %v1016_v29  ;;  %v1011_v38 = vsub.f32 %v995_v13, %v1007_v34 }
 0x861   :  { %v1018_v26 = vmul.f32 1.442695, %v1011_v38 }
 0x863   :  { %v3786_v30 = vpop.eup %3785  ;;  %3791 = vpow2.f32 %v1018_v26 }
 0x864   :  { %v1020_v24 = vsel %vm380_vm2, %v3786_v30, 0.0 }
 0x865   :  { %v3788_v31 = vpop.eup %3787  ;;  %1021 = vadd.xlane.f32.xlu0 %v1020_v24 }
 0x866   :  { %v1023_v17 = vsel %vm380_vm2, %v3788_v31, 0.0 }
 0x867   :  { %1024 = vadd.xlane.f32.xlu1 %v1023_v17 }
 0x869   :  { %v3790_v35 = vpop.eup %3789 }
 0x86a   :  { %v1026_v37 = vsel %vm380_vm2, %v3790_v35, 0.0 }
 0x86b   :  { %1027 = vadd.xlane.f32.xlu0 %v1026_v37 }
 0x86d   :  { %v3792_v39 = vpop.eup %3791 }
 0x86e   :  { %v1029_v41 = vsel %vm380_vm2, %v3792_v39, 0.0 }
 0x878   :  { %1091 = vrot.lane.b32.xlu1 %v4303_v50, %s4068_s14 }
 0x87c   :  { %1142 = vrot.lane.b32.xlu1 %v4301_v47, %s4069_s22 }
 0x881   :  { %1042 = vrot.lane.b32.xlu0 %v4301_v47, %s4068_s14 }
 0x885   :  { %1140 = vrot.lane.b32.xlu0 %v4314_v0, %s4069_s22 }
 0x8a0   :  { %1030 = vadd.xlane.f32.xlu1 %v1029_v41 }
 0x8b1   :  { %1193 = vrot.lane.b32.xlu1 %v4303_v50, %s4069_s22 }
 0x8b5   :  { %1191 = vrot.lane.b32.xlu1 %v4312_v63, %s4069_s22 }
 0x8f2   :  { %v1022_v45 = vpop.xlane.xlu0 %1021 }
 0x8f3   :  { %3793 = vrcp.f32 %v1022_v45 }
 0x8f4   :  { %v1025_v48 = vpop.xlane.xlu1 %1024 }
 0x8f5   :  { %3795 = vrcp.f32 %v1025_v48 }
 0x8f8   :  { %v1028_v51 = vpop.xlane.xlu0 %1027  ;;  %v1092_v0 = vpop.permute.xlu1 %1091 }
 0x8f9   :  { %v1097_v53 = vsel %vm535_vm3, %v1092_v0, 0  ;;  %3797 = vrcp.f32 %v1028_v51 }
 0x8fa   :  { %3463 = vmatpush3.bf16.msra.mxu1 %v1097_v53 }
 0x8fb   :  { %3474 = vmatprep.subr.bf16.mxu1 %v4062_v43 }
 0x8fc   :  { %v1043_v54 = vpop.permute.xlu0 %1042  ;;  %v1143_v60 = vpop.permute.xlu1 %1142 }
 0x8fd   :  { %v3794_v55 = vpop.eup %3793  ;;  %v1048_v56 = vsel %vm535_vm3, %v1043_v54, 0  ;;  %v1148_v62 = vsel %vm380_vm2, %v1143_v60, 0 }
 0x8fe   :  { %3457 = vmatpush3.bf16.msra.mxu0 %v1048_v56  ;;  %v1036_v63 = vmul.f32 %v3794_v55, %v3786_v30 }
 0x8ff   :  { %v3796_v57 = vpop.eup %3795  ;;  %3468 = vmatprep.subr.bf16.mxu0 %v4062_v43 }
 0x900   :  { %v1037_v58 = vmul.f32 %v3796_v57, %v3788_v31  ;;  %v1141_v1 = vpop.permute.xlu0 %1140 }
 0x902   :  { %v1040_v59 = vpack.c.bf16 %v1037_v58, %v1036_v63 }
 0x903   :  { %v3798_v4 = vpop.eup %3797 }
 0x904   :  { %3459 = vmatmul.mubr.msk.bf16.vlgmr.msra.gmra.mrb[24].mxu0 %vm380_vm2, %v1040_v59  ;;  %v1038_v6 = vmul.f32 %v3798_v4, %v3790_v35 }
 0x905   :  { %3470 = vmatprep.mubr.msk.bf16.mxu0 %vm4063_vm1, %v4062_v43 }
 0x907   :  { %3469 = vmatpush3.bf16.xpose.msra.mxu0 %v1148_v62 }
 0x908   :  { %3480 = vmatprep.subr.bf16.mxu0 %v4062_v43 }
 0x90e   :  { %3471 = vmatmul.mubr.msk.bf16.vlgmr.msra.gmra.mrb[28].mxu0 %vm380_vm2, %v1141_v1 }
 0x90f   :  { %3482 = vmatprep.mubr.msk.bf16.mxu0 %vm4063_vm1, %v4062_v43 }
 0x92d   :  { %v1031_v2 = vpop.xlane.xlu1 %1030 }
 0x92e   :  { %3799 = vrcp.f32 %v1031_v2 }
 0x931   :  { %v1194_v8 = vpop.permute.xlu1 %1193 }
 0x932   :  { %v1199_v12 = vsel %vm380_vm2, %v1194_v8, 0 }
 0x935   :  { %v1192_v13 = vpop.permute.xlu1 %1191 }
 0x938   :  { %v3800_v5 = vpop.eup %3799 }
 0x939   :  { %v1039_v7 = vmul.f32 %v3800_v5, %v3792_v39 }
 0x93b   :  { %v1041_v9 = vpack.c.bf16 %v1039_v7, %v1038_v6 }
 0x93d   :  { %3465 = vmatmul.mubr.msk.bf16.vlgmr.msra.gmra.mrb[24].mxu1 %vm380_vm2, %v1041_v9 }
 0x93e   :  { %3475 = vmatpush3.bf16.xpose.msra.mxu1 %v1199_v12  ;;  %3476 = vmatprep.mubr.msk.bf16.mxu1 %vm4063_vm1, %v4062_v43 }
 0x93f   :  { %3486 = vmatprep.subr.bf16.mxu1 %v4062_v43 }
 0x945   :  { %3477 = vmatmul.mubr.msk.bf16.vlgmr.msra.gmra.mrb[28].mxu1 %vm380_vm2, %v1192_v13 }
 0x946   :  { %3488 = vmatprep.mubr.msk.bf16.mxu1 %vm4063_vm1, %v4062_v43 }
 0x9d7   :  { %v4496_v14 = vpop.f32.mrb[24].mxu0 }
 0x9d8   :  { %v3460_v18 = vpop.f32.mrb[25].mxu0 }
 0x9d9   :  { %v4498_v21 = vpop.f32.mrb[26].mxu0 }
 0x9da   :  { %v3671_v22 = vpack.i.bf16 %v4498_v21, %v4496_v14  ;;  %v3461_v23 = vpop.f32.mrb[27].mxu0 }
 0x9e1   :  { %v1184_v16 = vpop.f32.mrb[28].mxu0 }
 0x9e2   :  { %v1242_v25 = vmul.f32 0.35355338, %v1184_v16  ;;  %v3472_v27 = vpop.f32.mrb[29].mxu0 }
 0x9e3   :  { %v1187_v28 = vpop.f32.mrb[30].mxu0 }
 0x9e4   :  { %v1243_v29 = vmul.f32 0.35355338, %v1187_v28  ;;  %v3473_v30 = vpop.f32.mrb[31].mxu0  ;;  %v1246_v24 = vadd.f32 %v1242_v25, %v4327_v3 }
 0x9e6   :  { %v1250_v31 = vsel %vm380_vm2, %v1246_v24, -inf  ;;  %v1247_v17 = vadd.f32 %v1243_v29, %v4332_v10 }
 0x9e7   :  { %1251 = vmax.xlane.f32.xlu0 %v1250_v31 }
 0x9e8   :  { %v1253_v35 = vsel %vm380_vm2, %v1247_v17, -inf }
 0x9e9   :  { %1254 = vmax.xlane.f32.xlu1 %v1253_v35 }
 0xa10   :  { %v1133_v37 = vpop.f32.mrb[24].mxu1 }
 0xa11   :  { %v3466_v34 = vpop.f32.mrb[25].mxu1 }
 0xa12   :  { %v1136_v38 = vpop.f32.mrb[26].mxu1 }
 0xa13   :  { %v3676_v26 = vpack.i.bf16 %v1136_v38, %v1133_v37  ;;  %v3467_v39 = vpop.f32.mrb[27].mxu1  ;;  %v3726_v38 = vld [vmem:[%s4934_s5 + $0x18] sm:$0xff]  }
 0xa18   :  { %v1235_v41 = vpop.f32.mrb[28].mxu1 }
 0xa19   :  { %v1244_v45 = vmul.f32 0.35355338, %v1235_v41  ;;  %v3478_v48 = vpop.f32.mrb[29].mxu1 }
 0xa1a   :  { %v1238_v51 = vpop.f32.mrb[30].mxu1 }
 0xa1b   :  { %v1245_v0 = vmul.f32 0.35355338, %v1238_v51  ;;  %v3479_v53 = vpop.f32.mrb[31].mxu1  ;;  %v1248_v3 = vadd.f32 %v1244_v45, %v4337_v11 }
 0xa1d   :  { %v1256_v54 = vsel %vm380_vm2, %v1248_v3, -inf  ;;  %v1249_v10 = vadd.f32 %v1245_v0, %v4343_v19 }
 0xa1e   :  { %1257 = vmax.xlane.f32.xlu0 %v1256_v54 }
 0xa1f   :  { %v1259_v55 = vsel %vm380_vm2, %v1249_v10, -inf }
 0xa22   :  { %1260 = vmax.xlane.f32.xlu0 %v1259_v55 }
 0xa74   :  { %v1252_v56 = vpop.xlane.xlu0 %1251 }
 0xa75   :  { %v1262_v57 = vsub.f32 %v1246_v24, %v1252_v56  ;;  %v3725_v24 = vld [vmem:[%s4934_s5 + $0x10] sm:$0xff]  }
 0xa76   :  { %v1255_v63 = vpop.xlane.xlu1 %1254 }
 0xa77   :  { %v1266_v58 = vmul.f32 1.442695, %v1262_v57  ;;  %v1263_v59 = vsub.f32 %v1247_v17, %v1255_v63 }
 0xa79   :  { %3801 = vpow2.f32 %v1266_v58  ;;  %v1268_v60 = vmul.f32 1.442695, %v1263_v59 }
 0xa7b   :  { %3803 = vpow2.f32 %v1268_v60 }
 0xa83   :  { %v3802_v62 = vpop.eup %3801 }
 0xa84   :  { %v1274_v1 = vsel %vm380_vm2, %v3802_v62, 0.0 }
 0xa85   :  { %v3804_v11 = vpop.eup %3803  ;;  %1275 = vadd.xlane.f32.xlu0 %v1274_v1 }
 0xa86   :  { %v1277_v2 = vsel %vm380_vm2, %v3804_v11, 0.0 }
 0xa87   :  { %1278 = vadd.xlane.f32.xlu1 %v1277_v2 }
 0xaab   :  { %v1258_v19 = vpop.xlane.xlu0 %1257 }
 0xaac   :  { %v1264_v4 = vsub.f32 %v1248_v3, %v1258_v19 }
 0xaae   :  { %v1270_v5 = vmul.f32 1.442695, %v1264_v4 }
 0xaaf   :  { %v1261_v6 = vpop.xlane.xlu0 %1260 }
 0xab0   :  { %3805 = vpow2.f32 %v1270_v5  ;;  %v1265_v7 = vsub.f32 %v1249_v10, %v1261_v6 }
 0xab2   :  { %v1272_v8 = vmul.f32 1.442695, %v1265_v7 }
 0xab4   :  { %3807 = vpow2.f32 %v1272_v8 }
 0xaba   :  { %v3806_v9 = vpop.eup %3805 }
 0xabb   :  { %v1280_v12 = vsel %vm380_vm2, %v3806_v9, 0.0 }
 0xabc   :  { %1281 = vadd.xlane.f32.xlu0 %v1280_v12 }
 0xabe   :  { %v3808_v13 = vpop.eup %3807 }
 0xabf   :  { %v1283_v18 = vsel %vm380_vm2, %v3808_v13, 0.0 }
 0xac0   :  { %1284 = vadd.xlane.f32.xlu1 %v1283_v18 }
 0xad1   :  { %1345 = vrot.lane.b32.xlu1 %v4303_v50, %s4070_s1 }
 0xad2   :  { %1296 = vrot.lane.b32.xlu0 %v4301_v47, %s4070_s1 }
 0xad5   :  { %3662 = vrot.lane.b32.xlu1 %v3661_v44, %s4059_s18 }
 0xad6   :  { %3672 = vrot.lane.b32.xlu0 %v3671_v22, %s4071_s20 }
 0xad9   :  { %3667 = vrot.lane.b32.xlu1 %v3666_v52, %s4059_s18 }
 0xadd   :  { %3677 = vrot.lane.b32.xlu1 %v3676_v26, %s4071_s20 }
 0xb12   :  { %v1276_v47 = vpop.xlane.xlu0 %1275 }
 0xb14   :  { %v1279_v50 = vpop.xlane.xlu1 %1278 }
 0xb15   :  { %3809 = vrcp.f32 %v1279_v50 }
 0xb16   :  { %3811 = vrcp.f32 %v1276_v47 }
 0xb1f   :  { %v3810_v23 = vpop.eup %3809 }
 0xb20   :  { %v3812_v42 = vpop.eup %3811  ;;  %v1291_v44 = vmul.f32 %v3810_v23, %v3804_v11 }
 0xb21   :  { %v1290_v14 = vmul.f32 %v3812_v42, %v3802_v62 }
 0xb23   :  { %v1294_v46 = vpack.c.bf16 %v1291_v44, %v1290_v14 }
 0xb49   :  { %v1282_v40 = vpop.xlane.xlu0 %1281 }
 0xb4a   :  { %3813 = vrcp.f32 %v1282_v40  ;;  %v4562_v40 = vsub.s32 1, %v4274_v61 }
 0xb4d   :  { %v1297_v16 = vpop.permute.xlu0 %1296  ;;  %v1285_v25 = vpop.xlane.xlu1 %1284 }
 0xb4e   :  { %v1302_v21 = vsel %vm535_vm3, %v1297_v16, 0  ;;  %3815 = vrcp.f32 %v1285_v25 }
 0xb4f   :  { %3481 = vmatpush3.bf16.msra.mxu0 %v1302_v21 }
 0xb50   :  { %3492 = vmatprep.subr.bf16.mxu0 %v3725_v24 }
 0xb51   :  { %v1346_v49 = vpop.permute.xlu1 %1345  ;;  %v3673_v3 = vpop.permute.xlu0 %3672 }
 0xb52   :  { %v1351_v52 = vsel %vm535_vm3, %v1346_v49, 0  ;;  %3483 = vmatmul.mubr.msk.bf16.vlgmr.msra.gmra.mrb[32].mxu0 %vm380_vm2, %v1294_v46  ;;  %v3675_v55 = vunpack.i.h.bf16 %v3673_v3  ;;  %v3674_v56 = vunpack.i.l.bf16 %v3673_v3  ;;  %v3906_v46 = vld [vmem:[%s4929_s0] sm:$0xff] }
 0xb53   :  { %3487 = vmatpush3.bf16.msra.mxu1 %v1351_v52  ;;  %3493 = vmatpush3.bf16.msra.mxu0 %v3725_v24 }
 0xb54   :  { %v3814_v22 = vpop.eup %3813  ;;  %3494 = vmatprep.subr.bf16.mxu0 %v3726_v38 }
 0xb55   :  { %v1292_v28 = vmul.f32 %v3814_v22, %v3806_v9  ;;  %v3663_v51 = vpop.permute.xlu1 %3662  ;;  %v3907_v22 = vld [vmem:[%s4929_s0 + $0x10] sm:$0xff] }
 0xb56   :  { %v3665_v0 = vunpack.i.h.bf16 %v3663_v51  ;;  %v3664_v53 = vunpack.i.l.bf16 %v3663_v51 }
 0xb57   :  { %3495 = vmatpush3.bf16.msra.mxu0 %v3726_v38 }
 0xb58   :  { %v3816_v27 = vpop.eup %3815  ;;  %v1443_v54 = vsel %vm380_vm2, %v4390_v20, %v3665_v0  ;;  %v1442_v10 = vsel %vm380_vm2, %v4388_v15, %v3664_v53 }
 0xb59   :  { %v1293_v29 = vmul.f32 %v3816_v27, %v3808_v13  ;;  %v3668_v57 = vpop.permute.xlu1 %3667  ;;  %v1447_v60 = vsel %vm1446_vm4, %v1442_v10, %v3674_v56  ;;  %v1448_v62 = vsel %vm1446_vm4, %v1443_v54, %v3675_v55 }
 0xb5a   :  { %v3670_v15 = vunpack.i.h.bf16 %v3668_v57  ;;  %v3669_v19 = vunpack.i.l.bf16 %v3668_v57 }
 0xb5b   :  { %v1295_v30 = vpack.c.bf16 %v1293_v29, %v1292_v28  ;;  %v3908_v29 = vld [vmem:[%s4929_s0 + $0x8] sm:$0xff] }
 0xb5c   :  { %v1445_v7 = vsel %vm380_vm2, %v4398_v33, %v3670_v15  ;;  %v1444_v8 = vsel %vm380_vm2, %v4396_v32, %v3669_v19  ;;  %v4567_v32 = vld [vmem:[%s4938_s9] sm:$0xff]  ;;  %v3732_v19 = vld [vmem:[%s4934_s5 + $0x28] sm:$0xff]  }
 0xb5d   :  { %3489 = vmatmul.mubr.msk.bf16.vlgmr.msra.gmra.mrb[32].mxu1 %vm380_vm2, %v1295_v30  ;;  %v3678_v2 = vpop.permute.xlu1 %3677  ;;  %v1461_v33 = vrot.slane %v4567_v32, %v4562_v40  ;;  %v3731_v15 = vld [vmem:[%s4934_s5 + $0x20] sm:$0xff]  }
 0xb5e   :  { %v3680_v4 = vunpack.i.h.bf16 %v3678_v2  ;;  %v3679_v5 = vunpack.i.l.bf16 %v3678_v2  ;;  %v3730_v2 = vld [vmem:[#allocation5 + $0x8] sm:$0xff]   ;;  %3508 = vmatprep.subr.bf16.mxu0 %v3731_v15 }
 0xb60   :  { %v1449_v13 = vsel %vm1446_vm4, %v1444_v8, %v3679_v5  ;;  %v1450_v18 = vsel %vm1446_vm4, %v1445_v7, %v3680_v4 }
 0xc25   :  { %v1338_v31 = vpop.f32.mrb[32].mxu0 }
 0xc26   :  { %v3484_v17 = vpop.f32.mrb[33].mxu0 }
 0xc27   :  { %v1341_v35 = vpop.f32.mrb[34].mxu0  ;;  %v3909_v17 = vld [vmem:[%s4929_s0 + $0x18] sm:$0xff] }
 0xc28   :  { %v3681_v37 = vpack.i.bf16 %v1341_v35, %v1338_v31  ;;  %v3485_v34 = vpop.f32.mrb[35].mxu0 }
 0xc2a   :  { %3682 = vrot.lane.b32.xlu0 %v3681_v37, %s4072_s27 }
 0xc30   :  { %v1387_v26 = vpop.f32.mrb[32].mxu1 }
 0xc31   :  { %v3490_v39 = vpop.f32.mrb[33].mxu1 }
 0xc32   :  { %v1390_v41 = vpop.f32.mrb[34].mxu1 }
 0xc33   :  { %v3686_v45 = vpack.i.bf16 %v1390_v41, %v1387_v26  ;;  %v3491_v48 = vpop.f32.mrb[35].mxu1 }
 0xc35   :  { %3687 = vrot.lane.b32.xlu1 %v3686_v45, %s4072_s27 }
 0xc9c   :  { %v3683_v63 = vpop.permute.xlu0 %3682 }
 0xc9d   :  { %v3685_v58 = vunpack.i.h.bf16 %v3683_v63  ;;  %v3684_v59 = vunpack.i.l.bf16 %v3683_v63 }
 0xc9f   :  { %v1453_v1 = vsel %vm1451_vm5, %v1448_v62, %v3685_v58  ;;  %v1452_v11 = vsel %vm1451_vm5, %v1447_v60, %v3684_v59 }
 0xca0   :  { %v1456_v20 = vpack.c.bf16 %v1453_v1, %v1452_v11  ;;  %v3727_v1 = vld [vmem:[#allocation8 + $0x10] sm:$0xff]   ;;  %v3728_v11 = vld [vmem:[#allocation8 + $0x18] sm:$0xff]  }
 0xca1   :  { %3500 = vmatprep.subr.bf16.mxu1 %v3727_v1 }
 0xca2   :  { %3496 = vmatprep.mubr.msk.bf16.mxu0 %vm129_vm0, %v1456_v20  ;;  %3501 = vmatpush3.bf16.msra.mxu1 %v3727_v1  ;;  %v3729_v20 = vld [vmem:[#allocation5] sm:$0xff]  }
 0xca3   :  { %3502 = vmatprep.subr.bf16.mxu1 %v3728_v11  ;;  %3504 = vmatprep.mubr.msk.bf16.mxu1 %vm129_vm0, %v3729_v20 }
 0xca6   :  { %3503 = vmatpush3.bf16.msra.mxu1 %v3728_v11 }
 0xca7   :  { %v3688_v6 = vpop.permute.xlu1 %3687  ;;  %3516 = vmatprep.subr.bf16.mxu1 %v4062_v43 }
 0xca8   :  { %v3690_v9 = vunpack.i.h.bf16 %v3688_v6  ;;  %v3689_v12 = vunpack.i.l.bf16 %v3688_v6 }
 0xca9   :  { %3505 = vmatmul.mubr.msk.bf16.vlgmr.msra.gmra.mrb[36].mxu1 %vm129_vm0, %v3730_v2 }
 0xcaa   :  { %v1454_v50 = vsel %vm1451_vm5, %v1449_v13, %v3689_v12  ;;  %v1455_v47 = vsel %vm1451_vm5, %v1450_v18, %v3690_v9  ;;  %3518 = vmatprep.mubr.msk.bf16.mxu1 %vm4063_vm1, %v4062_v43 }
 0xcab   :  { %v1457_v23 = vpack.c.bf16 %v1455_v47, %v1454_v50 }
 0xcad   :  { %3497 = vmatmul.mubr.msk.bf16.vlgmr.msra.gmra.mrb[36].mxu0 %vm129_vm0, %v1457_v23  ;;  %v1587_v23 = vsub.s32 7, %v4274_v61 }
 0xcae   :  { %3509 = vmatpush3.bf16.msra.mxu0 %v3731_v15 }
 0xcaf   :  { %3510 = vmatprep.subr.bf16.mxu0 %v3732_v19 }
 0xcb2   :  { %3511 = vmatpush3.bf16.msra.mxu0 %v3732_v19 }
 0xcb3   :  { %3522 = vmatprep.subr.bf16.mxu0 %v4062_v43 }
 0xd80   :  { %v3498_v42 = vpop.f32.mrb[36].mxu0 }
 0xd81   :  { %v1514_v44 = vpop.f32.mrb[37].mxu0  ;;  %v1523_v16 = vadd.f32 %v3498_v42, %v1461_v33  ;;  %v1588_v42 = vrot.slane %v4567_v32, %v1587_v23 }
 0xd82   :  { %v1515_v25 = vadd.f32 %v1514_v44, %v1461_v33  ;;  %v3499_v14 = vpop.f32.mrb[38].mxu0 }
 0xd83   :  { %v1517_v21 = vpop.f32.mrb[39].mxu0  ;;  %v4579_v27 = vadd.f32 %v3907_v22, %v1523_v16  ;;  %v1526_v28 = vadd.f32 %v3499_v14, %v1461_v33  ;;  %v126_v16 = vld [vmem:[%s4938_s9 + $0x8] sm:$0x7] }
 0xd84   :  { %v4574_v49 = vadd.f32 %v3906_v46, %v1515_v25  ;;  %v1518_v52 = vadd.f32 %v1517_v21, %v1461_v33  ;;  %v1596_v21 = vrot.slane %v126_v16, %v4295_v36  ;;  %v3910_v36 = vld [vmem:[%s4939_s10] sm:$0x3] }
 0xd85   :  { %v4593_v35 = vadd.f32 %v3909_v17, %v1526_v28  ;;  %v1539_v37 = vsel %vm129_vm0, %v4579_v27, 0.0 }
 0xd86   :  { %v4584_v30 = vadd.f32 %v3908_v29, %v1518_v52  ;;  %v1533_v24 = vsel %vm129_vm0, %v4574_v49, 0.0 }
 0xd87   :  { %1534 = vadd.xlane.f32.xlu0 %v1533_v24  ;;  %v1542_v34 = vsel %vm129_vm0, %v4593_v35, 0.0 }
 0xd88   :  { %v1536_v31 = vsel %vm129_vm0, %v4584_v30, 0.0 }
 0xd89   :  { %1537 = vadd.xlane.f32.xlu1 %v1536_v31 }
 0xd8b   :  { %1540 = vadd.xlane.f32.xlu0 %v1539_v37 }
 0xd8f   :  { %1543 = vadd.xlane.f32.xlu0 %v1542_v34 }
 0xe14   :  { %v1535_v38 = vpop.xlane.xlu0 %1534 }
 0xe15   :  { %v1545_v26 = vmul.f32 0.03125, %v1535_v38 }
 0xe16   :  { %v1538_v39 = vpop.xlane.xlu1 %1537 }
 0xe17   :  { %v1549_v41 = vsub.f32 %v4574_v49, %v1545_v26  ;;  %v1546_v45 = vmul.f32 0.03125, %v1538_v39 }
 0xe18   :  { %v1541_v48 = vpop.xlane.xlu0 %1540 }
 0xe19   :  { %v1550_v51 = vsub.f32 %v4584_v30, %v1546_v45  ;;  %v1547_v0 = vmul.f32 0.03125, %v1541_v48  ;;  %v1553_v53 = vmul.f32 %v1549_v41, %v1549_v41  ;;  %v1613_v48 = vrot.slane %v3910_v36, %v4562_v40 }
 0xe1b   :  { %v1551_v3 = vsub.f32 %v4579_v27, %v1547_v0  ;;  %v1557_v54 = vsel %vm129_vm0, %v1553_v53, 0.0  ;;  %v1554_v10 = vmul.f32 %v1550_v51, %v1550_v51 }
 0xe1c   :  { %1558 = vadd.xlane.f32.xlu0 %v1557_v54  ;;  %v1544_v55 = vpop.xlane.xlu0 %1543 }
 0xe1d   :  { %v1548_v56 = vmul.f32 0.03125, %v1544_v55  ;;  %v1560_v57 = vsel %vm129_vm0, %v1554_v10, 0.0  ;;  %v1555_v63 = vmul.f32 %v1551_v3, %v1551_v3 }
 0xe1e   :  { %1561 = vadd.xlane.f32.xlu1 %v1560_v57 }
 0xe1f   :  { %v1552_v58 = vsub.f32 %v4593_v35, %v1548_v56  ;;  %v1563_v59 = vsel %vm129_vm0, %v1555_v63, 0.0 }
 0xe20   :  { %1564 = vadd.xlane.f32.xlu0 %v1563_v59 }
 0xe21   :  { %v1556_v60 = vmul.f32 %v1552_v58, %v1552_v58 }
 0xe23   :  { %v1566_v62 = vsel %vm129_vm0, %v1556_v60, 0.0  ;;  %v1702_v60 = vsub.s32 2, %v4274_v61 }
 0xe24   :  { %1567 = vadd.xlane.f32.xlu1 %v1566_v62 }
 0xe25   :  { %v1703_v62 = vrot.slane %v4567_v32, %v1702_v60 }
 0xea9   :  { %v1559_v4 = vpop.xlane.xlu0 %1558 }
 0xeaa   :  { %v1569_v5 = vmul.f32 0.03125, %v1559_v4 }
 0xeab   :  { %v1562_v6 = vpop.xlane.xlu1 %1561 }
 0xeac   :  { %v1573_v7 = vadd.f32 1e-05, %v1569_v5  ;;  %v1570_v8 = vmul.f32 0.03125, %v1562_v6 }
 0xead   :  { %v1565_v9 = vpop.xlane.xlu0 %1564 }
 0xeae   :  { %3817 = vrsqrt.f32 %v1573_v7  ;;  %v1574_v12 = vadd.f32 1e-05, %v1570_v8  ;;  %v1571_v13 = vmul.f32 0.03125, %v1565_v9 }
 0xeb0   :  { %3819 = vrsqrt.f32 %v1574_v12  ;;  %v1575_v18 = vadd.f32 1e-05, %v1571_v13 }
 0xeb1   :  { %v1568_v50 = vpop.xlane.xlu1 %1567 }
 0xeb2   :  { %3821 = vrsqrt.f32 %v1575_v18  ;;  %v1572_v47 = vmul.f32 0.03125, %v1568_v50 }
 0xeb4   :  { %v1576_v33 = vadd.f32 1e-05, %v1572_v47 }
 0xeb6   :  { %3823 = vrsqrt.f32 %v1576_v33 }
 0xeb8   :  { %v3818_v44 = vpop.eup %3817 }
 0xeb9   :  { %v1581_v25 = vmul.f32 %v3818_v44, %v1549_v41 }
 0xeba   :  { %v3820_v14 = vpop.eup %3819 }
 0xebb   :  { %v1582_v46 = vmul.f32 %v3820_v14, %v1550_v51  ;;  %v1589_v52 = vmul.f32 %v1588_v42, %v1581_v25  ;;  %v3506_v51 = vpop.f32.mrb[36].mxu1 }
 0xebc   :  { %v3822_v22 = vpop.eup %3821  ;;  %v1685_v0 = vadd.f32 %v3506_v51, %v1613_v48  ;;  %v1676_v53 = vpop.f32.mrb[37].mxu1 }
 0xebd   :  { %v1583_v28 = vmul.f32 %v3822_v22, %v1551_v3  ;;  %v1590_v29 = vmul.f32 %v1588_v42, %v1582_v46  ;;  %v1597_v24 = vadd.f32 %v1596_v21, %v1589_v52  ;;  %v1677_v3 = vadd.f32 %v1676_v53, %v1613_v48  ;;  %v3507_v54 = vpop.f32.mrb[38].mxu1 }
 0xebe   :  { %v1688_v10 = vadd.f32 %v3507_v54, %v1613_v48  ;;  %v1679_v55 = vpop.f32.mrb[39].mxu1 }
 0xebf   :  { %v1598_v31 = vadd.f32 %v1596_v21, %v1590_v29  ;;  %v1591_v37 = vmul.f32 %v1588_v42, %v1583_v28  ;;  %v1680_v56 = vadd.f32 %v1679_v55, %v1613_v48 }
 0xec0   :  { %v3824_v17 = vpop.eup %3823  ;;  %v4633_v57 = vpack.c.bf16 %v1688_v10, %v1685_v0 }
 0xec1   :  { %v1584_v34 = vmul.f32 %v3824_v17, %v1552_v58  ;;  %v1698_v38 = vpack.c.bf16 %v1598_v31, %v1597_v24  ;;  %v1599_v39 = vadd.f32 %v1596_v21, %v1591_v37  ;;  %v4635_v63 = vpack.c.bf16 %v1680_v56, %v1677_v3 }
 0xec2   :  { %v1829_v58 = vsel %vm380_vm2, %v4633_v57, 0 }
 0xec3   :  { %v1592_v26 = vmul.f32 %v1588_v42, %v1584_v34  ;;  %3512 = vmatprep.mubr.msk.bf16.mxu0 %vm129_vm0, %v1698_v38  ;;  %v1782_v59 = vsel %vm380_vm2, %v4635_v63, 0 }
 0xec4   :  { %3517 = vmatpush3.bf16.xpose.msra.mxu1 %v1782_v59 }
 0xec5   :  { %v1600_v45 = vadd.f32 %v1596_v21, %v1592_v26  ;;  %3528 = vmatprep.subr.bf16.mxu1 %v4062_v43 }
 0xec7   :  { %v1699_v41 = vpack.c.bf16 %v1600_v45, %v1599_v39 }
 0xec9   :  { %3513 = vmatmul.mubr.msk.bf16.vlgmr.msra.gmra.mrb[40].mxu0 %vm129_vm0, %v1699_v41 }
 0xeca   :  { %3524 = vmatprep.mubr.msk.bf16.mxu0 %vm4063_vm1, %v4062_v43  ;;  %3523 = vmatpush3.bf16.xpose.msra.mxu0 %v1829_v58 }
 0xecb   :  { %3534 = vmatprep.subr.bf16.mxu0 %v4062_v43 }
 0xf9c   :  { %v3514_v1 = vpop.f32.mrb[40].mxu0 }
 0xf9d   :  { %v1756_v11 = vpop.f32.mrb[41].mxu0  ;;  %v1765_v2 = vadd.f32 %v3514_v1, %v1703_v62 }
 0xf9e   :  { %v3515_v20 = vpop.f32.mrb[42].mxu0  ;;  %v1757_v4 = vadd.f32 %v1756_v11, %v1703_v62 }
 0xf9f   :  { %v1768_v15 = vadd.f32 %v3515_v20, %v1703_v62  ;;  %v1759_v19 = vpop.f32.mrb[43].mxu0 }
 0xfa0   :  { %v1760_v5 = vadd.f32 %v1759_v19, %v1703_v62 }
 0xfa1   :  { %v4647_v6 = vpack.c.bf16 %v1768_v15, %v1765_v2 }
 0xfa2   :  { %v4649_v7 = vpack.c.bf16 %v1760_v5, %v1757_v4 }
 0xfa3   :  { %3525 = vmatmul.mubr.msk.bf16.vlgmr.msra.gmra.mrb[44].mxu0 %vm380_vm2, %v4647_v6 }
 0xfa4   :  { %3519 = vmatmul.mubr.msk.bf16.vlgmr.msra.gmra.mrb[40].mxu1 %vm380_vm2, %v4649_v7  ;;  %3536 = vmatprep.mubr.msk.bf16.mxu0 %vm4063_vm1, %v4062_v43 }
 0xfa5   :  { %3530 = vmatprep.mubr.msk.bf16.mxu1 %vm4063_vm1, %v4062_v43 }
0x1076   :  { %v1865_v32 = vpop.f32.mrb[44].mxu0 }
0x1077   :  { %v1818_v8 = vpop.f32.mrb[40].mxu1  ;;  %v3526_v9 = vpop.f32.mrb[45].mxu0  ;;  %v1874_v23 = vmul.f32 0.35355338, %v1865_v32 }
0x1078   :  { %v1872_v12 = vmul.f32 0.35355338, %v1818_v8  ;;  %v3520_v13 = vpop.f32.mrb[41].mxu1  ;;  %v1868_v18 = vpop.f32.mrb[46].mxu0 }
0x1079   :  { %v1821_v50 = vpop.f32.mrb[42].mxu1  ;;  %v3527_v47 = vpop.f32.mrb[47].mxu0  ;;  %v1875_v16 = vmul.f32 0.35355338, %v1868_v18  ;;  %v1882_v14 = vsel %vm1446_vm4, %v1874_v23, -inf }
0x107a   :  { %v1873_v33 = vmul.f32 0.35355338, %v1821_v50  ;;  %v3521_v42 = vpop.f32.mrb[43].mxu1  ;;  %v1876_v44 = vsel %vm1446_vm4, %v1872_v12, -inf }
0x107b   :  { %1877 = vmax.xlane.f32.xlu0 %v1876_v44  ;;  %v1885_v21 = vsel %vm1446_vm4, %v1875_v16, -inf }
0x107c   :  { %v1879_v25 = vsel %vm1446_vm4, %v1873_v33, -inf }
0x107d   :  { %1880 = vmax.xlane.f32.xlu1 %v1879_v25 }
0x107f   :  { %1883 = vmax.xlane.f32.xlu0 %v1882_v14 }
0x1081   :  { %1886 = vmax.xlane.f32.xlu1 %v1885_v21 }
0x1092   :  { %1971 = vrot.lane.b32.xlu1 %v4633_v57, %s4064_s3 }
0x1096   :  { %2021 = vrot.lane.b32.xlu1 %v4635_v63, %s4065_s21 }
0x1108   :  { %v1878_v46 = vpop.xlane.xlu0 %1877 }
0x1109   :  { %v1888_v52 = vsub.f32 %v1872_v12, %v1878_v46 }
0x110a   :  { %v1881_v22 = vpop.xlane.xlu1 %1880 }
0x110b   :  { %v1889_v29 = vsub.f32 %v1873_v33, %v1881_v22  ;;  %v1892_v31 = vmul.f32 1.442695, %v1888_v52 }
0x110c   :  { %v1884_v28 = vpop.xlane.xlu0 %1883 }
0x110d   :  { %v1890_v24 = vsub.f32 %v1874_v23, %v1884_v28  ;;  %v1894_v38 = vmul.f32 1.442695, %v1889_v29 }
0x110e   :  { %v1887_v17 = vpop.xlane.xlu1 %1886 }
0x110f   :  { %v1896_v37 = vmul.f32 1.442695, %v1890_v24  ;;  %v1891_v34 = vsub.f32 %v1875_v16, %v1887_v17 }
0x1111   :  { %3825 = vpow2.f32 %v1896_v37  ;;  %v1898_v26 = vmul.f32 1.442695, %v1891_v34 }
0x1112   :  { %3827 = vpow2.f32 %v1892_v31  ;;  %v1972_v39 = vpop.permute.xlu1 %1971 }
0x1113   :  { %3829 = vpow2.f32 %v1898_v26  ;;  %3535 = vmatpush3.bf16.msra.mxu0 %v1972_v39 }
0x1114   :  { %3546 = vmatprep.subr.bf16.mxu0 %v4062_v43  ;;  %3831 = vpow2.f32 %v1894_v38 }
0x1116   :  { %v2022_v54 = vpop.permute.xlu1 %2021 }
0x1117   :  { %v2027_v12 = vsel %vm380_vm2, %v2022_v54, 0 }
0x111b   :  { %v3826_v45 = vpop.eup %3825 }
0x111c   :  { %v3828_v41 = vpop.eup %3827  ;;  %v1906_v36 = vsel %vm1446_vm4, %v3826_v45, 0.0 }
0x111d   :  { %v3830_v48 = vpop.eup %3829  ;;  %1907 = vadd.xlane.f32.xlu0 %v1906_v36  ;;  %v1900_v53 = vsel %vm1446_vm4, %v3828_v41, 0.0 }
0x111e   :  { %v1909_v51 = vsel %vm1446_vm4, %v3830_v48, 0.0  ;;  %v3832_v0 = vpop.eup %3831 }
0x111f   :  { %1910 = vadd.xlane.f32.xlu1 %v1909_v51  ;;  %v1903_v3 = vsel %vm1446_vm4, %v3832_v0, 0.0 }
0x1121   :  { %1901 = vadd.xlane.f32.xlu0 %v1900_v53 }
0x1123   :  { %1904 = vadd.xlane.f32.xlu1 %v1903_v3 }
0x1134   :  { %2073 = vrot.lane.b32.xlu1 %v4633_v57, %s4065_s21 }
0x1137   :  { %1923 = vrot.lane.b32.xlu0 %v4635_v63, %s4064_s3 }
0x1138   :  { %2071 = vrot.lane.b32.xlu1 %v4647_v6, %s4065_s21 }
0x113b   :  { %2019 = vrot.lane.b32.xlu0 %v4649_v7, %s4065_s21 }
0x11aa   :  { %v1908_v10 = vpop.xlane.xlu0 %1907 }
0x11ab   :  { %3833 = vrcp.f32 %v1908_v10 }
0x11ac   :  { %v1911_v55 = vpop.xlane.xlu1 %1910 }
0x11ad   :  { %3835 = vrcp.f32 %v1911_v55 }
0x11ae   :  { %v1902_v56 = vpop.xlane.xlu0 %1901 }
0x11af   :  { %3837 = vrcp.f32 %v1902_v56 }
0x11b0   :  { %v1905_v58 = vpop.xlane.xlu1 %1904 }
0x11b1   :  { %3839 = vrcp.f32 %v1905_v58 }
0x11b2   :  { %v1924_v59 = vpop.permute.xlu0 %1923 }
0x11b3   :  { %3529 = vmatpush3.bf16.msra.mxu1 %v1924_v59 }
0x11b4   :  { %3540 = vmatprep.subr.bf16.mxu1 %v4062_v43  ;;  %v2074_v15 = vpop.permute.xlu1 %2073 }
0x11b5   :  { %v3834_v62 = vpop.eup %3833  ;;  %v2079_v8 = vsel %vm380_vm2, %v2074_v15, 0 }
0x11b6   :  { %v1918_v11 = vmul.f32 %v3834_v62, %v3826_v45  ;;  %v2020_v18 = vpop.permute.xlu0 %2019 }
0x11b7   :  { %v3836_v1 = vpop.eup %3835 }
0x11b8   :  { %v1919_v20 = vmul.f32 %v3836_v1, %v3830_v48  ;;  %v2072_v13 = vpop.permute.xlu1 %2071 }
0x11b9   :  { %v3838_v2 = vpop.eup %3837 }
0x11ba   :  { %v1921_v19 = vpack.c.bf16 %v1919_v20, %v1918_v11  ;;  %v1916_v5 = vmul.f32 %v3838_v2, %v3828_v41 }
0x11bb   :  { %v3840_v4 = vpop.eup %3839 }
0x11bc   :  { %v1917_v32 = vmul.f32 %v3840_v4, %v3832_v0  ;;  %3537 = vmatmul.mubr.msk.bf16.vlgmr.msra.gmra.mrb[48].mxu0 %vm1446_vm4, %v1921_v19 }
0x11bd   :  { %3547 = vmatpush3.bf16.xpose.msra.mxu0 %v2079_v8  ;;  %3548 = vmatprep.mubr.msk.bf16.mxu0 %vm4063_vm1, %v4062_v43 }
0x11be   :  { %v1920_v9 = vpack.c.bf16 %v1917_v32, %v1916_v5  ;;  %3558 = vmatprep.subr.bf16.mxu0 %v4062_v43 }
0x11c0   :  { %3531 = vmatmul.mubr.msk.bf16.vlgmr.msra.gmra.mrb[44].mxu1 %vm1446_vm4, %v1920_v9 }
0x11c1   :  { %3541 = vmatpush3.bf16.xpose.msra.mxu1 %v2027_v12  ;;  %3542 = vmatprep.mubr.msk.bf16.mxu1 %vm4063_vm1, %v4062_v43 }
0x11c2   :  { %3552 = vmatprep.subr.bf16.mxu1 %v4062_v43 }
0x11c4   :  { %3549 = vmatmul.mubr.msk.bf16.vlgmr.msra.gmra.mrb[52].mxu0 %vm380_vm2, %v2072_v13 }
0x11c5   :  { %3560 = vmatprep.mubr.msk.bf16.mxu0 %vm4063_vm1, %v4062_v43 }
0x11c8   :  { %3543 = vmatmul.mubr.msk.bf16.vlgmr.msra.gmra.mrb[48].mxu1 %vm380_vm2, %v2020_v18 }
0x11c9   :  { %3554 = vmatprep.mubr.msk.bf16.mxu1 %vm4063_vm1, %v4062_v43 }
0x128f   :  { %v4697_v50 = vpop.f32.mrb[48].mxu0 }
0x1290   :  { %v3538_v47 = vpop.f32.mrb[49].mxu0 }
0x1291   :  { %v4699_v23 = vpop.f32.mrb[50].mxu0 }
0x1292   :  { %v3539_v33 = vpop.f32.mrb[51].mxu0 }
0x1293   :  { %v4701_v42 = vpop.f32.mrb[44].mxu1 }
0x1294   :  { %v3532_v44 = vpop.f32.mrb[45].mxu1 }
0x1295   :  { %v4703_v16 = vpop.f32.mrb[46].mxu1 }
0x1296   :  { %v3533_v25 = vpop.f32.mrb[47].mxu1 }
0x1297   :  { %v2115_v14 = vpop.f32.mrb[52].mxu0 }
0x1298   :  { %v3550_v21 = vpop.f32.mrb[53].mxu0  ;;  %v2124_v31 = vmul.f32 0.35355338, %v2115_v14 }
0x1299   :  { %v2118_v46 = vpop.f32.mrb[54].mxu0 }
0x129a   :  { %v3551_v52 = vpop.f32.mrb[55].mxu0  ;;  %v2125_v26 = vmul.f32 0.35355338, %v2118_v46  ;;  %v2132_v39 = vsel %vm1446_vm4, %v2124_v31, -inf }
0x129b   :  { %v2063_v22 = vpop.f32.mrb[48].mxu1 }
0x129c   :  { %v2122_v28 = vmul.f32 0.35355338, %v2063_v22  ;;  %v3544_v29 = vpop.f32.mrb[49].mxu1  ;;  %v2135_v45 = vsel %vm1446_vm4, %v2125_v26, -inf }
0x129d   :  { %v2066_v24 = vpop.f32.mrb[50].mxu1 }
0x129e   :  { %v2123_v17 = vmul.f32 0.35355338, %v2066_v24  ;;  %v3545_v37 = vpop.f32.mrb[51].mxu1  ;;  %v2126_v34 = vsel %vm1446_vm4, %v2122_v28, -inf }
0x129f   :  { %2127 = vmax.xlane.f32.xlu0 %v2126_v34 }
0x12a0   :  { %v2129_v38 = vsel %vm1446_vm4, %v2123_v17, -inf }
0x12a1   :  { %2130 = vmax.xlane.f32.xlu1 %v2129_v38 }
0x12a3   :  { %2133 = vmax.xlane.f32.xlu0 %v2132_v39 }
0x12a7   :  { %2136 = vmax.xlane.f32.xlu0 %v2135_v45 }
0x12b2   :  { %2219 = vrot.lane.b32.xlu1 %v4633_v57, %s4066_s7 }
0x12b6   :  { %2268 = vrot.lane.b32.xlu1 %v4635_v63, %s4067_s13 }
0x132c   :  { %v2128_v41 = vpop.xlane.xlu0 %2127 }
0x132d   :  { %v2138_v48 = vsub.f32 %v2122_v28, %v2128_v41 }
0x132e   :  { %v2131_v36 = vpop.xlane.xlu1 %2130 }
0x132f   :  { %v2142_v3 = vmul.f32 1.442695, %v2138_v48  ;;  %v2139_v54 = vsub.f32 %v2123_v17, %v2131_v36 }
0x1330   :  { %v2134_v51 = vpop.xlane.xlu0 %2133 }
0x1331   :  { %v2140_v0 = vsub.f32 %v2124_v31, %v2134_v51  ;;  %v2144_v58 = vmul.f32 1.442695, %v2139_v54 }
0x1332   :  { %v2220_v53 = vpop.permute.xlu1 %2219 }
0x1333   :  { %v2146_v10 = vmul.f32 1.442695, %v2140_v0  ;;  %3559 = vmatpush3.bf16.msra.mxu0 %v2220_v53 }
0x1334   :  { %v2137_v55 = vpop.xlane.xlu0 %2136  ;;  %3570 = vmatprep.subr.bf16.mxu0 %v4062_v43 }
0x1335   :  { %3841 = vpow2.f32 %v2146_v10  ;;  %v2141_v56 = vsub.f32 %v2125_v26, %v2137_v55 }
0x1336   :  { %3843 = vpow2.f32 %v2142_v3  ;;  %v2269_v5 = vpop.permute.xlu1 %2268 }
0x1337   :  { %v2148_v59 = vmul.f32 1.442695, %v2141_v56  ;;  %v2274_v24 = vsel %vm380_vm2, %v2269_v5, 0 }
0x1339   :  { %3845 = vpow2.f32 %v2148_v59 }
0x133a   :  { %3847 = vpow2.f32 %v2144_v58 }
0x133f   :  { %v3842_v62 = vpop.eup %3841 }
0x1340   :  { %v2156_v1 = vsel %vm1446_vm4, %v3842_v62, 0.0  ;;  %v3844_v11 = vpop.eup %3843 }
0x1341   :  { %2157 = vadd.xlane.f32.xlu0 %v2156_v1  ;;  %v2150_v2 = vsel %vm1446_vm4, %v3844_v11, 0.0 }
0x1343   :  { %v3846_v20 = vpop.eup %3845 }
0x1344   :  { %v2159_v15 = vsel %vm1446_vm4, %v3846_v20, 0.0  ;;  %v3848_v19 = vpop.eup %3847 }
0x1345   :  { %2151 = vadd.xlane.f32.xlu0 %v2150_v2  ;;  %2160 = vadd.xlane.f32.xlu1 %v2159_v15  ;;  %v2153_v4 = vsel %vm1446_vm4, %v3848_v19, 0.0 }
0x1349   :  { %2154 = vadd.xlane.f32.xlu1 %v2153_v4 }
0x135a   :  { %2319 = vrot.lane.b32.xlu1 %v4633_v57, %s4067_s13 }
0x135b   :  { %2172 = vrot.lane.b32.xlu0 %v4635_v63, %s4066_s7 }
0x135e   :  { %2317 = vrot.lane.b32.xlu1 %v4647_v6, %s4067_s13 }
0x135f   :  { %2266 = vrot.lane.b32.xlu0 %v4649_v7, %s4067_s13 }
0x13ce   :  { %v2158_v32 = vpop.xlane.xlu0 %2157 }
0x13cf   :  { %3849 = vrcp.f32 %v2158_v32 }
0x13d2   :  { %v2152_v8 = vpop.xlane.xlu0 %2151  ;;  %v2161_v9 = vpop.xlane.xlu1 %2160 }
0x13d3   :  { %3851 = vrcp.f32 %v2161_v9 }
0x13d4   :  { %3853 = vrcp.f32 %v2152_v8 }
0x13d6   :  { %v2173_v12 = vpop.permute.xlu0 %2172  ;;  %v2155_v13 = vpop.xlane.xlu1 %2154 }
0x13d7   :  { %3855 = vrcp.f32 %v2155_v13  ;;  %3553 = vmatpush3.bf16.msra.mxu1 %v2173_v12 }
0x13d8   :  { %3564 = vmatprep.subr.bf16.mxu1 %v4062_v43 }
0x13d9   :  { %v3850_v18 = vpop.eup %3849 }
0x13da   :  { %v2168_v44 = vmul.f32 %v3850_v18, %v3842_v62  ;;  %v2320_v14 = vpop.permute.xlu1 %2319  ;;  %v2267_v17 = vpop.permute.xlu0 %2266 }
0x13db   :  { %v2325_v28 = vsel %vm380_vm2, %v2320_v14, 0 }
0x13dd   :  { %v3852_v47 = vpop.eup %3851 }
0x13de   :  { %v3854_v33 = vpop.eup %3853  ;;  %v2169_v25 = vmul.f32 %v3852_v47, %v3846_v20  ;;  %v2318_v31 = vpop.permute.xlu1 %2317 }
0x13df   :  { %v2166_v52 = vmul.f32 %v3854_v33, %v3844_v11 }
0x13e0   :  { %v2171_v46 = vpack.c.bf16 %v2169_v25, %v2168_v44 }
0x13e1   :  { %v3856_v21 = vpop.eup %3855 }
0x13e2   :  { %v2167_v22 = vmul.f32 %v3856_v21, %v3848_v19  ;;  %3561 = vmatmul.mubr.msk.bf16.vlgmr.msra.gmra.mrb[56].mxu0 %vm1446_vm4, %v2171_v46 }
0x13e3   :  { %3571 = vmatpush3.bf16.xpose.msra.mxu0 %v2325_v28  ;;  %3572 = vmatprep.mubr.msk.bf16.mxu0 %vm4063_vm1, %v4062_v43 }
0x13e4   :  { %v2170_v29 = vpack.c.bf16 %v2167_v22, %v2166_v52  ;;  %3582 = vmatprep.subr.bf16.mxu0 %v4062_v43 }
0x13e6   :  { %3555 = vmatmul.mubr.msk.bf16.vlgmr.msra.gmra.mrb[52].mxu1 %vm1446_vm4, %v2170_v29 }
0x13e7   :  { %3565 = vmatpush3.bf16.xpose.msra.mxu1 %v2274_v24  ;;  %3566 = vmatprep.mubr.msk.bf16.mxu1 %vm4063_vm1, %v4062_v43 }
0x13e8   :  { %3576 = vmatprep.subr.bf16.mxu1 %v4062_v43 }
0x13ea   :  { %3573 = vmatmul.mubr.msk.bf16.vlgmr.msra.gmra.mrb[60].mxu0 %vm380_vm2, %v2318_v31 }
0x13eb   :  { %3584 = vmatprep.mubr.msk.bf16.mxu0 %vm4063_vm1, %v4062_v43 }
0x13ee   :  { %3567 = vmatmul.mubr.msk.bf16.vlgmr.msra.gmra.mrb[56].mxu1 %vm380_vm2, %v2267_v17 }
0x13ef   :  { %3578 = vmatprep.mubr.msk.bf16.mxu1 %vm4063_vm1, %v4062_v43 }
0x14b5   :  { %v4743_v37 = vpop.f32.mrb[56].mxu0 }
0x14b6   :  { %v3562_v34 = vpop.f32.mrb[57].mxu0 }
0x14b7   :  { %v4745_v38 = vpop.f32.mrb[58].mxu0 }
0x14b8   :  { %v3696_v26 = vpack.i.bf16 %v4745_v38, %v4743_v37  ;;  %v3563_v39 = vpop.f32.mrb[59].mxu0 }
0x14b9   :  { %v4749_v45 = vpop.f32.mrb[52].mxu1 }
0x14ba   :  { %v3556_v41 = vpop.f32.mrb[53].mxu1 }
0x14bb   :  { %v4751_v36 = vpop.f32.mrb[54].mxu1 }
0x14bc   :  { %v3691_v48 = vpack.i.bf16 %v4751_v36, %v4749_v45  ;;  %v3557_v51 = vpop.f32.mrb[55].mxu1 }
0x14bd   :  { %v2361_v0 = vpop.f32.mrb[60].mxu0 }
0x14be   :  { %v3574_v53 = vpop.f32.mrb[61].mxu0  ;;  %v2370_v59 = vmul.f32 0.35355338, %v2361_v0 }
0x14bf   :  { %v2364_v3 = vpop.f32.mrb[62].mxu0 }
0x14c0   :  { %v3575_v54 = vpop.f32.mrb[63].mxu0  ;;  %v2371_v2 = vmul.f32 0.35355338, %v2364_v3  ;;  %v2378_v15 = vsel %vm1446_vm4, %v2370_v59, -inf }
0x14c1   :  { %v2310_v10 = vpop.f32.mrb[56].mxu1 }
0x14c2   :  { %v2368_v55 = vmul.f32 0.35355338, %v2310_v10  ;;  %v3568_v56 = vpop.f32.mrb[57].mxu1  ;;  %v2381_v19 = vsel %vm1446_vm4, %v2371_v2, -inf }
0x14c3   :  { %v2313_v58 = vpop.f32.mrb[58].mxu1 }
0x14c4   :  { %v2369_v62 = vmul.f32 0.35355338, %v2313_v58  ;;  %v3569_v1 = vpop.f32.mrb[59].mxu1  ;;  %v2372_v11 = vsel %vm1446_vm4, %v2368_v55, -inf }
0x14c5   :  { %2373 = vmax.xlane.f32.xlu0 %v2372_v11 }
0x14c6   :  { %v2375_v20 = vsel %vm1446_vm4, %v2369_v62, -inf }
0x14c7   :  { %2376 = vmax.xlane.f32.xlu1 %v2375_v20 }
0x14c9   :  { %2379 = vmax.xlane.f32.xlu0 %v2378_v15 }
0x14cd   :  { %2382 = vmax.xlane.f32.xlu0 %v2381_v19 }
0x14d8   :  { %2465 = vrot.lane.b32.xlu1 %v4633_v57, %s4068_s14 }
0x14dc   :  { %2514 = vrot.lane.b32.xlu1 %v4635_v63, %s4069_s22 }
0x1552   :  { %v2374_v4 = vpop.xlane.xlu0 %2373 }
0x1553   :  { %v2384_v32 = vsub.f32 %v2368_v55, %v2374_v4 }
0x1554   :  { %v2377_v5 = vpop.xlane.xlu1 %2376 }
0x1555   :  { %v2388_v13 = vmul.f32 1.442695, %v2384_v32  ;;  %v2385_v18 = vsub.f32 %v2369_v62, %v2377_v5 }
0x1556   :  { %v2380_v8 = vpop.xlane.xlu0 %2379 }
0x1557   :  { %v2386_v9 = vsub.f32 %v2370_v59, %v2380_v8  ;;  %v2390_v25 = vmul.f32 1.442695, %v2385_v18 }
0x1558   :  { %v2466_v12 = vpop.permute.xlu1 %2465 }
0x1559   :  { %v2392_v47 = vmul.f32 1.442695, %v2386_v9  ;;  %3583 = vmatpush3.bf16.msra.mxu0 %v2466_v12 }
0x155a   :  { %v2383_v33 = vpop.xlane.xlu0 %2382  ;;  %3594 = vmatprep.subr.bf16.mxu0 %v4062_v43 }
0x155b   :  { %3857 = vpow2.f32 %v2392_v47  ;;  %v2387_v44 = vsub.f32 %v2371_v2, %v2383_v33 }
0x155c   :  { %3859 = vpow2.f32 %v2388_v13  ;;  %v2515_v17 = vpop.permute.xlu1 %2514 }
0x155d   :  { %v2394_v14 = vmul.f32 1.442695, %v2387_v44  ;;  %v2520_v11 = vsel %vm380_vm2, %v2515_v17, 0 }
0x155f   :  { %3861 = vpow2.f32 %v2394_v14 }
0x1560   :  { %3863 = vpow2.f32 %v2390_v25 }
0x1565   :  { %v3858_v21 = vpop.eup %3857 }
0x1566   :  { %v2402_v46 = vsel %vm1446_vm4, %v3858_v21, 0.0  ;;  %v3860_v52 = vpop.eup %3859 }
0x1567   :  { %2403 = vadd.xlane.f32.xlu0 %v2402_v46  ;;  %v2396_v28 = vsel %vm1446_vm4, %v3860_v52, 0.0 }
0x1569   :  { %v3862_v22 = vpop.eup %3861 }
0x156a   :  { %v2405_v29 = vsel %vm1446_vm4, %v3862_v22, 0.0  ;;  %v3864_v24 = vpop.eup %3863 }
0x156b   :  { %2397 = vadd.xlane.f32.xlu0 %v2396_v28  ;;  %2406 = vadd.xlane.f32.xlu1 %v2405_v29  ;;  %v2399_v31 = vsel %vm1446_vm4, %v3864_v24, 0.0 }
0x156f   :  { %2400 = vadd.xlane.f32.xlu1 %v2399_v31 }
0x1580   :  { %2565 = vrot.lane.b32.xlu1 %v4633_v57, %s4069_s22 }
0x1581   :  { %2418 = vrot.lane.b32.xlu0 %v4635_v63, %s4068_s14 }
0x1584   :  { %2563 = vrot.lane.b32.xlu1 %v4647_v6, %s4069_s22 }
0x1585   :  { %2512 = vrot.lane.b32.xlu0 %v4649_v7, %s4069_s22 }
0x15f4   :  { %v2404_v34 = vpop.xlane.xlu0 %2403 }
0x15f5   :  { %3865 = vrcp.f32 %v2404_v34 }
0x15f8   :  { %v2398_v39 = vpop.xlane.xlu0 %2397  ;;  %v2407_v41 = vpop.xlane.xlu1 %2406 }
0x15f9   :  { %3867 = vrcp.f32 %v2407_v41 }
0x15fa   :  { %3869 = vrcp.f32 %v2398_v39 }
0x15fc   :  { %v2419_v51 = vpop.permute.xlu0 %2418  ;;  %v2401_v0 = vpop.xlane.xlu1 %2400 }
0x15fd   :  { %3871 = vrcp.f32 %v2401_v0  ;;  %3577 = vmatpush3.bf16.msra.mxu1 %v2419_v51 }
0x15fe   :  { %3588 = vmatprep.subr.bf16.mxu1 %v4062_v43 }
0x15ff   :  { %v3866_v53 = vpop.eup %3865 }
0x1600   :  { %v2414_v6 = vmul.f32 %v3866_v53, %v3858_v21  ;;  %v2566_v55 = vpop.permute.xlu1 %2565  ;;  %v2513_v2 = vpop.permute.xlu0 %2512 }
0x1601   :  { %v2571_v62 = vsel %vm380_vm2, %v2566_v55, 0 }
0x1603   :  { %v3868_v3 = vpop.eup %3867 }
0x1604   :  { %v3870_v54 = vpop.eup %3869  ;;  %v2415_v10 = vmul.f32 %v3868_v3, %v3862_v22  ;;  %v2564_v20 = vpop.permute.xlu1 %2563 }
0x1605   :  { %v2412_v58 = vmul.f32 %v3870_v54, %v3860_v52 }
0x1606   :  { %v2417_v56 = vpack.c.bf16 %v2415_v10, %v2414_v6 }
0x1607   :  { %v3872_v7 = vpop.eup %3871 }
0x1608   :  { %v2413_v59 = vmul.f32 %v3872_v7, %v3864_v24  ;;  %3585 = vmatmul.mubr.msk.bf16.vlgmr.msra.gmra.mrb[64].mxu0 %vm1446_vm4, %v2417_v56 }
0x1609   :  { %3595 = vmatpush3.bf16.xpose.msra.mxu0 %v2571_v62  ;;  %3596 = vmatprep.mubr.msk.bf16.mxu0 %vm4063_vm1, %v4062_v43 }
0x160a   :  { %v2416_v1 = vpack.c.bf16 %v2413_v59, %v2412_v58  ;;  %3606 = vmatprep.subr.bf16.mxu0 %v4062_v43 }
0x160c   :  { %3579 = vmatmul.mubr.msk.bf16.vlgmr.msra.gmra.mrb[60].mxu1 %vm1446_vm4, %v2416_v1 }
0x160d   :  { %3589 = vmatpush3.bf16.xpose.msra.mxu1 %v2520_v11  ;;  %3590 = vmatprep.mubr.msk.bf16.mxu1 %vm4063_vm1, %v4062_v43 }
0x160e   :  { %3600 = vmatprep.subr.bf16.mxu1 %v4062_v43 }
0x1610   :  { %3597 = vmatmul.mubr.msk.bf16.vlgmr.msra.gmra.mrb[68].mxu0 %vm380_vm2, %v2564_v20 }
0x1611   :  { %3608 = vmatprep.mubr.msk.bf16.mxu0 %vm4063_vm1, %v4062_v43 }
0x1614   :  { %3591 = vmatmul.mubr.msk.bf16.vlgmr.msra.gmra.mrb[64].mxu1 %vm380_vm2, %v2513_v2 }
0x1615   :  { %3602 = vmatprep.mubr.msk.bf16.mxu1 %vm4063_vm1, %v4062_v43 }
0x16db   :  { %v4793_v15 = vpop.f32.mrb[64].mxu0 }
0x16dc   :  { %v3586_v19 = vpop.f32.mrb[65].mxu0 }
0x16dd   :  { %v2508_v4 = vpop.f32.mrb[66].mxu0 }
0x16de   :  { %v3706_v5 = vpack.i.bf16 %v2508_v4, %v4793_v15  ;;  %v3587_v32 = vpop.f32.mrb[67].mxu0 }
0x16df   :  { %v2458_v8 = vpop.f32.mrb[60].mxu1 }
0x16e0   :  { %v3580_v9 = vpop.f32.mrb[61].mxu1 }
0x16e1   :  { %v2461_v12 = vpop.f32.mrb[62].mxu1 }
0x16e2   :  { %v3701_v13 = vpack.i.bf16 %v2461_v12, %v2458_v8  ;;  %v3581_v18 = vpop.f32.mrb[63].mxu1 }
0x16e3   :  { %v2607_v47 = vpop.f32.mrb[68].mxu0  ;;  %v3733_v18 = vld [vmem:[%s4934_s5 + $0x30] sm:$0xff]  }
0x16e4   :  { %v3598_v33 = vpop.f32.mrb[69].mxu0  ;;  %v2616_v52 = vmul.f32 0.35355338, %v2607_v47  ;;  %v3734_v47 = vld [vmem:[%s4934_s5 + $0x38] sm:$0xff]  }
0x16e5   :  { %v2610_v44 = vpop.f32.mrb[70].mxu0 }
0x16e6   :  { %v3599_v25 = vpop.f32.mrb[71].mxu0  ;;  %v2617_v31 = vmul.f32 0.35355338, %v2610_v44  ;;  %v2624_v17 = vsel %vm1446_vm4, %v2616_v52, -inf }
0x16e7   :  { %v2556_v14 = vpop.f32.mrb[64].mxu1 }
0x16e8   :  { %v2614_v21 = vmul.f32 0.35355338, %v2556_v14  ;;  %v3592_v46 = vpop.f32.mrb[65].mxu1  ;;  %v2627_v34 = vsel %vm1446_vm4, %v2617_v31, -inf }
0x16e9   :  { %v2559_v43 = vpop.f32.mrb[66].mxu1 }
0x16ea   :  { %v2615_v22 = vmul.f32 0.35355338, %v2559_v43  ;;  %v3593_v28 = vpop.f32.mrb[67].mxu1  ;;  %v2618_v29 = vsel %vm1446_vm4, %v2614_v21, -inf }
0x16eb   :  { %2619 = vmax.xlane.f32.xlu0 %v2618_v29 }
0x16ec   :  { %v2621_v24 = vsel %vm1446_vm4, %v2615_v22, -inf }
0x16ed   :  { %2622 = vmax.xlane.f32.xlu1 %v2621_v24 }
0x16ef   :  { %2625 = vmax.xlane.f32.xlu0 %v2624_v17 }
0x16f3   :  { %2628 = vmax.xlane.f32.xlu0 %v2627_v34 }
0x1778   :  { %v2620_v39 = vpop.xlane.xlu0 %2619 }
0x1779   :  { %v2630_v41 = vsub.f32 %v2614_v21, %v2620_v39 }
0x177a   :  { %v2623_v51 = vpop.xlane.xlu1 %2622 }
0x177b   :  { %v2634_v3 = vmul.f32 1.442695, %v2630_v41  ;;  %v2631_v54 = vsub.f32 %v2615_v22, %v2623_v51 }
0x177c   :  { %v2626_v0 = vpop.xlane.xlu0 %2625 }
0x177d   :  { %v2632_v53 = vsub.f32 %v2616_v52, %v2626_v0  ;;  %v2636_v7 = vmul.f32 1.442695, %v2631_v54 }
0x177f   :  { %v2638_v6 = vmul.f32 1.442695, %v2632_v53 }
0x1780   :  { %v2629_v10 = vpop.xlane.xlu0 %2628 }
0x1781   :  { %3873 = vpow2.f32 %v2638_v6  ;;  %v2633_v55 = vsub.f32 %v2617_v31, %v2629_v10 }
0x1782   :  { %3875 = vpow2.f32 %v2634_v3 }
0x1783   :  { %v2640_v56 = vmul.f32 1.442695, %v2633_v55 }
0x1785   :  { %3877 = vpow2.f32 %v2640_v56 }
0x1786   :  { %3879 = vpow2.f32 %v2636_v7 }
0x178b   :  { %v3874_v58 = vpop.eup %3873 }
0x178c   :  { %v2648_v59 = vsel %vm1446_vm4, %v3874_v58, 0.0  ;;  %v3876_v62 = vpop.eup %3875 }
0x178d   :  { %2649 = vadd.xlane.f32.xlu0 %v2648_v59  ;;  %v2642_v11 = vsel %vm1446_vm4, %v3876_v62, 0.0 }
0x178f   :  { %v3878_v1 = vpop.eup %3877 }
0x1790   :  { %v2651_v20 = vsel %vm1446_vm4, %v3878_v1, 0.0  ;;  %v3880_v2 = vpop.eup %3879 }
0x1791   :  { %2643 = vadd.xlane.f32.xlu0 %v2642_v11  ;;  %2652 = vadd.xlane.f32.xlu1 %v2651_v20  ;;  %v2645_v15 = vsel %vm1446_vm4, %v3880_v2, 0.0 }
0x1795   :  { %2646 = vadd.xlane.f32.xlu1 %v2645_v15 }
0x17a6   :  { %2711 = vrot.lane.b32.xlu1 %v4633_v57, %s4070_s1 }
0x17a7   :  { %2664 = vrot.lane.b32.xlu0 %v4635_v63, %s4070_s1 }
0x17aa   :  { %3692 = vrot.lane.b32.xlu1 %v3691_v48, %s4059_s18 }
0x17ab   :  { %3702 = vrot.lane.b32.xlu0 %v3701_v13, %s4071_s20 }
0x17ae   :  { %3697 = vrot.lane.b32.xlu1 %v3696_v26, %s4059_s18 }
0x17b2   :  { %3707 = vrot.lane.b32.xlu1 %v3706_v5, %s4071_s20 }
0x181a   :  { %v2650_v19 = vpop.xlane.xlu0 %2649 }
0x181b   :  { %3881 = vrcp.f32 %v2650_v19 }
0x181e   :  { %v2644_v57 = vpop.xlane.xlu0 %2643  ;;  %v2653_v4 = vpop.xlane.xlu1 %2652 }
0x181f   :  { %3883 = vrcp.f32 %v2653_v4 }
0x1820   :  { %3885 = vrcp.f32 %v2644_v57 }
0x1822   :  { %v2665_v63 = vpop.permute.xlu0 %2664  ;;  %v2647_v32 = vpop.xlane.xlu1 %2646 }
0x1823   :  { %3887 = vrcp.f32 %v2647_v32  ;;  %3601 = vmatpush3.bf16.msra.mxu1 %v2665_v63  ;;  %v2822_v63 = vsub.s32 3, %v4274_v61  ;;  %v4850_v32 = vld [vmem:[%s4938_s9] sm:$0xff] }
0x1824   :  { %3612 = vmatprep.subr.bf16.mxu1 %v3733_v18 }
0x1825   :  { %v3882_v36 = vpop.eup %3881 }
0x1826   :  { %v2712_v45 = vpop.permute.xlu1 %2711  ;;  %v2660_v9 = vmul.f32 %v3882_v36, %v3874_v58  ;;  %v3703_v53 = vpop.permute.xlu0 %3702 }
0x1827   :  { %3607 = vmatpush3.bf16.msra.mxu0 %v2712_v45  ;;  %v2823_v45 = vrot.slane %v4850_v32, %v2822_v63 }
0x1829   :  { %v3884_v48 = vpop.eup %3883 }
0x182a   :  { %v3886_v8 = vpop.eup %3885  ;;  %v2661_v37 = vmul.f32 %v3884_v48, %v3878_v1  ;;  %v3693_v29 = vpop.permute.xlu1 %3692  ;;  %v3704_v1 = vunpack.i.l.bf16 %v3703_v53 }
0x182b   :  { %v2658_v5 = vmul.f32 %v3886_v8, %v3876_v62  ;;  %v3695_v39 = vunpack.i.h.bf16 %v3693_v29  ;;  %v3694_v41 = vunpack.i.l.bf16 %v3693_v29  ;;  %v3705_v62 = vunpack.i.h.bf16 %v3703_v53 }
0x182c   :  { %v2663_v26 = vpack.c.bf16 %v2661_v37, %v2660_v9 }
0x182d   :  { %v3888_v38 = vpop.eup %3887  ;;  %v2807_v7 = vsel %vm380_vm2, %v4703_v16, %v3695_v39  ;;  %v2806_v56 = vsel %vm380_vm2, %v4701_v42, %v3694_v41 }
0x182e   :  { %v2659_v12 = vmul.f32 %v3888_v38, %v3880_v2  ;;  %3609 = vmatmul.mubr.msk.bf16.vlgmr.msra.gmra.mrb[72].mxu0 %vm1446_vm4, %v2663_v26  ;;  %v3698_v24 = vpop.permute.xlu1 %3697  ;;  %v2810_v19 = vsel %vm1446_vm4, %v2806_v56, %v3704_v1  ;;  %v2811_v16 = vsel %vm1446_vm4, %v2807_v7, %v3705_v62 }
0x182f   :  { %v3700_v17 = vunpack.i.h.bf16 %v3698_v24  ;;  %v3699_v34 = vunpack.i.l.bf16 %v3698_v24 }
0x1830   :  { %v2662_v13 = vpack.c.bf16 %v2659_v12, %v2658_v5 }
0x1831   :  { %v2809_v54 = vsel %vm380_vm2, %v4699_v23, %v3700_v17  ;;  %v2808_v6 = vsel %vm380_vm2, %v4697_v50, %v3699_v34 }
0x1832   :  { %3603 = vmatmul.mubr.msk.bf16.vlgmr.msra.gmra.mrb[68].mxu1 %vm1446_vm4, %v2662_v13  ;;  %v3708_v31 = vpop.permute.xlu1 %3707 }
0x1833   :  { %3613 = vmatpush3.bf16.msra.mxu1 %v3733_v18  ;;  %v3710_v51 = vunpack.i.h.bf16 %v3708_v31  ;;  %v3709_v0 = vunpack.i.l.bf16 %v3708_v31 }
0x1834   :  { %3614 = vmatprep.subr.bf16.mxu1 %v3734_v47 }
0x1835   :  { %v2812_v58 = vsel %vm1446_vm4, %v2808_v6, %v3709_v0  ;;  %v2813_v59 = vsel %vm1446_vm4, %v2809_v54, %v3710_v51  ;;  %v3736_v54 = vld [vmem:[#allocation10 + $0x8] sm:$0xff]  }
0x1837   :  { %3615 = vmatpush3.bf16.msra.mxu1 %v3734_v47 }
0x1901   :  { %v2751_v33 = vpop.f32.mrb[72].mxu0 }
0x1902   :  { %v3610_v44 = vpop.f32.mrb[73].mxu0 }
0x1903   :  { %v2754_v25 = vpop.f32.mrb[74].mxu0 }
0x1904   :  { %v3716_v14 = vpack.i.bf16 %v2754_v25, %v2751_v33  ;;  %v3611_v21 = vpop.f32.mrb[75].mxu0 }
0x1905   :  { %v2704_v46 = vpop.f32.mrb[68].mxu1 }
0x1906   :  { %v3604_v43 = vpop.f32.mrb[69].mxu1  ;;  %3717 = vrot.lane.b32.xlu1 %v3716_v14, %s4072_s27 }
0x1907   :  { %v2707_v52 = vpop.f32.mrb[70].mxu1 }
0x1908   :  { %v3711_v22 = vpack.i.bf16 %v2707_v52, %v2704_v46  ;;  %v3605_v28 = vpop.f32.mrb[71].mxu1 }
0x190a   :  { %3712 = vrot.lane.b32.xlu0 %v3711_v22, %s4072_s27 }
0x1978   :  { %v3718_v3 = vpop.permute.xlu1 %3717 }
0x1979   :  { %v3720_v10 = vunpack.i.h.bf16 %v3718_v3  ;;  %v3719_v55 = vunpack.i.l.bf16 %v3718_v3  ;;  %v3735_v3 = vld [vmem:[#allocation10] sm:$0xff]  }
0x197a   :  { %3620 = vmatprep.subr.bf16.mxu0 %v3735_v3 }
0x197b   :  { %v2816_v11 = vsel %vm1451_vm5, %v2812_v58, %v3719_v55  ;;  %v2817_v23 = vsel %vm1451_vm5, %v2813_v59, %v3720_v10  ;;  %3621 = vmatpush3.bf16.msra.mxu0 %v3735_v3 }
0x197c   :  { %v3713_v20 = vpop.permute.xlu0 %3712  ;;  %v2819_v50 = vpack.c.bf16 %v2817_v23, %v2816_v11  ;;  %3622 = vmatprep.subr.bf16.mxu0 %v3736_v54 }
0x197d   :  { %v3715_v2 = vunpack.i.h.bf16 %v3713_v20  ;;  %v3714_v15 = vunpack.i.l.bf16 %v3713_v20 }
0x197f   :  { %v2815_v42 = vsel %vm1451_vm5, %v2811_v16, %v3715_v2  ;;  %v2814_v57 = vsel %vm1451_vm5, %v2810_v19, %v3714_v15  ;;  %3623 = vmatpush3.bf16.msra.mxu0 %v3736_v54 }
0x1980   :  { %v2818_v4 = vpack.c.bf16 %v2815_v42, %v2814_v57 }
0x1982   :  { %3616 = vmatprep.mubr.msk.bf16.mxu1 %vm129_vm0, %v2818_v4 }
0x1983   :  { %3617 = vmatmul.mubr.msk.bf16.vlgmr.msra.gmra.mrb[72].mxu1 %vm129_vm0, %v2819_v50  ;;  %v3912_v50 = vld [vmem:[%s4938_s9 + $0x8] sm:$0x7] }
0x1984   :  { %v2950_v2 = vrot.slane %v3912_v50, %v4562_v40  ;;  %v2958_v42 = vrot.slane %v3912_v50, %v1702_v60  ;;  %v3737_v60 = vld [vmem:[%s4937_s8] sm:$0xff]  }
0x1985   :  { %3628 = vmatprep.subr.bf16.mxu1 %v3737_v60 }
0x1986   :  { %3629 = vmatpush3.bf16.msra.mxu1 %v3737_v60 }
0x1a56   :  { %v3618_v36 = vpop.f32.mrb[72].mxu1 }
0x1a57   :  { %v2876_v48 = vpop.f32.mrb[73].mxu1  ;;  %v2885_v8 = vadd.f32 %v3618_v36, %v2823_v45 }
0x1a58   :  { %v2877_v9 = vadd.f32 %v2876_v48, %v2823_v45  ;;  %v3619_v37 = vpop.f32.mrb[74].mxu1 }
0x1a59   :  { %v2879_v38 = vpop.f32.mrb[75].mxu1  ;;  %v4857_v12 = vadd.f32 %v2885_v8, %v4579_v27  ;;  %v2888_v13 = vadd.f32 %v3619_v37, %v2823_v45 }
0x1a5a   :  { %v4854_v26 = vadd.f32 %v2877_v9, %v4574_v49  ;;  %v2880_v5 = vadd.f32 %v2879_v38, %v2823_v45 }
0x1a5b   :  { %v4867_v44 = vadd.f32 %v2888_v13, %v4593_v35  ;;  %v2901_v49 = vsel %vm129_vm0, %v4857_v12, 0.0 }
0x1a5c   :  { %v4860_v18 = vadd.f32 %v2880_v5, %v4584_v30  ;;  %v2895_v47 = vsel %vm129_vm0, %v4854_v26, 0.0 }
0x1a5d   :  { %2896 = vadd.xlane.f32.xlu0 %v2895_v47  ;;  %v2904_v27 = vsel %vm129_vm0, %v4867_v44, 0.0 }
0x1a5e   :  { %v2898_v33 = vsel %vm129_vm0, %v4860_v18, 0.0 }
0x1a5f   :  { %2899 = vadd.xlane.f32.xlu1 %v2898_v33 }
0x1a61   :  { %2902 = vadd.xlane.f32.xlu0 %v2901_v49  ;;  %v3738_v49 = vld [vmem:[%s4937_s8 + $0x8] sm:$0xff]  }
0x1a62   :  { %3630 = vmatprep.subr.bf16.mxu1 %v3738_v49 }
0x1a63   :  { %3631 = vmatpush3.bf16.msra.mxu1 %v3738_v49 }
0x1a65   :  { %2905 = vadd.xlane.f32.xlu0 %v2904_v27  ;;  %v3739_v27 = vld [vmem:[%s4937_s8 + $0x10] sm:$0xff]  }
0x1a66   :  { %3632 = vmatprep.subr.bf16.mxu1 %v3739_v27 }
0x1a67   :  { %3633 = vmatpush3.bf16.msra.mxu1 %v3739_v27 }
0x1aea   :  { %v2897_v30 = vpop.xlane.xlu0 %2896 }
0x1aeb   :  { %v2907_v25 = vmul.f32 0.03125, %v2897_v30  ;;  %v3740_v30 = vld [vmem:[%s4937_s8 + $0x18] sm:$0xff]   ;;  %s4073_s8 = smov [#allocation11]  }
0x1aec   :  { %v2900_v14 = vpop.xlane.xlu1 %2899  ;;  %3634 = vmatprep.subr.bf16.mxu1 %v3740_v30 }
0x1aed   :  { %v2911_v21 = vsub.f32 %v4854_v26, %v2907_v25  ;;  %v2908_v46 = vmul.f32 0.03125, %v2900_v14  ;;  %3635 = vmatpush3.bf16.msra.mxu1 %v3740_v30  ;;  %v3272_v25 = vld [vmem:[%s4940_s11] ss:$0 sm:$0xff]  ;;  %s3189_s11 = sshll.u32 %s4073_s8, 4  ;;  %s3190_s11 = int_to_ptr.vmem [resolvable:$true] %s3189_s11 }
0x1aee   :  { %v2903_v43 = vpop.xlane.xlu0 %2902  ;;  %s4023_s0 = scalar_lea.vmem %s3190_s11, 512  ;;  %p4028_p13 = scmp.lt.s32.totalorder %s3190_s11, %s3190_s11 }
0x1aef   :  { %v2912_v52 = vsub.f32 %v4860_v18, %v2908_v46  ;;  %v2909_v22 = vmul.f32 0.03125, %v2903_v43  ;;  %v2915_v35 = vmul.f32 %v2911_v21, %v2911_v21  ;;  %p4024_p12 = scmp.ne.s32.totalorder %s3190_s11, %s4023_s0  ;;  %p4029_p0 = scmp.lt.s32.totalorder %s4023_s0, %s4023_s0 }
0x1af1   :  { %v2913_v28 = vsub.f32 %v4857_v12, %v2909_v22  ;;  %v2919_v29 = vsel %vm129_vm0, %v2915_v35, 0.0  ;;  %v2916_v24 = vmul.f32 %v2912_v52, %v2912_v52  ;;  %p4030_p1 = por %p4029_p0, %p4028_p13 }
0x1af2   :  { %2920 = vadd.xlane.f32.xlu0 %v2919_v29  ;;  %v2906_v31 = vpop.xlane.xlu0 %2905 }
0x1af3   :  { %v2910_v17 = vmul.f32 0.03125, %v2906_v31  ;;  %v2922_v34 = vsel %vm129_vm0, %v2916_v24, 0.0  ;;  %v2917_v39 = vmul.f32 %v2913_v28, %v2913_v28  ;;  %p4031_p2 = pnand %p4030_p1, %p4024_p12 }
0x1af4   :  { %2923 = vadd.xlane.f32.xlu1 %v2922_v34 }
0x1af5   :  { %v2914_v41 = vsub.f32 %v4867_v44, %v2910_v17  ;;  %v2925_v51 = vsel %vm129_vm0, %v2917_v39, 0.0 }
0x1af6   :  { %2926 = vadd.xlane.f32.xlu0 %v2925_v51 }
0x1af7   :  { %v2918_v0 = vmul.f32 %v2914_v41, %v2914_v41 }
0x1af9   :  { %v2928_v53 = vsel %vm129_vm0, %v2918_v0, 0.0 }
0x1afa   :  { %2929 = vadd.xlane.f32.xlu1 %v2928_v53 }
0x1b7f   :  { %v2921_v6 = vpop.xlane.xlu0 %2920 }
0x1b80   :  { %v2931_v10 = vmul.f32 0.03125, %v2921_v6 }
0x1b81   :  { %v2924_v55 = vpop.xlane.xlu1 %2923 }
0x1b82   :  { %v2935_v7 = vadd.f32 1e-05, %v2931_v10  ;;  %v2932_v56 = vmul.f32 0.03125, %v2924_v55 }
0x1b83   :  { %v2927_v58 = vpop.xlane.xlu0 %2926 }
0x1b84   :  { %3889 = vrsqrt.f32 %v2935_v7  ;;  %v2936_v59 = vadd.f32 1e-05, %v2932_v56  ;;  %v2933_v62 = vmul.f32 0.03125, %v2927_v58 }
0x1b86   :  { %3891 = vrsqrt.f32 %v2936_v59  ;;  %v2937_v1 = vadd.f32 1e-05, %v2933_v62 }
0x1b87   :  { %v2930_v11 = vpop.xlane.xlu1 %2929 }
0x1b88   :  { %3893 = vrsqrt.f32 %v2937_v1  ;;  %v2934_v23 = vmul.f32 0.03125, %v2930_v11 }
0x1b8a   :  { %v2938_v20 = vadd.f32 1e-05, %v2934_v23 }
0x1b8c   :  { %3895 = vrsqrt.f32 %v2938_v20 }
0x1b8e   :  { %v3890_v15 = vpop.eup %3889 }
0x1b8f   :  { %v2943_v19 = vmul.f32 %v3890_v15, %v2911_v21 }
0x1b90   :  { %v3892_v16 = vpop.eup %3891 }
0x1b91   :  { %v2944_v57 = vmul.f32 %v3892_v16, %v2912_v52  ;;  %v2951_v4 = vmul.f32 %v2950_v2, %v2943_v19 }
0x1b92   :  { %v3894_v63 = vpop.eup %3893 }
0x1b93   :  { %v2945_v45 = vmul.f32 %v3894_v63, %v2913_v28  ;;  %v2952_v36 = vmul.f32 %v2950_v2, %v2944_v57  ;;  %v2959_v48 = vadd.f32 %v2958_v42, %v2951_v4 }
0x1b95   :  { %v2960_v8 = vadd.f32 %v2958_v42, %v2952_v36  ;;  %v2953_v37 = vmul.f32 %v2950_v2, %v2945_v45 }
0x1b96   :  { %v3896_v9 = vpop.eup %3895 }
0x1b97   :  { %v2946_v38 = vmul.f32 %v3896_v9, %v2914_v41  ;;  %v2967_v5 = vpack.c.bf16 %v2960_v8, %v2959_v48  ;;  %v2961_v40 = vadd.f32 %v2958_v42, %v2953_v37  ;;  %v3174_v37 = vsub.s32 4, %v4274_v61 }
0x1b99   :  { %v2954_v13 = vmul.f32 %v2950_v2, %v2946_v38  ;;  %3624 = vmatprep.mubr.msk.bf16.mxu0 %vm129_vm0, %v2967_v5  ;;  %v3175_v38 = vrot.slane %v4850_v32, %v3174_v37 }
0x1b9b   :  { %v2962_v47 = vadd.f32 %v2958_v42, %v2954_v13 }
0x1b9d   :  { %v2968_v33 = vpack.c.bf16 %v2962_v47, %v2961_v40 }
0x1b9f   :  { %3625 = vmatmul.mubr.msk.bf16.vlgmr.msra.gmra.mrb[76].mxu0 %vm129_vm0, %v2968_v33 }
0x1c72   :  { %v3626_v14 = vpop.f32.mrb[76].mxu0 }
0x1c73   :  { %v3036_v21 = vadd.f32 %v3626_v14, %v3272_v25  ;;  %v3027_v46 = vpop.f32.mrb[77].mxu0 }
0x1c74   :  { %v3028_v43 = vadd.f32 %v3272_v25, %v3027_v46  ;;  %v3627_v52 = vpop.f32.mrb[78].mxu0 }
0x1c75   :  { %v3048_v22 = vmul.f32 %v3036_v21, %v3036_v21  ;;  %v3039_v35 = vadd.f32 %v3627_v52, %v3272_v25  ;;  %v3030_v28 = vpop.f32.mrb[79].mxu0  ;;  %v3044_v15 = vmul.f32 0.5, %v3036_v21 }
0x1c76   :  { %v3046_v29 = vmul.f32 %v3028_v43, %v3028_v43  ;;  %v3031_v24 = vadd.f32 %v3272_v25, %v3030_v28  ;;  %v3042_v42 = vmul.f32 0.5, %v3028_v43 }
0x1c77   :  { %v3052_v31 = vmul.f32 %v3048_v22, %v3036_v21  ;;  %v3049_v17 = vmul.f32 %v3039_v35, %v3039_v35  ;;  %v3045_v19 = vmul.f32 0.5, %v3039_v35 }
0x1c78   :  { %v3050_v34 = vmul.f32 %v3046_v29, %v3028_v43  ;;  %v3047_v39 = vmul.f32 %v3031_v24, %v3031_v24  ;;  %v3043_v57 = vmul.f32 0.5, %v3031_v24 }
0x1c79   :  { %v3056_v41 = vmul.f32 0.044715, %v3052_v31  ;;  %v3053_v51 = vmul.f32 %v3049_v17, %v3039_v35 }
0x1c7a   :  { %v3054_v0 = vmul.f32 0.044715, %v3050_v34  ;;  %v3051_v53 = vmul.f32 %v3047_v39, %v3031_v24 }
0x1c7b   :  { %v3060_v3 = vadd.f32 %v3056_v41, %v3036_v21  ;;  %v3057_v54 = vmul.f32 0.044715, %v3053_v51 }
0x1c7c   :  { %v3058_v6 = vadd.f32 %v3054_v0, %v3028_v43  ;;  %v3055_v10 = vmul.f32 0.044715, %v3051_v53 }
0x1c7d   :  { %v3064_v55 = vmul.f32 0.7978846, %v3060_v3  ;;  %v3061_v7 = vadd.f32 %v3057_v54, %v3039_v35 }
0x1c7e   :  { %v3062_v56 = vmul.f32 0.7978846, %v3058_v6  ;;  %v3059_v58 = vadd.f32 %v3055_v10, %v3031_v24 }
0x1c7f   :  { %3897 = vtanh.f32 %v3064_v55  ;;  %v3065_v59 = vmul.f32 0.7978846, %v3061_v7 }
0x1c80   :  { %3899 = vtanh.f32 %v3062_v56  ;;  %v3063_v62 = vmul.f32 0.7978846, %v3059_v58 }
0x1c81   :  { %3901 = vtanh.f32 %v3065_v59 }
0x1c82   :  { %3903 = vtanh.f32 %v3063_v62 }
0x1c89   :  { %v3898_v1 = vpop.eup %3897 }
0x1c8a   :  { %v3900_v11 = vpop.eup %3899  ;;  %v3072_v23 = vadd.f32 1.0, %v3898_v1 }
0x1c8b   :  { %v3902_v20 = vpop.eup %3901  ;;  %v3070_v50 = vadd.f32 1.0, %v3900_v11 }
0x1c8c   :  { %v3904_v2 = vpop.eup %3903  ;;  %v3073_v16 = vadd.f32 1.0, %v3902_v20  ;;  %v3076_v63 = vmul.f32 %v3072_v23, %v3044_v15 }
0x1c8d   :  { %v3071_v4 = vadd.f32 1.0, %v3904_v2  ;;  %v3074_v36 = vmul.f32 %v3070_v50, %v3042_v42 }
0x1c8e   :  { %v3077_v45 = vmul.f32 %v3073_v16, %v3045_v19 }
0x1c8f   :  { %v3075_v48 = vmul.f32 %v3071_v4, %v3043_v57 }
0x1c90   :  { %v3087_v8 = vpack.c.bf16 %v3077_v45, %v3076_v63 }
0x1c91   :  { %v3086_v9 = vpack.c.bf16 %v3075_v48, %v3074_v36 }
0x1c93   :  { %3636 = vmatprep.mubr.msk.bf16.mxu1 %vm3112_vm6, %v3086_v9 }
0x1c94   :  { %3637 = vmatmul.mubr.msk.bf16.vlgmr.msra.gmra.mrb[76].mxu1 %vm3112_vm6, %v3087_v8 }
0x1d67   :  { %v3638_v5 = vpop.f32.mrb[76].mxu1 }
0x1d68   :  { %v3170_v13 = vadd.f32 %v3638_v5, %v4857_v12  ;;  %v3153_v40 = vpop.f32.mrb[77].mxu1 }
0x1d69   :  { %v3168_v47 = vadd.f32 %v3153_v40, %v4854_v26  ;;  %v3639_v33 = vpop.f32.mrb[78].mxu1 }
0x1d6a   :  { %v3178_v60 = vadd.f32 %v3175_v38, %v3170_v13  ;;  %v3171_v49 = vadd.f32 %v3639_v33, %v4867_v44  ;;  %v3156_v27 = vpop.f32.mrb[79].mxu1 }
0x1d6b   :  { %v3176_v30 = vadd.f32 %v3175_v38, %v3168_v47  ;;  %v3169_v25 = vadd.f32 %v3156_v27, %v4860_v18 }
0x1d6c   :  { %3182 = vst.msk [vmem:[#allocation11 + $0x10] sm:$0xff] %vm129_vm0, %v3178_v60  ;;  %v3179_v61 = vadd.f32 %v3175_v38, %v3171_v49 }
0x1d6d   :  { %3180 = vst.msk [vmem:[#allocation11] sm:$0xff] %vm129_vm0, %v3176_v30  ;;  %v3177_v32 = vadd.f32 %v3175_v38, %v3169_v25 }
0x1d6e   :  { %3183 = vst.msk [vmem:[#allocation11 + $0x18] sm:$0xff] %vm129_vm0, %v3179_v61 }
0x1d6f   :  { %3181 = vst.msk [vmem:[#allocation11 + $0x8] sm:$0xff] %vm129_vm0, %v3177_v32 }
0x1d70   :  { %4034 = shalt.err (!%p4031_p2)
}
0x1d71   :  { %s4035_s26 = scalar_lea.hbm %s4941_s12, 512 }
0x1d72   :  { %p4036_p3 = scmp.ne.s32.totalorder %s4941_s12, %s4035_s26  ;;  %p4039_p4 = scmp.lt.u32.totalorder %s4035_s26, %s4941_s12 }
0x1d74   :  { %p4041_p5 = pnand %p4039_p4, %p4036_p3 }
0x1d76   :  { %4044 = shalt.err (!%p4041_p5)
}
0x1d77   :  { %3195 = dma.vmem_to_hbm [thread:$0]  %s3190_s11, 512, %s4941_s12, [#allocation4], %s4058_s6, %s4058_s6, %s4059_s18  }
0x1d78   :  { %4051 = dma.done.wait [#allocation4], 512  }
0x1d79   :  { %4052 = vsyncadd [#allocation4], 4294966784 }
0x1d7a   :  { %3199 = vsyncpa [#allocation3], 1 }
0x1d7b   :  { %3200 = vsyncpa [#allocation6], 1 }
0x1d7c   :  { %3201 = vsyncpa [#allocation9], 1 }
0x1d7d   :  { %3202 = vsyncpa [#allocation4], 1 }

// kernel: tpu_custom_call.1
= control target key start
LH: loop header
LB: loop body
LE: loop exit
PB: predicated region body
PF: predicated region fallthrough
CT: control target
= control target key end

     0   :  { %17 = vsyncpa [#allocation3], 0  ;;  %s4929_s0 = inlined_call_operand.vmem [shape: f32[2,16,32], index: 0, kind: input, shape index: {}]   ;;  %s4930_s1 = inlined_call_operand.hbm [shape: f32[2,8,32], index: 1, kind: input, shape index: {}]   ;;  %s4931_s2 = inlined_call_operand.hbm [shape: bf16[2,16,32], index: 2, kind: input, shape index: {}]   ;;  %s4932_s3 = inlined_call_operand.vmem [shape: f32[2,16,8], index: 3, kind: input, shape index: {}]   ;;  %s4933_s4 = inlined_call_operand.hbm [shape: f32[2,16,32], index: 4, kind: input, shape index: {}]   ;;  %s4934_s5 = inlined_call_operand.vmem [shape: bf16[4,32,32], index: 5, kind: input, shape index: {}]   ;;  %s4935_s6 = inlined_call_operand.hbm [shape: bf16[2,32,64], index: 6, kind: input, shape index: {}]   ;;  %s4936_s7 = inlined_call_operand.hbm [shape: bf16[32,64], index: 7, kind: input, shape index: {}]   ;;  %s4937_s8 = inlined_call_operand.vmem [shape: bf16[64,32], index: 8, kind: input, shape index: {}]   ;;  %s4938_s9 = inlined_call_operand.vmem [shape: f32[11,32], index: 9, kind: input, shape index: {}]   ;;  %s4939_s10 = inlined_call_operand.vmem [shape: f32[2,64], index: 10, kind: input, shape index: {}]   ;;  %s4940_s11 = inlined_call_operand.vmem [shape: f32[1,64], index: 11, kind: input, shape index: {}]   ;;  %s4941_s12 = inlined_call_operand.hbm [shape: f32[2,16,32], index: 12, kind: output, shape index: {}]  }
   0x1   :  { %18 = vsyncpa [#allocation6], 0 }
   0x2   :  { %19 = vsyncpa [#allocation9], 0 }
   0x3   :  { %20 = vsyncpa [#allocation4], 0  ;;  %s4053_s21 = smov [#allocation5]   ;;  %s3913_s25 = scalar_lea.hbm %s4931_s2, 256 }
   0x4   :  { %s40_s22 = sshll.u32 %s4053_s21, 4  ;;  %p3914_p0 = scmp.ne.s32.totalorder %s4931_s2, %s3913_s25  ;;  %s41_s22 = int_to_ptr.vmem [resolvable:$true] %s40_s22 }
   0x5   :  { %p3917_p1 = scmp.lt.u32.totalorder %s3913_s25, %s4931_s2 }
   0x7   :  { %p3919_p2 = pnand %p3917_p1, %p3914_p0 }
   0x9   :  { %3922 = shalt.err (!%p3919_p2)
}
   0xa   :  { %s3923_s30 = scalar_lea.vmem %s41_s22, 256  ;;  %p3928_p4 = scmp.lt.s32.totalorder %s41_s22, %s41_s22 }
   0xb   :  { %p3924_p3 = scmp.ne.s32.totalorder %s41_s22, %s3923_s30  ;;  %p3929_p5 = scmp.lt.s32.totalorder %s3923_s30, %s3923_s30 }
   0xd   :  { %p3930_p6 = por %p3929_p5, %p3928_p4 }
   0xf   :  { %p3931_p7 = pnand %p3930_p6, %p3924_p3 }
  0x11   :  { %3934 = shalt.err (!%p3931_p7)
}
  0x12   :  { %s4054_s13 = smov 64   ;;  %s4055_s14 = smov 4  }
  0x13   :  { %46 = dma.hbm_to_vmem [thread:$0]  %s4931_s2, 256, %s41_s22, [#allocation6], %s4054_s13, %s4054_s13, %s4055_s14  }
  0x14   :  { %s4056_s17 = smov [#allocation8]   ;;  %s4057_s19 = smov [#allocation2]  }
  0x15   :  { %s68_s18 = sshll.u32 %s4056_s17, 4  ;;  %s28_s20 = sshll.u32 %s4057_s19, 4  ;;  %s69_s18 = int_to_ptr.vmem [resolvable:$true] %s68_s18  ;;  %s29_s20 = int_to_ptr.vmem [resolvable:$true] %s28_s20 }
  0x16   :  { %s3935_s24 = scalar_lea.hbm %s4935_s6, 512 }
  0x17   :  { %p3936_p8 = scmp.ne.s32.totalorder %s4935_s6, %s3935_s24  ;;  %p3939_p9 = scmp.lt.u32.totalorder %s3935_s24, %s4935_s6 }
  0x19   :  { %p3941_p10 = pnand %p3939_p9, %p3936_p8 }
  0x1b   :  { %3944 = shalt.err (!%p3941_p10)
}
  0x1c   :  { %s3945_s2 = scalar_lea.vmem %s69_s18, 512  ;;  %p3950_p12 = scmp.lt.s32.totalorder %s69_s18, %s69_s18 }
  0x1d   :  { %p3946_p11 = scmp.ne.s32.totalorder %s69_s18, %s3945_s2  ;;  %p3951_p13 = scmp.lt.s32.totalorder %s3945_s2, %s3945_s2 }
  0x1f   :  { %p3952_p0 = por %p3951_p13, %p3950_p12 }
  0x21   :  { %p3953_p1 = pnand %p3952_p0, %p3946_p11 }
  0x23   :  { %3956 = shalt.err (!%p3953_p1)
}
  0x24   :  { %74 = dma.hbm_to_vmem [thread:$0]  %s4935_s6, 512, %s69_s18, [#allocation9], %s4054_s13, %s4054_s13, %s4055_s14  }
  0x25   :  { %s3957_s16 = scalar_lea.hbm %s4930_s1, 256 }
  0x26   :  { %p3958_p2 = scmp.ne.s32.totalorder %s4930_s1, %s3957_s16  ;;  %p3961_p3 = scmp.lt.u32.totalorder %s3957_s16, %s4930_s1 }
  0x28   :  { %p3963_p4 = pnand %p3961_p3, %p3958_p2 }
  0x2a   :  { %3966 = shalt.err (!%p3963_p4)
}
  0x2b   :  { %s3967_s24 = scalar_lea.vmem %s29_s20, 256  ;;  %p3972_p6 = scmp.lt.s32.totalorder %s29_s20, %s29_s20 }
  0x2c   :  { %p3968_p5 = scmp.ne.s32.totalorder %s29_s20, %s3967_s24  ;;  %p3973_p7 = scmp.lt.s32.totalorder %s3967_s24, %s3967_s24 }
  0x2e   :  { %p3974_p8 = por %p3973_p7, %p3972_p6 }
  0x30   :  { %p3975_p9 = pnand %p3974_p8, %p3968_p5 }
  0x32   :  { %3978 = shalt.err (!%p3975_p9)
}
  0x33   :  { %s4058_s6 = smov 128   ;;  %s4059_s18 = smov 8  }
  0x34   :  { %34 = dma.hbm_to_vmem [thread:$0]  %s4930_s1, 256, %s29_s20, [#allocation3], %s4058_s6, %s4058_s6, %s4059_s18  }
  0x35   :  { %s4060_s27 = smov [#allocation7]   ;;  %s4061_s2 = smov [#allocation10]  }
  0x36   :  { %s54_s28 = sshll.u32 %s4060_s27, 4  ;;  %s80_s22 = sshll.u32 %s4061_s2, 4  ;;  %s55_s28 = int_to_ptr.vmem [resolvable:$true] %s54_s28  ;;  %s81_s22 = int_to_ptr.vmem [resolvable:$true] %s80_s22 }
  0x37   :  { %s3979_s15 = scalar_lea.hbm %s4933_s4, 512 }
  0x38   :  { %p3980_p10 = scmp.ne.s32.totalorder %s4933_s4, %s3979_s15  ;;  %p3983_p11 = scmp.lt.u32.totalorder %s3979_s15, %s4933_s4 }
  0x3a   :  { %p3985_p12 = pnand %p3983_p11, %p3980_p10 }
  0x3c   :  { %3988 = shalt.err (!%p3985_p12)
}
  0x3d   :  { %s3989_s1 = scalar_lea.vmem %s55_s28, 512  ;;  %p3994_p0 = scmp.lt.s32.totalorder %s55_s28, %s55_s28 }
  0x3e   :  { %p3990_p13 = scmp.ne.s32.totalorder %s55_s28, %s3989_s1  ;;  %p3995_p1 = scmp.lt.s32.totalorder %s3989_s1, %s3989_s1 }
  0x40   :  { %p3996_p2 = por %p3995_p1, %p3994_p0 }
  0x42   :  { %p3997_p3 = pnand %p3996_p2, %p3990_p13 }
  0x44   :  { %4000 = shalt.err (!%p3997_p3)
}
  0x45   :  { %60 = dma.hbm_to_vmem [thread:$0]  %s4933_s4, 512, %s55_s28, [#allocation6], %s4058_s6, %s4058_s6, %s4059_s18  }
  0x46   :  { %s4001_s26 = scalar_lea.hbm %s4936_s7, 256 }
  0x47   :  { %p4002_p4 = scmp.ne.s32.totalorder %s4936_s7, %s4001_s26  ;;  %p4005_p5 = scmp.lt.u32.totalorder %s4001_s26, %s4936_s7 }
  0x49   :  { %p4007_p6 = pnand %p4005_p5, %p4002_p4 }
  0x4b   :  { %4010 = shalt.err (!%p4007_p6)
}
  0x4c   :  { %s4011_s15 = scalar_lea.vmem %s81_s22, 256  ;;  %p4016_p8 = scmp.lt.s32.totalorder %s81_s22, %s81_s22 }
  0x4d   :  { %p4012_p7 = scmp.ne.s32.totalorder %s81_s22, %s4011_s15  ;;  %p4017_p9 = scmp.lt.s32.totalorder %s4011_s15, %s4011_s15 }
  0x4f   :  { %p4018_p10 = por %p4017_p9, %p4016_p8 }
  0x51   :  { %p4019_p11 = pnand %p4018_p10, %p4012_p7 }
  0x53   :  { %4022 = shalt.err (!%p4019_p11)
}
  0x54   :  { %86 = dma.hbm_to_vmem [thread:$0]  %s4936_s7, 256, %s81_s22, [#allocation9], %s4054_s13, %s4054_s13, %s4055_s14  }
  0x55   :  { %4045 = dma.done.wait [#allocation3], 256  }
  0x56   :  { %4046 = vsyncadd [#allocation3], 4294967040 }
  0x57   :  { %4047 = dma.done.wait [#allocation6], 768  }
  0x58   :  { %4048 = vsyncadd [#allocation6], 4294966528 }
  0x59   :  { %4049 = dma.done.wait [#allocation9], 768  }
  0x5a   :  { %4050 = vsyncadd [#allocation9], 4294966528  ;;  %vm129_vm0 = vcmask 261120   ;;  %v115_v0 = vld [vmem:[#allocation2] sm:$0xff]  ;;  %v116_v1 = vld [vmem:[#allocation2 + $0x8] sm:$0xff]  ;;  %v4062_v43 = vmov 0.0   ;;  %v217_v54 = vlaneseq }
  0x5b   :  { %v111_v2 = vld [vmem:[%s4929_s0] sm:$0xff]  ;;  %v191_v3 = vsel %vm129_vm0, %v115_v0, 0.0  ;;  %v113_v5 = vld [vmem:[%s4929_s0 + $0x10] sm:$0xff]  ;;  %v112_v6 = vld [vmem:[%s4929_s0 + $0x8] sm:$0xff]  ;;  %v194_v8 = vsel %vm129_vm0, %v116_v1, 0.0  ;;  %3380 = vmatprep.subr.bf16.mxu0 %v4062_v43  ;;  %vm4063_vm1 = vmmov 0  }
  0x5c   :  { %v130_v4 = vsel %vm129_vm0, %v111_v2, 0.0  ;;  %v114_v7 = vld [vmem:[%s4929_s0 + $0x18] sm:$0xff]  ;;  %192 = vadd.xlane.f32.xlu0 %v191_v3  ;;  %v136_v9 = vsel %vm129_vm0, %v113_v5, 0.0  ;;  %v133_v10 = vsel %vm129_vm0, %v112_v6, 0.0  ;;  %v3721_v42 = vld [vmem:[#allocation8] sm:$0xff]   ;;  %3384 = vmatprep.mubr.msk.bf16.mxu0 %vm4063_vm1, %v4062_v43  ;;  %v3722_v44 = vld [vmem:[#allocation8 + $0x8] sm:$0xff]  }
  0x5d   :  { %131 = vadd.xlane.f32.xlu1 %v130_v4  ;;  %v139_v11 = vsel %vm129_vm0, %v114_v7, 0.0  ;;  %3381 = vmatpush3.bf16.msra.mxu0 %v3721_v42  ;;  %v3723_v45 = vld [vmem:[%s4934_s5] sm:$0xff]   ;;  %v3724_v46 = vld [vmem:[%s4934_s5 + $0x8] sm:$0xff]   ;;  %v4274_v61 = vshrl.u32 %v217_v54, 7  ;;  %vm380_vm2 = vcmask 64512   ;;  %s4065_s21 = smov 120  }
  0x5e   :  { %3382 = vmatprep.subr.bf16.mxu0 %v4062_v43  ;;  %3388 = vmatprep.subr.bf16.mxu1 %v3723_v45  ;;  %v125_v3 = vld [vmem:[%s4938_s9] sm:$0xff]  ;;  %vm535_vm3 = vcmask 1043456   ;;  %s4066_s7 = smov 88   ;;  %s4067_s13 = smov 112   ;;  %vm1446_vm4 = vcmask 130048   ;;  %vm1451_vm5 = vcmask 195584  }
  0x5f   :  { %3389 = vmatpush3.bf16.msra.mxu1 %v3723_v45  ;;  %s4068_s14 = smov 80   ;;  %s4069_s22 = smov 104   ;;  %vm3112_vm6 = vcmask 523264  }
  0x60   :  { %195 = vadd.xlane.f32.xlu0 %v194_v8  ;;  %3390 = vmatprep.subr.bf16.mxu1 %v3724_v46  ;;  %v225_v8 = vsub.s32 6, %v4274_v61  ;;  %s4070_s1 = smov 72   ;;  %s4071_s20 = smov 16  }
  0x61   :  { %134 = vadd.xlane.f32.xlu1 %v133_v10  ;;  %3383 = vmatpush3.bf16.msra.mxu0 %v3722_v44  ;;  %s4072_s27 = smov 24  }
  0x62   :  { %3396 = vmatprep.subr.bf16.mxu0 %v4062_v43 }
  0x63   :  { %3391 = vmatpush3.bf16.msra.mxu1 %v3724_v46 }
  0x64   :  { %137 = vadd.xlane.f32.xlu0 %v136_v9  ;;  %3402 = vmatprep.subr.bf16.mxu1 %v4062_v43 }
  0x65   :  { %140 = vadd.xlane.f32.xlu1 %v139_v11 }
  0xe9   :  { %v193_v12 = vpop.xlane.xlu0 %192 }
  0xea   :  { %v132_v13 = vpop.xlane.xlu1 %131  ;;  %v197_v14 = vmul.f32 0.03125, %v193_v12 }
  0xeb   :  { %v143_v15 = vmul.f32 0.03125, %v132_v13  ;;  %v226_v13 = vrot.slane %v125_v3, %v225_v8 }
  0xec   :  { %v4232_v16 = vsub.f32 %v115_v0, %v197_v14 }
  0xed   :  { %v4234_v17 = vsub.f32 %v111_v2, %v143_v15  ;;  %v196_v18 = vpop.xlane.xlu0 %195  ;;  %v219_v2 = vsub.s32 5, %v4274_v61  ;;  %v121_v15 = vld [vmem:[#allocation7] sm:$0xff] }
  0xee   :  { %v135_v19 = vpop.xlane.xlu1 %134  ;;  %v198_v20 = vmul.f32 0.03125, %v196_v18  ;;  %v201_v21 = vmul.f32 %v4232_v16, %v4232_v16 }
  0xef   :  { %v144_v22 = vmul.f32 0.03125, %v135_v19  ;;  %v151_v23 = vmul.f32 %v4234_v17, %v4234_v17 }
  0xf0   :  { %v4240_v24 = vsub.f32 %v116_v1, %v198_v20  ;;  %v203_v25 = vsel %vm129_vm0, %v201_v21, 0.0  ;;  %v122_v21 = vld [vmem:[#allocation7 + $0x8] sm:$0xff] }
  0xf1   :  { %v4243_v26 = vsub.f32 %v112_v6, %v144_v22  ;;  %204 = vadd.xlane.f32.xlu0 %v203_v25  ;;  %v138_v27 = vpop.xlane.xlu0 %137  ;;  %v155_v28 = vsel %vm129_vm0, %v151_v23, 0.0 }
  0xf2   :  { %v141_v29 = vpop.xlane.xlu1 %140  ;;  %v145_v30 = vmul.f32 0.03125, %v138_v27  ;;  %v202_v31 = vmul.f32 %v4240_v24, %v4240_v24 }
  0xf3   :  { %v146_v32 = vmul.f32 0.03125, %v141_v29  ;;  %v152_v33 = vmul.f32 %v4243_v26, %v4243_v26  ;;  %v124_v29 = vld [vmem:[#allocation7 + $0x18] sm:$0xff] }
  0xf4   :  { %v4250_v34 = vsub.f32 %v113_v5, %v145_v30  ;;  %v206_v35 = vsel %vm129_vm0, %v202_v31, 0.0 }
  0xf5   :  { %v4253_v36 = vsub.f32 %v114_v7, %v146_v32  ;;  %207 = vadd.xlane.f32.xlu1 %v206_v35  ;;  %156 = vadd.xlane.f32.xlu0 %v155_v28  ;;  %v158_v38 = vsel %vm129_vm0, %v152_v33, 0.0  ;;  %v220_v7 = vrot.slane %v125_v3, %v219_v2  ;;  %v123_v28 = vld [vmem:[#allocation7 + $0x10] sm:$0xff] }
  0xf6   :  { %v153_v37 = vmul.f32 %v4250_v34, %v4250_v34 }
  0xf7   :  { %v154_v39 = vmul.f32 %v4253_v36, %v4253_v36 }
  0xf8   :  { %v161_v40 = vsel %vm129_vm0, %v153_v37, 0.0 }
  0xf9   :  { %162 = vadd.xlane.f32.xlu0 %v161_v40  ;;  %159 = vadd.xlane.f32.xlu1 %v158_v38  ;;  %v164_v41 = vsel %vm129_vm0, %v154_v39, 0.0  ;;  %v127_v40 = vld [vmem:[%s4939_s10] sm:$0x3] }
  0xfd   :  { %165 = vadd.xlane.f32.xlu1 %v164_v41 }
 0x17e   :  { %v205_v47 = vpop.xlane.xlu0 %204 }
 0x17f   :  { %v209_v48 = vmul.f32 0.03125, %v205_v47 }
 0x181   :  { %v211_v49 = vadd.f32 1e-05, %v209_v48 }
 0x182   :  { %v157_v50 = vpop.xlane.xlu0 %156  ;;  %v208_v51 = vpop.xlane.xlu1 %207 }
 0x183   :  { %3741 = vrsqrt.f32 %v211_v49  ;;  %v167_v52 = vmul.f32 0.03125, %v157_v50  ;;  %v210_v53 = vmul.f32 0.03125, %v208_v51 }
 0x185   :  { %v171_v55 = vadd.f32 1e-05, %v167_v52  ;;  %v212_v56 = vadd.f32 1e-05, %v210_v53 }
 0x186   :  { %v163_v57 = vpop.xlane.xlu0 %162  ;;  %v160_v58 = vpop.xlane.xlu1 %159 }
 0x187   :  { %3743 = vrsqrt.f32 %v171_v55  ;;  %v169_v59 = vmul.f32 0.03125, %v163_v57  ;;  %v168_v60 = vmul.f32 0.03125, %v160_v58 }
 0x188   :  { %3745 = vrsqrt.f32 %v212_v56 }
 0x189   :  { %v173_v62 = vadd.f32 1e-05, %v169_v59  ;;  %v172_v63 = vadd.f32 1e-05, %v168_v60 }
 0x18a   :  { %v166_v0 = vpop.xlane.xlu1 %165 }
 0x18b   :  { %3747 = vrsqrt.f32 %v173_v62  ;;  %v170_v1 = vmul.f32 0.03125, %v166_v0 }
 0x18c   :  { %3749 = vrsqrt.f32 %v172_v63 }
 0x18d   :  { %v3742_v4 = vpop.eup %3741  ;;  %v174_v5 = vadd.f32 1e-05, %v170_v1 }
 0x18e   :  { %v215_v6 = vmul.f32 %v3742_v4, %v4232_v16 }
 0x18f   :  { %3751 = vrsqrt.f32 %v174_v5 }
 0x190   :  { %v221_v12 = vmul.f32 %v220_v7, %v215_v6 }
 0x191   :  { %v3744_v9 = vpop.eup %3743 }
 0x192   :  { %v3746_v10 = vpop.eup %3745  ;;  %v179_v14 = vmul.f32 %v3744_v9, %v4234_v17  ;;  %v227_v23 = vadd.f32 %v226_v13, %v221_v12 }
 0x193   :  { %v216_v11 = vmul.f32 %v3746_v10, %v4240_v24  ;;  %v4332_v10 = vld [vmem:[%s4932_s3 + $0x8] sm:$0xff] }
 0x194   :  { %v183_v27 = vmul.f32 %v179_v14, %v121_v15 }
 0x195   :  { %v3748_v18 = vpop.eup %3747  ;;  %v222_v19 = vmul.f32 %v220_v7, %v216_v11  ;;  %v4337_v11 = vld [vmem:[%s4932_s3 + $0x10] sm:$0xff] }
 0x196   :  { %v3750_v20 = vpop.eup %3749  ;;  %v181_v22 = vmul.f32 %v3748_v18, %v4250_v34  ;;  %v187_v33 = vadd.f32 %v183_v27, %v123_v28 }
 0x197   :  { %v228_v16 = vadd.f32 %v226_v13, %v222_v19  ;;  %v180_v25 = vmul.f32 %v3750_v20, %v4243_v26  ;;  %v4343_v19 = vld [vmem:[%s4932_s3 + $0x18] sm:$0xff] }
 0x198   :  { %v185_v17 = vmul.f32 %v181_v22, %v121_v15 }
 0x199   :  { %v3752_v30 = vpop.eup %3751  ;;  %v233_v24 = vpack.c.bf16 %v228_v16, %v227_v23  ;;  %v184_v31 = vmul.f32 %v180_v25, %v122_v21 }
 0x19a   :  { %v182_v32 = vmul.f32 %v3752_v30, %v4253_v36  ;;  %v189_v38 = vadd.f32 %v185_v17, %v123_v28  ;;  %v4295_v36 = vsub.s32 0, %v4274_v61 }
 0x19b   :  { %3385 = vmatmul.mubr.msk.bf16.vlgmr.msra.gmra.mrb[0].mxu0 %vm129_vm0, %v233_v24  ;;  %v188_v35 = vadd.f32 %v184_v31, %v124_v29 }
 0x19c   :  { %v186_v37 = vmul.f32 %v182_v32, %v122_v21  ;;  %3398 = vmatprep.mubr.msk.bf16.mxu0 %vm4063_vm1, %v4062_v43  ;;  %v237_v41 = vrot.slane %v127_v40, %v4295_v36  ;;  %v305_v52 = vrot.slane %v125_v3, %v4295_v36  ;;  %v4327_v3 = vld [vmem:[%s4932_s3] sm:$0xff]  ;;  %s4064_s3 = smov 96  }
 0x19d   :  { %v300_v34 = vpack.c.bf16 %v188_v35, %v187_v33 }
 0x19e   :  { %v190_v26 = vadd.f32 %v186_v37, %v124_v29 }
 0x19f   :  { %3392 = vmatprep.mubr.msk.bf16.mxu1 %vm129_vm0, %v300_v34 }
 0x1a0   :  { %v301_v39 = vpack.c.bf16 %v190_v26, %v189_v38 }
 0x1a2   :  { %3393 = vmatmul.mubr.msk.bf16.vlgmr.msra.gmra.mrb[0].mxu1 %vm129_vm0, %v301_v39 }
 0x1a3   :  { %3404 = vmatprep.mubr.msk.bf16.mxu1 %vm4063_vm1, %v4062_v43 }
 0x26e   :  { %v287_v42 = vpop.f32.mrb[0].mxu0 }
 0x26f   :  { %v288_v44 = vadd.f32 %v287_v42, %v237_v41  ;;  %v3386_v45 = vpop.f32.mrb[1].mxu0 }
 0x270   :  { %v290_v46 = vpop.f32.mrb[2].mxu0 }
 0x271   :  { %v4301_v47 = vpack.c.bf16 %v288_v44, %v288_v44  ;;  %v291_v48 = vadd.f32 %v290_v46, %v237_v41  ;;  %v3387_v49 = vpop.f32.mrb[3].mxu0 }
 0x273   :  { %v4303_v50 = vpack.c.bf16 %v291_v48, %v291_v48  ;;  %v385_v51 = vsel %vm380_vm2, %v4301_v47, 0 }
 0x274   :  { %3397 = vmatpush3.bf16.xpose.msra.mxu0 %v385_v51 }
 0x275   :  { %v3394_v53 = vpop.f32.mrb[0].mxu1  ;;  %v432_v54 = vsel %vm380_vm2, %v4303_v50, 0  ;;  %3408 = vmatprep.subr.bf16.mxu0 %v4062_v43 }
 0x276   :  { %3403 = vmatpush3.bf16.xpose.msra.mxu1 %v432_v54  ;;  %v358_v55 = vpop.f32.mrb[1].mxu1  ;;  %v367_v57 = vadd.f32 %v3394_v53, %v305_v52 }
 0x277   :  { %v3395_v56 = vpop.f32.mrb[2].mxu1  ;;  %3414 = vmatprep.subr.bf16.mxu1 %v4062_v43  ;;  %v359_v60 = vadd.f32 %v358_v55, %v305_v52 }
 0x278   :  { %v370_v58 = vadd.f32 %v3395_v56, %v305_v52  ;;  %v361_v59 = vpop.f32.mrb[3].mxu1 }
 0x279   :  { %v362_v62 = vadd.f32 %v361_v59, %v305_v52 }
 0x27a   :  { %v4312_v63 = vpack.c.bf16 %v370_v58, %v367_v57 }
 0x27b   :  { %v4314_v0 = vpack.c.bf16 %v362_v62, %v359_v60 }
 0x27d   :  { %3405 = vmatmul.mubr.msk.bf16.vlgmr.msra.gmra.mrb[4].mxu1 %vm380_vm2, %v4312_v63  ;;  %3399 = vmatmul.mubr.msk.bf16.vlgmr.msra.gmra.mrb[4].mxu0 %vm380_vm2, %v4314_v0 }
 0x27e   :  { %3410 = vmatprep.mubr.msk.bf16.mxu0 %vm4063_vm1, %v4062_v43  ;;  %3416 = vmatprep.mubr.msk.bf16.mxu1 %vm4063_vm1, %v4062_v43 }
 0x350   :  { %v468_v1 = vpop.f32.mrb[4].mxu1  ;;  %v421_v2 = vpop.f32.mrb[4].mxu0 }
 0x351   :  { %v477_v4 = vmul.f32 0.35355338, %v468_v1  ;;  %v475_v5 = vmul.f32 0.35355338, %v421_v2  ;;  %v3406_v6 = vpop.f32.mrb[5].mxu1  ;;  %v3400_v7 = vpop.f32.mrb[5].mxu0 }
 0x352   :  { %v471_v8 = vpop.f32.mrb[6].mxu1  ;;  %v424_v9 = vpop.f32.mrb[6].mxu0 }
 0x353   :  { %v478_v12 = vmul.f32 0.35355338, %v471_v8  ;;  %v476_v13 = vmul.f32 0.35355338, %v424_v9  ;;  %v3407_v14 = vpop.f32.mrb[7].mxu1  ;;  %v3401_v15 = vpop.f32.mrb[7].mxu0  ;;  %v479_v18 = vadd.f32 %v475_v5, %v4327_v3  ;;  %v481_v22 = vadd.f32 %v477_v4, %v4337_v11 }
 0x355   :  { %v483_v20 = vsel %vm380_vm2, %v479_v18, -inf  ;;  %v480_v21 = vadd.f32 %v476_v13, %v4332_v10  ;;  %v482_v16 = vadd.f32 %v478_v12, %v4343_v19  ;;  %v489_v25 = vsel %vm380_vm2, %v481_v22, -inf }
 0x356   :  { %484 = vmax.xlane.f32.xlu0 %v483_v20 }
 0x357   :  { %v486_v23 = vsel %vm380_vm2, %v480_v21, -inf  ;;  %v492_v27 = vsel %vm380_vm2, %v482_v16, -inf }
 0x358   :  { %487 = vmax.xlane.f32.xlu1 %v486_v23 }
 0x35a   :  { %490 = vmax.xlane.f32.xlu0 %v489_v25 }
 0x35c   :  { %493 = vmax.xlane.f32.xlu1 %v492_v27 }
 0x3e3   :  { %v485_v28 = vpop.xlane.xlu0 %484 }
 0x3e4   :  { %v495_v29 = vsub.f32 %v479_v18, %v485_v28 }
 0x3e5   :  { %v488_v30 = vpop.xlane.xlu1 %487 }
 0x3e6   :  { %v499_v24 = vmul.f32 1.442695, %v495_v29  ;;  %v496_v31 = vsub.f32 %v480_v21, %v488_v30 }
 0x3e7   :  { %v491_v32 = vpop.xlane.xlu0 %490 }
 0x3e8   :  { %3753 = vpow2.f32 %v499_v24  ;;  %v501_v17 = vmul.f32 1.442695, %v496_v31  ;;  %v497_v33 = vsub.f32 %v481_v22, %v491_v32 }
 0x3e9   :  { %v494_v41 = vpop.xlane.xlu1 %493 }
 0x3ea   :  { %3755 = vpow2.f32 %v501_v17  ;;  %v503_v35 = vmul.f32 1.442695, %v497_v33  ;;  %v498_v42 = vsub.f32 %v482_v16, %v494_v41 }
 0x3ec   :  { %3757 = vpow2.f32 %v503_v35  ;;  %v505_v44 = vmul.f32 1.442695, %v498_v42 }
 0x3ee   :  { %3759 = vpow2.f32 %v505_v44 }
 0x3f2   :  { %v3754_v37 = vpop.eup %3753 }
 0x3f3   :  { %v507_v34 = vsel %vm380_vm2, %v3754_v37, 0.0 }
 0x3f4   :  { %v3756_v38 = vpop.eup %3755  ;;  %508 = vadd.xlane.f32.xlu0 %v507_v34 }
 0x3f5   :  { %v510_v26 = vsel %vm380_vm2, %v3756_v38, 0.0 }
 0x3f6   :  { %v3758_v39 = vpop.eup %3757  ;;  %511 = vadd.xlane.f32.xlu1 %v510_v26 }
 0x3f7   :  { %v513_v40 = vsel %vm380_vm2, %v3758_v39, 0.0 }
 0x3f8   :  { %514 = vadd.xlane.f32.xlu0 %v513_v40  ;;  %v3760_v45 = vpop.eup %3759 }
 0x3f9   :  { %v516_v46 = vsel %vm380_vm2, %v3760_v45, 0.0 }
 0x407   :  { %581 = vrot.lane.b32.xlu1 %v4303_v50, %s4064_s3 }
 0x40b   :  { %633 = vrot.lane.b32.xlu1 %v4301_v47, %s4065_s21 }
 0x40e   :  { %530 = vrot.lane.b32.xlu0 %v4301_v47, %s4064_s3 }
 0x412   :  { %631 = vrot.lane.b32.xlu0 %v4314_v0, %s4065_s21 }
 0x42f   :  { %517 = vadd.xlane.f32.xlu1 %v516_v46 }
 0x440   :  { %685 = vrot.lane.b32.xlu1 %v4303_v50, %s4065_s21 }
 0x444   :  { %683 = vrot.lane.b32.xlu1 %v4312_v63, %s4065_s21 }
 0x481   :  { %v509_v48 = vpop.xlane.xlu0 %508 }
 0x482   :  { %3761 = vrcp.f32 %v509_v48 }
 0x483   :  { %v512_v49 = vpop.xlane.xlu1 %511 }
 0x484   :  { %3763 = vrcp.f32 %v512_v49 }
 0x485   :  { %v515_v51 = vpop.xlane.xlu0 %514 }
 0x486   :  { %3765 = vrcp.f32 %v515_v51 }
 0x487   :  { %v582_v52 = vpop.permute.xlu1 %581 }
 0x488   :  { %v587_v53 = vsel %vm535_vm3, %v582_v52, 0 }
 0x489   :  { %v531_v54 = vpop.permute.xlu0 %530  ;;  %3415 = vmatpush3.bf16.msra.mxu1 %v587_v53 }
 0x48a   :  { %v537_v55 = vsel %vm535_vm3, %v531_v54, 0  ;;  %3426 = vmatprep.subr.bf16.mxu1 %v4062_v43 }
 0x48b   :  { %3409 = vmatpush3.bf16.msra.mxu0 %v537_v55  ;;  %v634_v60 = vpop.permute.xlu1 %633 }
 0x48c   :  { %v3762_v56 = vpop.eup %3761  ;;  %3420 = vmatprep.subr.bf16.mxu0 %v4062_v43  ;;  %v639_v1 = vsel %vm380_vm2, %v634_v60, 0 }
 0x48d   :  { %v523_v58 = vmul.f32 %v3762_v56, %v3754_v37  ;;  %v632_v2 = vpop.permute.xlu0 %631 }
 0x48e   :  { %v3764_v57 = vpop.eup %3763 }
 0x48f   :  { %v524_v59 = vmul.f32 %v3764_v57, %v3756_v38 }
 0x490   :  { %v3766_v5 = vpop.eup %3765 }
 0x491   :  { %v527_v62 = vpack.c.bf16 %v524_v59, %v523_v58  ;;  %v525_v7 = vmul.f32 %v3766_v5, %v3758_v39 }
 0x493   :  { %3411 = vmatmul.mubr.msk.bf16.vlgmr.msra.gmra.mrb[8].mxu0 %vm380_vm2, %v527_v62 }
 0x494   :  { %3421 = vmatpush3.bf16.xpose.msra.mxu0 %v639_v1  ;;  %3422 = vmatprep.mubr.msk.bf16.mxu0 %vm4063_vm1, %v4062_v43 }
 0x495   :  { %3432 = vmatprep.subr.bf16.mxu0 %v4062_v43 }
 0x49b   :  { %3423 = vmatmul.mubr.msk.bf16.vlgmr.msra.gmra.mrb[12].mxu0 %vm380_vm2, %v632_v2 }
 0x49c   :  { %3434 = vmatprep.mubr.msk.bf16.mxu0 %vm4063_vm1, %v4062_v43 }
 0x4bc   :  { %v518_v4 = vpop.xlane.xlu1 %517 }
 0x4bd   :  { %3767 = vrcp.f32 %v518_v4 }
 0x4c0   :  { %v686_v9 = vpop.permute.xlu1 %685 }
 0x4c1   :  { %v691_v13 = vsel %vm380_vm2, %v686_v9, 0 }
 0x4c4   :  { %v684_v14 = vpop.permute.xlu1 %683 }
 0x4c7   :  { %v3768_v6 = vpop.eup %3767 }
 0x4c8   :  { %v526_v8 = vmul.f32 %v3768_v6, %v3760_v45 }
 0x4ca   :  { %v528_v12 = vpack.c.bf16 %v526_v8, %v525_v7 }
 0x4cc   :  { %3417 = vmatmul.mubr.msk.bf16.vlgmr.msra.gmra.mrb[8].mxu1 %vm380_vm2, %v528_v12 }
 0x4cd   :  { %3427 = vmatpush3.bf16.xpose.msra.mxu1 %v691_v13  ;;  %3428 = vmatprep.mubr.msk.bf16.mxu1 %vm4063_vm1, %v4062_v43 }
 0x4ce   :  { %3438 = vmatprep.subr.bf16.mxu1 %v4062_v43 }
 0x4d4   :  { %3429 = vmatmul.mubr.msk.bf16.vlgmr.msra.gmra.mrb[12].mxu1 %vm380_vm2, %v684_v14 }
 0x4d5   :  { %3440 = vmatprep.mubr.msk.bf16.mxu1 %vm4063_vm1, %v4062_v43 }
 0x566   :  { %v4388_v15 = vpop.f32.mrb[8].mxu0 }
 0x567   :  { %v3412_v18 = vpop.f32.mrb[9].mxu0 }
 0x568   :  { %v4390_v20 = vpop.f32.mrb[10].mxu0 }
 0x569   :  { %v3413_v21 = vpop.f32.mrb[11].mxu0 }
 0x56e   :  { %v675_v22 = vpop.f32.mrb[12].mxu0 }
 0x56f   :  { %v734_v23 = vmul.f32 0.35355338, %v675_v22  ;;  %v3424_v16 = vpop.f32.mrb[13].mxu0 }
 0x570   :  { %v678_v25 = vpop.f32.mrb[14].mxu0 }
 0x571   :  { %v735_v27 = vmul.f32 0.35355338, %v678_v25  ;;  %v3425_v28 = vpop.f32.mrb[15].mxu0  ;;  %v738_v29 = vadd.f32 %v734_v23, %v4327_v3 }
 0x573   :  { %v742_v30 = vsel %vm380_vm2, %v738_v29, -inf  ;;  %v739_v24 = vadd.f32 %v735_v27, %v4332_v10 }
 0x574   :  { %743 = vmax.xlane.f32.xlu0 %v742_v30 }
 0x575   :  { %v745_v31 = vsel %vm380_vm2, %v739_v24, -inf }
 0x576   :  { %746 = vmax.xlane.f32.xlu1 %v745_v31 }
 0x59f   :  { %v4396_v32 = vpop.f32.mrb[8].mxu1 }
 0x5a0   :  { %v3418_v17 = vpop.f32.mrb[9].mxu1 }
 0x5a1   :  { %v4398_v33 = vpop.f32.mrb[10].mxu1 }
 0x5a2   :  { %v3419_v35 = vpop.f32.mrb[11].mxu1 }
 0x5a7   :  { %v727_v37 = vpop.f32.mrb[12].mxu1 }
 0x5a8   :  { %v736_v34 = vmul.f32 0.35355338, %v727_v37  ;;  %v3430_v38 = vpop.f32.mrb[13].mxu1 }
 0x5a9   :  { %v730_v26 = vpop.f32.mrb[14].mxu1 }
 0x5aa   :  { %v737_v39 = vmul.f32 0.35355338, %v730_v26  ;;  %v3431_v40 = vpop.f32.mrb[15].mxu1  ;;  %v740_v41 = vadd.f32 %v736_v34, %v4337_v11 }
 0x5ac   :  { %v748_v42 = vsel %vm380_vm2, %v740_v41, -inf  ;;  %v741_v44 = vadd.f32 %v737_v39, %v4343_v19 }
 0x5ad   :  { %749 = vmax.xlane.f32.xlu0 %v748_v42 }
 0x5ae   :  { %v751_v45 = vsel %vm380_vm2, %v741_v44, -inf }
 0x5b1   :  { %752 = vmax.xlane.f32.xlu0 %v751_v45 }
 0x601   :  { %v744_v46 = vpop.xlane.xlu0 %743 }
 0x602   :  { %v754_v48 = vsub.f32 %v738_v29, %v744_v46 }
 0x603   :  { %v747_v49 = vpop.xlane.xlu1 %746 }
 0x604   :  { %v758_v51 = vmul.f32 1.442695, %v754_v48  ;;  %v755_v52 = vsub.f32 %v739_v24, %v747_v49 }
 0x606   :  { %3769 = vpow2.f32 %v758_v51  ;;  %v760_v53 = vmul.f32 1.442695, %v755_v52 }
 0x608   :  { %3771 = vpow2.f32 %v760_v53 }
 0x610   :  { %v3770_v54 = vpop.eup %3769 }
 0x611   :  { %v766_v55 = vsel %vm380_vm2, %v3770_v54, 0.0 }
 0x612   :  { %v3772_v56 = vpop.eup %3771  ;;  %767 = vadd.xlane.f32.xlu0 %v766_v55 }
 0x613   :  { %v769_v57 = vsel %vm380_vm2, %v3772_v56, 0.0 }
 0x614   :  { %770 = vadd.xlane.f32.xlu1 %v769_v57 }
 0x625   :  { %837 = vrot.lane.b32.xlu1 %v4303_v50, %s4066_s7 }
 0x629   :  { %888 = vrot.lane.b32.xlu1 %v4301_v47, %s4067_s13 }
 0x63a   :  { %v750_v58 = vpop.xlane.xlu0 %749 }
 0x63b   :  { %v756_v59 = vsub.f32 %v740_v41, %v750_v58 }
 0x63d   :  { %v762_v60 = vmul.f32 1.442695, %v756_v59 }
 0x63e   :  { %v753_v62 = vpop.xlane.xlu0 %752 }
 0x63f   :  { %3773 = vpow2.f32 %v762_v60  ;;  %v757_v1 = vsub.f32 %v741_v44, %v753_v62 }
 0x641   :  { %v764_v2 = vmul.f32 1.442695, %v757_v1 }
 0x643   :  { %3775 = vpow2.f32 %v764_v2 }
 0x649   :  { %v3774_v4 = vpop.eup %3773 }
 0x64a   :  { %v772_v5 = vsel %vm380_vm2, %v3774_v4, 0.0 }
 0x64b   :  { %773 = vadd.xlane.f32.xlu0 %v772_v5 }
 0x64d   :  { %v3776_v6 = vpop.eup %3775 }
 0x64e   :  { %v775_v7 = vsel %vm380_vm2, %v3776_v6, 0.0 }
 0x64f   :  { %776 = vadd.xlane.f32.xlu1 %v775_v7 }
 0x660   :  { %939 = vrot.lane.b32.xlu1 %v4303_v50, %s4067_s13 }
 0x661   :  { %788 = vrot.lane.b32.xlu0 %v4301_v47, %s4066_s7 }
 0x664   :  { %937 = vrot.lane.b32.xlu1 %v4312_v63, %s4067_s13 }
 0x665   :  { %886 = vrot.lane.b32.xlu0 %v4314_v0, %s4067_s13 }
 0x69f   :  { %v768_v13 = vpop.xlane.xlu0 %767 }
 0x6a1   :  { %v771_v8 = vpop.xlane.xlu1 %770 }
 0x6a2   :  { %3777 = vrcp.f32 %v771_v8 }
 0x6a3   :  { %3779 = vrcp.f32 %v768_v13 }
 0x6a5   :  { %v838_v9 = vpop.permute.xlu1 %837 }
 0x6a6   :  { %v843_v12 = vsel %vm535_vm3, %v838_v9, 0 }
 0x6a7   :  { %3439 = vmatpush3.bf16.msra.mxu1 %v843_v12 }
 0x6a8   :  { %3450 = vmatprep.subr.bf16.mxu1 %v4062_v43 }
 0x6a9   :  { %v889_v18 = vpop.permute.xlu1 %888 }
 0x6aa   :  { %v894_v24 = vsel %vm380_vm2, %v889_v18, 0 }
 0x6ac   :  { %v3778_v14 = vpop.eup %3777 }
 0x6ad   :  { %v3780_v22 = vpop.eup %3779  ;;  %v783_v23 = vmul.f32 %v3778_v14, %v3772_v56 }
 0x6ae   :  { %v782_v27 = vmul.f32 %v3780_v22, %v3770_v54 }
 0x6b0   :  { %v786_v29 = vpack.c.bf16 %v783_v23, %v782_v27 }
 0x6d8   :  { %v774_v21 = vpop.xlane.xlu0 %773 }
 0x6d9   :  { %3781 = vrcp.f32 %v774_v21 }
 0x6dc   :  { %v789_v16 = vpop.permute.xlu0 %788  ;;  %v777_v25 = vpop.xlane.xlu1 %776 }
 0x6dd   :  { %v794_v28 = vsel %vm535_vm3, %v789_v16, 0  ;;  %3783 = vrcp.f32 %v777_v25 }
 0x6de   :  { %3433 = vmatpush3.bf16.msra.mxu0 %v794_v28 }
 0x6df   :  { %3444 = vmatprep.subr.bf16.mxu0 %v4062_v43 }
 0x6e0   :  { %v940_v37 = vpop.permute.xlu1 %939  ;;  %v887_v26 = vpop.permute.xlu0 %886 }
 0x6e1   :  { %3435 = vmatmul.mubr.msk.bf16.vlgmr.msra.gmra.mrb[16].mxu0 %vm380_vm2, %v786_v29  ;;  %v945_v38 = vsel %vm380_vm2, %v940_v37, 0 }
 0x6e2   :  { %3446 = vmatprep.mubr.msk.bf16.mxu0 %vm4063_vm1, %v4062_v43 }
 0x6e3   :  { %v3782_v30 = vpop.eup %3781 }
 0x6e4   :  { %v784_v17 = vmul.f32 %v3782_v30, %v3774_v4  ;;  %v938_v39 = vpop.permute.xlu1 %937 }
 0x6e7   :  { %v3784_v31 = vpop.eup %3783  ;;  %3445 = vmatpush3.bf16.xpose.msra.mxu0 %v894_v24 }
 0x6e8   :  { %v785_v35 = vmul.f32 %v3784_v31, %v3776_v6  ;;  %3456 = vmatprep.subr.bf16.mxu0 %v4062_v43 }
 0x6ea   :  { %v787_v34 = vpack.c.bf16 %v785_v35, %v784_v17 }
 0x6ec   :  { %3441 = vmatmul.mubr.msk.bf16.vlgmr.msra.gmra.mrb[16].mxu1 %vm380_vm2, %v787_v34 }
 0x6ed   :  { %3451 = vmatpush3.bf16.xpose.msra.mxu1 %v945_v38  ;;  %3452 = vmatprep.mubr.msk.bf16.mxu1 %vm4063_vm1, %v4062_v43 }
 0x6ee   :  { %3447 = vmatmul.mubr.msk.bf16.vlgmr.msra.gmra.mrb[20].mxu0 %vm380_vm2, %v887_v26  ;;  %3462 = vmatprep.subr.bf16.mxu1 %v4062_v43 }
 0x6ef   :  { %3458 = vmatprep.mubr.msk.bf16.mxu0 %vm4063_vm1, %v4062_v43 }
 0x6f4   :  { %3453 = vmatmul.mubr.msk.bf16.vlgmr.msra.gmra.mrb[20].mxu1 %vm380_vm2, %v938_v39 }
 0x6f5   :  { %3464 = vmatprep.mubr.msk.bf16.mxu1 %vm4063_vm1, %v4062_v43 }
 0x7b4   :  { %v4440_v40 = vpop.f32.mrb[16].mxu0 }
 0x7b5   :  { %v3436_v41 = vpop.f32.mrb[17].mxu0 }
 0x7b6   :  { %v4442_v42 = vpop.f32.mrb[18].mxu0 }
 0x7b7   :  { %v3661_v44 = vpack.i.bf16 %v4442_v42, %v4440_v40  ;;  %v3437_v45 = vpop.f32.mrb[19].mxu0 }
 0x7bf   :  { %v4446_v46 = vpop.f32.mrb[16].mxu1 }
 0x7c0   :  { %v3442_v48 = vpop.f32.mrb[17].mxu1 }
 0x7c1   :  { %v4448_v49 = vpop.f32.mrb[18].mxu1  ;;  %v930_v51 = vpop.f32.mrb[20].mxu0 }
 0x7c2   :  { %v3666_v52 = vpack.i.bf16 %v4448_v49, %v4446_v46  ;;  %v988_v53 = vmul.f32 0.35355338, %v930_v51  ;;  %v3443_v54 = vpop.f32.mrb[19].mxu1  ;;  %v3448_v55 = vpop.f32.mrb[21].mxu0 }
 0x7c3   :  { %v933_v56 = vpop.f32.mrb[22].mxu0 }
 0x7c4   :  { %v989_v57 = vmul.f32 0.35355338, %v933_v56  ;;  %v3449_v58 = vpop.f32.mrb[23].mxu0  ;;  %v992_v59 = vadd.f32 %v988_v53, %v4327_v3 }
 0x7c6   :  { %v996_v60 = vsel %vm380_vm2, %v992_v59, -inf  ;;  %v993_v62 = vadd.f32 %v989_v57, %v4332_v10 }
 0x7c7   :  { %v981_v1 = vpop.f32.mrb[20].mxu1  ;;  %997 = vmax.xlane.f32.xlu0 %v996_v60 }
 0x7c8   :  { %v990_v2 = vmul.f32 0.35355338, %v981_v1  ;;  %v3454_v4 = vpop.f32.mrb[21].mxu1  ;;  %v999_v5 = vsel %vm380_vm2, %v993_v62, -inf }
 0x7c9   :  { %v984_v6 = vpop.f32.mrb[22].mxu1  ;;  %1000 = vmax.xlane.f32.xlu1 %v999_v5 }
 0x7ca   :  { %v991_v7 = vmul.f32 0.35355338, %v984_v6  ;;  %v3455_v8 = vpop.f32.mrb[23].mxu1  ;;  %v994_v9 = vadd.f32 %v990_v2, %v4337_v11 }
 0x7cc   :  { %v1002_v12 = vsel %vm380_vm2, %v994_v9, -inf  ;;  %v995_v13 = vadd.f32 %v991_v7, %v4343_v19 }
 0x7cd   :  { %1003 = vmax.xlane.f32.xlu0 %v1002_v12 }
 0x7ce   :  { %v1005_v14 = vsel %vm380_vm2, %v995_v13, -inf }
 0x7d1   :  { %1006 = vmax.xlane.f32.xlu0 %v1005_v14 }
 0x854   :  { %v998_v18 = vpop.xlane.xlu0 %997 }
 0x855   :  { %v1008_v21 = vsub.f32 %v992_v59, %v998_v18 }
 0x856   :  { %v1001_v22 = vpop.xlane.xlu1 %1000 }
 0x857   :  { %v1012_v23 = vmul.f32 1.442695, %v1008_v21  ;;  %v1009_v16 = vsub.f32 %v993_v62, %v1001_v22 }
 0x859   :  { %3785 = vpow2.f32 %v1012_v23  ;;  %v1014_v25 = vmul.f32 1.442695, %v1009_v16 }
 0x85a   :  { %v1004_v27 = vpop.xlane.xlu0 %1003 }
 0x85b   :  { %3787 = vpow2.f32 %v1014_v25  ;;  %v1010_v28 = vsub.f32 %v994_v9, %v1004_v27 }
 0x85d   :  { %v1016_v29 = vmul.f32 1.442695, %v1010_v28 }
 0x85e   :  { %v1007_v34 = vpop.xlane.xlu0 %1006 }
 0x85f   :  { %3789 = vpow2.f32 %v1016_v29  ;;  %v1011_v38 = vsub.f32 %v995_v13, %v1007_v34 }
 0x861   :  { %v1018_v26 = vmul.f32 1.442695, %v1011_v38 }
 0x863   :  { %v3786_v30 = vpop.eup %3785  ;;  %3791 = vpow2.f32 %v1018_v26 }
 0x864   :  { %v1020_v24 = vsel %vm380_vm2, %v3786_v30, 0.0 }
 0x865   :  { %v3788_v31 = vpop.eup %3787  ;;  %1021 = vadd.xlane.f32.xlu0 %v1020_v24 }
 0x866   :  { %v1023_v17 = vsel %vm380_vm2, %v3788_v31, 0.0 }
 0x867   :  { %1024 = vadd.xlane.f32.xlu1 %v1023_v17 }
 0x869   :  { %v3790_v35 = vpop.eup %3789 }
 0x86a   :  { %v1026_v37 = vsel %vm380_vm2, %v3790_v35, 0.0 }
 0x86b   :  { %1027 = vadd.xlane.f32.xlu0 %v1026_v37 }
 0x86d   :  { %v3792_v39 = vpop.eup %3791 }
 0x86e   :  { %v1029_v41 = vsel %vm380_vm2, %v3792_v39, 0.0 }
 0x878   :  { %1091 = vrot.lane.b32.xlu1 %v4303_v50, %s4068_s14 }
 0x87c   :  { %1142 = vrot.lane.b32.xlu1 %v4301_v47, %s4069_s22 }
 0x881   :  { %1042 = vrot.lane.b32.xlu0 %v4301_v47, %s4068_s14 }
 0x885   :  { %1140 = vrot.lane.b32.xlu0 %v4314_v0, %s4069_s22 }
 0x8a0   :  { %1030 = vadd.xlane.f32.xlu1 %v1029_v41 }
 0x8b1   :  { %1193 = vrot.lane.b32.xlu1 %v4303_v50, %s4069_s22 }
 0x8b5   :  { %1191 = vrot.lane.b32.xlu1 %v4312_v63, %s4069_s22 }
 0x8f2   :  { %v1022_v45 = vpop.xlane.xlu0 %1021 }
 0x8f3   :  { %3793 = vrcp.f32 %v1022_v45 }
 0x8f4   :  { %v1025_v48 = vpop.xlane.xlu1 %1024 }
 0x8f5   :  { %3795 = vrcp.f32 %v1025_v48 }
 0x8f8   :  { %v1028_v51 = vpop.xlane.xlu0 %1027  ;;  %v1092_v0 = vpop.permute.xlu1 %1091 }
 0x8f9   :  { %v1097_v53 = vsel %vm535_vm3, %v1092_v0, 0  ;;  %3797 = vrcp.f32 %v1028_v51 }
 0x8fa   :  { %3463 = vmatpush3.bf16.msra.mxu1 %v1097_v53 }
 0x8fb   :  { %3474 = vmatprep.subr.bf16.mxu1 %v4062_v43 }
 0x8fc   :  { %v1043_v54 = vpop.permute.xlu0 %1042  ;;  %v1143_v60 = vpop.permute.xlu1 %1142 }
 0x8fd   :  { %v3794_v55 = vpop.eup %3793  ;;  %v1048_v56 = vsel %vm535_vm3, %v1043_v54, 0  ;;  %v1148_v62 = vsel %vm380_vm2, %v1143_v60, 0 }
 0x8fe   :  { %3457 = vmatpush3.bf16.msra.mxu0 %v1048_v56  ;;  %v1036_v63 = vmul.f32 %v3794_v55, %v3786_v30 }
 0x8ff   :  { %v3796_v57 = vpop.eup %3795  ;;  %3468 = vmatprep.subr.bf16.mxu0 %v4062_v43 }
 0x900   :  { %v1037_v58 = vmul.f32 %v3796_v57, %v3788_v31  ;;  %v1141_v1 = vpop.permute.xlu0 %1140 }
 0x902   :  { %v1040_v59 = vpack.c.bf16 %v1037_v58, %v1036_v63 }
 0x903   :  { %v3798_v4 = vpop.eup %3797 }
 0x904   :  { %3459 = vmatmul.mubr.msk.bf16.vlgmr.msra.gmra.mrb[24].mxu0 %vm380_vm2, %v1040_v59  ;;  %v1038_v6 = vmul.f32 %v3798_v4, %v3790_v35 }
 0x905   :  { %3470 = vmatprep.mubr.msk.bf16.mxu0 %vm4063_vm1, %v4062_v43 }
 0x907   :  { %3469 = vmatpush3.bf16.xpose.msra.mxu0 %v1148_v62 }
 0x908   :  { %3480 = vmatprep.subr.bf16.mxu0 %v4062_v43 }
 0x90e   :  { %3471 = vmatmul.mubr.msk.bf16.vlgmr.msra.gmra.mrb[28].mxu0 %vm380_vm2, %v1141_v1 }
 0x90f   :  { %3482 = vmatprep.mubr.msk.bf16.mxu0 %vm4063_vm1, %v4062_v43 }
 0x92d   :  { %v1031_v2 = vpop.xlane.xlu1 %1030 }
 0x92e   :  { %3799 = vrcp.f32 %v1031_v2 }
 0x931   :  { %v1194_v8 = vpop.permute.xlu1 %1193 }
 0x932   :  { %v1199_v12 = vsel %vm380_vm2, %v1194_v8, 0 }
 0x935   :  { %v1192_v13 = vpop.permute.xlu1 %1191 }
 0x938   :  { %v3800_v5 = vpop.eup %3799 }
 0x939   :  { %v1039_v7 = vmul.f32 %v3800_v5, %v3792_v39 }
 0x93b   :  { %v1041_v9 = vpack.c.bf16 %v1039_v7, %v1038_v6 }
 0x93d   :  { %3465 = vmatmul.mubr.msk.bf16.vlgmr.msra.gmra.mrb[24].mxu1 %vm380_vm2, %v1041_v9 }
 0x93e   :  { %3475 = vmatpush3.bf16.xpose.msra.mxu1 %v1199_v12  ;;  %3476 = vmatprep.mubr.msk.bf16.mxu1 %vm4063_vm1, %v4062_v43 }
 0x93f   :  { %3486 = vmatprep.subr.bf16.mxu1 %v4062_v43 }
 0x945   :  { %3477 = vmatmul.mubr.msk.bf16.vlgmr.msra.gmra.mrb[28].mxu1 %vm380_vm2, %v1192_v13 }
 0x946   :  { %3488 = vmatprep.mubr.msk.bf16.mxu1 %vm4063_vm1, %v4062_v43 }
 0x9d7   :  { %v4496_v14 = vpop.f32.mrb[24].mxu0 }
 0x9d8   :  { %v3460_v18 = vpop.f32.mrb[25].mxu0 }
 0x9d9   :  { %v4498_v21 = vpop.f32.mrb[26].mxu0 }
 0x9da   :  { %v3671_v22 = vpack.i.bf16 %v4498_v21, %v4496_v14  ;;  %v3461_v23 = vpop.f32.mrb[27].mxu0 }
 0x9e1   :  { %v1184_v16 = vpop.f32.mrb[28].mxu0 }
 0x9e2   :  { %v1242_v25 = vmul.f32 0.35355338, %v1184_v16  ;;  %v3472_v27 = vpop.f32.mrb[29].mxu0 }
 0x9e3   :  { %v1187_v28 = vpop.f32.mrb[30].mxu0 }
 0x9e4   :  { %v1243_v29 = vmul.f32 0.35355338, %v1187_v28  ;;  %v3473_v30 = vpop.f32.mrb[31].mxu0  ;;  %v1246_v24 = vadd.f32 %v1242_v25, %v4327_v3 }
 0x9e6   :  { %v1250_v31 = vsel %vm380_vm2, %v1246_v24, -inf  ;;  %v1247_v17 = vadd.f32 %v1243_v29, %v4332_v10 }
 0x9e7   :  { %1251 = vmax.xlane.f32.xlu0 %v1250_v31 }
 0x9e8   :  { %v1253_v35 = vsel %vm380_vm2, %v1247_v17, -inf }
 0x9e9   :  { %1254 = vmax.xlane.f32.xlu1 %v1253_v35 }
 0xa10   :  { %v1133_v37 = vpop.f32.mrb[24].mxu1 }
 0xa11   :  { %v3466_v34 = vpop.f32.mrb[25].mxu1 }
 0xa12   :  { %v1136_v38 = vpop.f32.mrb[26].mxu1 }
 0xa13   :  { %v3676_v26 = vpack.i.bf16 %v1136_v38, %v1133_v37  ;;  %v3467_v39 = vpop.f32.mrb[27].mxu1  ;;  %v3726_v38 = vld [vmem:[%s4934_s5 + $0x18] sm:$0xff]  }
 0xa18   :  { %v1235_v41 = vpop.f32.mrb[28].mxu1 }
 0xa19   :  { %v1244_v45 = vmul.f32 0.35355338, %v1235_v41  ;;  %v3478_v48 = vpop.f32.mrb[29].mxu1 }
 0xa1a   :  { %v1238_v51 = vpop.f32.mrb[30].mxu1 }
 0xa1b   :  { %v1245_v0 = vmul.f32 0.35355338, %v1238_v51  ;;  %v3479_v53 = vpop.f32.mrb[31].mxu1  ;;  %v1248_v3 = vadd.f32 %v1244_v45, %v4337_v11 }
 0xa1d   :  { %v1256_v54 = vsel %vm380_vm2, %v1248_v3, -inf  ;;  %v1249_v10 = vadd.f32 %v1245_v0, %v4343_v19 }
 0xa1e   :  { %1257 = vmax.xlane.f32.xlu0 %v1256_v54 }
 0xa1f   :  { %v1259_v55 = vsel %vm380_vm2, %v1249_v10, -inf }
 0xa22   :  { %1260 = vmax.xlane.f32.xlu0 %v1259_v55 }
 0xa74   :  { %v1252_v56 = vpop.xlane.xlu0 %1251 }
 0xa75   :  { %v1262_v57 = vsub.f32 %v1246_v24, %v1252_v56  ;;  %v3725_v24 = vld [vmem:[%s4934_s5 + $0x10] sm:$0xff]  }
 0xa76   :  { %v1255_v63 = vpop.xlane.xlu1 %1254 }
 0xa77   :  { %v1266_v58 = vmul.f32 1.442695, %v1262_v57  ;;  %v1263_v59 = vsub.f32 %v1247_v17, %v1255_v63 }
 0xa79   :  { %3801 = vpow2.f32 %v1266_v58  ;;  %v1268_v60 = vmul.f32 1.442695, %v1263_v59 }
 0xa7b   :  { %3803 = vpow2.f32 %v1268_v60 }
 0xa83   :  { %v3802_v62 = vpop.eup %3801 }
 0xa84   :  { %v1274_v1 = vsel %vm380_vm2, %v3802_v62, 0.0 }
 0xa85   :  { %v3804_v11 = vpop.eup %3803  ;;  %1275 = vadd.xlane.f32.xlu0 %v1274_v1 }
 0xa86   :  { %v1277_v2 = vsel %vm380_vm2, %v3804_v11, 0.0 }
 0xa87   :  { %1278 = vadd.xlane.f32.xlu1 %v1277_v2 }
 0xaab   :  { %v1258_v19 = vpop.xlane.xlu0 %1257 }
 0xaac   :  { %v1264_v4 = vsub.f32 %v1248_v3, %v1258_v19 }
 0xaae   :  { %v1270_v5 = vmul.f32 1.442695, %v1264_v4 }
 0xaaf   :  { %v1261_v6 = vpop.xlane.xlu0 %1260 }
 0xab0   :  { %3805 = vpow2.f32 %v1270_v5  ;;  %v1265_v7 = vsub.f32 %v1249_v10, %v1261_v6 }
 0xab2   :  { %v1272_v8 = vmul.f32 1.442695, %v1265_v7 }
 0xab4   :  { %3807 = vpow2.f32 %v1272_v8 }
 0xaba   :  { %v3806_v9 = vpop.eup %3805 }
 0xabb   :  { %v1280_v12 = vsel %vm380_vm2, %v3806_v9, 0.0 }
 0xabc   :  { %1281 = vadd.xlane.f32.xlu0 %v1280_v12 }
 0xabe   :  { %v3808_v13 = vpop.eup %3807 }
 0xabf   :  { %v1283_v18 = vsel %vm380_vm2, %v3808_v13, 0.0 }
 0xac0   :  { %1284 = vadd.xlane.f32.xlu1 %v1283_v18 }
 0xad1   :  { %1345 = vrot.lane.b32.xlu1 %v4303_v50, %s4070_s1 }
 0xad2   :  { %1296 = vrot.lane.b32.xlu0 %v4301_v47, %s4070_s1 }
 0xad5   :  { %3662 = vrot.lane.b32.xlu1 %v3661_v44, %s4059_s18 }
 0xad6   :  { %3672 = vrot.lane.b32.xlu0 %v3671_v22, %s4071_s20 }
 0xad9   :  { %3667 = vrot.lane.b32.xlu1 %v3666_v52, %s4059_s18 }
 0xadd   :  { %3677 = vrot.lane.b32.xlu1 %v3676_v26, %s4071_s20 }
 0xb12   :  { %v1276_v47 = vpop.xlane.xlu0 %1275 }
 0xb14   :  { %v1279_v50 = vpop.xlane.xlu1 %1278 }
 0xb15   :  { %3809 = vrcp.f32 %v1279_v50 }
 0xb16   :  { %3811 = vrcp.f32 %v1276_v47 }
 0xb1f   :  { %v3810_v23 = vpop.eup %3809 }
 0xb20   :  { %v3812_v42 = vpop.eup %3811  ;;  %v1291_v44 = vmul.f32 %v3810_v23, %v3804_v11 }
 0xb21   :  { %v1290_v14 = vmul.f32 %v3812_v42, %v3802_v62 }
 0xb23   :  { %v1294_v46 = vpack.c.bf16 %v1291_v44, %v1290_v14 }
 0xb49   :  { %v1282_v40 = vpop.xlane.xlu0 %1281 }
 0xb4a   :  { %3813 = vrcp.f32 %v1282_v40  ;;  %v4562_v40 = vsub.s32 1, %v4274_v61 }
 0xb4d   :  { %v1297_v16 = vpop.permute.xlu0 %1296  ;;  %v1285_v25 = vpop.xlane.xlu1 %1284 }
 0xb4e   :  { %v1302_v21 = vsel %vm535_vm3, %v1297_v16, 0  ;;  %3815 = vrcp.f32 %v1285_v25 }
 0xb4f   :  { %3481 = vmatpush3.bf16.msra.mxu0 %v1302_v21 }
 0xb50   :  { %3492 = vmatprep.subr.bf16.mxu0 %v3725_v24 }
 0xb51   :  { %v1346_v49 = vpop.permute.xlu1 %1345  ;;  %v3673_v3 = vpop.permute.xlu0 %3672 }
 0xb52   :  { %v1351_v52 = vsel %vm535_vm3, %v1346_v49, 0  ;;  %3483 = vmatmul.mubr.msk.bf16.vlgmr.msra.gmra.mrb[32].mxu0 %vm380_vm2, %v1294_v46  ;;  %v3675_v55 = vunpack.i.h.bf16 %v3673_v3  ;;  %v3674_v56 = vunpack.i.l.bf16 %v3673_v3  ;;  %v3906_v46 = vld [vmem:[%s4929_s0] sm:$0xff] }
 0xb53   :  { %3487 = vmatpush3.bf16.msra.mxu1 %v1351_v52  ;;  %3493 = vmatpush3.bf16.msra.mxu0 %v3725_v24 }
 0xb54   :  { %v3814_v22 = vpop.eup %3813  ;;  %3494 = vmatprep.subr.bf16.mxu0 %v3726_v38 }
 0xb55   :  { %v1292_v28 = vmul.f32 %v3814_v22, %v3806_v9  ;;  %v3663_v51 = vpop.permute.xlu1 %3662  ;;  %v3907_v22 = vld [vmem:[%s4929_s0 + $0x10] sm:$0xff] }
 0xb56   :  { %v3665_v0 = vunpack.i.h.bf16 %v3663_v51  ;;  %v3664_v53 = vunpack.i.l.bf16 %v3663_v51 }
 0xb57   :  { %3495 = vmatpush3.bf16.msra.mxu0 %v3726_v38 }
 0xb58   :  { %v3816_v27 = vpop.eup %3815  ;;  %v1443_v54 = vsel %vm380_vm2, %v4390_v20, %v3665_v0  ;;  %v1442_v10 = vsel %vm380_vm2, %v4388_v15, %v3664_v53 }
 0xb59   :  { %v1293_v29 = vmul.f32 %v3816_v27, %v3808_v13  ;;  %v3668_v57 = vpop.permute.xlu1 %3667  ;;  %v1447_v60 = vsel %vm1446_vm4, %v1442_v10, %v3674_v56  ;;  %v1448_v62 = vsel %vm1446_vm4, %v1443_v54, %v3675_v55 }
 0xb5a   :  { %v3670_v15 = vunpack.i.h.bf16 %v3668_v57  ;;  %v3669_v19 = vunpack.i.l.bf16 %v3668_v57 }
 0xb5b   :  { %v1295_v30 = vpack.c.bf16 %v1293_v29, %v1292_v28  ;;  %v3908_v29 = vld [vmem:[%s4929_s0 + $0x8] sm:$0xff] }
 0xb5c   :  { %v1445_v7 = vsel %vm380_vm2, %v4398_v33, %v3670_v15  ;;  %v1444_v8 = vsel %vm380_vm2, %v4396_v32, %v3669_v19  ;;  %v4567_v32 = vld [vmem:[%s4938_s9] sm:$0xff]  ;;  %v3732_v19 = vld [vmem:[%s4934_s5 + $0x28] sm:$0xff]  }
 0xb5d   :  { %3489 = vmatmul.mubr.msk.bf16.vlgmr.msra.gmra.mrb[32].mxu1 %vm380_vm2, %v1295_v30  ;;  %v3678_v2 = vpop.permute.xlu1 %3677  ;;  %v1461_v33 = vrot.slane %v4567_v32, %v4562_v40  ;;  %v3731_v15 = vld [vmem:[%s4934_s5 + $0x20] sm:$0xff]  }
 0xb5e   :  { %v3680_v4 = vunpack.i.h.bf16 %v3678_v2  ;;  %v3679_v5 = vunpack.i.l.bf16 %v3678_v2  ;;  %v3730_v2 = vld [vmem:[#allocation5 + $0x8] sm:$0xff]   ;;  %3508 = vmatprep.subr.bf16.mxu0 %v3731_v15 }
 0xb60   :  { %v1449_v13 = vsel %vm1446_vm4, %v1444_v8, %v3679_v5  ;;  %v1450_v18 = vsel %vm1446_vm4, %v1445_v7, %v3680_v4 }
 0xc25   :  { %v1338_v31 = vpop.f32.mrb[32].mxu0 }
 0xc26   :  { %v3484_v17 = vpop.f32.mrb[33].mxu0 }
 0xc27   :  { %v1341_v35 = vpop.f32.mrb[34].mxu0  ;;  %v3909_v17 = vld [vmem:[%s4929_s0 + $0x18] sm:$0xff] }
 0xc28   :  { %v3681_v37 = vpack.i.bf16 %v1341_v35, %v1338_v31  ;;  %v3485_v34 = vpop.f32.mrb[35].mxu0 }
 0xc2a   :  { %3682 = vrot.lane.b32.xlu0 %v3681_v37, %s4072_s27 }
 0xc30   :  { %v1387_v26 = vpop.f32.mrb[32].mxu1 }
 0xc31   :  { %v3490_v39 = vpop.f32.mrb[33].mxu1 }
 0xc32   :  { %v1390_v41 = vpop.f32.mrb[34].mxu1 }
 0xc33   :  { %v3686_v45 = vpack.i.bf16 %v1390_v41, %v1387_v26  ;;  %v3491_v48 = vpop.f32.mrb[35].mxu1 }
 0xc35   :  { %3687 = vrot.lane.b32.xlu1 %v3686_v45, %s4072_s27 }
 0xc9c   :  { %v3683_v63 = vpop.permute.xlu0 %3682 }
 0xc9d   :  { %v3685_v58 = vunpack.i.h.bf16 %v3683_v63  ;;  %v3684_v59 = vunpack.i.l.bf16 %v3683_v63 }
 0xc9f   :  { %v1453_v1 = vsel %vm1451_vm5, %v1448_v62, %v3685_v58  ;;  %v1452_v11 = vsel %vm1451_vm5, %v1447_v60, %v3684_v59 }
 0xca0   :  { %v1456_v20 = vpack.c.bf16 %v1453_v1, %v1452_v11  ;;  %v3727_v1 = vld [vmem:[#allocation8 + $0x10] sm:$0xff]   ;;  %v3728_v11 = vld [vmem:[#allocation8 + $0x18] sm:$0xff]  }
 0xca1   :  { %3500 = vmatprep.subr.bf16.mxu1 %v3727_v1 }
 0xca2   :  { %3496 = vmatprep.mubr.msk.bf16.mxu0 %vm129_vm0, %v1456_v20  ;;  %3501 = vmatpush3.bf16.msra.mxu1 %v3727_v1  ;;  %v3729_v20 = vld [vmem:[#allocation5] sm:$0xff]  }
 0xca3   :  { %3502 = vmatprep.subr.bf16.mxu1 %v3728_v11  ;;  %3504 = vmatprep.mubr.msk.bf16.mxu1 %vm129_vm0, %v3729_v20 }
 0xca6   :  { %3503 = vmatpush3.bf16.msra.mxu1 %v3728_v11 }
 0xca7   :  { %v3688_v6 = vpop.permute.xlu1 %3687  ;;  %3516 = vmatprep.subr.bf16.mxu1 %v4062_v43 }
 0xca8   :  { %v3690_v9 = vunpack.i.h.bf16 %v3688_v6  ;;  %v3689_v12 = vunpack.i.l.bf16 %v3688_v6 }
 0xca9   :  { %3505 = vmatmul.mubr.msk.bf16.vlgmr.msra.gmra.mrb[36].mxu1 %vm129_vm0, %v3730_v2 }
 0xcaa   :  { %v1454_v50 = vsel %vm1451_vm5, %v1449_v13, %v3689_v12  ;;  %v1455_v47 = vsel %vm1451_vm5, %v1450_v18, %v3690_v9  ;;  %3518 = vmatprep.mubr.msk.bf16.mxu1 %vm4063_vm1, %v4062_v43 }
 0xcab   :  { %v1457_v23 = vpack.c.bf16 %v1455_v47, %v1454_v50 }
 0xcad   :  { %3497 = vmatmul.mubr.msk.bf16.vlgmr.msra.gmra.mrb[36].mxu0 %vm129_vm0, %v1457_v23  ;;  %v1587_v23 = vsub.s32 7, %v4274_v61 }
 0xcae   :  { %3509 = vmatpush3.bf16.msra.mxu0 %v3731_v15 }
 0xcaf   :  { %3510 = vmatprep.subr.bf16.mxu0 %v3732_v19 }
 0xcb2   :  { %3511 = vmatpush3.bf16.msra.mxu0 %v3732_v19 }
 0xcb3   :  { %3522 = vmatprep.subr.bf16.mxu0 %v4062_v43 }
 0xd80   :  { %v3498_v42 = vpop.f32.mrb[36].mxu0 }
 0xd81   :  { %v1514_v44 = vpop.f32.mrb[37].mxu0  ;;  %v1523_v16 = vadd.f32 %v3498_v42, %v1461_v33  ;;  %v1588_v42 = vrot.slane %v4567_v32, %v1587_v23 }
 0xd82   :  { %v1515_v25 = vadd.f32 %v1514_v44, %v1461_v33  ;;  %v3499_v14 = vpop.f32.mrb[38].mxu0 }
 0xd83   :  { %v1517_v21 = vpop.f32.mrb[39].mxu0  ;;  %v4579_v27 = vadd.f32 %v3907_v22, %v1523_v16  ;;  %v1526_v28 = vadd.f32 %v3499_v14, %v1461_v33  ;;  %v126_v16 = vld [vmem:[%s4938_s9 + $0x8] sm:$0x7] }
 0xd84   :  { %v4574_v49 = vadd.f32 %v3906_v46, %v1515_v25  ;;  %v1518_v52 = vadd.f32 %v1517_v21, %v1461_v33  ;;  %v1596_v21 = vrot.slane %v126_v16, %v4295_v36  ;;  %v3910_v36 = vld [vmem:[%s4939_s10] sm:$0x3] }
 0xd85   :  { %v4593_v35 = vadd.f32 %v3909_v17, %v1526_v28  ;;  %v1539_v37 = vsel %vm129_vm0, %v4579_v27, 0.0 }
 0xd86   :  { %v4584_v30 = vadd.f32 %v3908_v29, %v1518_v52  ;;  %v1533_v24 = vsel %vm129_vm0, %v4574_v49, 0.0 }
 0xd87   :  { %1534 = vadd.xlane.f32.xlu0 %v1533_v24  ;;  %v1542_v34 = vsel %vm129_vm0, %v4593_v35, 0.0 }
 0xd88   :  { %v1536_v31 = vsel %vm129_vm0, %v4584_v30, 0.0 }
 0xd89   :  { %1537 = vadd.xlane.f32.xlu1 %v1536_v31 }
 0xd8b   :  { %1540 = vadd.xlane.f32.xlu0 %v1539_v37 }
 0xd8f   :  { %1543 = vadd.xlane.f32.xlu0 %v1542_v34 }
 0xe14   :  { %v1535_v38 = vpop.xlane.xlu0 %1534 }
 0xe15   :  { %v1545_v26 = vmul.f32 0.03125, %v1535_v38 }
 0xe16   :  { %v1538_v39 = vpop.xlane.xlu1 %1537 }
 0xe17   :  { %v1549_v41 = vsub.f32 %v4574_v49, %v1545_v26  ;;  %v1546_v45 = vmul.f32 0.03125, %v1538_v39 }
 0xe18   :  { %v1541_v48 = vpop.xlane.xlu0 %1540 }
 0xe19   :  { %v1550_v51 = vsub.f32 %v4584_v30, %v1546_v45  ;;  %v1547_v0 = vmul.f32 0.03125, %v1541_v48  ;;  %v1553_v53 = vmul.f32 %v1549_v41, %v1549_v41  ;;  %v1613_v48 = vrot.slane %v3910_v36, %v4562_v40 }
 0xe1b   :  { %v1551_v3 = vsub.f32 %v4579_v27, %v1547_v0  ;;  %v1557_v54 = vsel %vm129_vm0, %v1553_v53, 0.0  ;;  %v1554_v10 = vmul.f32 %v1550_v51, %v1550_v51 }
 0xe1c   :  { %1558 = vadd.xlane.f32.xlu0 %v1557_v54  ;;  %v1544_v55 = vpop.xlane.xlu0 %1543 }
 0xe1d   :  { %v1548_v56 = vmul.f32 0.03125, %v1544_v55  ;;  %v1560_v57 = vsel %vm129_vm0, %v1554_v10, 0.0  ;;  %v1555_v63 = vmul.f32 %v1551_v3, %v1551_v3 }
 0xe1e   :  { %1561 = vadd.xlane.f32.xlu1 %v1560_v57 }
 0xe1f   :  { %v1552_v58 = vsub.f32 %v4593_v35, %v1548_v56  ;;  %v1563_v59 = vsel %vm129_vm0, %v1555_v63, 0.0 }
 0xe20   :  { %1564 = vadd.xlane.f32.xlu0 %v1563_v59 }
 0xe21   :  { %v1556_v60 = vmul.f32 %v1552_v58, %v1552_v58 }
 0xe23   :  { %v1566_v62 = vsel %vm129_vm0, %v1556_v60, 0.0  ;;  %v1702_v60 = vsub.s32 2, %v4274_v61 }
 0xe24   :  { %1567 = vadd.xlane.f32.xlu1 %v1566_v62 }
 0xe25   :  { %v1703_v62 = vrot.slane %v4567_v32, %v1702_v60 }
 0xea9   :  { %v1559_v4 = vpop.xlane.xlu0 %1558 }
 0xeaa   :  { %v1569_v5 = vmul.f32 0.03125, %v1559_v4 }
 0xeab   :  { %v1562_v6 = vpop.xlane.xlu1 %1561 }
 0xeac   :  { %v1573_v7 = vadd.f32 1e-05, %v1569_v5  ;;  %v1570_v8 = vmul.f32 0.03125, %v1562_v6 }
 0xead   :  { %v1565_v9 = vpop.xlane.xlu0 %1564 }
 0xeae   :  { %3817 = vrsqrt.f32 %v1573_v7  ;;  %v1574_v12 = vadd.f32 1e-05, %v1570_v8  ;;  %v1571_v13 = vmul.f32 0.03125, %v1565_v9 }
 0xeb0   :  { %3819 = vrsqrt.f32 %v1574_v12  ;;  %v1575_v18 = vadd.f32 1e-05, %v1571_v13 }
 0xeb1   :  { %v1568_v50 = vpop.xlane.xlu1 %1567 }
 0xeb2   :  { %3821 = vrsqrt.f32 %v1575_v18  ;;  %v1572_v47 = vmul.f32 0.03125, %v1568_v50 }
 0xeb4   :  { %v1576_v33 = vadd.f32 1e-05, %v1572_v47 }
 0xeb6   :  { %3823 = vrsqrt.f32 %v1576_v33 }
 0xeb8   :  { %v3818_v44 = vpop.eup %3817 }
 0xeb9   :  { %v1581_v25 = vmul.f32 %v3818_v44, %v1549_v41 }
 0xeba   :  { %v3820_v14 = vpop.eup %3819 }
 0xebb   :  { %v1582_v46 = vmul.f32 %v3820_v14, %v1550_v51  ;;  %v1589_v52 = vmul.f32 %v1588_v42, %v1581_v25  ;;  %v3506_v51 = vpop.f32.mrb[36].mxu1 }
 0xebc   :  { %v3822_v22 = vpop.eup %3821  ;;  %v1685_v0 = vadd.f32 %v3506_v51, %v1613_v48  ;;  %v1676_v53 = vpop.f32.mrb[37].mxu1 }
 0xebd   :  { %v1583_v28 = vmul.f32 %v3822_v22, %v1551_v3  ;;  %v1590_v29 = vmul.f32 %v1588_v42, %v1582_v46  ;;  %v1597_v24 = vadd.f32 %v1596_v21, %v1589_v52  ;;  %v1677_v3 = vadd.f32 %v1676_v53, %v1613_v48  ;;  %v3507_v54 = vpop.f32.mrb[38].mxu1 }
 0xebe   :  { %v1688_v10 = vadd.f32 %v3507_v54, %v1613_v48  ;;  %v1679_v55 = vpop.f32.mrb[39].mxu1 }
 0xebf   :  { %v1598_v31 = vadd.f32 %v1596_v21, %v1590_v29  ;;  %v1591_v37 = vmul.f32 %v1588_v42, %v1583_v28  ;;  %v1680_v56 = vadd.f32 %v1679_v55, %v1613_v48 }
 0xec0   :  { %v3824_v17 = vpop.eup %3823  ;;  %v4633_v57 = vpack.c.bf16 %v1688_v10, %v1685_v0 }
 0xec1   :  { %v1584_v34 = vmul.f32 %v3824_v17, %v1552_v58  ;;  %v1698_v38 = vpack.c.bf16 %v1598_v31, %v1597_v24  ;;  %v1599_v39 = vadd.f32 %v1596_v21, %v1591_v37  ;;  %v4635_v63 = vpack.c.bf16 %v1680_v56, %v1677_v3 }
 0xec2   :  { %v1829_v58 = vsel %vm380_vm2, %v4633_v57, 0 }
 0xec3   :  { %v1592_v26 = vmul.f32 %v1588_v42, %v1584_v34  ;;  %3512 = vmatprep.mubr.msk.bf16.mxu0 %vm129_vm0, %v1698_v38  ;;  %v1782_v59 = vsel %vm380_vm2, %v4635_v63, 0 }
 0xec4   :  { %3517 = vmatpush3.bf16.xpose.msra.mxu1 %v1782_v59 }
 0xec5   :  { %v1600_v45 = vadd.f32 %v1596_v21, %v1592_v26  ;;  %3528 = vmatprep.subr.bf16.mxu1 %v4062_v43 }
 0xec7   :  { %v1699_v41 = vpack.c.bf16 %v1600_v45, %v1599_v39 }
 0xec9   :  { %3513 = vmatmul.mubr.msk.bf16.vlgmr.msra.gmra.mrb[40].mxu0 %vm129_vm0, %v1699_v41 }
 0xeca   :  { %3524 = vmatprep.mubr.msk.bf16.mxu0 %vm4063_vm1, %v4062_v43  ;;  %3523 = vmatpush3.bf16.xpose.msra.mxu0 %v1829_v58 }
 0xecb   :  { %3534 = vmatprep.subr.bf16.mxu0 %v4062_v43 }
 0xf9c   :  { %v3514_v1 = vpop.f32.mrb[40].mxu0 }
 0xf9d   :  { %v1756_v11 = vpop.f32.mrb[41].mxu0  ;;  %v1765_v2 = vadd.f32 %v3514_v1, %v1703_v62 }
 0xf9e   :  { %v3515_v20 = vpop.f32.mrb[42].mxu0  ;;  %v1757_v4 = vadd.f32 %v1756_v11, %v1703_v62 }
 0xf9f   :  { %v1768_v15 = vadd.f32 %v3515_v20, %v1703_v62  ;;  %v1759_v19 = vpop.f32.mrb[43].mxu0 }
 0xfa0   :  { %v1760_v5 = vadd.f32 %v1759_v19, %v1703_v62 }
 0xfa1   :  { %v4647_v6 = vpack.c.bf16 %v1768_v15, %v1765_v2 }
 0xfa2   :  { %v4649_v7 = vpack.c.bf16 %v1760_v5, %v1757_v4 }
 0xfa3   :  { %3525 = vmatmul.mubr.msk.bf16.vlgmr.msra.gmra.mrb[44].mxu0 %vm380_vm2, %v4647_v6 }
 0xfa4   :  { %3519 = vmatmul.mubr.msk.bf16.vlgmr.msra.gmra.mrb[40].mxu1 %vm380_vm2, %v4649_v7  ;;  %3536 = vmatprep.mubr.msk.bf16.mxu0 %vm4063_vm1, %v4062_v43 }
 0xfa5   :  { %3530 = vmatprep.mubr.msk.bf16.mxu1 %vm4063_vm1, %v4062_v43 }
0x1076   :  { %v1865_v32 = vpop.f32.mrb[44].mxu0 }
0x1077   :  { %v1818_v8 = vpop.f32.mrb[40].mxu1  ;;  %v3526_v9 = vpop.f32.mrb[45].mxu0  ;;  %v1874_v23 = vmul.f32 0.35355338, %v1865_v32 }
0x1078   :  { %v1872_v12 = vmul.f32 0.35355338, %v1818_v8  ;;  %v3520_v13 = vpop.f32.mrb[41].mxu1  ;;  %v1868_v18 = vpop.f32.mrb[46].mxu0 }
0x1079   :  { %v1821_v50 = vpop.f32.mrb[42].mxu1  ;;  %v3527_v47 = vpop.f32.mrb[47].mxu0  ;;  %v1875_v16 = vmul.f32 0.35355338, %v1868_v18  ;;  %v1882_v14 = vsel %vm1446_vm4, %v1874_v23, -inf }
0x107a   :  { %v1873_v33 = vmul.f32 0.35355338, %v1821_v50  ;;  %v3521_v42 = vpop.f32.mrb[43].mxu1  ;;  %v1876_v44 = vsel %vm1446_vm4, %v1872_v12, -inf }
0x107b   :  { %1877 = vmax.xlane.f32.xlu0 %v1876_v44  ;;  %v1885_v21 = vsel %vm1446_vm4, %v1875_v16, -inf }
0x107c   :  { %v1879_v25 = vsel %vm1446_vm4, %v1873_v33, -inf }
0x107d   :  { %1880 = vmax.xlane.f32.xlu1 %v1879_v25 }
0x107f   :  { %1883 = vmax.xlane.f32.xlu0 %v1882_v14 }
0x1081   :  { %1886 = vmax.xlane.f32.xlu1 %v1885_v21 }
0x1092   :  { %1971 = vrot.lane.b32.xlu1 %v4633_v57, %s4064_s3 }
0x1096   :  { %2021 = vrot.lane.b32.xlu1 %v4635_v63, %s4065_s21 }
0x1108   :  { %v1878_v46 = vpop.xlane.xlu0 %1877 }
0x1109   :  { %v1888_v52 = vsub.f32 %v1872_v12, %v1878_v46 }
0x110a   :  { %v1881_v22 = vpop.xlane.xlu1 %1880 }
0x110b   :  { %v1889_v29 = vsub.f32 %v1873_v33, %v1881_v22  ;;  %v1892_v31 = vmul.f32 1.442695, %v1888_v52 }
0x110c   :  { %v1884_v28 = vpop.xlane.xlu0 %1883 }
0x110d   :  { %v1890_v24 = vsub.f32 %v1874_v23, %v1884_v28  ;;  %v1894_v38 = vmul.f32 1.442695, %v1889_v29 }
0x110e   :  { %v1887_v17 = vpop.xlane.xlu1 %1886 }
0x110f   :  { %v1896_v37 = vmul.f32 1.442695, %v1890_v24  ;;  %v1891_v34 = vsub.f32 %v1875_v16, %v1887_v17 }
0x1111   :  { %3825 = vpow2.f32 %v1896_v37  ;;  %v1898_v26 = vmul.f32 1.442695, %v1891_v34 }
0x1112   :  { %3827 = vpow2.f32 %v1892_v31  ;;  %v1972_v39 = vpop.permute.xlu1 %1971 }
0x1113   :  { %3829 = vpow2.f32 %v1898_v26  ;;  %3535 = vmatpush3.bf16.msra.mxu0 %v1972_v39 }
0x1114   :  { %3546 = vmatprep.subr.bf16.mxu0 %v4062_v43  ;;  %3831 = vpow2.f32 %v1894_v38 }
0x1116   :  { %v2022_v54 = vpop.permute.xlu1 %2021 }
0x1117   :  { %v2027_v12 = vsel %vm380_vm2, %v2022_v54, 0 }
0x111b   :  { %v3826_v45 = vpop.eup %3825 }
0x111c   :  { %v3828_v41 = vpop.eup %3827  ;;  %v1906_v36 = vsel %vm1446_vm4, %v3826_v45, 0.0 }
0x111d   :  { %v3830_v48 = vpop.eup %3829  ;;  %1907 = vadd.xlane.f32.xlu0 %v1906_v36  ;;  %v1900_v53 = vsel %vm1446_vm4, %v3828_v41, 0.0 }
0x111e   :  { %v1909_v51 = vsel %vm1446_vm4, %v3830_v48, 0.0  ;;  %v3832_v0 = vpop.eup %3831 }
0x111f   :  { %1910 = vadd.xlane.f32.xlu1 %v1909_v51  ;;  %v1903_v3 = vsel %vm1446_vm4, %v3832_v0, 0.0 }
0x1121   :  { %1901 = vadd.xlane.f32.xlu0 %v1900_v53 }
0x1123   :  { %1904 = vadd.xlane.f32.xlu1 %v1903_v3 }
0x1134   :  { %2073 = vrot.lane.b32.xlu1 %v4633_v57, %s4065_s21 }
0x1137   :  { %1923 = vrot.lane.b32.xlu0 %v4635_v63, %s4064_s3 }
0x1138   :  { %2071 = vrot.lane.b32.xlu1 %v4647_v6, %s4065_s21 }
0x113b   :  { %2019 = vrot.lane.b32.xlu0 %v4649_v7, %s4065_s21 }
0x11aa   :  { %v1908_v10 = vpop.xlane.xlu0 %1907 }
0x11ab   :  { %3833 = vrcp.f32 %v1908_v10 }
0x11ac   :  { %v1911_v55 = vpop.xlane.xlu1 %1910 }
0x11ad   :  { %3835 = vrcp.f32 %v1911_v55 }
0x11ae   :  { %v1902_v56 = vpop.xlane.xlu0 %1901 }
0x11af   :  { %3837 = vrcp.f32 %v1902_v56 }
0x11b0   :  { %v1905_v58 = vpop.xlane.xlu1 %1904 }
0x11b1   :  { %3839 = vrcp.f32 %v1905_v58 }
0x11b2   :  { %v1924_v59 = vpop.permute.xlu0 %1923 }
0x11b3   :  { %3529 = vmatpush3.bf16.msra.mxu1 %v1924_v59 }
0x11b4   :  { %3540 = vmatprep.subr.bf16.mxu1 %v4062_v43  ;;  %v2074_v15 = vpop.permute.xlu1 %2073 }
0x11b5   :  { %v3834_v62 = vpop.eup %3833  ;;  %v2079_v8 = vsel %vm380_vm2, %v2074_v15, 0 }
0x11b6   :  { %v1918_v11 = vmul.f32 %v3834_v62, %v3826_v45  ;;  %v2020_v18 = vpop.permute.xlu0 %2019 }
0x11b7   :  { %v3836_v1 = vpop.eup %3835 }
0x11b8   :  { %v1919_v20 = vmul.f32 %v3836_v1, %v3830_v48  ;;  %v2072_v13 = vpop.permute.xlu1 %2071 }
0x11b9   :  { %v3838_v2 = vpop.eup %3837 }
0x11ba   :  { %v1921_v19 = vpack.c.bf16 %v1919_v20, %v1918_v11  ;;  %v1916_v5 = vmul.f32 %v3838_v2, %v3828_v41 }
0x11bb   :  { %v3840_v4 = vpop.eup %3839 }
0x11bc   :  { %v1917_v32 = vmul.f32 %v3840_v4, %v3832_v0  ;;  %3537 = vmatmul.mubr.msk.bf16.vlgmr.msra.gmra.mrb[48].mxu0 %vm1446_vm4, %v1921_v19 }
0x11bd   :  { %3547 = vmatpush3.bf16.xpose.msra.mxu0 %v2079_v8  ;;  %3548 = vmatprep.mubr.msk.bf16.mxu0 %vm4063_vm1, %v4062_v43 }
0x11be   :  { %v1920_v9 = vpack.c.bf16 %v1917_v32, %v1916_v5  ;;  %3558 = vmatprep.subr.bf16.mxu0 %v4062_v43 }
0x11c0   :  { %3531 = vmatmul.mubr.msk.bf16.vlgmr.msra.gmra.mrb[44].mxu1 %vm1446_vm4, %v1920_v9 }
0x11c1   :  { %3541 = vmatpush3.bf16.xpose.msra.mxu1 %v2027_v12  ;;  %3542 = vmatprep.mubr.msk.bf16.mxu1 %vm4063_vm1, %v4062_v43 }
0x11c2   :  { %3552 = vmatprep.subr.bf16.mxu1 %v4062_v43 }
0x11c4   :  { %3549 = vmatmul.mubr.msk.bf16.vlgmr.msra.gmra.mrb[52].mxu0 %vm380_vm2, %v2072_v13 }
0x11c5   :  { %3560 = vmatprep.mubr.msk.bf16.mxu0 %vm4063_vm1, %v4062_v43 }
0x11c8   :  { %3543 = vmatmul.mubr.msk.bf16.vlgmr.msra.gmra.mrb[48].mxu1 %vm380_vm2, %v2020_v18 }
0x11c9   :  { %3554 = vmatprep.mubr.msk.bf16.mxu1 %vm4063_vm1, %v4062_v43 }
0x128f   :  { %v4697_v50 = vpop.f32.mrb[48].mxu0 }
0x1290   :  { %v3538_v47 = vpop.f32.mrb[49].mxu0 }
0x1291   :  { %v4699_v23 = vpop.f32.mrb[50].mxu0 }
0x1292   :  { %v3539_v33 = vpop.f32.mrb[51].mxu0 }
0x1293   :  { %v4701_v42 = vpop.f32.mrb[44].mxu1 }
0x1294   :  { %v3532_v44 = vpop.f32.mrb[45].mxu1 }
0x1295   :  { %v4703_v16 = vpop.f32.mrb[46].mxu1 }
0x1296   :  { %v3533_v25 = vpop.f32.mrb[47].mxu1 }
0x1297   :  { %v2115_v14 = vpop.f32.mrb[52].mxu0 }
0x1298   :  { %v3550_v21 = vpop.f32.mrb[53].mxu0  ;;  %v2124_v31 = vmul.f32 0.35355338, %v2115_v14 }
0x1299   :  { %v2118_v46 = vpop.f32.mrb[54].mxu0 }
0x129a   :  { %v3551_v52 = vpop.f32.mrb[55].mxu0  ;;  %v2125_v26 = vmul.f32 0.35355338, %v2118_v46  ;;  %v2132_v39 = vsel %vm1446_vm4, %v2124_v31, -inf }
0x129b   :  { %v2063_v22 = vpop.f32.mrb[48].mxu1 }
0x129c   :  { %v2122_v28 = vmul.f32 0.35355338, %v2063_v22  ;;  %v3544_v29 = vpop.f32.mrb[49].mxu1  ;;  %v2135_v45 = vsel %vm1446_vm4, %v2125_v26, -inf }
0x129d   :  { %v2066_v24 = vpop.f32.mrb[50].mxu1 }
0x129e   :  { %v2123_v17 = vmul.f32 0.35355338, %v2066_v24  ;;  %v3545_v37 = vpop.f32.mrb[51].mxu1  ;;  %v2126_v34 = vsel %vm1446_vm4, %v2122_v28, -inf }
0x129f   :  { %2127 = vmax.xlane.f32.xlu0 %v2126_v34 }
0x12a0   :  { %v2129_v38 = vsel %vm1446_vm4, %v2123_v17, -inf }
0x12a1   :  { %2130 = vmax.xlane.f32.xlu1 %v2129_v38 }
0x12a3   :  { %2133 = vmax.xlane.f32.xlu0 %v2132_v39 }
0x12a7   :  { %2136 = vmax.xlane.f32.xlu0 %v2135_v45 }
0x12b2   :  { %2219 = vrot.lane.b32.xlu1 %v4633_v57, %s4066_s7 }
0x12b6   :  { %2268 = vrot.lane.b32.xlu1 %v4635_v63, %s4067_s13 }
0x132c   :  { %v2128_v41 = vpop.xlane.xlu0 %2127 }
0x132d   :  { %v2138_v48 = vsub.f32 %v2122_v28, %v2128_v41 }
0x132e   :  { %v2131_v36 = vpop.xlane.xlu1 %2130 }
0x132f   :  { %v2142_v3 = vmul.f32 1.442695, %v2138_v48  ;;  %v2139_v54 = vsub.f32 %v2123_v17, %v2131_v36 }
0x1330   :  { %v2134_v51 = vpop.xlane.xlu0 %2133 }
0x1331   :  { %v2140_v0 = vsub.f32 %v2124_v31, %v2134_v51  ;;  %v2144_v58 = vmul.f32 1.442695, %v2139_v54 }
0x1332   :  { %v2220_v53 = vpop.permute.xlu1 %2219 }
0x1333   :  { %v2146_v10 = vmul.f32 1.442695, %v2140_v0  ;;  %3559 = vmatpush3.bf16.msra.mxu0 %v2220_v53 }
0x1334   :  { %v2137_v55 = vpop.xlane.xlu0 %2136  ;;  %3570 = vmatprep.subr.bf16.mxu0 %v4062_v43 }
0x1335   :  { %3841 = vpow2.f32 %v2146_v10  ;;  %v2141_v56 = vsub.f32 %v2125_v26, %v2137_v55 }
0x1336   :  { %3843 = vpow2.f32 %v2142_v3  ;;  %v2269_v5 = vpop.permute.xlu1 %2268 }
0x1337   :  { %v2148_v59 = vmul.f32 1.442695, %v2141_v56  ;;  %v2274_v24 = vsel %vm380_vm2, %v2269_v5, 0 }
0x1339   :  { %3845 = vpow2.f32 %v2148_v59 }
0x133a   :  { %3847 = vpow2.f32 %v2144_v58 }
0x133f   :  { %v3842_v62 = vpop.eup %3841 }
0x1340   :  { %v2156_v1 = vsel %vm1446_vm4, %v3842_v62, 0.0  ;;  %v3844_v11 = vpop.eup %3843 }
0x1341   :  { %2157 = vadd.xlane.f32.xlu0 %v2156_v1  ;;  %v2150_v2 = vsel %vm1446_vm4, %v3844_v11, 0.0 }
0x1343   :  { %v3846_v20 = vpop.eup %3845 }
0x1344   :  { %v2159_v15 = vsel %vm1446_vm4, %v3846_v20, 0.0  ;;  %v3848_v19 = vpop.eup %3847 }
0x1345   :  { %2151 = vadd.xlane.f32.xlu0 %v2150_v2  ;;  %2160 = vadd.xlane.f32.xlu1 %v2159_v15  ;;  %v2153_v4 = vsel %vm1446_vm4, %v3848_v19, 0.0 }
0x1349   :  { %2154 = vadd.xlane.f32.xlu1 %v2153_v4 }
0x135a   :  { %2319 = vrot.lane.b32.xlu1 %v4633_v57, %s4067_s13 }
0x135b   :  { %2172 = vrot.lane.b32.xlu0 %v4635_v63, %s4066_s7 }
0x135e   :  { %2317 = vrot.lane.b32.xlu1 %v4647_v6, %s4067_s13 }
0x135f   :  { %2266 = vrot.lane.b32.xlu0 %v4649_v7, %s4067_s13 }
0x13ce   :  { %v2158_v32 = vpop.xlane.xlu0 %2157 }
0x13cf   :  { %3849 = vrcp.f32 %v2158_v32 }
0x13d2   :  { %v2152_v8 = vpop.xlane.xlu0 %2151  ;;  %v2161_v9 = vpop.xlane.xlu1 %2160 }
0x13d3   :  { %3851 = vrcp.f32 %v2161_v9 }
0x13d4   :  { %3853 = vrcp.f32 %v2152_v8 }
0x13d6   :  { %v2173_v12 = vpop.permute.xlu0 %2172  ;;  %v2155_v13 = vpop.xlane.xlu1 %2154 }
0x13d7   :  { %3855 = vrcp.f32 %v2155_v13  ;;  %3553 = vmatpush3.bf16.msra.mxu1 %v2173_v12 }
0x13d8   :  { %3564 = vmatprep.subr.bf16.mxu1 %v4062_v43 }
0x13d9   :  { %v3850_v18 = vpop.eup %3849 }
0x13da   :  { %v2168_v44 = vmul.f32 %v3850_v18, %v3842_v62  ;;  %v2320_v14 = vpop.permute.xlu1 %2319  ;;  %v2267_v17 = vpop.permute.xlu0 %2266 }
0x13db   :  { %v2325_v28 = vsel %vm380_vm2, %v2320_v14, 0 }
0x13dd   :  { %v3852_v47 = vpop.eup %3851 }
0x13de   :  { %v3854_v33 = vpop.eup %3853  ;;  %v2169_v25 = vmul.f32 %v3852_v47, %v3846_v20  ;;  %v2318_v31 = vpop.permute.xlu1 %2317 }
0x13df   :  { %v2166_v52 = vmul.f32 %v3854_v33, %v3844_v11 }
0x13e0   :  { %v2171_v46 = vpack.c.bf16 %v2169_v25, %v2168_v44 }
0x13e1   :  { %v3856_v21 = vpop.eup %3855 }
0x13e2   :  { %v2167_v22 = vmul.f32 %v3856_v21, %v3848_v19  ;;  %3561 = vmatmul.mubr.msk.bf16.vlgmr.msra.gmra.mrb[56].mxu0 %vm1446_vm4, %v2171_v46 }
0x13e3   :  { %3571 = vmatpush3.bf16.xpose.msra.mxu0 %v2325_v28  ;;  %3572 = vmatprep.mubr.msk.bf16.mxu0 %vm4063_vm1, %v4062_v43 }
0x13e4   :  { %v2170_v29 = vpack.c.bf16 %v2167_v22, %v2166_v52  ;;  %3582 = vmatprep.subr.bf16.mxu0 %v4062_v43 }
0x13e6   :  { %3555 = vmatmul.mubr.msk.bf16.vlgmr.msra.gmra.mrb[52].mxu1 %vm1446_vm4, %v2170_v29 }
0x13e7   :  { %3565 = vmatpush3.bf16.xpose.msra.mxu1 %v2274_v24  ;;  %3566 = vmatprep.mubr.msk.bf16.mxu1 %vm4063_vm1, %v4062_v43 }
0x13e8   :  { %3576 = vmatprep.subr.bf16.mxu1 %v4062_v43 }
0x13ea   :  { %3573 = vmatmul.mubr.msk.bf16.vlgmr.msra.gmra.mrb[60].mxu0 %vm380_vm2, %v2318_v31 }
0x13eb   :  { %3584 = vmatprep.mubr.msk.bf16.mxu0 %vm4063_vm1, %v4062_v43 }
0x13ee   :  { %3567 = vmatmul.mubr.msk.bf16.vlgmr.msra.gmra.mrb[56].mxu1 %vm380_vm2, %v2267_v17 }
0x13ef   :  { %3578 = vmatprep.mubr.msk.bf16.mxu1 %vm4063_vm1, %v4062_v43 }
0x14b5   :  { %v4743_v37 = vpop.f32.mrb[56].mxu0 }
0x14b6   :  { %v3562_v34 = vpop.f32.mrb[57].mxu0 }
0x14b7   :  { %v4745_v38 = vpop.f32.mrb[58].mxu0 }
0x14b8   :  { %v3696_v26 = vpack.i.bf16 %v4745_v38, %v4743_v37  ;;  %v3563_v39 = vpop.f32.mrb[59].mxu0 }
0x14b9   :  { %v4749_v45 = vpop.f32.mrb[52].mxu1 }
0x14ba   :  { %v3556_v41 = vpop.f32.mrb[53].mxu1 }
0x14bb   :  { %v4751_v36 = vpop.f32.mrb[54].mxu1 }
0x14bc   :  { %v3691_v48 = vpack.i.bf16 %v4751_v36, %v4749_v45  ;;  %v3557_v51 = vpop.f32.mrb[55].mxu1 }
0x14bd   :  { %v2361_v0 = vpop.f32.mrb[60].mxu0 }
0x14be   :  { %v3574_v53 = vpop.f32.mrb[61].mxu0  ;;  %v2370_v59 = vmul.f32 0.35355338, %v2361_v0 }
0x14bf   :  { %v2364_v3 = vpop.f32.mrb[62].mxu0 }
0x14c0   :  { %v3575_v54 = vpop.f32.mrb[63].mxu0  ;;  %v2371_v2 = vmul.f32 0.35355338, %v2364_v3  ;;  %v2378_v15 = vsel %vm1446_vm4, %v2370_v59, -inf }
0x14c1   :  { %v2310_v10 = vpop.f32.mrb[56].mxu1 }
0x14c2   :  { %v2368_v55 = vmul.f32 0.35355338, %v2310_v10  ;;  %v3568_v56 = vpop.f32.mrb[57].mxu1  ;;  %v2381_v19 = vsel %vm1446_vm4, %v2371_v2, -inf }
0x14c3   :  { %v2313_v58 = vpop.f32.mrb[58].mxu1 }
0x14c4   :  { %v2369_v62 = vmul.f32 0.35355338, %v2313_v58  ;;  %v3569_v1 = vpop.f32.mrb[59].mxu1  ;;  %v2372_v11 = vsel %vm1446_vm4, %v2368_v55, -inf }
0x14c5   :  { %2373 = vmax.xlane.f32.xlu0 %v2372_v11 }
0x14c6   :  { %v2375_v20 = vsel %vm1446_vm4, %v2369_v62, -inf }
0x14c7   :  { %2376 = vmax.xlane.f32.xlu1 %v2375_v20 }
0x14c9   :  { %2379 = vmax.xlane.f32.xlu0 %v2378_v15 }
0x14cd   :  { %2382 = vmax.xlane.f32.xlu0 %v2381_v19 }
0x14d8   :  { %2465 = vrot.lane.b32.xlu1 %v4633_v57, %s4068_s14 }
0x14dc   :  { %2514 = vrot.lane.b32.xlu1 %v4635_v63, %s4069_s22 }
0x1552   :  { %v2374_v4 = vpop.xlane.xlu0 %2373 }
0x1553   :  { %v2384_v32 = vsub.f32 %v2368_v55, %v2374_v4 }
0x1554   :  { %v2377_v5 = vpop.xlane.xlu1 %2376 }
0x1555   :  { %v2388_v13 = vmul.f32 1.442695, %v2384_v32  ;;  %v2385_v18 = vsub.f32 %v2369_v62, %v2377_v5 }
0x1556   :  { %v2380_v8 = vpop.xlane.xlu0 %2379 }
0x1557   :  { %v2386_v9 = vsub.f32 %v2370_v59, %v2380_v8  ;;  %v2390_v25 = vmul.f32 1.442695, %v2385_v18 }
0x1558   :  { %v2466_v12 = vpop.permute.xlu1 %2465 }
0x1559   :  { %v2392_v47 = vmul.f32 1.442695, %v2386_v9  ;;  %3583 = vmatpush3.bf16.msra.mxu0 %v2466_v12 }
0x155a   :  { %v2383_v33 = vpop.xlane.xlu0 %2382  ;;  %3594 = vmatprep.subr.bf16.mxu0 %v4062_v43 }
0x155b   :  { %3857 = vpow2.f32 %v2392_v47  ;;  %v2387_v44 = vsub.f32 %v2371_v2, %v2383_v33 }
0x155c   :  { %3859 = vpow2.f32 %v2388_v13  ;;  %v2515_v17 = vpop.permute.xlu1 %2514 }
0x155d   :  { %v2394_v14 = vmul.f32 1.442695, %v2387_v44  ;;  %v2520_v11 = vsel %vm380_vm2, %v2515_v17, 0 }
0x155f   :  { %3861 = vpow2.f32 %v2394_v14 }
0x1560   :  { %3863 = vpow2.f32 %v2390_v25 }
0x1565   :  { %v3858_v21 = vpop.eup %3857 }
0x1566   :  { %v2402_v46 = vsel %vm1446_vm4, %v3858_v21, 0.0  ;;  %v3860_v52 = vpop.eup %3859 }
0x1567   :  { %2403 = vadd.xlane.f32.xlu0 %v2402_v46  ;;  %v2396_v28 = vsel %vm1446_vm4, %v3860_v52, 0.0 }
0x1569   :  { %v3862_v22 = vpop.eup %3861 }
0x156a   :  { %v2405_v29 = vsel %vm1446_vm4, %v3862_v22, 0.0  ;;  %v3864_v24 = vpop.eup %3863 }
0x156b   :  { %2397 = vadd.xlane.f32.xlu0 %v2396_v28  ;;  %2406 = vadd.xlane.f32.xlu1 %v2405_v29  ;;  %v2399_v31 = vsel %vm1446_vm4, %v3864_v24, 0.0 }
0x156f   :  { %2400 = vadd.xlane.f32.xlu1 %v2399_v31 }
0x1580   :  { %2565 = vrot.lane.b32.xlu1 %v4633_v57, %s4069_s22 }
0x1581   :  { %2418 = vrot.lane.b32.xlu0 %v4635_v63, %s4068_s14 }
0x1584   :  { %2563 = vrot.lane.b32.xlu1 %v4647_v6, %s4069_s22 }
0x1585   :  { %2512 = vrot.lane.b32.xlu0 %v4649_v7, %s4069_s22 }
0x15f4   :  { %v2404_v34 = vpop.xlane.xlu0 %2403 }
0x15f5   :  { %3865 = vrcp.f32 %v2404_v34 }
0x15f8   :  { %v2398_v39 = vpop.xlane.xlu0 %2397  ;;  %v2407_v41 = vpop.xlane.xlu1 %2406 }
0x15f9   :  { %3867 = vrcp.f32 %v2407_v41 }
0x15fa   :  { %3869 = vrcp.f32 %v2398_v39 }
0x15fc   :  { %v2419_v51 = vpop.permute.xlu0 %2418  ;;  %v2401_v0 = vpop.xlane.xlu1 %2400 }
0x15fd   :  { %3871 = vrcp.f32 %v2401_v0  ;;  %3577 = vmatpush3.bf16.msra.mxu1 %v2419_v51 }
0x15fe   :  { %3588 = vmatprep.subr.bf16.mxu1 %v4062_v43 }
0x15ff   :  { %v3866_v53 = vpop.eup %3865 }
0x1600   :  { %v2414_v6 = vmul.f32 %v3866_v53, %v3858_v21  ;;  %v2566_v55 = vpop.permute.xlu1 %2565  ;;  %v2513_v2 = vpop.permute.xlu0 %2512 }
0x1601   :  { %v2571_v62 = vsel %vm380_vm2, %v2566_v55, 0 }
0x1603   :  { %v3868_v3 = vpop.eup %3867 }
0x1604   :  { %v3870_v54 = vpop.eup %3869  ;;  %v2415_v10 = vmul.f32 %v3868_v3, %v3862_v22  ;;  %v2564_v20 = vpop.permute.xlu1 %2563 }
0x1605   :  { %v2412_v58 = vmul.f32 %v3870_v54, %v3860_v52 }
0x1606   :  { %v2417_v56 = vpack.c.bf16 %v2415_v10, %v2414_v6 }
0x1607   :  { %v3872_v7 = vpop.eup %3871 }
0x1608   :  { %v2413_v59 = vmul.f32 %v3872_v7, %v3864_v24  ;;  %3585 = vmatmul.mubr.msk.bf16.vlgmr.msra.gmra.mrb[64].mxu0 %vm1446_vm4, %v2417_v56 }
0x1609   :  { %3595 = vmatpush3.bf16.xpose.msra.mxu0 %v2571_v62  ;;  %3596 = vmatprep.mubr.msk.bf16.mxu0 %vm4063_vm1, %v4062_v43 }
0x160a   :  { %v2416_v1 = vpack.c.bf16 %v2413_v59, %v2412_v58  ;;  %3606 = vmatprep.subr.bf16.mxu0 %v4062_v43 }
0x160c   :  { %3579 = vmatmul.mubr.msk.bf16.vlgmr.msra.gmra.mrb[60].mxu1 %vm1446_vm4, %v2416_v1 }
0x160d   :  { %3589 = vmatpush3.bf16.xpose.msra.mxu1 %v2520_v11  ;;  %3590 = vmatprep.mubr.msk.bf16.mxu1 %vm4063_vm1, %v4062_v43 }
0x160e   :  { %3600 = vmatprep.subr.bf16.mxu1 %v4062_v43 }
0x1610   :  { %3597 = vmatmul.mubr.msk.bf16.vlgmr.msra.gmra.mrb[68].mxu0 %vm380_vm2, %v2564_v20 }
0x1611   :  { %3608 = vmatprep.mubr.msk.bf16.mxu0 %vm4063_vm1, %v4062_v43 }
0x1614   :  { %3591 = vmatmul.mubr.msk.bf16.vlgmr.msra.gmra.mrb[64].mxu1 %vm380_vm2, %v2513_v2 }
0x1615   :  { %3602 = vmatprep.mubr.msk.bf16.mxu1 %vm4063_vm1, %v4062_v43 }
0x16db   :  { %v4793_v15 = vpop.f32.mrb[64].mxu0 }
0x16dc   :  { %v3586_v19 = vpop.f32.mrb[65].mxu0 }
0x16dd   :  { %v2508_v4 = vpop.f32.mrb[66].mxu0 }
0x16de   :  { %v3706_v5 = vpack.i.bf16 %v2508_v4, %v4793_v15  ;;  %v3587_v32 = vpop.f32.mrb[67].mxu0 }
0x16df   :  { %v2458_v8 = vpop.f32.mrb[60].mxu1 }
0x16e0   :  { %v3580_v9 = vpop.f32.mrb[61].mxu1 }
0x16e1   :  { %v2461_v12 = vpop.f32.mrb[62].mxu1 }
0x16e2   :  { %v3701_v13 = vpack.i.bf16 %v2461_v12, %v2458_v8  ;;  %v3581_v18 = vpop.f32.mrb[63].mxu1 }
0x16e3   :  { %v2607_v47 = vpop.f32.mrb[68].mxu0  ;;  %v3733_v18 = vld [vmem:[%s4934_s5 + $0x30] sm:$0xff]  }
0x16e4   :  { %v3598_v33 = vpop.f32.mrb[69].mxu0  ;;  %v2616_v52 = vmul.f32 0.35355338, %v2607_v47  ;;  %v3734_v47 = vld [vmem:[%s4934_s5 + $0x38] sm:$0xff]  }
0x16e5   :  { %v2610_v44 = vpop.f32.mrb[70].mxu0 }
0x16e6   :  { %v3599_v25 = vpop.f32.mrb[71].mxu0  ;;  %v2617_v31 = vmul.f32 0.35355338, %v2610_v44  ;;  %v2624_v17 = vsel %vm1446_vm4, %v2616_v52, -inf }
0x16e7   :  { %v2556_v14 = vpop.f32.mrb[64].mxu1 }
0x16e8   :  { %v2614_v21 = vmul.f32 0.35355338, %v2556_v14  ;;  %v3592_v46 = vpop.f32.mrb[65].mxu1  ;;  %v2627_v34 = vsel %vm1446_vm4, %v2617_v31, -inf }
0x16e9   :  { %v2559_v43 = vpop.f32.mrb[66].mxu1 }
0x16ea   :  { %v2615_v22 = vmul.f32 0.35355338, %v2559_v43  ;;  %v3593_v28 = vpop.f32.mrb[67].mxu1  ;;  %v2618_v29 = vsel %vm1446_vm4, %v2614_v21, -inf }
0x16eb   :  { %2619 = vmax.xlane.f32.xlu0 %v2618_v29 }
0x16ec   :  { %v2621_v24 = vsel %vm1446_vm4, %v2615_v22, -inf }
0x16ed   :  { %2622 = vmax.xlane.f32.xlu1 %v2621_v24 }
0x16ef   :  { %2625 = vmax.xlane.f32.xlu0 %v2624_v17 }
0x16f3   :  { %2628 = vmax.xlane.f32.xlu0 %v2627_v34 }
0x1778   :  { %v2620_v39 = vpop.xlane.xlu0 %2619 }
0x1779   :  { %v2630_v41 = vsub.f32 %v2614_v21, %v2620_v39 }
0x177a   :  { %v2623_v51 = vpop.xlane.xlu1 %2622 }
0x177b   :  { %v2634_v3 = vmul.f32 1.442695, %v2630_v41  ;;  %v2631_v54 = vsub.f32 %v2615_v22, %v2623_v51 }
0x177c   :  { %v2626_v0 = vpop.xlane.xlu0 %2625 }
0x177d   :  { %v2632_v53 = vsub.f32 %v2616_v52, %v2626_v0  ;;  %v2636_v7 = vmul.f32 1.442695, %v2631_v54 }
0x177f   :  { %v2638_v6 = vmul.f32 1.442695, %v2632_v53 }
0x1780   :  { %v2629_v10 = vpop.xlane.xlu0 %2628 }
0x1781   :  { %3873 = vpow2.f32 %v2638_v6  ;;  %v2633_v55 = vsub.f32 %v2617_v31, %v2629_v10 }
0x1782   :  { %3875 = vpow2.f32 %v2634_v3 }
0x1783   :  { %v2640_v56 = vmul.f32 1.442695, %v2633_v55 }
0x1785   :  { %3877 = vpow2.f32 %v2640_v56 }
0x1786   :  { %3879 = vpow2.f32 %v2636_v7 }
0x178b   :  { %v3874_v58 = vpop.eup %3873 }
0x178c   :  { %v2648_v59 = vsel %vm1446_vm4, %v3874_v58, 0.0  ;;  %v3876_v62 = vpop.eup %3875 }
0x178d   :  { %2649 = vadd.xlane.f32.xlu0 %v2648_v59  ;;  %v2642_v11 = vsel %vm1446_vm4, %v3876_v62, 0.0 }
0x178f   :  { %v3878_v1 = vpop.eup %3877 }
0x1790   :  { %v2651_v20 = vsel %vm1446_vm4, %v3878_v1, 0.0  ;;  %v3880_v2 = vpop.eup %3879 }
0x1791   :  { %2643 = vadd.xlane.f32.xlu0 %v2642_v11  ;;  %2652 = vadd.xlane.f32.xlu1 %v2651_v20  ;;  %v2645_v15 = vsel %vm1446_vm4, %v3880_v2, 0.0 }
0x1795   :  { %2646 = vadd.xlane.f32.xlu1 %v2645_v15 }
0x17a6   :  { %2711 = vrot.lane.b32.xlu1 %v4633_v57, %s4070_s1 }
0x17a7   :  { %2664 = vrot.lane.b32.xlu0 %v4635_v63, %s4070_s1 }
0x17aa   :  { %3692 = vrot.lane.b32.xlu1 %v3691_v48, %s4059_s18 }
0x17ab   :  { %3702 = vrot.lane.b32.xlu0 %v3701_v13, %s4071_s20 }
0x17ae   :  { %3697 = vrot.lane.b32.xlu1 %v3696_v26, %s4059_s18 }
0x17b2   :  { %3707 = vrot.lane.b32.xlu1 %v3706_v5, %s4071_s20 }
0x181a   :  { %v2650_v19 = vpop.xlane.xlu0 %2649 }
0x181b   :  { %3881 = vrcp.f32 %v2650_v19 }
0x181e   :  { %v2644_v57 = vpop.xlane.xlu0 %2643  ;;  %v2653_v4 = vpop.xlane.xlu1 %2652 }
0x181f   :  { %3883 = vrcp.f32 %v2653_v4 }
0x1820   :  { %3885 = vrcp.f32 %v2644_v57 }
0x1822   :  { %v2665_v63 = vpop.permute.xlu0 %2664  ;;  %v2647_v32 = vpop.xlane.xlu1 %2646 }
0x1823   :  { %3887 = vrcp.f32 %v2647_v32  ;;  %3601 = vmatpush3.bf16.msra.mxu1 %v2665_v63  ;;  %v2822_v63 = vsub.s32 3, %v4274_v61  ;;  %v4850_v32 = vld [vmem:[%s4938_s9] sm:$0xff] }
0x1824   :  { %3612 = vmatprep.subr.bf16.mxu1 %v3733_v18 }
0x1825   :  { %v3882_v36 = vpop.eup %3881 }
0x1826   :  { %v2712_v45 = vpop.permute.xlu1 %2711  ;;  %v2660_v9 = vmul.f32 %v3882_v36, %v3874_v58  ;;  %v3703_v53 = vpop.permute.xlu0 %3702 }
0x1827   :  { %3607 = vmatpush3.bf16.msra.mxu0 %v2712_v45  ;;  %v2823_v45 = vrot.slane %v4850_v32, %v2822_v63 }
0x1829   :  { %v3884_v48 = vpop.eup %3883 }
0x182a   :  { %v3886_v8 = vpop.eup %3885  ;;  %v2661_v37 = vmul.f32 %v3884_v48, %v3878_v1  ;;  %v3693_v29 = vpop.permute.xlu1 %3692  ;;  %v3704_v1 = vunpack.i.l.bf16 %v3703_v53 }
0x182b   :  { %v2658_v5 = vmul.f32 %v3886_v8, %v3876_v62  ;;  %v3695_v39 = vunpack.i.h.bf16 %v3693_v29  ;;  %v3694_v41 = vunpack.i.l.bf16 %v3693_v29  ;;  %v3705_v62 = vunpack.i.h.bf16 %v3703_v53 }
0x182c   :  { %v2663_v26 = vpack.c.bf16 %v2661_v37, %v2660_v9 }
0x182d   :  { %v3888_v38 = vpop.eup %3887  ;;  %v2807_v7 = vsel %vm380_vm2, %v4703_v16, %v3695_v39  ;;  %v2806_v56 = vsel %vm380_vm2, %v4701_v42, %v3694_v41 }
0x182e   :  { %v2659_v12 = vmul.f32 %v3888_v38, %v3880_v2  ;;  %3609 = vmatmul.mubr.msk.bf16.vlgmr.msra.gmra.mrb[72].mxu0 %vm1446_vm4, %v2663_v26  ;;  %v3698_v24 = vpop.permute.xlu1 %3697  ;;  %v2810_v19 = vsel %vm1446_vm4, %v2806_v56, %v3704_v1  ;;  %v2811_v16 = vsel %vm1446_vm4, %v2807_v7, %v3705_v62 }
0x182f   :  { %v3700_v17 = vunpack.i.h.bf16 %v3698_v24  ;;  %v3699_v34 = vunpack.i.l.bf16 %v3698_v24 }
0x1830   :  { %v2662_v13 = vpack.c.bf16 %v2659_v12, %v2658_v5 }
0x1831   :  { %v2809_v54 = vsel %vm380_vm2, %v4699_v23, %v3700_v17  ;;  %v2808_v6 = vsel %vm380_vm2, %v4697_v50, %v3699_v34 }
0x1832   :  { %3603 = vmatmul.mubr.msk.bf16.vlgmr.msra.gmra.mrb[68].mxu1 %vm1446_vm4, %v2662_v13  ;;  %v3708_v31 = vpop.permute.xlu1 %3707 }
0x1833   :  { %3613 = vmatpush3.bf16.msra.mxu1 %v3733_v18  ;;  %v3710_v51 = vunpack.i.h.bf16 %v3708_v31  ;;  %v3709_v0 = vunpack.i.l.bf16 %v3708_v31 }
0x1834   :  { %3614 = vmatprep.subr.bf16.mxu1 %v3734_v47 }
0x1835   :  { %v2812_v58 = vsel %vm1446_vm4, %v2808_v6, %v3709_v0  ;;  %v2813_v59 = vsel %vm1446_vm4, %v2809_v54, %v3710_v51  ;;  %v3736_v54 = vld [vmem:[#allocation10 + $0x8] sm:$0xff]  }
0x1837   :  { %3615 = vmatpush3.bf16.msra.mxu1 %v3734_v47 }
0x1901   :  { %v2751_v33 = vpop.f32.mrb[72].mxu0 }
0x1902   :  { %v3610_v44 = vpop.f32.mrb[73].mxu0 }
0x1903   :  { %v2754_v25 = vpop.f32.mrb[74].mxu0 }
0x1904   :  { %v3716_v14 = vpack.i.bf16 %v2754_v25, %v2751_v33  ;;  %v3611_v21 = vpop.f32.mrb[75].mxu0 }
0x1905   :  { %v2704_v46 = vpop.f32.mrb[68].mxu1 }
0x1906   :  { %v3604_v43 = vpop.f32.mrb[69].mxu1  ;;  %3717 = vrot.lane.b32.xlu1 %v3716_v14, %s4072_s27 }
0x1907   :  { %v2707_v52 = vpop.f32.mrb[70].mxu1 }
0x1908   :  { %v3711_v22 = vpack.i.bf16 %v2707_v52, %v2704_v46  ;;  %v3605_v28 = vpop.f32.mrb[71].mxu1 }
0x190a   :  { %3712 = vrot.lane.b32.xlu0 %v3711_v22, %s4072_s27 }
0x1978   :  { %v3718_v3 = vpop.permute.xlu1 %3717 }
0x1979   :  { %v3720_v10 = vunpack.i.h.bf16 %v3718_v3  ;;  %v3719_v55 = vunpack.i.l.bf16 %v3718_v3  ;;  %v3735_v3 = vld [vmem:[#allocation10] sm:$0xff]  }
0x197a   :  { %3620 = vmatprep.subr.bf16.mxu0 %v3735_v3 }
0x197b   :  { %v2816_v11 = vsel %vm1451_vm5, %v2812_v58, %v3719_v55  ;;  %v2817_v23 = vsel %vm1451_vm5, %v2813_v59, %v3720_v10  ;;  %3621 = vmatpush3.bf16.msra.mxu0 %v3735_v3 }
0x197c   :  { %v3713_v20 = vpop.permute.xlu0 %3712  ;;  %v2819_v50 = vpack.c.bf16 %v2817_v23, %v2816_v11  ;;  %3622 = vmatprep.subr.bf16.mxu0 %v3736_v54 }
0x197d   :  { %v3715_v2 = vunpack.i.h.bf16 %v3713_v20  ;;  %v3714_v15 = vunpack.i.l.bf16 %v3713_v20 }
0x197f   :  { %v2815_v42 = vsel %vm1451_vm5, %v2811_v16, %v3715_v2  ;;  %v2814_v57 = vsel %vm1451_vm5, %v2810_v19, %v3714_v15  ;;  %3623 = vmatpush3.bf16.msra.mxu0 %v3736_v54 }
0x1980   :  { %v2818_v4 = vpack.c.bf16 %v2815_v42, %v2814_v57 }
0x1982   :  { %3616 = vmatprep.mubr.msk.bf16.mxu1 %vm129_vm0, %v2818_v4 }
0x1983   :  { %3617 = vmatmul.mubr.msk.bf16.vlgmr.msra.gmra.mrb[72].mxu1 %vm129_vm0, %v2819_v50  ;;  %v3912_v50 = vld [vmem:[%s4938_s9 + $0x8] sm:$0x7] }
0x1984   :  { %v2950_v2 = vrot.slane %v3912_v50, %v4562_v40  ;;  %v2958_v42 = vrot.slane %v3912_v50, %v1702_v60  ;;  %v3737_v60 = vld [vmem:[%s4937_s8] sm:$0xff]  }
0x1985   :  { %3628 = vmatprep.subr.bf16.mxu1 %v3737_v60 }
0x1986   :  { %3629 = vmatpush3.bf16.msra.mxu1 %v3737_v60 }
0x1a56   :  { %v3618_v36 = vpop.f32.mrb[72].mxu1 }
0x1a57   :  { %v2876_v48 = vpop.f32.mrb[73].mxu1  ;;  %v2885_v8 = vadd.f32 %v3618_v36, %v2823_v45 }
0x1a58   :  { %v2877_v9 = vadd.f32 %v2876_v48, %v2823_v45  ;;  %v3619_v37 = vpop.f32.mrb[74].mxu1 }
0x1a59   :  { %v2879_v38 = vpop.f32.mrb[75].mxu1  ;;  %v4857_v12 = vadd.f32 %v2885_v8, %v4579_v27  ;;  %v2888_v13 = vadd.f32 %v3619_v37, %v2823_v45 }
0x1a5a   :  { %v4854_v26 = vadd.f32 %v2877_v9, %v4574_v49  ;;  %v2880_v5 = vadd.f32 %v2879_v38, %v2823_v45 }
0x1a5b   :  { %v4867_v44 = vadd.f32 %v2888_v13, %v4593_v35  ;;  %v2901_v49 = vsel %vm129_vm0, %v4857_v12, 0.0 }
0x1a5c   :  { %v4860_v18 = vadd.f32 %v2880_v5, %v4584_v30  ;;  %v2895_v47 = vsel %vm129_vm0, %v4854_v26, 0.0 }
0x1a5d   :  { %2896 = vadd.xlane.f32.xlu0 %v2895_v47  ;;  %v2904_v27 = vsel %vm129_vm0, %v4867_v44, 0.0 }
0x1a5e   :  { %v2898_v33 = vsel %vm129_vm0, %v4860_v18, 0.0 }
0x1a5f   :  { %2899 = vadd.xlane.f32.xlu1 %v2898_v33 }
0x1a61   :  { %2902 = vadd.xlane.f32.xlu0 %v2901_v49  ;;  %v3738_v49 = vld [vmem:[%s4937_s8 + $0x8] sm:$0xff]  }
0x1a62   :  { %3630 = vmatprep.subr.bf16.mxu1 %v3738_v49 }
0x1a63   :  { %3631 = vmatpush3.bf16.msra.mxu1 %v3738_v49 }
0x1a65   :  { %2905 = vadd.xlane.f32.xlu0 %v2904_v27  ;;  %v3739_v27 = vld [vmem:[%s4937_s8 + $0x10] sm:$0xff]  }
0x1a66   :  { %3632 = vmatprep.subr.bf16.mxu1 %v3739_v27 }
0x1a67   :  { %3633 = vmatpush3.bf16.msra.mxu1 %v3739_v27 }
0x1aea   :  { %v2897_v30 = vpop.xlane.xlu0 %2896 }
0x1aeb   :  { %v2907_v25 = vmul.f32 0.03125, %v2897_v30  ;;  %v3740_v30 = vld [vmem:[%s4937_s8 + $0x18] sm:$0xff]   ;;  %s4073_s8 = smov [#allocation11]  }
0x1aec   :  { %v2900_v14 = vpop.xlane.xlu1 %2899  ;;  %3634 = vmatprep.subr.bf16.mxu1 %v3740_v30 }
0x1aed   :  { %v2911_v21 = vsub.f32 %v4854_v26, %v2907_v25  ;;  %v2908_v46 = vmul.f32 0.03125, %v2900_v14  ;;  %3635 = vmatpush3.bf16.msra.mxu1 %v3740_v30  ;;  %v3272_v25 = vld [vmem:[%s4940_s11] ss:$0 sm:$0xff]  ;;  %s3189_s11 = sshll.u32 %s4073_s8, 4  ;;  %s3190_s11 = int_to_ptr.vmem [resolvable:$true] %s3189_s11 }
0x1aee   :  { %v2903_v43 = vpop.xlane.xlu0 %2902  ;;  %s4023_s0 = scalar_lea.vmem %s3190_s11, 512  ;;  %p4028_p13 = scmp.lt.s32.totalorder %s3190_s11, %s3190_s11 }
0x1aef   :  { %v2912_v52 = vsub.f32 %v4860_v18, %v2908_v46  ;;  %v2909_v22 = vmul.f32 0.03125, %v2903_v43  ;;  %v2915_v35 = vmul.f32 %v2911_v21, %v2911_v21  ;;  %p4024_p12 = scmp.ne.s32.totalorder %s3190_s11, %s4023_s0  ;;  %p4029_p0 = scmp.lt.s32.totalorder %s4023_s0, %s4023_s0 }
0x1af1   :  { %v2913_v28 = vsub.f32 %v4857_v12, %v2909_v22  ;;  %v2919_v29 = vsel %vm129_vm0, %v2915_v35, 0.0  ;;  %v2916_v24 = vmul.f32 %v2912_v52, %v2912_v52  ;;  %p4030_p1 = por %p4029_p0, %p4028_p13 }
0x1af2   :  { %2920 = vadd.xlane.f32.xlu0 %v2919_v29  ;;  %v2906_v31 = vpop.xlane.xlu0 %2905 }
0x1af3   :  { %v2910_v17 = vmul.f32 0.03125, %v2906_v31  ;;  %v2922_v34 = vsel %vm129_vm0, %v2916_v24, 0.0  ;;  %v2917_v39 = vmul.f32 %v2913_v28, %v2913_v28  ;;  %p4031_p2 = pnand %p4030_p1, %p4024_p12 }
0x1af4   :  { %2923 = vadd.xlane.f32.xlu1 %v2922_v34 }
0x1af5   :  { %v2914_v41 = vsub.f32 %v4867_v44, %v2910_v17  ;;  %v2925_v51 = vsel %vm129_vm0, %v2917_v39, 0.0 }
0x1af6   :  { %2926 = vadd.xlane.f32.xlu0 %v2925_v51 }
0x1af7   :  { %v2918_v0 = vmul.f32 %v2914_v41, %v2914_v41 }
0x1af9   :  { %v2928_v53 = vsel %vm129_vm0, %v2918_v0, 0.0 }
0x1afa   :  { %2929 = vadd.xlane.f32.xlu1 %v2928_v53 }
0x1b7f   :  { %v2921_v6 = vpop.xlane.xlu0 %2920 }
0x1b80   :  { %v2931_v10 = vmul.f32 0.03125, %v2921_v6 }
0x1b81   :  { %v2924_v55 = vpop.xlane.xlu1 %2923 }
0x1b82   :  { %v2935_v7 = vadd.f32 1e-05, %v2931_v10  ;;  %v2932_v56 = vmul.f32 0.03125, %v2924_v55 }
0x1b83   :  { %v2927_v58 = vpop.xlane.xlu0 %2926 }
0x1b84   :  { %3889 = vrsqrt.f32 %v2935_v7  ;;  %v2936_v59 = vadd.f32 1e-05, %v2932_v56  ;;  %v2933_v62 = vmul.f32 0.03125, %v2927_v58 }
0x1b86   :  { %3891 = vrsqrt.f32 %v2936_v59  ;;  %v2937_v1 = vadd.f32 1e-05, %v2933_v62 }
0x1b87   :  { %v2930_v11 = vpop.xlane.xlu1 %2929 }
0x1b88   :  { %3893 = vrsqrt.f32 %v2937_v1  ;;  %v2934_v23 = vmul.f32 0.03125, %v2930_v11 }
0x1b8a   :  { %v2938_v20 = vadd.f32 1e-05, %v2934_v23 }
0x1b8c   :  { %3895 = vrsqrt.f32 %v2938_v20 }
0x1b8e   :  { %v3890_v15 = vpop.eup %3889 }
0x1b8f   :  { %v2943_v19 = vmul.f32 %v3890_v15, %v2911_v21 }
0x1b90   :  { %v3892_v16 = vpop.eup %3891 }
0x1b91   :  { %v2944_v57 = vmul.f32 %v3892_v16, %v2912_v52  ;;  %v2951_v4 = vmul.f32 %v2950_v2, %v2943_v19 }
0x1b92   :  { %v3894_v63 = vpop.eup %3893 }
0x1b93   :  { %v2945_v45 = vmul.f32 %v3894_v63, %v2913_v28  ;;  %v2952_v36 = vmul.f32 %v2950_v2, %v2944_v57  ;;  %v2959_v48 = vadd.f32 %v2958_v42, %v2951_v4 }
0x1b95   :  { %v2960_v8 = vadd.f32 %v2958_v42, %v2952_v36  ;;  %v2953_v37 = vmul.f32 %v2950_v2, %v2945_v45 }
0x1b96   :  { %v3896_v9 = vpop.eup %3895 }
0x1b97   :  { %v2946_v38 = vmul.f32 %v3896_v9, %v2914_v41  ;;  %v2967_v5 = vpack.c.bf16 %v2960_v8, %v2959_v48  ;;  %v2961_v40 = vadd.f32 %v2958_v42, %v2953_v37  ;;  %v3174_v37 = vsub.s32 4, %v4274_v61 }
0x1b99   :  { %v2954_v13 = vmul.f32 %v2950_v2, %v2946_v38  ;;  %3624 = vmatprep.mubr.msk.bf16.mxu0 %vm129_vm0, %v2967_v5  ;;  %v3175_v38 = vrot.slane %v4850_v32, %v3174_v37 }
0x1b9b   :  { %v2962_v47 = vadd.f32 %v2958_v42, %v2954_v13 }
0x1b9d   :  { %v2968_v33 = vpack.c.bf16 %v2962_v47, %v2961_v40 }
0x1b9f   :  { %3625 = vmatmul.mubr.msk.bf16.vlgmr.msra.gmra.mrb[76].mxu0 %vm129_vm0, %v2968_v33 }
0x1c72   :  { %v3626_v14 = vpop.f32.mrb[76].mxu0 }
0x1c73   :  { %v3036_v21 = vadd.f32 %v3626_v14, %v3272_v25  ;;  %v3027_v46 = vpop.f32.mrb[77].mxu0 }
0x1c74   :  { %v3028_v43 = vadd.f32 %v3272_v25, %v3027_v46  ;;  %v3627_v52 = vpop.f32.mrb[78].mxu0 }
0x1c75   :  { %v3048_v22 = vmul.f32 %v3036_v21, %v3036_v21  ;;  %v3039_v35 = vadd.f32 %v3627_v52, %v3272_v25  ;;  %v3030_v28 = vpop.f32.mrb[79].mxu0  ;;  %v3044_v15 = vmul.f32 0.5, %v3036_v21 }
0x1c76   :  { %v3046_v29 = vmul.f32 %v3028_v43, %v3028_v43  ;;  %v3031_v24 = vadd.f32 %v3272_v25, %v3030_v28  ;;  %v3042_v42 = vmul.f32 0.5, %v3028_v43 }
0x1c77   :  { %v3052_v31 = vmul.f32 %v3048_v22, %v3036_v21  ;;  %v3049_v17 = vmul.f32 %v3039_v35, %v3039_v35  ;;  %v3045_v19 = vmul.f32 0.5, %v3039_v35 }
0x1c78   :  { %v3050_v34 = vmul.f32 %v3046_v29, %v3028_v43  ;;  %v3047_v39 = vmul.f32 %v3031_v24, %v3031_v24  ;;  %v3043_v57 = vmul.f32 0.5, %v3031_v24 }
0x1c79   :  { %v3056_v41 = vmul.f32 0.044715, %v3052_v31  ;;  %v3053_v51 = vmul.f32 %v3049_v17, %v3039_v35 }
0x1c7a   :  { %v3054_v0 = vmul.f32 0.044715, %v3050_v34  ;;  %v3051_v53 = vmul.f32 %v3047_v39, %v3031_v24 }
0x1c7b   :  { %v3060_v3 = vadd.f32 %v3056_v41, %v3036_v21  ;;  %v3057_v54 = vmul.f32 0.044715, %v3053_v51 }
0x1c7c   :  { %v3058_v6 = vadd.f32 %v3054_v0, %v3028_v43  ;;  %v3055_v10 = vmul.f32 0.044715, %v3051_v53 }
0x1c7d   :  { %v3064_v55 = vmul.f32 0.7978846, %v3060_v3  ;;  %v3061_v7 = vadd.f32 %v3057_v54, %v3039_v35 }
0x1c7e   :  { %v3062_v56 = vmul.f32 0.7978846, %v3058_v6  ;;  %v3059_v58 = vadd.f32 %v3055_v10, %v3031_v24 }
0x1c7f   :  { %3897 = vtanh.f32 %v3064_v55  ;;  %v3065_v59 = vmul.f32 0.7978846, %v3061_v7 }
0x1c80   :  { %3899 = vtanh.f32 %v3062_v56  ;;  %v3063_v62 = vmul.f32 0.7978846, %v3059_v58 }
0x1c81   :  { %3901 = vtanh.f32 %v3065_v59 }
0x1c82   :  { %3903 = vtanh.f32 %v3063_v62 }
0x1c89   :  { %v3898_v1 = vpop.eup %3897 }
0x1c8a   :  { %v3900_v11 = vpop.eup %3899  ;;  %v3072_v23 = vadd.f32 1.0, %v3898_v1 }
0x1c8b   :  { %v3902_v20 = vpop.eup %3901  ;;  %v3070_v50 = vadd.f32 1.0, %v3900_v11 }
0x1c8c   :  { %v3904_v2 = vpop.eup %3903  ;;  %v3073_v16 = vadd.f32 1.0, %v3902_v20  ;;  %v3076_v63 = vmul.f32 %v3072_v23, %v3044_v15 }
0x1c8d   :  { %v3071_v4 = vadd.f32 1.0, %v3904_v2  ;;  %v3074_v36 = vmul.f32 %v3070_v50, %v3042_v42 }
0x1c8e   :  { %v3077_v45 = vmul.f32 %v3073_v16, %v3045_v19 }
0x1c8f   :  { %v3075_v48 = vmul.f32 %v3071_v4, %v3043_v57 }
0x1c90   :  { %v3087_v8 = vpack.c.bf16 %v3077_v45, %v3076_v63 }
0x1c91   :  { %v3086_v9 = vpack.c.bf16 %v3075_v48, %v3074_v36 }
0x1c93   :  { %3636 = vmatprep.mubr.msk.bf16.mxu1 %vm3112_vm6, %v3086_v9 }
0x1c94   :  { %3637 = vmatmul.mubr.msk.bf16.vlgmr.msra.gmra.mrb[76].mxu1 %vm3112_vm6, %v3087_v8 }
0x1d67   :  { %v3638_v5 = vpop.f32.mrb[76].mxu1 }
0x1d68   :  { %v3170_v13 = vadd.f32 %v3638_v5, %v4857_v12  ;;  %v3153_v40 = vpop.f32.mrb[77].mxu1 }
0x1d69   :  { %v3168_v47 = vadd.f32 %v3153_v40, %v4854_v26  ;;  %v3639_v33 = vpop.f32.mrb[78].mxu1 }
0x1d6a   :  { %v3178_v60 = vadd.f32 %v3175_v38, %v3170_v13  ;;  %v3171_v49 = vadd.f32 %v3639_v33, %v4867_v44  ;;  %v3156_v27 = vpop.f32.mrb[79].mxu1 }
0x1d6b   :  { %v3176_v30 = vadd.f32 %v3175_v38, %v3168_v47  ;;  %v3169_v25 = vadd.f32 %v3156_v27, %v4860_v18 }
0x1d6c   :  { %3182 = vst.msk [vmem:[#allocation11 + $0x10] sm:$0xff] %vm129_vm0, %v3178_v60  ;;  %v3179_v61 = vadd.f32 %v3175_v38, %v3171_v49 }
0x1d6d   :  { %3180 = vst.msk [vmem:[#allocation11] sm:$0xff] %vm129_vm0, %v3176_v30  ;;  %v3177_v32 = vadd.f32 %v3175_v38, %v3169_v25 }
0x1d6e   :  { %3183 = vst.msk [vmem:[#allocation11 + $0x18] sm:$0xff] %vm129_vm0, %v3179_v61 }
0x1d6f   :  { %3181 = vst.msk [vmem:[#allocation11 + $0x8] sm:$0xff] %vm129_vm0, %v3177_v32 }
0x1d70   :  { %4034 = shalt.err (!%p4031_p2)
}
0x1d71   :  { %s4035_s26 = scalar_lea.hbm %s4941_s12, 512 }
0x1d72   :  { %p4036_p3 = scmp.ne.s32.totalorder %s4941_s12, %s4035_s26  ;;  %p4039_p4 = scmp.lt.u32.totalorder %s4035_s26, %s4941_s12 }
0x1d74   :  { %p4041_p5 = pnand %p4039_p4, %p4036_p3 }
0x1d76   :  { %4044 = shalt.err (!%p4041_p5)
}
0x1d77   :  { %3195 = dma.vmem_to_hbm [thread:$0]  %s3190_s11, 512, %s4941_s12, [#allocation4], %s4058_s6, %s4058_s6, %s4059_s18  }
0x1d78   :  { %4051 = dma.done.wait [#allocation4], 512  }
0x1d79   :  { %4052 = vsyncadd [#allocation4], 4294966784 }
0x1d7a   :  { %3199 = vsyncpa [#allocation3], 1 }
0x1d7b   :  { %3200 = vsyncpa [#allocation6], 1 }
0x1d7c   :  { %3201 = vsyncpa [#allocation9], 1 }
0x1d7d   :  { %3202 = vsyncpa [#allocation4], 1 }

</bundles_post_ra>
